<compile_context>
chip_gen: v7x
topology: tpu7x:2x2x1
jax: 0.10.0
libtpu: 0.0.40
codegen_flags: <defaults>
</compile_context>

<pallas_src>
import jax
import jax.numpy as jnp
from jax.experimental import pallas as pl
from jax.experimental.pallas import tpu as pltpu

KSIZE = 7
PAD = 3


def _make_kernel(C, H, W, TB, tc, num_chunks):
    HW = H * W
    inv_c = 1.0 / C
    has_partial = (C % tc) != 0

    def kernel(w_ref, x_ref, o_ref, sum_ref, max_ref, pool_ref, shift_ref):
        # w_ref    : SMEM (2*K*K,) f32     flattened conv weight [avg taps, max taps]
        # x_ref    : VMEM (TB, tc, HW)     current channel chunk, native dtype
        # o_ref    : VMEM (TB, 1, HW)      lane-dense output block
        # sum_ref  : VMEM (TB, HW) f32     running channel sum  (persists across c)
        # max_ref  : VMEM (TB, HW) f32     running channel max  (persists across c)
        # pool_ref : VMEM (2, Hp, Wp) f32  zero-padded pooled maps (per batch elt)
        # shift_ref: VMEM (2, K, Hp, W) f32 kx-shifted copies of padded pooled maps
        c = pl.program_id(1)

        # ---- vectorized chunk reduction (native dtype -> f32 in-kernel) -----
        xc = x_ref[...].astype(jnp.float32)                  # (TB, tc, HW)
        if has_partial:
            ch = jax.lax.broadcasted_iota(jnp.int32, xc.shape, 1)
            valid = (c * tc + ch) < C
            x_sum = jnp.where(valid, xc, 0.0)
            x_max = jnp.where(valid, xc, -jnp.inf)
        else:
            x_sum = xc
            x_max = xc
        chunk_sum = jnp.sum(x_sum, axis=1)                   # (TB, HW)
        chunk_max = jnp.max(x_max, axis=1)                   # (TB, HW)

        # ---- one accumulator update per grid step ----------------------------
        @pl.when(c == 0)
        def _():
            sum_ref[...] = chunk_sum
            max_ref[...] = chunk_max

        if num_chunks > 1:
            @pl.when(c > 0)
            def _():
                sum_ref[...] = sum_ref[...] + chunk_sum
                max_ref[...] = jnp.maximum(max_ref[...], chunk_max)

        # ---- finalize at the last chunk: pad, 7x7 conv, sigmoid, store -------
        @pl.when(c == num_chunks - 1)
        def _():
            # Zero the halo (scratch persists across grid steps / batches);
            # the interior is fully overwritten for every batch element below.
            pool_ref[...] = jnp.zeros_like(pool_ref)
            for tb in range(TB):
                # Unflatten the two pooled maps into the padded interior.
                for y in range(H):
                    pool_ref[0, PAD + y, pl.ds(PAD, W)] = (
                        sum_ref[tb, pl.ds(y * W, W)] * inv_c)        # mean
                    pool_ref[1, PAD + y, pl.ds(PAD, W)] = (
                        max_ref[tb, pl.ds(y * W, W)])                # max
                # Materialize the 7 lane-shifted copies of each padded plane
                # once; the conv loop then only does lane-aligned reads.
                for ci in range(2):
                    for kx in range(KSIZE):
                        shift_ref[ci, kx] = pool_ref[ci, :, pl.ds(kx, W)]
                # 7x7 conv: 98 statically-unrolled scalar-weighted accumulations
                # (static ky -> static sublane offsets, LLO-schedulable).
                acc = jnp.zeros((H, W), jnp.float32)
                for ky in range(KSIZE):
                    for ci in range(2):
                        base = ci * KSIZE * KSIZE + ky * KSIZE
                        for kx in range(KSIZE):
                            acc = acc + w_ref[base + kx] * shift_ref[
                                ci, kx, pl.ds(ky, H), :]
                res = jax.nn.sigmoid(acc).astype(o_ref.dtype)        # (H, W)
                # Lane-dense flattened store.
                for y in range(H):
                    o_ref[tb, 0, pl.ds(y * W, W)] = res[y]

    return kernel


def spatial_attention(x, weight, *, vmem_block_budget_bytes=4 * 1024 * 1024):
    """x: (B, C, H, W), weight: (1, 2, K, K) -> (B, 1, H, W) in x.dtype."""
    B, C, H, W = x.shape
    HW = H * W
    Hp, Wp = H + 2 * PAD, W + 2 * PAD

    w_flat = weight.astype(jnp.float32).reshape(-1)          # (2*K*K,)
    x_flat = x.reshape(B, C, HW)                             # free metadata reshape

    itemsize = jnp.dtype(x.dtype).itemsize
    plane_bytes = HW * itemsize
    slab_bytes = C * plane_bytes

    if slab_bytes <= vmem_block_budget_bytes:
        # Whole per-batch channel slab fits: single channel step; block
        # several batch elements per grid step to amortize step overhead.
        tc, num_chunks = C, 1
        tb_cap = min(B, 8, max(1, vmem_block_budget_bytes // slab_bytes))
        TB = max(d for d in range(1, tb_cap + 1) if B % d == 0)
    else:
        # Byte-budgeted channel chunks (multiple of 8; masked partial last chunk).
        TB = 1
        tc = max(8, (vmem_block_budget_bytes // plane_bytes) // 8 * 8)
        tc = min(tc, C)
        num_chunks = (C + tc - 1) // tc

    kernel = _make_kernel(C, H, W, TB, tc, num_chunks)

    out_flat = pl.pallas_call(
        kernel,
        out_shape=jax.ShapeDtypeStruct((B, 1, HW), x.dtype),
        grid=(B // TB, num_chunks),
        in_specs=[
            pl.BlockSpec(memory_space=pltpu.MemorySpace.SMEM),     # weights
            pl.BlockSpec((TB, tc, HW), lambda b, c: (b, c, 0)),    # x chunk
        ],
        out_specs=pl.BlockSpec((TB, 1, HW), lambda b, c: (b, 0, 0)),
        scratch_shapes=[
            pltpu.VMEM((TB, HW), jnp.float32),             # running channel sum
            pltpu.VMEM((TB, HW), jnp.float32),             # running channel max
            pltpu.VMEM((2, Hp, Wp), jnp.float32),          # padded pooled maps
            pltpu.VMEM((2, KSIZE, Hp, W), jnp.float32),    # kx-shifted copies
        ],
        compiler_params=pltpu.CompilerParams(
            dimension_semantics=("parallel", "arbitrary"),
            vmem_limit_bytes=32 * 1024 * 1024,
        ),
    )(w_flat, x_flat)

    return out_flat.reshape(B, 1, H, W)


def reference(x, weight):
    avg = jnp.mean(x, axis=1, keepdims=True)
    mx = jnp.max(x, axis=1, keepdims=True)
    cat = jnp.concatenate([avg, mx], axis=1)
    out = jax.lax.conv_general_dilated(
        cat, weight, window_strides=(1, 1),
        padding=[(PAD, PAD), (PAD, PAD)],
        dimension_numbers=("NCHW", "OIHW", "NCHW"))
    return jax.nn.sigmoid(out)


if __name__ == "__main__":
    key = jax.random.PRNGKey(0)
    kx, kw = jax.random.split(key)

    B, C, H, W = 2, 4, 16, 16
    x = jax.random.normal(kx, (B, C, H, W), dtype=jnp.float32)

    # Deterministic conv1 weight, shape (out=1, in=2, 7, 7), no bias
    # (kaiming-uniform-like bound, as in nn.Conv2d default init).
    fan_in = 2 * KSIZE * KSIZE
    bound = 1.0 / jnp.sqrt(jnp.float32(fan_in))
    weight = jax.random.uniform(kw, (1, 2, KSIZE, KSIZE),
                                minval=-bound, maxval=bound,
                                dtype=jnp.float32)

    out = jax.block_until_ready(spatial_attention(x, weight))
    ref = jax.block_until_ready(reference(x, weight))

    assert out.shape == (B, 1, H, W)
    assert jnp.allclose(out, ref, atol=1e-5, rtol=1e-5), (
        f"max err {jnp.max(jnp.abs(out - ref))}")
    print("KERNEL_OK")
</pallas_src>

<mosaic_0001>
module attributes {stable_mosaic.version = 11 : i64} {
  func.func @kernel(%arg0: i32, %arg1: i32, %arg2: memref<98xf32, #tpu.memory_space<smem>>, %arg3: memref<2x4x256xf32, #tpu.memory_space<vmem>>, %arg4: memref<2x1x256xf32, #tpu.memory_space<vmem>>, %arg5: memref<2x256xf32, #tpu.memory_space<vmem>>, %arg6: memref<2x256xf32, #tpu.memory_space<vmem>>, %arg7: memref<2x22x22xf32, #tpu.memory_space<vmem>>, %arg8: memref<2x7x22x16xf32, #tpu.memory_space<vmem>>) attributes {dimension_semantics = [#tpu.dimension_semantics<parallel>, #tpu.dimension_semantics<arbitrary>], iteration_bounds = array<i64: 1, 1>, scalar_prefetch = 0 : i64, scratch_operands = 4 : i64, tpu.core_type = #tpu.core_type<tc>, window_params = [{transform_indices = @transform_0, window_bounds = array<i64: 98>}, {transform_indices = @transform_1, window_bounds = array<i64: 2, 4, 256>}, {transform_indices = @transform_2, window_bounds = array<i64: 2, 1, 256>}]} {
    %c0 = arith.constant 0 : index
    %c0_0 = arith.constant 0 : index
    %c0_1 = arith.constant 0 : index
    %0 = vector.load %arg3[%c0, %c0_0, %c0_1] : memref<2x4x256xf32, #tpu.memory_space<vmem>>, vector<2x4x256xf32>
    %cst = arith.constant dense<0.000000e+00> : vector<2x256xf32>
    %1 = vector.multi_reduction <add>, %0, %cst [1] : vector<2x4x256xf32> to vector<2x256xf32>
    %cst_2 = arith.constant dense<0xFF800000> : vector<2x256xf32>
    %2 = vector.multi_reduction <maximumf>, %0, %cst_2 [1] : vector<2x4x256xf32> to vector<2x256xf32>
    %c0_i32 = arith.constant 0 : i32
    %3 = arith.cmpi eq, %arg1, %c0_i32 : i32
    %4 = arith.extui %3 : i1 to i32
    %c0_i32_3 = arith.constant 0 : i32
    %5 = arith.cmpi ne, %4, %c0_i32_3 : i32
    scf.if %5 {
      %c0_6 = arith.constant 0 : index
      %c0_7 = arith.constant 0 : index
      %9 = vector.load %arg5[%c0_6, %c0_7] : memref<2x256xf32, #tpu.memory_space<vmem>>, vector<2x256xf32>
      tpu.vector_store %arg5[%c0_6, %c0_7], %1 {strides = array<i32>} : memref<2x256xf32, #tpu.memory_space<vmem>>, vector<2x256xf32>,
      %c0_8 = arith.constant 0 : index
      %c0_9 = arith.constant 0 : index
      %10 = vector.load %arg6[%c0_8, %c0_9] : memref<2x256xf32, #tpu.memory_space<vmem>>, vector<2x256xf32>
      tpu.vector_store %arg6[%c0_8, %c0_9], %2 {strides = array<i32>} : memref<2x256xf32, #tpu.memory_space<vmem>>, vector<2x256xf32>,
    } else {
    }
    %c0_i32_4 = arith.constant 0 : i32
    %6 = arith.cmpi eq, %arg1, %c0_i32_4 : i32
    %7 = arith.extui %6 : i1 to i32
    %c0_i32_5 = arith.constant 0 : i32
    %8 = arith.cmpi ne, %7, %c0_i32_5 : i32
    scf.if %8 {
      %cst_6 = arith.constant 0.000000e+00 : f32
      %9 = vector.broadcast %cst_6 : f32 to vector<2x22x22xf32>
      %c0_7 = arith.constant 0 : index
      %c0_8 = arith.constant 0 : index
      %c0_9 = arith.constant 0 : index
      %10 = vector.load %arg7[%c0_7, %c0_8, %c0_9] : memref<2x22x22xf32, #tpu.memory_space<vmem>>, vector<2x22x22xf32>
      tpu.vector_store %arg7[%c0_7, %c0_8, %c0_9], %9 {strides = array<i32>} : memref<2x22x22xf32, #tpu.memory_space<vmem>>, vector<2x22x22xf32>,
      %c0_10 = arith.constant 0 : index
      %c0_11 = arith.constant 0 : index
      %11 = vector.load %arg5[%c0_10, %c0_11] : memref<2x256xf32, #tpu.memory_space<vmem>>, vector<1x16xf32>
      %12 = vector.shape_cast %11 : vector<1x16xf32> to vector<16xf32>
      %cst_12 = arith.constant 2.500000e-01 : f32
      %13 = vector.broadcast %cst_12 : f32 to vector<16xf32>
      %14 = arith.mulf %12, %13 : vector<16xf32>
      %c0_13 = arith.constant 0 : index
      %c3 = arith.constant 3 : index
      %c3_14 = arith.constant 3 : index
      %15 = vector.load %arg7[%c0_13, %c3, %c3_14] : memref<2x22x22xf32, #tpu.memory_space<vmem>>, vector<1x1x16xf32>
      %16 = vector.shape_cast %15 : vector<1x1x16xf32> to vector<16xf32>
      %17 = vector.shape_cast %14 : vector<16xf32> to vector<1x1x16xf32>
      tpu.vector_store %arg7[%c0_13, %c3, %c3_14], %17 {strides = array<i32>} : memref<2x22x22xf32, #tpu.memory_space<vmem>>, vector<1x1x16xf32>,
      %c0_15 = arith.constant 0 : index
      %c0_16 = arith.constant 0 : index
      %18 = vector.load %arg6[%c0_15, %c0_16] : memref<2x256xf32, #tpu.memory_space<vmem>>, vector<1x16xf32>
      %19 = vector.shape_cast %18 : vector<1x16xf32> to vector<16xf32>
      %c1 = arith.constant 1 : index
      %c3_17 = arith.constant 3 : index
      %c3_18 = arith.constant 3 : index
      %20 = vector.load %arg7[%c1, %c3_17, %c3_18] : memref<2x22x22xf32, #tpu.memory_space<vmem>>, vector<1x1x16xf32>
      %21 = vector.shape_cast %20 : vector<1x1x16xf32> to vector<16xf32>
      %22 = vector.shape_cast %19 : vector<16xf32> to vector<1x1x16xf32>
      tpu.vector_store %arg7[%c1, %c3_17, %c3_18], %22 {strides = array<i32>} : memref<2x22x22xf32, #tpu.memory_space<vmem>>, vector<1x1x16xf32>,
      %c0_19 = arith.constant 0 : index
      %c16 = arith.constant 16 : index
      %23 = vector.load %arg5[%c0_19, %c16] : memref<2x256xf32, #tpu.memory_space<vmem>>, vector<1x16xf32>
      %24 = vector.shape_cast %23 : vector<1x16xf32> to vector<16xf32>
      %cst_20 = arith.constant 2.500000e-01 : f32
      %25 = vector.broadcast %cst_20 : f32 to vector<16xf32>
      %26 = arith.mulf %24, %25 : vector<16xf32>
      %c0_21 = arith.constant 0 : index
      %c4 = arith.constant 4 : index
      %c3_22 = arith.constant 3 : index
      %27 = vector.load %arg7[%c0_21, %c4, %c3_22] : memref<2x22x22xf32, #tpu.memory_space<vmem>>, vector<1x1x16xf32>
      %28 = vector.shape_cast %27 : vector<1x1x16xf32> to vector<16xf32>
      %29 = vector.shape_cast %26 : vector<16xf32> to vector<1x1x16xf32>
      tpu.vector_store %arg7[%c0_21, %c4, %c3_22], %29 {strides = array<i32>} : memref<2x22x22xf32, #tpu.memory_space<vmem>>, vector<1x1x16xf32>,
      %c0_23 = arith.constant 0 : index
      %c16_24 = arith.constant 16 : index
      %30 = vector.load %arg6[%c0_23, %c16_24] : memref<2x256xf32, #tpu.memory_space<vmem>>, vector<1x16xf32>
      %31 = vector.shape_cast %30 : vector<1x16xf32> to vector<16xf32>
      %c1_25 = arith.constant 1 : index
      %c4_26 = arith.constant 4 : index
      %c3_27 = arith.constant 3 : index
      %32 = vector.load %arg7[%c1_25, %c4_26, %c3_27] : memref<2x22x22xf32, #tpu.memory_space<vmem>>, vector<1x1x16xf32>
      %33 = vector.shape_cast %32 : vector<1x1x16xf32> to vector<16xf32>
      %34 = vector.shape_cast %31 : vector<16xf32> to vector<1x1x16xf32>
      tpu.vector_store %arg7[%c1_25, %c4_26, %c3_27], %34 {strides = array<i32>} : memref<2x22x22xf32, #tpu.memory_space<vmem>>, vector<1x1x16xf32>,
      %c0_28 = arith.constant 0 : index
      %c32 = arith.constant 32 : index
      %35 = vector.load %arg5[%c0_28, %c32] : memref<2x256xf32, #tpu.memory_space<vmem>>, vector<1x16xf32>
      %36 = vector.shape_cast %35 : vector<1x16xf32> to vector<16xf32>
      %cst_29 = arith.constant 2.500000e-01 : f32
      %37 = vector.broadcast %cst_29 : f32 to vector<16xf32>
      %38 = arith.mulf %36, %37 : vector<16xf32>
      %c0_30 = arith.constant 0 : index
      %c5 = arith.constant 5 : index
      %c3_31 = arith.constant 3 : index
      %39 = vector.load %arg7[%c0_30, %c5, %c3_31] : memref<2x22x22xf32, #tpu.memory_space<vmem>>, vector<1x1x16xf32>
      %40 = vector.shape_cast %39 : vector<1x1x16xf32> to vector<16xf32>
      %41 = vector.shape_cast %38 : vector<16xf32> to vector<1x1x16xf32>
      tpu.vector_store %arg7[%c0_30, %c5, %c3_31], %41 {strides = array<i32>} : memref<2x22x22xf32, #tpu.memory_space<vmem>>, vector<1x1x16xf32>,
      %c0_32 = arith.constant 0 : index
      %c32_33 = arith.constant 32 : index
      %42 = vector.load %arg6[%c0_32, %c32_33] : memref<2x256xf32, #tpu.memory_space<vmem>>, vector<1x16xf32>
      %43 = vector.shape_cast %42 : vector<1x16xf32> to vector<16xf32>
      %c1_34 = arith.constant 1 : index
      %c5_35 = arith.constant 5 : index
      %c3_36 = arith.constant 3 : index
      %44 = vector.load %arg7[%c1_34, %c5_35, %c3_36] : memref<2x22x22xf32, #tpu.memory_space<vmem>>, vector<1x1x16xf32>
      %45 = vector.shape_cast %44 : vector<1x1x16xf32> to vector<16xf32>
      %46 = vector.shape_cast %43 : vector<16xf32> to vector<1x1x16xf32>
      tpu.vector_store %arg7[%c1_34, %c5_35, %c3_36], %46 {strides = array<i32>} : memref<2x22x22xf32, #tpu.memory_space<vmem>>, vector<1x1x16xf32>,
      %c0_37 = arith.constant 0 : index
      %c48 = arith.constant 48 : index
      %47 = vector.load %arg5[%c0_37, %c48] : memref<2x256xf32, #tpu.memory_space<vmem>>, vector<1x16xf32>
      %48 = vector.shape_cast %47 : vector<1x16xf32> to vector<16xf32>
      %cst_38 = arith.constant 2.500000e-01 : f32
      %49 = vector.broadcast %cst_38 : f32 to vector<16xf32>
      %50 = arith.mulf %48, %49 : vector<16xf32>
      %c0_39 = arith.constant 0 : index
      %c6 = arith.constant 6 : index
      %c3_40 = arith.constant 3 : index
      %51 = vector.load %arg7[%c0_39, %c6, %c3_40] : memref<2x22x22xf32, #tpu.memory_space<vmem>>, vector<1x1x16xf32>
      %52 = vector.shape_cast %51 : vector<1x1x16xf32> to vector<16xf32>
      %53 = vector.shape_cast %50 : vector<16xf32> to vector<1x1x16xf32>
      tpu.vector_store %arg7[%c0_39, %c6, %c3_40], %53 {strides = array<i32>} : memref<2x22x22xf32, #tpu.memory_space<vmem>>, vector<1x1x16xf32>,
      %c0_41 = arith.constant 0 : index
      %c48_42 = arith.constant 48 : index
      %54 = vector.load %arg6[%c0_41, %c48_42] : memref<2x256xf32, #tpu.memory_space<vmem>>, vector<1x16xf32>
      %55 = vector.shape_cast %54 : vector<1x16xf32> to vector<16xf32>
      %c1_43 = arith.constant 1 : index
      %c6_44 = arith.constant 6 : index
      %c3_45 = arith.constant 3 : index
      %56 = vector.load %arg7[%c1_43, %c6_44, %c3_45] : memref<2x22x22xf32, #tpu.memory_space<vmem>>, vector<1x1x16xf32>
      %57 = vector.shape_cast %56 : vector<1x1x16xf32> to vector<16xf32>
      %58 = vector.shape_cast %55 : vector<16xf32> to vector<1x1x16xf32>
      tpu.vector_store %arg7[%c1_43, %c6_44, %c3_45], %58 {strides = array<i32>} : memref<2x22x22xf32, #tpu.memory_space<vmem>>, vector<1x1x16xf32>,
      %c0_46 = arith.constant 0 : index
      %c64 = arith.constant 64 : index
      %59 = vector.load %arg5[%c0_46, %c64] : memref<2x256xf32, #tpu.memory_space<vmem>>, vector<1x16xf32>
      %60 = vector.shape_cast %59 : vector<1x16xf32> to vector<16xf32>
      %cst_47 = arith.constant 2.500000e-01 : f32
      %61 = vector.broadcast %cst_47 : f32 to vector<16xf32>
      %62 = arith.mulf %60, %61 : vector<16xf32>
      %c0_48 = arith.constant 0 : index
      %c7 = arith.constant 7 : index
      %c3_49 = arith.constant 3 : index
      %63 = vector.load %arg7[%c0_48, %c7, %c3_49] : memref<2x22x22xf32, #tpu.memory_space<vmem>>, vector<1x1x16xf32>
      %64 = vector.shape_cast %63 : vector<1x1x16xf32> to vector<16xf32>
      %65 = vector.shape_cast %62 : vector<16xf32> to vector<1x1x16xf32>
      tpu.vector_store %arg7[%c0_48, %c7, %c3_49], %65 {strides = array<i32>} : memref<2x22x22xf32, #tpu.memory_space<vmem>>, vector<1x1x16xf32>,
      %c0_50 = arith.constant 0 : index
      %c64_51 = arith.constant 64 : index
      %66 = vector.load %arg6[%c0_50, %c64_51] : memref<2x256xf32, #tpu.memory_space<vmem>>, vector<1x16xf32>
      %67 = vector.shape_cast %66 : vector<1x16xf32> to vector<16xf32>
      %c1_52 = arith.constant 1 : index
      %c7_53 = arith.constant 7 : index
      %c3_54 = arith.constant 3 : index
      %68 = vector.load %arg7[%c1_52, %c7_53, %c3_54] : memref<2x22x22xf32, #tpu.memory_space<vmem>>, vector<1x1x16xf32>
      %69 = vector.shape_cast %68 : vector<1x1x16xf32> to vector<16xf32>
      %70 = vector.shape_cast %67 : vector<16xf32> to vector<1x1x16xf32>
      tpu.vector_store %arg7[%c1_52, %c7_53, %c3_54], %70 {strides = array<i32>} : memref<2x22x22xf32, #tpu.memory_space<vmem>>, vector<1x1x16xf32>,
      %c0_55 = arith.constant 0 : index
      %c80 = arith.constant 80 : index
      %71 = vector.load %arg5[%c0_55, %c80] : memref<2x256xf32, #tpu.memory_space<vmem>>, vector<1x16xf32>
      %72 = vector.shape_cast %71 : vector<1x16xf32> to vector<16xf32>
      %cst_56 = arith.constant 2.500000e-01 : f32
      %73 = vector.broadcast %cst_56 : f32 to vector<16xf32>
      %74 = arith.mulf %72, %73 : vector<16xf32>
      %c0_57 = arith.constant 0 : index
      %c8 = arith.constant 8 : index
      %c3_58 = arith.constant 3 : index
      %75 = vector.load %arg7[%c0_57, %c8, %c3_58] : memref<2x22x22xf32, #tpu.memory_space<vmem>>, vector<1x1x16xf32>
      %76 = vector.shape_cast %75 : vector<1x1x16xf32> to vector<16xf32>
      %77 = vector.shape_cast %74 : vector<16xf32> to vector<1x1x16xf32>
      tpu.vector_store %arg7[%c0_57, %c8, %c3_58], %77 {strides = array<i32>} : memref<2x22x22xf32, #tpu.memory_space<vmem>>, vector<1x1x16xf32>,
      %c0_59 = arith.constant 0 : index
      %c80_60 = arith.constant 80 : index
      %78 = vector.load %arg6[%c0_59, %c80_60] : memref<2x256xf32, #tpu.memory_space<vmem>>, vector<1x16xf32>
      %79 = vector.shape_cast %78 : vector<1x16xf32> to vector<16xf32>
      %c1_61 = arith.constant 1 : index
      %c8_62 = arith.constant 8 : index
      %c3_63 = arith.constant 3 : index
      %80 = vector.load %arg7[%c1_61, %c8_62, %c3_63] : memref<2x22x22xf32, #tpu.memory_space<vmem>>, vector<1x1x16xf32>
      %81 = vector.shape_cast %80 : vector<1x1x16xf32> to vector<16xf32>
      %82 = vector.shape_cast %79 : vector<16xf32> to vector<1x1x16xf32>
      tpu.vector_store %arg7[%c1_61, %c8_62, %c3_63], %82 {strides = array<i32>} : memref<2x22x22xf32, #tpu.memory_space<vmem>>, vector<1x1x16xf32>,
      %c0_64 = arith.constant 0 : index
      %c96 = arith.constant 96 : index
      %83 = vector.load %arg5[%c0_64, %c96] : memref<2x256xf32, #tpu.memory_space<vmem>>, vector<1x16xf32>
      %84 = vector.shape_cast %83 : vector<1x16xf32> to vector<16xf32>
      %cst_65 = arith.constant 2.500000e-01 : f32
      %85 = vector.broadcast %cst_65 : f32 to vector<16xf32>
      %86 = arith.mulf %84, %85 : vector<16xf32>
      %c0_66 = arith.constant 0 : index
      %c9 = arith.constant 9 : index
      %c3_67 = arith.constant 3 : index
      %87 = vector.load %arg7[%c0_66, %c9, %c3_67] : memref<2x22x22xf32, #tpu.memory_space<vmem>>, vector<1x1x16xf32>
      %88 = vector.shape_cast %87 : vector<1x1x16xf32> to vector<16xf32>
      %89 = vector.shape_cast %86 : vector<16xf32> to vector<1x1x16xf32>
      tpu.vector_store %arg7[%c0_66, %c9, %c3_67], %89 {strides = array<i32>} : memref<2x22x22xf32, #tpu.memory_space<vmem>>, vector<1x1x16xf32>,
      %c0_68 = arith.constant 0 : index
      %c96_69 = arith.constant 96 : index
      %90 = vector.load %arg6[%c0_68, %c96_69] : memref<2x256xf32, #tpu.memory_space<vmem>>, vector<1x16xf32>
      %91 = vector.shape_cast %90 : vector<1x16xf32> to vector<16xf32>
      %c1_70 = arith.constant 1 : index
      %c9_71 = arith.constant 9 : index
      %c3_72 = arith.constant 3 : index
      %92 = vector.load %arg7[%c1_70, %c9_71, %c3_72] : memref<2x22x22xf32, #tpu.memory_space<vmem>>, vector<1x1x16xf32>
      %93 = vector.shape_cast %92 : vector<1x1x16xf32> to vector<16xf32>
      %94 = vector.shape_cast %91 : vector<16xf32> to vector<1x1x16xf32>
      tpu.vector_store %arg7[%c1_70, %c9_71, %c3_72], %94 {strides = array<i32>} : memref<2x22x22xf32, #tpu.memory_space<vmem>>, vector<1x1x16xf32>,
      %c0_73 = arith.constant 0 : index
      %c112 = arith.constant 112 : index
      %95 = vector.load %arg5[%c0_73, %c112] : memref<2x256xf32, #tpu.memory_space<vmem>>, vector<1x16xf32>
      %96 = vector.shape_cast %95 : vector<1x16xf32> to vector<16xf32>
      %cst_74 = arith.constant 2.500000e-01 : f32
      %97 = vector.broadcast %cst_74 : f32 to vector<16xf32>
      %98 = arith.mulf %96, %97 : vector<16xf32>
      %c0_75 = arith.constant 0 : index
      %c10 = arith.constant 10 : index
      %c3_76 = arith.constant 3 : index
      %99 = vector.load %arg7[%c0_75, %c10, %c3_76] : memref<2x22x22xf32, #tpu.memory_space<vmem>>, vector<1x1x16xf32>
      %100 = vector.shape_cast %99 : vector<1x1x16xf32> to vector<16xf32>
      %101 = vector.shape_cast %98 : vector<16xf32> to vector<1x1x16xf32>
      tpu.vector_store %arg7[%c0_75, %c10, %c3_76], %101 {strides = array<i32>} : memref<2x22x22xf32, #tpu.memory_space<vmem>>, vector<1x1x16xf32>,
      %c0_77 = arith.constant 0 : index
      %c112_78 = arith.constant 112 : index
      %102 = vector.load %arg6[%c0_77, %c112_78] : memref<2x256xf32, #tpu.memory_space<vmem>>, vector<1x16xf32>
      %103 = vector.shape_cast %102 : vector<1x16xf32> to vector<16xf32>
      %c1_79 = arith.constant 1 : index
      %c10_80 = arith.constant 10 : index
      %c3_81 = arith.constant 3 : index
      %104 = vector.load %arg7[%c1_79, %c10_80, %c3_81] : memref<2x22x22xf32, #tpu.memory_space<vmem>>, vector<1x1x16xf32>
      %105 = vector.shape_cast %104 : vector<1x1x16xf32> to vector<16xf32>
      %106 = vector.shape_cast %103 : vector<16xf32> to vector<1x1x16xf32>
      tpu.vector_store %arg7[%c1_79, %c10_80, %c3_81], %106 {strides = array<i32>} : memref<2x22x22xf32, #tpu.memory_space<vmem>>, vector<1x1x16xf32>,
      %c0_82 = arith.constant 0 : index
      %c128 = arith.constant 128 : index
      %107 = vector.load %arg5[%c0_82, %c128] : memref<2x256xf32, #tpu.memory_space<vmem>>, vector<1x16xf32>
      %108 = vector.shape_cast %107 : vector<1x16xf32> to vector<16xf32>
      %cst_83 = arith.constant 2.500000e-01 : f32
      %109 = vector.broadcast %cst_83 : f32 to vector<16xf32>
      %110 = arith.mulf %108, %109 : vector<16xf32>
      %c0_84 = arith.constant 0 : index
      %c11 = arith.constant 11 : index
      %c3_85 = arith.constant 3 : index
      %111 = vector.load %arg7[%c0_84, %c11, %c3_85] : memref<2x22x22xf32, #tpu.memory_space<vmem>>, vector<1x1x16xf32>
      %112 = vector.shape_cast %111 : vector<1x1x16xf32> to vector<16xf32>
      %113 = vector.shape_cast %110 : vector<16xf32> to vector<1x1x16xf32>
      tpu.vector_store %arg7[%c0_84, %c11, %c3_85], %113 {strides = array<i32>} : memref<2x22x22xf32, #tpu.memory_space<vmem>>, vector<1x1x16xf32>,
      %c0_86 = arith.constant 0 : index
      %c128_87 = arith.constant 128 : index
      %114 = vector.load %arg6[%c0_86, %c128_87] : memref<2x256xf32, #tpu.memory_space<vmem>>, vector<1x16xf32>
      %115 = vector.shape_cast %114 : vector<1x16xf32> to vector<16xf32>
      %c1_88 = arith.constant 1 : index
      %c11_89 = arith.constant 11 : index
      %c3_90 = arith.constant 3 : index
      %116 = vector.load %arg7[%c1_88, %c11_89, %c3_90] : memref<2x22x22xf32, #tpu.memory_space<vmem>>, vector<1x1x16xf32>
      %117 = vector.shape_cast %116 : vector<1x1x16xf32> to vector<16xf32>
      %118 = vector.shape_cast %115 : vector<16xf32> to vector<1x1x16xf32>
      tpu.vector_store %arg7[%c1_88, %c11_89, %c3_90], %118 {strides = array<i32>} : memref<2x22x22xf32, #tpu.memory_space<vmem>>, vector<1x1x16xf32>,
      %c0_91 = arith.constant 0 : index
      %c144 = arith.constant 144 : index
      %119 = vector.load %arg5[%c0_91, %c144] : memref<2x256xf32, #tpu.memory_space<vmem>>, vector<1x16xf32>
      %120 = vector.shape_cast %119 : vector<1x16xf32> to vector<16xf32>
      %cst_92 = arith.constant 2.500000e-01 : f32
      %121 = vector.broadcast %cst_92 : f32 to vector<16xf32>
      %122 = arith.mulf %120, %121 : vector<16xf32>
      %c0_93 = arith.constant 0 : index
      %c12 = arith.constant 12 : index
      %c3_94 = arith.constant 3 : index
      %123 = vector.load %arg7[%c0_93, %c12, %c3_94] : memref<2x22x22xf32, #tpu.memory_space<vmem>>, vector<1x1x16xf32>
      %124 = vector.shape_cast %123 : vector<1x1x16xf32> to vector<16xf32>
      %125 = vector.shape_cast %122 : vector<16xf32> to vector<1x1x16xf32>
      tpu.vector_store %arg7[%c0_93, %c12, %c3_94], %125 {strides = array<i32>} : memref<2x22x22xf32, #tpu.memory_space<vmem>>, vector<1x1x16xf32>,
      %c0_95 = arith.constant 0 : index
      %c144_96 = arith.constant 144 : index
      %126 = vector.load %arg6[%c0_95, %c144_96] : memref<2x256xf32, #tpu.memory_space<vmem>>, vector<1x16xf32>
      %127 = vector.shape_cast %126 : vector<1x16xf32> to vector<16xf32>
      %c1_97 = arith.constant 1 : index
      %c12_98 = arith.constant 12 : index
      %c3_99 = arith.constant 3 : index
      %128 = vector.load %arg7[%c1_97, %c12_98, %c3_99] : memref<2x22x22xf32, #tpu.memory_space<vmem>>, vector<1x1x16xf32>
      %129 = vector.shape_cast %128 : vector<1x1x16xf32> to vector<16xf32>
      %130 = vector.shape_cast %127 : vector<16xf32> to vector<1x1x16xf32>
      tpu.vector_store %arg7[%c1_97, %c12_98, %c3_99], %130 {strides = array<i32>} : memref<2x22x22xf32, #tpu.memory_space<vmem>>, vector<1x1x16xf32>,
      %c0_100 = arith.constant 0 : index
      %c160 = arith.constant 160 : index
      %131 = vector.load %arg5[%c0_100, %c160] : memref<2x256xf32, #tpu.memory_space<vmem>>, vector<1x16xf32>
      %132 = vector.shape_cast %131 : vector<1x16xf32> to vector<16xf32>
      %cst_101 = arith.constant 2.500000e-01 : f32
      %133 = vector.broadcast %cst_101 : f32 to vector<16xf32>
      %134 = arith.mulf %132, %133 : vector<16xf32>
      %c0_102 = arith.constant 0 : index
      %c13 = arith.constant 13 : index
      %c3_103 = arith.constant 3 : index
      %135 = vector.load %arg7[%c0_102, %c13, %c3_103] : memref<2x22x22xf32, #tpu.memory_space<vmem>>, vector<1x1x16xf32>
      %136 = vector.shape_cast %135 : vector<1x1x16xf32> to vector<16xf32>
      %137 = vector.shape_cast %134 : vector<16xf32> to vector<1x1x16xf32>
      tpu.vector_store %arg7[%c0_102, %c13, %c3_103], %137 {strides = array<i32>} : memref<2x22x22xf32, #tpu.memory_space<vmem>>, vector<1x1x16xf32>,
      %c0_104 = arith.constant 0 : index
      %c160_105 = arith.constant 160 : index
      %138 = vector.load %arg6[%c0_104, %c160_105] : memref<2x256xf32, #tpu.memory_space<vmem>>, vector<1x16xf32>
      %139 = vector.shape_cast %138 : vector<1x16xf32> to vector<16xf32>
      %c1_106 = arith.constant 1 : index
      %c13_107 = arith.constant 13 : index
      %c3_108 = arith.constant 3 : index
      %140 = vector.load %arg7[%c1_106, %c13_107, %c3_108] : memref<2x22x22xf32, #tpu.memory_space<vmem>>, vector<1x1x16xf32>
      %141 = vector.shape_cast %140 : vector<1x1x16xf32> to vector<16xf32>
      %142 = vector.shape_cast %139 : vector<16xf32> to vector<1x1x16xf32>
      tpu.vector_store %arg7[%c1_106, %c13_107, %c3_108], %142 {strides = array<i32>} : memref<2x22x22xf32, #tpu.memory_space<vmem>>, vector<1x1x16xf32>,
      %c0_109 = arith.constant 0 : index
      %c176 = arith.constant 176 : index
      %143 = vector.load %arg5[%c0_109, %c176] : memref<2x256xf32, #tpu.memory_space<vmem>>, vector<1x16xf32>
      %144 = vector.shape_cast %143 : vector<1x16xf32> to vector<16xf32>
      %cst_110 = arith.constant 2.500000e-01 : f32
      %145 = vector.broadcast %cst_110 : f32 to vector<16xf32>
      %146 = arith.mulf %144, %145 : vector<16xf32>
      %c0_111 = arith.constant 0 : index
      %c14 = arith.constant 14 : index
      %c3_112 = arith.constant 3 : index
      %147 = vector.load %arg7[%c0_111, %c14, %c3_112] : memref<2x22x22xf32, #tpu.memory_space<vmem>>, vector<1x1x16xf32>
      %148 = vector.shape_cast %147 : vector<1x1x16xf32> to vector<16xf32>
      %149 = vector.shape_cast %146 : vector<16xf32> to vector<1x1x16xf32>
      tpu.vector_store %arg7[%c0_111, %c14, %c3_112], %149 {strides = array<i32>} : memref<2x22x22xf32, #tpu.memory_space<vmem>>, vector<1x1x16xf32>,
      %c0_113 = arith.constant 0 : index
      %c176_114 = arith.constant 176 : index
      %150 = vector.load %arg6[%c0_113, %c176_114] : memref<2x256xf32, #tpu.memory_space<vmem>>, vector<1x16xf32>
      %151 = vector.shape_cast %150 : vector<1x16xf32> to vector<16xf32>
      %c1_115 = arith.constant 1 : index
      %c14_116 = arith.constant 14 : index
      %c3_117 = arith.constant 3 : index
      %152 = vector.load %arg7[%c1_115, %c14_116, %c3_117] : memref<2x22x22xf32, #tpu.memory_space<vmem>>, vector<1x1x16xf32>
      %153 = vector.shape_cast %152 : vector<1x1x16xf32> to vector<16xf32>
      %154 = vector.shape_cast %151 : vector<16xf32> to vector<1x1x16xf32>
      tpu.vector_store %arg7[%c1_115, %c14_116, %c3_117], %154 {strides = array<i32>} : memref<2x22x22xf32, #tpu.memory_space<vmem>>, vector<1x1x16xf32>,
      %c0_118 = arith.constant 0 : index
      %c192 = arith.constant 192 : index
      %155 = vector.load %arg5[%c0_118, %c192] : memref<2x256xf32, #tpu.memory_space<vmem>>, vector<1x16xf32>
      %156 = vector.shape_cast %155 : vector<1x16xf32> to vector<16xf32>
      %cst_119 = arith.constant 2.500000e-01 : f32
      %157 = vector.broadcast %cst_119 : f32 to vector<16xf32>
      %158 = arith.mulf %156, %157 : vector<16xf32>
      %c0_120 = arith.constant 0 : index
      %c15 = arith.constant 15 : index
      %c3_121 = arith.constant 3 : index
      %159 = vector.load %arg7[%c0_120, %c15, %c3_121] : memref<2x22x22xf32, #tpu.memory_space<vmem>>, vector<1x1x16xf32>
      %160 = vector.shape_cast %159 : vector<1x1x16xf32> to vector<16xf32>
      %161 = vector.shape_cast %158 : vector<16xf32> to vector<1x1x16xf32>
      tpu.vector_store %arg7[%c0_120, %c15, %c3_121], %161 {strides = array<i32>} : memref<2x22x22xf32, #tpu.memory_space<vmem>>, vector<1x1x16xf32>,
      %c0_122 = arith.constant 0 : index
      %c192_123 = arith.constant 192 : index
      %162 = vector.load %arg6[%c0_122, %c192_123] : memref<2x256xf32, #tpu.memory_space<vmem>>, vector<1x16xf32>
      %163 = vector.shape_cast %162 : vector<1x16xf32> to vector<16xf32>
      %c1_124 = arith.constant 1 : index
      %c15_125 = arith.constant 15 : index
      %c3_126 = arith.constant 3 : index
      %164 = vector.load %arg7[%c1_124, %c15_125, %c3_126] : memref<2x22x22xf32, #tpu.memory_space<vmem>>, vector<1x1x16xf32>
      %165 = vector.shape_cast %164 : vector<1x1x16xf32> to vector<16xf32>
      %166 = vector.shape_cast %163 : vector<16xf32> to vector<1x1x16xf32>
      tpu.vector_store %arg7[%c1_124, %c15_125, %c3_126], %166 {strides = array<i32>} : memref<2x22x22xf32, #tpu.memory_space<vmem>>, vector<1x1x16xf32>,
      %c0_127 = arith.constant 0 : index
      %c208 = arith.constant 208 : index
      %167 = vector.load %arg5[%c0_127, %c208] : memref<2x256xf32, #tpu.memory_space<vmem>>, vector<1x16xf32>
      %168 = vector.shape_cast %167 : vector<1x16xf32> to vector<16xf32>
      %cst_128 = arith.constant 2.500000e-01 : f32
      %169 = vector.broadcast %cst_128 : f32 to vector<16xf32>
      %170 = arith.mulf %168, %169 : vector<16xf32>
      %c0_129 = arith.constant 0 : index
      %c16_130 = arith.constant 16 : index
      %c3_131 = arith.constant 3 : index
      %171 = vector.load %arg7[%c0_129, %c16_130, %c3_131] : memref<2x22x22xf32, #tpu.memory_space<vmem>>, vector<1x1x16xf32>
      %172 = vector.shape_cast %171 : vector<1x1x16xf32> to vector<16xf32>
      %173 = vector.shape_cast %170 : vector<16xf32> to vector<1x1x16xf32>
      tpu.vector_store %arg7[%c0_129, %c16_130, %c3_131], %173 {strides = array<i32>} : memref<2x22x22xf32, #tpu.memory_space<vmem>>, vector<1x1x16xf32>,
      %c0_132 = arith.constant 0 : index
      %c208_133 = arith.constant 208 : index
      %174 = vector.load %arg6[%c0_132, %c208_133] : memref<2x256xf32, #tpu.memory_space<vmem>>, vector<1x16xf32>
      %175 = vector.shape_cast %174 : vector<1x16xf32> to vector<16xf32>
      %c1_134 = arith.constant 1 : index
      %c16_135 = arith.constant 16 : index
      %c3_136 = arith.constant 3 : index
      %176 = vector.load %arg7[%c1_134, %c16_135, %c3_136] : memref<2x22x22xf32, #tpu.memory_space<vmem>>, vector<1x1x16xf32>
      %177 = vector.shape_cast %176 : vector<1x1x16xf32> to vector<16xf32>
      %178 = vector.shape_cast %175 : vector<16xf32> to vector<1x1x16xf32>
      tpu.vector_store %arg7[%c1_134, %c16_135, %c3_136], %178 {strides = array<i32>} : memref<2x22x22xf32, #tpu.memory_space<vmem>>, vector<1x1x16xf32>,
      %c0_137 = arith.constant 0 : index
      %c224 = arith.constant 224 : index
      %179 = vector.load %arg5[%c0_137, %c224] : memref<2x256xf32, #tpu.memory_space<vmem>>, vector<1x16xf32>
      %180 = vector.shape_cast %179 : vector<1x16xf32> to vector<16xf32>
      %cst_138 = arith.constant 2.500000e-01 : f32
      %181 = vector.broadcast %cst_138 : f32 to vector<16xf32>
      %182 = arith.mulf %180, %181 : vector<16xf32>
      %c0_139 = arith.constant 0 : index
      %c17 = arith.constant 17 : index
      %c3_140 = arith.constant 3 : index
      %183 = vector.load %arg7[%c0_139, %c17, %c3_140] : memref<2x22x22xf32, #tpu.memory_space<vmem>>, vector<1x1x16xf32>
      %184 = vector.shape_cast %183 : vector<1x1x16xf32> to vector<16xf32>
      %185 = vector.shape_cast %182 : vector<16xf32> to vector<1x1x16xf32>
      tpu.vector_store %arg7[%c0_139, %c17, %c3_140], %185 {strides = array<i32>} : memref<2x22x22xf32, #tpu.memory_space<vmem>>, vector<1x1x16xf32>,
      %c0_141 = arith.constant 0 : index
      %c224_142 = arith.constant 224 : index
      %186 = vector.load %arg6[%c0_141, %c224_142] : memref<2x256xf32, #tpu.memory_space<vmem>>, vector<1x16xf32>
      %187 = vector.shape_cast %186 : vector<1x16xf32> to vector<16xf32>
      %c1_143 = arith.constant 1 : index
      %c17_144 = arith.constant 17 : index
      %c3_145 = arith.constant 3 : index
      %188 = vector.load %arg7[%c1_143, %c17_144, %c3_145] : memref<2x22x22xf32, #tpu.memory_space<vmem>>, vector<1x1x16xf32>
      %189 = vector.shape_cast %188 : vector<1x1x16xf32> to vector<16xf32>
      %190 = vector.shape_cast %187 : vector<16xf32> to vector<1x1x16xf32>
      tpu.vector_store %arg7[%c1_143, %c17_144, %c3_145], %190 {strides = array<i32>} : memref<2x22x22xf32, #tpu.memory_space<vmem>>, vector<1x1x16xf32>,
      %c0_146 = arith.constant 0 : index
      %c240 = arith.constant 240 : index
      %191 = vector.load %arg5[%c0_146, %c240] : memref<2x256xf32, #tpu.memory_space<vmem>>, vector<1x16xf32>
      %192 = vector.shape_cast %191 : vector<1x16xf32> to vector<16xf32>
      %cst_147 = arith.constant 2.500000e-01 : f32
      %193 = vector.broadcast %cst_147 : f32 to vector<16xf32>
      %194 = arith.mulf %192, %193 : vector<16xf32>
      %c0_148 = arith.constant 0 : index
      %c18 = arith.constant 18 : index
      %c3_149 = arith.constant 3 : index
      %195 = vector.load %arg7[%c0_148, %c18, %c3_149] : memref<2x22x22xf32, #tpu.memory_space<vmem>>, vector<1x1x16xf32>
      %196 = vector.shape_cast %195 : vector<1x1x16xf32> to vector<16xf32>
      %197 = vector.shape_cast %194 : vector<16xf32> to vector<1x1x16xf32>
      tpu.vector_store %arg7[%c0_148, %c18, %c3_149], %197 {strides = array<i32>} : memref<2x22x22xf32, #tpu.memory_space<vmem>>, vector<1x1x16xf32>,
      %c0_150 = arith.constant 0 : index
      %c240_151 = arith.constant 240 : index
      %198 = vector.load %arg6[%c0_150, %c240_151] : memref<2x256xf32, #tpu.memory_space<vmem>>, vector<1x16xf32>
      %199 = vector.shape_cast %198 : vector<1x16xf32> to vector<16xf32>
      %c1_152 = arith.constant 1 : index
      %c18_153 = arith.constant 18 : index
      %c3_154 = arith.constant 3 : index
      %200 = vector.load %arg7[%c1_152, %c18_153, %c3_154] : memref<2x22x22xf32, #tpu.memory_space<vmem>>, vector<1x1x16xf32>
      %201 = vector.shape_cast %200 : vector<1x1x16xf32> to vector<16xf32>
      %202 = vector.shape_cast %199 : vector<16xf32> to vector<1x1x16xf32>
      tpu.vector_store %arg7[%c1_152, %c18_153, %c3_154], %202 {strides = array<i32>} : memref<2x22x22xf32, #tpu.memory_space<vmem>>, vector<1x1x16xf32>,
      %c0_155 = arith.constant 0 : index
      %c0_156 = arith.constant 0 : index
      %c0_157 = arith.constant 0 : index
      %203 = vector.load %arg7[%c0_155, %c0_156, %c0_157] : memref<2x22x22xf32, #tpu.memory_space<vmem>>, vector<1x22x16xf32>
      %204 = vector.shape_cast %203 : vector<1x22x16xf32> to vector<22x16xf32>
      %c0_158 = arith.constant 0 : index
      %c0_159 = arith.constant 0 : index
      %c0_160 = arith.constant 0 : index
      %c0_161 = arith.constant 0 : index
      %205 = vector.load %arg8[%c0_158, %c0_159, %c0_160, %c0_161] : memref<2x7x22x16xf32, #tpu.memory_space<vmem>>, vector<1x1x22x16xf32>
      %206 = vector.shape_cast %205 : vector<1x1x22x16xf32> to vector<22x16xf32>
      %207 = vector.shape_cast %204 : vector<22x16xf32> to vector<1x1x22x16xf32>
      tpu.vector_store %arg8[%c0_158, %c0_159, %c0_160, %c0_161], %207 {strides = array<i32>} : memref<2x7x22x16xf32, #tpu.memory_space<vmem>>, vector<1x1x22x16xf32>,
      %c0_162 = arith.constant 0 : index
      %c0_163 = arith.constant 0 : index
      %c1_164 = arith.constant 1 : index
      %208 = vector.load %arg7[%c0_162, %c0_163, %c1_164] : memref<2x22x22xf32, #tpu.memory_space<vmem>>, vector<1x22x16xf32>
      %209 = vector.shape_cast %208 : vector<1x22x16xf32> to vector<22x16xf32>
      %c0_165 = arith.constant 0 : index
      %c1_166 = arith.constant 1 : index
      %c0_167 = arith.constant 0 : index
      %c0_168 = arith.constant 0 : index
      %210 = vector.load %arg8[%c0_165, %c1_166, %c0_167, %c0_168] : memref<2x7x22x16xf32, #tpu.memory_space<vmem>>, vector<1x1x22x16xf32>
      %211 = vector.shape_cast %210 : vector<1x1x22x16xf32> to vector<22x16xf32>
      %212 = vector.shape_cast %209 : vector<22x16xf32> to vector<1x1x22x16xf32>
      tpu.vector_store %arg8[%c0_165, %c1_166, %c0_167, %c0_168], %212 {strides = array<i32>} : memref<2x7x22x16xf32, #tpu.memory_space<vmem>>, vector<1x1x22x16xf32>,
      %c0_169 = arith.constant 0 : index
      %c0_170 = arith.constant 0 : index
      %c2 = arith.constant 2 : index
      %213 = vector.load %arg7[%c0_169, %c0_170, %c2] : memref<2x22x22xf32, #tpu.memory_space<vmem>>, vector<1x22x16xf32>
      %214 = vector.shape_cast %213 : vector<1x22x16xf32> to vector<22x16xf32>
      %c0_171 = arith.constant 0 : index
      %c2_172 = arith.constant 2 : index
      %c0_173 = arith.constant 0 : index
      %c0_174 = arith.constant 0 : index
      %215 = vector.load %arg8[%c0_171, %c2_172, %c0_173, %c0_174] : memref<2x7x22x16xf32, #tpu.memory_space<vmem>>, vector<1x1x22x16xf32>
      %216 = vector.shape_cast %215 : vector<1x1x22x16xf32> to vector<22x16xf32>
      %217 = vector.shape_cast %214 : vector<22x16xf32> to vector<1x1x22x16xf32>
      tpu.vector_store %arg8[%c0_171, %c2_172, %c0_173, %c0_174], %217 {strides = array<i32>} : memref<2x7x22x16xf32, #tpu.memory_space<vmem>>, vector<1x1x22x16xf32>,
      %c0_175 = arith.constant 0 : index
      %c0_176 = arith.constant 0 : index
      %c3_177 = arith.constant 3 : index
      %218 = vector.load %arg7[%c0_175, %c0_176, %c3_177] : memref<2x22x22xf32, #tpu.memory_space<vmem>>, vector<1x22x16xf32>
      %219 = vector.shape_cast %218 : vector<1x22x16xf32> to vector<22x16xf32>
      %c0_178 = arith.constant 0 : index
      %c3_179 = arith.constant 3 : index
      %c0_180 = arith.constant 0 : index
      %c0_181 = arith.constant 0 : index
      %220 = vector.load %arg8[%c0_178, %c3_179, %c0_180, %c0_181] : memref<2x7x22x16xf32, #tpu.memory_space<vmem>>, vector<1x1x22x16xf32>
      %221 = vector.shape_cast %220 : vector<1x1x22x16xf32> to vector<22x16xf32>
      %222 = vector.shape_cast %219 : vector<22x16xf32> to vector<1x1x22x16xf32>
      tpu.vector_store %arg8[%c0_178, %c3_179, %c0_180, %c0_181], %222 {strides = array<i32>} : memref<2x7x22x16xf32, #tpu.memory_space<vmem>>, vector<1x1x22x16xf32>,
      %c0_182 = arith.constant 0 : index
      %c0_183 = arith.constant 0 : index
      %c4_184 = arith.constant 4 : index
      %223 = vector.load %arg7[%c0_182, %c0_183, %c4_184] : memref<2x22x22xf32, #tpu.memory_space<vmem>>, vector<1x22x16xf32>
      %224 = vector.shape_cast %223 : vector<1x22x16xf32> to vector<22x16xf32>
      %c0_185 = arith.constant 0 : index
      %c4_186 = arith.constant 4 : index
      %c0_187 = arith.constant 0 : index
      %c0_188 = arith.constant 0 : index
      %225 = vector.load %arg8[%c0_185, %c4_186, %c0_187, %c0_188] : memref<2x7x22x16xf32, #tpu.memory_space<vmem>>, vector<1x1x22x16xf32>
      %226 = vector.shape_cast %225 : vector<1x1x22x16xf32> to vector<22x16xf32>
      %227 = vector.shape_cast %224 : vector<22x16xf32> to vector<1x1x22x16xf32>
      tpu.vector_store %arg8[%c0_185, %c4_186, %c0_187, %c0_188], %227 {strides = array<i32>} : memref<2x7x22x16xf32, #tpu.memory_space<vmem>>, vector<1x1x22x16xf32>,
      %c0_189 = arith.constant 0 : index
      %c0_190 = arith.constant 0 : index
      %c5_191 = arith.constant 5 : index
      %228 = vector.load %arg7[%c0_189, %c0_190, %c5_191] : memref<2x22x22xf32, #tpu.memory_space<vmem>>, vector<1x22x16xf32>
      %229 = vector.shape_cast %228 : vector<1x22x16xf32> to vector<22x16xf32>
      %c0_192 = arith.constant 0 : index
      %c5_193 = arith.constant 5 : index
      %c0_194 = arith.constant 0 : index
      %c0_195 = arith.constant 0 : index
      %230 = vector.load %arg8[%c0_192, %c5_193, %c0_194, %c0_195] : memref<2x7x22x16xf32, #tpu.memory_space<vmem>>, vector<1x1x22x16xf32>
      %231 = vector.shape_cast %230 : vector<1x1x22x16xf32> to vector<22x16xf32>
      %232 = vector.shape_cast %229 : vector<22x16xf32> to vector<1x1x22x16xf32>
      tpu.vector_store %arg8[%c0_192, %c5_193, %c0_194, %c0_195], %232 {strides = array<i32>} : memref<2x7x22x16xf32, #tpu.memory_space<vmem>>, vector<1x1x22x16xf32>,
      %c0_196 = arith.constant 0 : index
      %c0_197 = arith.constant 0 : index
      %c6_198 = arith.constant 6 : index
      %233 = vector.load %arg7[%c0_196, %c0_197, %c6_198] : memref<2x22x22xf32, #tpu.memory_space<vmem>>, vector<1x22x16xf32>
      %234 = vector.shape_cast %233 : vector<1x22x16xf32> to vector<22x16xf32>
      %c0_199 = arith.constant 0 : index
      %c6_200 = arith.constant 6 : index
      %c0_201 = arith.constant 0 : index
      %c0_202 = arith.constant 0 : index
      %235 = vector.load %arg8[%c0_199, %c6_200, %c0_201, %c0_202] : memref<2x7x22x16xf32, #tpu.memory_space<vmem>>, vector<1x1x22x16xf32>
      %236 = vector.shape_cast %235 : vector<1x1x22x16xf32> to vector<22x16xf32>
      %237 = vector.shape_cast %234 : vector<22x16xf32> to vector<1x1x22x16xf32>
      tpu.vector_store %arg8[%c0_199, %c6_200, %c0_201, %c0_202], %237 {strides = array<i32>} : memref<2x7x22x16xf32, #tpu.memory_space<vmem>>, vector<1x1x22x16xf32>,
      %c1_203 = arith.constant 1 : index
      %c0_204 = arith.constant 0 : index
      %c0_205 = arith.constant 0 : index
      %238 = vector.load %arg7[%c1_203, %c0_204, %c0_205] : memref<2x22x22xf32, #tpu.memory_space<vmem>>, vector<1x22x16xf32>
      %239 = vector.shape_cast %238 : vector<1x22x16xf32> to vector<22x16xf32>
      %c1_206 = arith.constant 1 : index
      %c0_207 = arith.constant 0 : index
      %c0_208 = arith.constant 0 : index
      %c0_209 = arith.constant 0 : index
      %240 = vector.load %arg8[%c1_206, %c0_207, %c0_208, %c0_209] : memref<2x7x22x16xf32, #tpu.memory_space<vmem>>, vector<1x1x22x16xf32>
      %241 = vector.shape_cast %240 : vector<1x1x22x16xf32> to vector<22x16xf32>
      %242 = vector.shape_cast %239 : vector<22x16xf32> to vector<1x1x22x16xf32>
      tpu.vector_store %arg8[%c1_206, %c0_207, %c0_208, %c0_209], %242 {strides = array<i32>} : memref<2x7x22x16xf32, #tpu.memory_space<vmem>>, vector<1x1x22x16xf32>,
      %c1_210 = arith.constant 1 : index
      %c0_211 = arith.constant 0 : index
      %c1_212 = arith.constant 1 : index
      %243 = vector.load %arg7[%c1_210, %c0_211, %c1_212] : memref<2x22x22xf32, #tpu.memory_space<vmem>>, vector<1x22x16xf32>
      %244 = vector.shape_cast %243 : vector<1x22x16xf32> to vector<22x16xf32>
      %c1_213 = arith.constant 1 : index
      %c1_214 = arith.constant 1 : index
      %c0_215 = arith.constant 0 : index
      %c0_216 = arith.constant 0 : index
      %245 = vector.load %arg8[%c1_213, %c1_214, %c0_215, %c0_216] : memref<2x7x22x16xf32, #tpu.memory_space<vmem>>, vector<1x1x22x16xf32>
      %246 = vector.shape_cast %245 : vector<1x1x22x16xf32> to vector<22x16xf32>
      %247 = vector.shape_cast %244 : vector<22x16xf32> to vector<1x1x22x16xf32>
      tpu.vector_store %arg8[%c1_213, %c1_214, %c0_215, %c0_216], %247 {strides = array<i32>} : memref<2x7x22x16xf32, #tpu.memory_space<vmem>>, vector<1x1x22x16xf32>,
      %c1_217 = arith.constant 1 : index
      %c0_218 = arith.constant 0 : index
      %c2_219 = arith.constant 2 : index
      %248 = vector.load %arg7[%c1_217, %c0_218, %c2_219] : memref<2x22x22xf32, #tpu.memory_space<vmem>>, vector<1x22x16xf32>
      %249 = vector.shape_cast %248 : vector<1x22x16xf32> to vector<22x16xf32>
      %c1_220 = arith.constant 1 : index
      %c2_221 = arith.constant 2 : index
      %c0_222 = arith.constant 0 : index
      %c0_223 = arith.constant 0 : index
      %250 = vector.load %arg8[%c1_220, %c2_221, %c0_222, %c0_223] : memref<2x7x22x16xf32, #tpu.memory_space<vmem>>, vector<1x1x22x16xf32>
      %251 = vector.shape_cast %250 : vector<1x1x22x16xf32> to vector<22x16xf32>
      %252 = vector.shape_cast %249 : vector<22x16xf32> to vector<1x1x22x16xf32>
      tpu.vector_store %arg8[%c1_220, %c2_221, %c0_222, %c0_223], %252 {strides = array<i32>} : memref<2x7x22x16xf32, #tpu.memory_space<vmem>>, vector<1x1x22x16xf32>,
      %c1_224 = arith.constant 1 : index
      %c0_225 = arith.constant 0 : index
      %c3_226 = arith.constant 3 : index
      %253 = vector.load %arg7[%c1_224, %c0_225, %c3_226] : memref<2x22x22xf32, #tpu.memory_space<vmem>>, vector<1x22x16xf32>
      %254 = vector.shape_cast %253 : vector<1x22x16xf32> to vector<22x16xf32>
      %c1_227 = arith.constant 1 : index
      %c3_228 = arith.constant 3 : index
      %c0_229 = arith.constant 0 : index
      %c0_230 = arith.constant 0 : index
      %255 = vector.load %arg8[%c1_227, %c3_228, %c0_229, %c0_230] : memref<2x7x22x16xf32, #tpu.memory_space<vmem>>, vector<1x1x22x16xf32>
      %256 = vector.shape_cast %255 : vector<1x1x22x16xf32> to vector<22x16xf32>
      %257 = vector.shape_cast %254 : vector<22x16xf32> to vector<1x1x22x16xf32>
      tpu.vector_store %arg8[%c1_227, %c3_228, %c0_229, %c0_230], %257 {strides = array<i32>} : memref<2x7x22x16xf32, #tpu.memory_space<vmem>>, vector<1x1x22x16xf32>,
      %c1_231 = arith.constant 1 : index
      %c0_232 = arith.constant 0 : index
      %c4_233 = arith.constant 4 : index
      %258 = vector.load %arg7[%c1_231, %c0_232, %c4_233] : memref<2x22x22xf32, #tpu.memory_space<vmem>>, vector<1x22x16xf32>
      %259 = vector.shape_cast %258 : vector<1x22x16xf32> to vector<22x16xf32>
      %c1_234 = arith.constant 1 : index
      %c4_235 = arith.constant 4 : index
      %c0_236 = arith.constant 0 : index
      %c0_237 = arith.constant 0 : index
      %260 = vector.load %arg8[%c1_234, %c4_235, %c0_236, %c0_237] : memref<2x7x22x16xf32, #tpu.memory_space<vmem>>, vector<1x1x22x16xf32>
      %261 = vector.shape_cast %260 : vector<1x1x22x16xf32> to vector<22x16xf32>
      %262 = vector.shape_cast %259 : vector<22x16xf32> to vector<1x1x22x16xf32>
      tpu.vector_store %arg8[%c1_234, %c4_235, %c0_236, %c0_237], %262 {strides = array<i32>} : memref<2x7x22x16xf32, #tpu.memory_space<vmem>>, vector<1x1x22x16xf32>,
      %c1_238 = arith.constant 1 : index
      %c0_239 = arith.constant 0 : index
      %c5_240 = arith.constant 5 : index
      %263 = vector.load %arg7[%c1_238, %c0_239, %c5_240] : memref<2x22x22xf32, #tpu.memory_space<vmem>>, vector<1x22x16xf32>
      %264 = vector.shape_cast %263 : vector<1x22x16xf32> to vector<22x16xf32>
      %c1_241 = arith.constant 1 : index
      %c5_242 = arith.constant 5 : index
      %c0_243 = arith.constant 0 : index
      %c0_244 = arith.constant 0 : index
      %265 = vector.load %arg8[%c1_241, %c5_242, %c0_243, %c0_244] : memref<2x7x22x16xf32, #tpu.memory_space<vmem>>, vector<1x1x22x16xf32>
      %266 = vector.shape_cast %265 : vector<1x1x22x16xf32> to vector<22x16xf32>
      %267 = vector.shape_cast %264 : vector<22x16xf32> to vector<1x1x22x16xf32>
      tpu.vector_store %arg8[%c1_241, %c5_242, %c0_243, %c0_244], %267 {strides = array<i32>} : memref<2x7x22x16xf32, #tpu.memory_space<vmem>>, vector<1x1x22x16xf32>,
      %c1_245 = arith.constant 1 : index
      %c0_246 = arith.constant 0 : index
      %c6_247 = arith.constant 6 : index
      %268 = vector.load %arg7[%c1_245, %c0_246, %c6_247] : memref<2x22x22xf32, #tpu.memory_space<vmem>>, vector<1x22x16xf32>
      %269 = vector.shape_cast %268 : vector<1x22x16xf32> to vector<22x16xf32>
      %c1_248 = arith.constant 1 : index
      %c6_249 = arith.constant 6 : index
      %c0_250 = arith.constant 0 : index
      %c0_251 = arith.constant 0 : index
      %270 = vector.load %arg8[%c1_248, %c6_249, %c0_250, %c0_251] : memref<2x7x22x16xf32, #tpu.memory_space<vmem>>, vector<1x1x22x16xf32>
      %271 = vector.shape_cast %270 : vector<1x1x22x16xf32> to vector<22x16xf32>
      %272 = vector.shape_cast %269 : vector<22x16xf32> to vector<1x1x22x16xf32>
      tpu.vector_store %arg8[%c1_248, %c6_249, %c0_250, %c0_251], %272 {strides = array<i32>} : memref<2x7x22x16xf32, #tpu.memory_space<vmem>>, vector<1x1x22x16xf32>,
      %cst_252 = arith.constant 0.000000e+00 : f32
      %273 = vector.broadcast %cst_252 : f32 to vector<16x16xf32>
      %c0_253 = arith.constant 0 : index
      %274 = memref.load %arg2[%c0_253] : memref<98xf32, #tpu.memory_space<smem>>
      %c0_254 = arith.constant 0 : index
      %c0_255 = arith.constant 0 : index
      %c0_256 = arith.constant 0 : index
      %c0_257 = arith.constant 0 : index
      %275 = vector.load %arg8[%c0_254, %c0_255, %c0_256, %c0_257] : memref<2x7x22x16xf32, #tpu.memory_space<vmem>>, vector<1x1x16x16xf32>
      %276 = vector.shape_cast %275 : vector<1x1x16x16xf32> to vector<16x16xf32>
      %277 = vector.broadcast %274 : f32 to vector<16x16xf32>
      %278 = arith.mulf %277, %276 : vector<16x16xf32>
      %279 = arith.addf %273, %278 : vector<16x16xf32>
      %c1_258 = arith.constant 1 : index
      %280 = memref.load %arg2[%c1_258] : memref<98xf32, #tpu.memory_space<smem>>
      %c0_259 = arith.constant 0 : index
      %c1_260 = arith.constant 1 : index
      %c0_261 = arith.constant 0 : index
      %c0_262 = arith.constant 0 : index
      %281 = vector.load %arg8[%c0_259, %c1_260, %c0_261, %c0_262] : memref<2x7x22x16xf32, #tpu.memory_space<vmem>>, vector<1x1x16x16xf32>
      %282 = vector.shape_cast %281 : vector<1x1x16x16xf32> to vector<16x16xf32>
      %283 = vector.broadcast %280 : f32 to vector<16x16xf32>
      %284 = arith.mulf %283, %282 : vector<16x16xf32>
      %285 = arith.addf %279, %284 : vector<16x16xf32>
      %c2_263 = arith.constant 2 : index
      %286 = memref.load %arg2[%c2_263] : memref<98xf32, #tpu.memory_space<smem>>
      %c0_264 = arith.constant 0 : index
      %c2_265 = arith.constant 2 : index
      %c0_266 = arith.constant 0 : index
      %c0_267 = arith.constant 0 : index
      %287 = vector.load %arg8[%c0_264, %c2_265, %c0_266, %c0_267] : memref<2x7x22x16xf32, #tpu.memory_space<vmem>>, vector<1x1x16x16xf32>
      %288 = vector.shape_cast %287 : vector<1x1x16x16xf32> to vector<16x16xf32>
      %289 = vector.broadcast %286 : f32 to vector<16x16xf32>
      %290 = arith.mulf %289, %288 : vector<16x16xf32>
      %291 = arith.addf %285, %290 : vector<16x16xf32>
      %c3_268 = arith.constant 3 : index
      %292 = memref.load %arg2[%c3_268] : memref<98xf32, #tpu.memory_space<smem>>
      %c0_269 = arith.constant 0 : index
      %c3_270 = arith.constant 3 : index
      %c0_271 = arith.constant 0 : index
      %c0_272 = arith.constant 0 : index
      %293 = vector.load %arg8[%c0_269, %c3_270, %c0_271, %c0_272] : memref<2x7x22x16xf32, #tpu.memory_space<vmem>>, vector<1x1x16x16xf32>
      %294 = vector.shape_cast %293 : vector<1x1x16x16xf32> to vector<16x16xf32>
      %295 = vector.broadcast %292 : f32 to vector<16x16xf32>
      %296 = arith.mulf %295, %294 : vector<16x16xf32>
      %297 = arith.addf %291, %296 : vector<16x16xf32>
      %c4_273 = arith.constant 4 : index
      %298 = memref.load %arg2[%c4_273] : memref<98xf32, #tpu.memory_space<smem>>
      %c0_274 = arith.constant 0 : index
      %c4_275 = arith.constant 4 : index
      %c0_276 = arith.constant 0 : index
      %c0_277 = arith.constant 0 : index
      %299 = vector.load %arg8[%c0_274, %c4_275, %c0_276, %c0_277] : memref<2x7x22x16xf32, #tpu.memory_space<vmem>>, vector<1x1x16x16xf32>
      %300 = vector.shape_cast %299 : vector<1x1x16x16xf32> to vector<16x16xf32>
      %301 = vector.broadcast %298 : f32 to vector<16x16xf32>
      %302 = arith.mulf %301, %300 : vector<16x16xf32>
      %303 = arith.addf %297, %302 : vector<16x16xf32>
      %c5_278 = arith.constant 5 : index
      %304 = memref.load %arg2[%c5_278] : memref<98xf32, #tpu.memory_space<smem>>
      %c0_279 = arith.constant 0 : index
      %c5_280 = arith.constant 5 : index
      %c0_281 = arith.constant 0 : index
      %c0_282 = arith.constant 0 : index
      %305 = vector.load %arg8[%c0_279, %c5_280, %c0_281, %c0_282] : memref<2x7x22x16xf32, #tpu.memory_space<vmem>>, vector<1x1x16x16xf32>
      %306 = vector.shape_cast %305 : vector<1x1x16x16xf32> to vector<16x16xf32>
      %307 = vector.broadcast %304 : f32 to vector<16x16xf32>
      %308 = arith.mulf %307, %306 : vector<16x16xf32>
      %309 = arith.addf %303, %308 : vector<16x16xf32>
      %c6_283 = arith.constant 6 : index
      %310 = memref.load %arg2[%c6_283] : memref<98xf32, #tpu.memory_space<smem>>
      %c0_284 = arith.constant 0 : index
      %c6_285 = arith.constant 6 : index
      %c0_286 = arith.constant 0 : index
      %c0_287 = arith.constant 0 : index
      %311 = vector.load %arg8[%c0_284, %c6_285, %c0_286, %c0_287] : memref<2x7x22x16xf32, #tpu.memory_space<vmem>>, vector<1x1x16x16xf32>
      %312 = vector.shape_cast %311 : vector<1x1x16x16xf32> to vector<16x16xf32>
      %313 = vector.broadcast %310 : f32 to vector<16x16xf32>
      %314 = arith.mulf %313, %312 : vector<16x16xf32>
      %315 = arith.addf %309, %314 : vector<16x16xf32>
      %c49 = arith.constant 49 : index
      %316 = memref.load %arg2[%c49] : memref<98xf32, #tpu.memory_space<smem>>
      %c1_288 = arith.constant 1 : index
      %c0_289 = arith.constant 0 : index
      %c0_290 = arith.constant 0 : index
      %c0_291 = arith.constant 0 : index
      %317 = vector.load %arg8[%c1_288, %c0_289, %c0_290, %c0_291] : memref<2x7x22x16xf32, #tpu.memory_space<vmem>>, vector<1x1x16x16xf32>
      %318 = vector.shape_cast %317 : vector<1x1x16x16xf32> to vector<16x16xf32>
      %319 = vector.broadcast %316 : f32 to vector<16x16xf32>
      %320 = arith.mulf %319, %318 : vector<16x16xf32>
      %321 = arith.addf %315, %320 : vector<16x16xf32>
      %c50 = arith.constant 50 : index
      %322 = memref.load %arg2[%c50] : memref<98xf32, #tpu.memory_space<smem>>
      %c1_292 = arith.constant 1 : index
      %c1_293 = arith.constant 1 : index
      %c0_294 = arith.constant 0 : index
      %c0_295 = arith.constant 0 : index
      %323 = vector.load %arg8[%c1_292, %c1_293, %c0_294, %c0_295] : memref<2x7x22x16xf32, #tpu.memory_space<vmem>>, vector<1x1x16x16xf32>
      %324 = vector.shape_cast %323 : vector<1x1x16x16xf32> to vector<16x16xf32>
      %325 = vector.broadcast %322 : f32 to vector<16x16xf32>
      %326 = arith.mulf %325, %324 : vector<16x16xf32>
      %327 = arith.addf %321, %326 : vector<16x16xf32>
      %c51 = arith.constant 51 : index
      %328 = memref.load %arg2[%c51] : memref<98xf32, #tpu.memory_space<smem>>
      %c1_296 = arith.constant 1 : index
      %c2_297 = arith.constant 2 : index
      %c0_298 = arith.constant 0 : index
      %c0_299 = arith.constant 0 : index
      %329 = vector.load %arg8[%c1_296, %c2_297, %c0_298, %c0_299] : memref<2x7x22x16xf32, #tpu.memory_space<vmem>>, vector<1x1x16x16xf32>
      %330 = vector.shape_cast %329 : vector<1x1x16x16xf32> to vector<16x16xf32>
      %331 = vector.broadcast %328 : f32 to vector<16x16xf32>
      %332 = arith.mulf %331, %330 : vector<16x16xf32>
      %333 = arith.addf %327, %332 : vector<16x16xf32>
      %c52 = arith.constant 52 : index
      %334 = memref.load %arg2[%c52] : memref<98xf32, #tpu.memory_space<smem>>
      %c1_300 = arith.constant 1 : index
      %c3_301 = arith.constant 3 : index
      %c0_302 = arith.constant 0 : index
      %c0_303 = arith.constant 0 : index
      %335 = vector.load %arg8[%c1_300, %c3_301, %c0_302, %c0_303] : memref<2x7x22x16xf32, #tpu.memory_space<vmem>>, vector<1x1x16x16xf32>
      %336 = vector.shape_cast %335 : vector<1x1x16x16xf32> to vector<16x16xf32>
      %337 = vector.broadcast %334 : f32 to vector<16x16xf32>
      %338 = arith.mulf %337, %336 : vector<16x16xf32>
      %339 = arith.addf %333, %338 : vector<16x16xf32>
      %c53 = arith.constant 53 : index
      %340 = memref.load %arg2[%c53] : memref<98xf32, #tpu.memory_space<smem>>
      %c1_304 = arith.constant 1 : index
      %c4_305 = arith.constant 4 : index
      %c0_306 = arith.constant 0 : index
      %c0_307 = arith.constant 0 : index
      %341 = vector.load %arg8[%c1_304, %c4_305, %c0_306, %c0_307] : memref<2x7x22x16xf32, #tpu.memory_space<vmem>>, vector<1x1x16x16xf32>
      %342 = vector.shape_cast %341 : vector<1x1x16x16xf32> to vector<16x16xf32>
      %343 = vector.broadcast %340 : f32 to vector<16x16xf32>
      %344 = arith.mulf %343, %342 : vector<16x16xf32>
      %345 = arith.addf %339, %344 : vector<16x16xf32>
      %c54 = arith.constant 54 : index
      %346 = memref.load %arg2[%c54] : memref<98xf32, #tpu.memory_space<smem>>
      %c1_308 = arith.constant 1 : index
      %c5_309 = arith.constant 5 : index
      %c0_310 = arith.constant 0 : index
      %c0_311 = arith.constant 0 : index
      %347 = vector.load %arg8[%c1_308, %c5_309, %c0_310, %c0_311] : memref<2x7x22x16xf32, #tpu.memory_space<vmem>>, vector<1x1x16x16xf32>
      %348 = vector.shape_cast %347 : vector<1x1x16x16xf32> to vector<16x16xf32>
      %349 = vector.broadcast %346 : f32 to vector<16x16xf32>
      %350 = arith.mulf %349, %348 : vector<16x16xf32>
      %351 = arith.addf %345, %350 : vector<16x16xf32>
      %c55 = arith.constant 55 : index
      %352 = memref.load %arg2[%c55] : memref<98xf32, #tpu.memory_space<smem>>
      %c1_312 = arith.constant 1 : index
      %c6_313 = arith.constant 6 : index
      %c0_314 = arith.constant 0 : index
      %c0_315 = arith.constant 0 : index
      %353 = vector.load %arg8[%c1_312, %c6_313, %c0_314, %c0_315] : memref<2x7x22x16xf32, #tpu.memory_space<vmem>>, vector<1x1x16x16xf32>
      %354 = vector.shape_cast %353 : vector<1x1x16x16xf32> to vector<16x16xf32>
      %355 = vector.broadcast %352 : f32 to vector<16x16xf32>
      %356 = arith.mulf %355, %354 : vector<16x16xf32>
      %357 = arith.addf %351, %356 : vector<16x16xf32>
      %c7_316 = arith.constant 7 : index
      %358 = memref.load %arg2[%c7_316] : memref<98xf32, #tpu.memory_space<smem>>
      %c0_317 = arith.constant 0 : index
      %c0_318 = arith.constant 0 : index
      %c1_319 = arith.constant 1 : index
      %c0_320 = arith.constant 0 : index
      %359 = vector.load %arg8[%c0_317, %c0_318, %c1_319, %c0_320] : memref<2x7x22x16xf32, #tpu.memory_space<vmem>>, vector<1x1x16x16xf32>
      %360 = vector.shape_cast %359 : vector<1x1x16x16xf32> to vector<16x16xf32>
      %361 = vector.broadcast %358 : f32 to vector<16x16xf32>
      %362 = arith.mulf %361, %360 : vector<16x16xf32>
      %363 = arith.addf %357, %362 : vector<16x16xf32>
      %c8_321 = arith.constant 8 : index
      %364 = memref.load %arg2[%c8_321] : memref<98xf32, #tpu.memory_space<smem>>
      %c0_322 = arith.constant 0 : index
      %c1_323 = arith.constant 1 : index
      %c1_324 = arith.constant 1 : index
      %c0_325 = arith.constant 0 : index
      %365 = vector.load %arg8[%c0_322, %c1_323, %c1_324, %c0_325] : memref<2x7x22x16xf32, #tpu.memory_space<vmem>>, vector<1x1x16x16xf32>
      %366 = vector.shape_cast %365 : vector<1x1x16x16xf32> to vector<16x16xf32>
      %367 = vector.broadcast %364 : f32 to vector<16x16xf32>
      %368 = arith.mulf %367, %366 : vector<16x16xf32>
      %369 = arith.addf %363, %368 : vector<16x16xf32>
      %c9_326 = arith.constant 9 : index
      %370 = memref.load %arg2[%c9_326] : memref<98xf32, #tpu.memory_space<smem>>
      %c0_327 = arith.constant 0 : index
      %c2_328 = arith.constant 2 : index
      %c1_329 = arith.constant 1 : index
      %c0_330 = arith.constant 0 : index
      %371 = vector.load %arg8[%c0_327, %c2_328, %c1_329, %c0_330] : memref<2x7x22x16xf32, #tpu.memory_space<vmem>>, vector<1x1x16x16xf32>
      %372 = vector.shape_cast %371 : vector<1x1x16x16xf32> to vector<16x16xf32>
      %373 = vector.broadcast %370 : f32 to vector<16x16xf32>
      %374 = arith.mulf %373, %372 : vector<16x16xf32>
      %375 = arith.addf %369, %374 : vector<16x16xf32>
      %c10_331 = arith.constant 10 : index
      %376 = memref.load %arg2[%c10_331] : memref<98xf32, #tpu.memory_space<smem>>
      %c0_332 = arith.constant 0 : index
      %c3_333 = arith.constant 3 : index
      %c1_334 = arith.constant 1 : index
      %c0_335 = arith.constant 0 : index
      %377 = vector.load %arg8[%c0_332, %c3_333, %c1_334, %c0_335] : memref<2x7x22x16xf32, #tpu.memory_space<vmem>>, vector<1x1x16x16xf32>
      %378 = vector.shape_cast %377 : vector<1x1x16x16xf32> to vector<16x16xf32>
      %379 = vector.broadcast %376 : f32 to vector<16x16xf32>
      %380 = arith.mulf %379, %378 : vector<16x16xf32>
      %381 = arith.addf %375, %380 : vector<16x16xf32>
      %c11_336 = arith.constant 11 : index
      %382 = memref.load %arg2[%c11_336] : memref<98xf32, #tpu.memory_space<smem>>
      %c0_337 = arith.constant 0 : index
      %c4_338 = arith.constant 4 : index
      %c1_339 = arith.constant 1 : index
      %c0_340 = arith.constant 0 : index
      %383 = vector.load %arg8[%c0_337, %c4_338, %c1_339, %c0_340] : memref<2x7x22x16xf32, #tpu.memory_space<vmem>>, vector<1x1x16x16xf32>
      %384 = vector.shape_cast %383 : vector<1x1x16x16xf32> to vector<16x16xf32>
      %385 = vector.broadcast %382 : f32 to vector<16x16xf32>
      %386 = arith.mulf %385, %384 : vector<16x16xf32>
      %387 = arith.addf %381, %386 : vector<16x16xf32>
      %c12_341 = arith.constant 12 : index
      %388 = memref.load %arg2[%c12_341] : memref<98xf32, #tpu.memory_space<smem>>
      %c0_342 = arith.constant 0 : index
      %c5_343 = arith.constant 5 : index
      %c1_344 = arith.constant 1 : index
      %c0_345 = arith.constant 0 : index
      %389 = vector.load %arg8[%c0_342, %c5_343, %c1_344, %c0_345] : memref<2x7x22x16xf32, #tpu.memory_space<vmem>>, vector<1x1x16x16xf32>
      %390 = vector.shape_cast %389 : vector<1x1x16x16xf32> to vector<16x16xf32>
      %391 = vector.broadcast %388 : f32 to vector<16x16xf32>
      %392 = arith.mulf %391, %390 : vector<16x16xf32>
      %393 = arith.addf %387, %392 : vector<16x16xf32>
      %c13_346 = arith.constant 13 : index
      %394 = memref.load %arg2[%c13_346] : memref<98xf32, #tpu.memory_space<smem>>
      %c0_347 = arith.constant 0 : index
      %c6_348 = arith.constant 6 : index
      %c1_349 = arith.constant 1 : index
      %c0_350 = arith.constant 0 : index
      %395 = vector.load %arg8[%c0_347, %c6_348, %c1_349, %c0_350] : memref<2x7x22x16xf32, #tpu.memory_space<vmem>>, vector<1x1x16x16xf32>
      %396 = vector.shape_cast %395 : vector<1x1x16x16xf32> to vector<16x16xf32>
      %397 = vector.broadcast %394 : f32 to vector<16x16xf32>
      %398 = arith.mulf %397, %396 : vector<16x16xf32>
      %399 = arith.addf %393, %398 : vector<16x16xf32>
      %c56 = arith.constant 56 : index
      %400 = memref.load %arg2[%c56] : memref<98xf32, #tpu.memory_space<smem>>
      %c1_351 = arith.constant 1 : index
      %c0_352 = arith.constant 0 : index
      %c1_353 = arith.constant 1 : index
      %c0_354 = arith.constant 0 : index
      %401 = vector.load %arg8[%c1_351, %c0_352, %c1_353, %c0_354] : memref<2x7x22x16xf32, #tpu.memory_space<vmem>>, vector<1x1x16x16xf32>
      %402 = vector.shape_cast %401 : vector<1x1x16x16xf32> to vector<16x16xf32>
      %403 = vector.broadcast %400 : f32 to vector<16x16xf32>
      %404 = arith.mulf %403, %402 : vector<16x16xf32>
      %405 = arith.addf %399, %404 : vector<16x16xf32>
      %c57 = arith.constant 57 : index
      %406 = memref.load %arg2[%c57] : memref<98xf32, #tpu.memory_space<smem>>
      %c1_355 = arith.constant 1 : index
      %c1_356 = arith.constant 1 : index
      %c1_357 = arith.constant 1 : index
      %c0_358 = arith.constant 0 : index
      %407 = vector.load %arg8[%c1_355, %c1_356, %c1_357, %c0_358] : memref<2x7x22x16xf32, #tpu.memory_space<vmem>>, vector<1x1x16x16xf32>
      %408 = vector.shape_cast %407 : vector<1x1x16x16xf32> to vector<16x16xf32>
      %409 = vector.broadcast %406 : f32 to vector<16x16xf32>
      %410 = arith.mulf %409, %408 : vector<16x16xf32>
      %411 = arith.addf %405, %410 : vector<16x16xf32>
      %c58 = arith.constant 58 : index
      %412 = memref.load %arg2[%c58] : memref<98xf32, #tpu.memory_space<smem>>
      %c1_359 = arith.constant 1 : index
      %c2_360 = arith.constant 2 : index
      %c1_361 = arith.constant 1 : index
      %c0_362 = arith.constant 0 : index
      %413 = vector.load %arg8[%c1_359, %c2_360, %c1_361, %c0_362] : memref<2x7x22x16xf32, #tpu.memory_space<vmem>>, vector<1x1x16x16xf32>
      %414 = vector.shape_cast %413 : vector<1x1x16x16xf32> to vector<16x16xf32>
      %415 = vector.broadcast %412 : f32 to vector<16x16xf32>
      %416 = arith.mulf %415, %414 : vector<16x16xf32>
      %417 = arith.addf %411, %416 : vector<16x16xf32>
      %c59 = arith.constant 59 : index
      %418 = memref.load %arg2[%c59] : memref<98xf32, #tpu.memory_space<smem>>
      %c1_363 = arith.constant 1 : index
      %c3_364 = arith.constant 3 : index
      %c1_365 = arith.constant 1 : index
      %c0_366 = arith.constant 0 : index
      %419 = vector.load %arg8[%c1_363, %c3_364, %c1_365, %c0_366] : memref<2x7x22x16xf32, #tpu.memory_space<vmem>>, vector<1x1x16x16xf32>
      %420 = vector.shape_cast %419 : vector<1x1x16x16xf32> to vector<16x16xf32>
      %421 = vector.broadcast %418 : f32 to vector<16x16xf32>
      %422 = arith.mulf %421, %420 : vector<16x16xf32>
      %423 = arith.addf %417, %422 : vector<16x16xf32>
      %c60 = arith.constant 60 : index
      %424 = memref.load %arg2[%c60] : memref<98xf32, #tpu.memory_space<smem>>
      %c1_367 = arith.constant 1 : index
      %c4_368 = arith.constant 4 : index
      %c1_369 = arith.constant 1 : index
      %c0_370 = arith.constant 0 : index
      %425 = vector.load %arg8[%c1_367, %c4_368, %c1_369, %c0_370] : memref<2x7x22x16xf32, #tpu.memory_space<vmem>>, vector<1x1x16x16xf32>
      %426 = vector.shape_cast %425 : vector<1x1x16x16xf32> to vector<16x16xf32>
      %427 = vector.broadcast %424 : f32 to vector<16x16xf32>
      %428 = arith.mulf %427, %426 : vector<16x16xf32>
      %429 = arith.addf %423, %428 : vector<16x16xf32>
      %c61 = arith.constant 61 : index
      %430 = memref.load %arg2[%c61] : memref<98xf32, #tpu.memory_space<smem>>
      %c1_371 = arith.constant 1 : index
      %c5_372 = arith.constant 5 : index
      %c1_373 = arith.constant 1 : index
      %c0_374 = arith.constant 0 : index
      %431 = vector.load %arg8[%c1_371, %c5_372, %c1_373, %c0_374] : memref<2x7x22x16xf32, #tpu.memory_space<vmem>>, vector<1x1x16x16xf32>
      %432 = vector.shape_cast %431 : vector<1x1x16x16xf32> to vector<16x16xf32>
      %433 = vector.broadcast %430 : f32 to vector<16x16xf32>
      %434 = arith.mulf %433, %432 : vector<16x16xf32>
      %435 = arith.addf %429, %434 : vector<16x16xf32>
      %c62 = arith.constant 62 : index
      %436 = memref.load %arg2[%c62] : memref<98xf32, #tpu.memory_space<smem>>
      %c1_375 = arith.constant 1 : index
      %c6_376 = arith.constant 6 : index
      %c1_377 = arith.constant 1 : index
      %c0_378 = arith.constant 0 : index
      %437 = vector.load %arg8[%c1_375, %c6_376, %c1_377, %c0_378] : memref<2x7x22x16xf32, #tpu.memory_space<vmem>>, vector<1x1x16x16xf32>
      %438 = vector.shape_cast %437 : vector<1x1x16x16xf32> to vector<16x16xf32>
      %439 = vector.broadcast %436 : f32 to vector<16x16xf32>
      %440 = arith.mulf %439, %438 : vector<16x16xf32>
      %441 = arith.addf %435, %440 : vector<16x16xf32>
      %c14_379 = arith.constant 14 : index
      %442 = memref.load %arg2[%c14_379] : memref<98xf32, #tpu.memory_space<smem>>
      %c0_380 = arith.constant 0 : index
      %c0_381 = arith.constant 0 : index
      %c2_382 = arith.constant 2 : index
      %c0_383 = arith.constant 0 : index
      %443 = vector.load %arg8[%c0_380, %c0_381, %c2_382, %c0_383] : memref<2x7x22x16xf32, #tpu.memory_space<vmem>>, vector<1x1x16x16xf32>
      %444 = vector.shape_cast %443 : vector<1x1x16x16xf32> to vector<16x16xf32>
      %445 = vector.broadcast %442 : f32 to vector<16x16xf32>
      %446 = arith.mulf %445, %444 : vector<16x16xf32>
      %447 = arith.addf %441, %446 : vector<16x16xf32>
      %c15_384 = arith.constant 15 : index
      %448 = memref.load %arg2[%c15_384] : memref<98xf32, #tpu.memory_space<smem>>
      %c0_385 = arith.constant 0 : index
      %c1_386 = arith.constant 1 : index
      %c2_387 = arith.constant 2 : index
      %c0_388 = arith.constant 0 : index
      %449 = vector.load %arg8[%c0_385, %c1_386, %c2_387, %c0_388] : memref<2x7x22x16xf32, #tpu.memory_space<vmem>>, vector<1x1x16x16xf32>
      %450 = vector.shape_cast %449 : vector<1x1x16x16xf32> to vector<16x16xf32>
      %451 = vector.broadcast %448 : f32 to vector<16x16xf32>
      %452 = arith.mulf %451, %450 : vector<16x16xf32>
      %453 = arith.addf %447, %452 : vector<16x16xf32>
      %c16_389 = arith.constant 16 : index
      %454 = memref.load %arg2[%c16_389] : memref<98xf32, #tpu.memory_space<smem>>
      %c0_390 = arith.constant 0 : index
      %c2_391 = arith.constant 2 : index
      %c2_392 = arith.constant 2 : index
      %c0_393 = arith.constant 0 : index
      %455 = vector.load %arg8[%c0_390, %c2_391, %c2_392, %c0_393] : memref<2x7x22x16xf32, #tpu.memory_space<vmem>>, vector<1x1x16x16xf32>
      %456 = vector.shape_cast %455 : vector<1x1x16x16xf32> to vector<16x16xf32>
      %457 = vector.broadcast %454 : f32 to vector<16x16xf32>
      %458 = arith.mulf %457, %456 : vector<16x16xf32>
      %459 = arith.addf %453, %458 : vector<16x16xf32>
      %c17_394 = arith.constant 17 : index
      %460 = memref.load %arg2[%c17_394] : memref<98xf32, #tpu.memory_space<smem>>
      %c0_395 = arith.constant 0 : index
      %c3_396 = arith.constant 3 : index
      %c2_397 = arith.constant 2 : index
      %c0_398 = arith.constant 0 : index
      %461 = vector.load %arg8[%c0_395, %c3_396, %c2_397, %c0_398] : memref<2x7x22x16xf32, #tpu.memory_space<vmem>>, vector<1x1x16x16xf32>
      %462 = vector.shape_cast %461 : vector<1x1x16x16xf32> to vector<16x16xf32>
      %463 = vector.broadcast %460 : f32 to vector<16x16xf32>
      %464 = arith.mulf %463, %462 : vector<16x16xf32>
      %465 = arith.addf %459, %464 : vector<16x16xf32>
      %c18_399 = arith.constant 18 : index
      %466 = memref.load %arg2[%c18_399] : memref<98xf32, #tpu.memory_space<smem>>
      %c0_400 = arith.constant 0 : index
      %c4_401 = arith.constant 4 : index
      %c2_402 = arith.constant 2 : index
      %c0_403 = arith.constant 0 : index
      %467 = vector.load %arg8[%c0_400, %c4_401, %c2_402, %c0_403] : memref<2x7x22x16xf32, #tpu.memory_space<vmem>>, vector<1x1x16x16xf32>
      %468 = vector.shape_cast %467 : vector<1x1x16x16xf32> to vector<16x16xf32>
      %469 = vector.broadcast %466 : f32 to vector<16x16xf32>
      %470 = arith.mulf %469, %468 : vector<16x16xf32>
      %471 = arith.addf %465, %470 : vector<16x16xf32>
      %c19 = arith.constant 19 : index
      %472 = memref.load %arg2[%c19] : memref<98xf32, #tpu.memory_space<smem>>
      %c0_404 = arith.constant 0 : index
      %c5_405 = arith.constant 5 : index
      %c2_406 = arith.constant 2 : index
      %c0_407 = arith.constant 0 : index
      %473 = vector.load %arg8[%c0_404, %c5_405, %c2_406, %c0_407] : memref<2x7x22x16xf32, #tpu.memory_space<vmem>>, vector<1x1x16x16xf32>
      %474 = vector.shape_cast %473 : vector<1x1x16x16xf32> to vector<16x16xf32>
      %475 = vector.broadcast %472 : f32 to vector<16x16xf32>
      %476 = arith.mulf %475, %474 : vector<16x16xf32>
      %477 = arith.addf %471, %476 : vector<16x16xf32>
      %c20 = arith.constant 20 : index
      %478 = memref.load %arg2[%c20] : memref<98xf32, #tpu.memory_space<smem>>
      %c0_408 = arith.constant 0 : index
      %c6_409 = arith.constant 6 : index
      %c2_410 = arith.constant 2 : index
      %c0_411 = arith.constant 0 : index
      %479 = vector.load %arg8[%c0_408, %c6_409, %c2_410, %c0_411] : memref<2x7x22x16xf32, #tpu.memory_space<vmem>>, vector<1x1x16x16xf32>
      %480 = vector.shape_cast %479 : vector<1x1x16x16xf32> to vector<16x16xf32>
      %481 = vector.broadcast %478 : f32 to vector<16x16xf32>
      %482 = arith.mulf %481, %480 : vector<16x16xf32>
      %483 = arith.addf %477, %482 : vector<16x16xf32>
      %c63 = arith.constant 63 : index
      %484 = memref.load %arg2[%c63] : memref<98xf32, #tpu.memory_space<smem>>
      %c1_412 = arith.constant 1 : index
      %c0_413 = arith.constant 0 : index
      %c2_414 = arith.constant 2 : index
      %c0_415 = arith.constant 0 : index
      %485 = vector.load %arg8[%c1_412, %c0_413, %c2_414, %c0_415] : memref<2x7x22x16xf32, #tpu.memory_space<vmem>>, vector<1x1x16x16xf32>
      %486 = vector.shape_cast %485 : vector<1x1x16x16xf32> to vector<16x16xf32>
      %487 = vector.broadcast %484 : f32 to vector<16x16xf32>
      %488 = arith.mulf %487, %486 : vector<16x16xf32>
      %489 = arith.addf %483, %488 : vector<16x16xf32>
      %c64_416 = arith.constant 64 : index
      %490 = memref.load %arg2[%c64_416] : memref<98xf32, #tpu.memory_space<smem>>
      %c1_417 = arith.constant 1 : index
      %c1_418 = arith.constant 1 : index
      %c2_419 = arith.constant 2 : index
      %c0_420 = arith.constant 0 : index
      %491 = vector.load %arg8[%c1_417, %c1_418, %c2_419, %c0_420] : memref<2x7x22x16xf32, #tpu.memory_space<vmem>>, vector<1x1x16x16xf32>
      %492 = vector.shape_cast %491 : vector<1x1x16x16xf32> to vector<16x16xf32>
      %493 = vector.broadcast %490 : f32 to vector<16x16xf32>
      %494 = arith.mulf %493, %492 : vector<16x16xf32>
      %495 = arith.addf %489, %494 : vector<16x16xf32>
      %c65 = arith.constant 65 : index
      %496 = memref.load %arg2[%c65] : memref<98xf32, #tpu.memory_space<smem>>
      %c1_421 = arith.constant 1 : index
      %c2_422 = arith.constant 2 : index
      %c2_423 = arith.constant 2 : index
      %c0_424 = arith.constant 0 : index
      %497 = vector.load %arg8[%c1_421, %c2_422, %c2_423, %c0_424] : memref<2x7x22x16xf32, #tpu.memory_space<vmem>>, vector<1x1x16x16xf32>
      %498 = vector.shape_cast %497 : vector<1x1x16x16xf32> to vector<16x16xf32>
      %499 = vector.broadcast %496 : f32 to vector<16x16xf32>
      %500 = arith.mulf %499, %498 : vector<16x16xf32>
      %501 = arith.addf %495, %500 : vector<16x16xf32>
      %c66 = arith.constant 66 : index
      %502 = memref.load %arg2[%c66] : memref<98xf32, #tpu.memory_space<smem>>
      %c1_425 = arith.constant 1 : index
      %c3_426 = arith.constant 3 : index
      %c2_427 = arith.constant 2 : index
      %c0_428 = arith.constant 0 : index
      %503 = vector.load %arg8[%c1_425, %c3_426, %c2_427, %c0_428] : memref<2x7x22x16xf32, #tpu.memory_space<vmem>>, vector<1x1x16x16xf32>
      %504 = vector.shape_cast %503 : vector<1x1x16x16xf32> to vector<16x16xf32>
      %505 = vector.broadcast %502 : f32 to vector<16x16xf32>
      %506 = arith.mulf %505, %504 : vector<16x16xf32>
      %507 = arith.addf %501, %506 : vector<16x16xf32>
      %c67 = arith.constant 67 : index
      %508 = memref.load %arg2[%c67] : memref<98xf32, #tpu.memory_space<smem>>
      %c1_429 = arith.constant 1 : index
      %c4_430 = arith.constant 4 : index
      %c2_431 = arith.constant 2 : index
      %c0_432 = arith.constant 0 : index
      %509 = vector.load %arg8[%c1_429, %c4_430, %c2_431, %c0_432] : memref<2x7x22x16xf32, #tpu.memory_space<vmem>>, vector<1x1x16x16xf32>
      %510 = vector.shape_cast %509 : vector<1x1x16x16xf32> to vector<16x16xf32>
      %511 = vector.broadcast %508 : f32 to vector<16x16xf32>
      %512 = arith.mulf %511, %510 : vector<16x16xf32>
      %513 = arith.addf %507, %512 : vector<16x16xf32>
      %c68 = arith.constant 68 : index
      %514 = memref.load %arg2[%c68] : memref<98xf32, #tpu.memory_space<smem>>
      %c1_433 = arith.constant 1 : index
      %c5_434 = arith.constant 5 : index
      %c2_435 = arith.constant 2 : index
      %c0_436 = arith.constant 0 : index
      %515 = vector.load %arg8[%c1_433, %c5_434, %c2_435, %c0_436] : memref<2x7x22x16xf32, #tpu.memory_space<vmem>>, vector<1x1x16x16xf32>
      %516 = vector.shape_cast %515 : vector<1x1x16x16xf32> to vector<16x16xf32>
      %517 = vector.broadcast %514 : f32 to vector<16x16xf32>
      %518 = arith.mulf %517, %516 : vector<16x16xf32>
      %519 = arith.addf %513, %518 : vector<16x16xf32>
      %c69 = arith.constant 69 : index
      %520 = memref.load %arg2[%c69] : memref<98xf32, #tpu.memory_space<smem>>
      %c1_437 = arith.constant 1 : index
      %c6_438 = arith.constant 6 : index
      %c2_439 = arith.constant 2 : index
      %c0_440 = arith.constant 0 : index
      %521 = vector.load %arg8[%c1_437, %c6_438, %c2_439, %c0_440] : memref<2x7x22x16xf32, #tpu.memory_space<vmem>>, vector<1x1x16x16xf32>
      %522 = vector.shape_cast %521 : vector<1x1x16x16xf32> to vector<16x16xf32>
      %523 = vector.broadcast %520 : f32 to vector<16x16xf32>
      %524 = arith.mulf %523, %522 : vector<16x16xf32>
      %525 = arith.addf %519, %524 : vector<16x16xf32>
      %c21 = arith.constant 21 : index
      %526 = memref.load %arg2[%c21] : memref<98xf32, #tpu.memory_space<smem>>
      %c0_441 = arith.constant 0 : index
      %c0_442 = arith.constant 0 : index
      %c3_443 = arith.constant 3 : index
      %c0_444 = arith.constant 0 : index
      %527 = vector.load %arg8[%c0_441, %c0_442, %c3_443, %c0_444] : memref<2x7x22x16xf32, #tpu.memory_space<vmem>>, vector<1x1x16x16xf32>
      %528 = vector.shape_cast %527 : vector<1x1x16x16xf32> to vector<16x16xf32>
      %529 = vector.broadcast %526 : f32 to vector<16x16xf32>
      %530 = arith.mulf %529, %528 : vector<16x16xf32>
      %531 = arith.addf %525, %530 : vector<16x16xf32>
      %c22 = arith.constant 22 : index
      %532 = memref.load %arg2[%c22] : memref<98xf32, #tpu.memory_space<smem>>
      %c0_445 = arith.constant 0 : index
      %c1_446 = arith.constant 1 : index
      %c3_447 = arith.constant 3 : index
      %c0_448 = arith.constant 0 : index
      %533 = vector.load %arg8[%c0_445, %c1_446, %c3_447, %c0_448] : memref<2x7x22x16xf32, #tpu.memory_space<vmem>>, vector<1x1x16x16xf32>
      %534 = vector.shape_cast %533 : vector<1x1x16x16xf32> to vector<16x16xf32>
      %535 = vector.broadcast %532 : f32 to vector<16x16xf32>
      %536 = arith.mulf %535, %534 : vector<16x16xf32>
      %537 = arith.addf %531, %536 : vector<16x16xf32>
      %c23 = arith.constant 23 : index
      %538 = memref.load %arg2[%c23] : memref<98xf32, #tpu.memory_space<smem>>
      %c0_449 = arith.constant 0 : index
      %c2_450 = arith.constant 2 : index
      %c3_451 = arith.constant 3 : index
      %c0_452 = arith.constant 0 : index
      %539 = vector.load %arg8[%c0_449, %c2_450, %c3_451, %c0_452] : memref<2x7x22x16xf32, #tpu.memory_space<vmem>>, vector<1x1x16x16xf32>
      %540 = vector.shape_cast %539 : vector<1x1x16x16xf32> to vector<16x16xf32>
      %541 = vector.broadcast %538 : f32 to vector<16x16xf32>
      %542 = arith.mulf %541, %540 : vector<16x16xf32>
      %543 = arith.addf %537, %542 : vector<16x16xf32>
      %c24 = arith.constant 24 : index
      %544 = memref.load %arg2[%c24] : memref<98xf32, #tpu.memory_space<smem>>
      %c0_453 = arith.constant 0 : index
      %c3_454 = arith.constant 3 : index
      %c3_455 = arith.constant 3 : index
      %c0_456 = arith.constant 0 : index
      %545 = vector.load %arg8[%c0_453, %c3_454, %c3_455, %c0_456] : memref<2x7x22x16xf32, #tpu.memory_space<vmem>>, vector<1x1x16x16xf32>
      %546 = vector.shape_cast %545 : vector<1x1x16x16xf32> to vector<16x16xf32>
      %547 = vector.broadcast %544 : f32 to vector<16x16xf32>
      %548 = arith.mulf %547, %546 : vector<16x16xf32>
      %549 = arith.addf %543, %548 : vector<16x16xf32>
      %c25 = arith.constant 25 : index
      %550 = memref.load %arg2[%c25] : memref<98xf32, #tpu.memory_space<smem>>
      %c0_457 = arith.constant 0 : index
      %c4_458 = arith.constant 4 : index
      %c3_459 = arith.constant 3 : index
      %c0_460 = arith.constant 0 : index
      %551 = vector.load %arg8[%c0_457, %c4_458, %c3_459, %c0_460] : memref<2x7x22x16xf32, #tpu.memory_space<vmem>>, vector<1x1x16x16xf32>
      %552 = vector.shape_cast %551 : vector<1x1x16x16xf32> to vector<16x16xf32>
      %553 = vector.broadcast %550 : f32 to vector<16x16xf32>
      %554 = arith.mulf %553, %552 : vector<16x16xf32>
      %555 = arith.addf %549, %554 : vector<16x16xf32>
      %c26 = arith.constant 26 : index
      %556 = memref.load %arg2[%c26] : memref<98xf32, #tpu.memory_space<smem>>
      %c0_461 = arith.constant 0 : index
      %c5_462 = arith.constant 5 : index
      %c3_463 = arith.constant 3 : index
      %c0_464 = arith.constant 0 : index
      %557 = vector.load %arg8[%c0_461, %c5_462, %c3_463, %c0_464] : memref<2x7x22x16xf32, #tpu.memory_space<vmem>>, vector<1x1x16x16xf32>
      %558 = vector.shape_cast %557 : vector<1x1x16x16xf32> to vector<16x16xf32>
      %559 = vector.broadcast %556 : f32 to vector<16x16xf32>
      %560 = arith.mulf %559, %558 : vector<16x16xf32>
      %561 = arith.addf %555, %560 : vector<16x16xf32>
      %c27 = arith.constant 27 : index
      %562 = memref.load %arg2[%c27] : memref<98xf32, #tpu.memory_space<smem>>
      %c0_465 = arith.constant 0 : index
      %c6_466 = arith.constant 6 : index
      %c3_467 = arith.constant 3 : index
      %c0_468 = arith.constant 0 : index
      %563 = vector.load %arg8[%c0_465, %c6_466, %c3_467, %c0_468] : memref<2x7x22x16xf32, #tpu.memory_space<vmem>>, vector<1x1x16x16xf32>
      %564 = vector.shape_cast %563 : vector<1x1x16x16xf32> to vector<16x16xf32>
      %565 = vector.broadcast %562 : f32 to vector<16x16xf32>
      %566 = arith.mulf %565, %564 : vector<16x16xf32>
      %567 = arith.addf %561, %566 : vector<16x16xf32>
      %c70 = arith.constant 70 : index
      %568 = memref.load %arg2[%c70] : memref<98xf32, #tpu.memory_space<smem>>
      %c1_469 = arith.constant 1 : index
      %c0_470 = arith.constant 0 : index
      %c3_471 = arith.constant 3 : index
      %c0_472 = arith.constant 0 : index
      %569 = vector.load %arg8[%c1_469, %c0_470, %c3_471, %c0_472] : memref<2x7x22x16xf32, #tpu.memory_space<vmem>>, vector<1x1x16x16xf32>
      %570 = vector.shape_cast %569 : vector<1x1x16x16xf32> to vector<16x16xf32>
      %571 = vector.broadcast %568 : f32 to vector<16x16xf32>
      %572 = arith.mulf %571, %570 : vector<16x16xf32>
      %573 = arith.addf %567, %572 : vector<16x16xf32>
      %c71 = arith.constant 71 : index
      %574 = memref.load %arg2[%c71] : memref<98xf32, #tpu.memory_space<smem>>
      %c1_473 = arith.constant 1 : index
      %c1_474 = arith.constant 1 : index
      %c3_475 = arith.constant 3 : index
      %c0_476 = arith.constant 0 : index
      %575 = vector.load %arg8[%c1_473, %c1_474, %c3_475, %c0_476] : memref<2x7x22x16xf32, #tpu.memory_space<vmem>>, vector<1x1x16x16xf32>
      %576 = vector.shape_cast %575 : vector<1x1x16x16xf32> to vector<16x16xf32>
      %577 = vector.broadcast %574 : f32 to vector<16x16xf32>
      %578 = arith.mulf %577, %576 : vector<16x16xf32>
      %579 = arith.addf %573, %578 : vector<16x16xf32>
      %c72 = arith.constant 72 : index
      %580 = memref.load %arg2[%c72] : memref<98xf32, #tpu.memory_space<smem>>
      %c1_477 = arith.constant 1 : index
      %c2_478 = arith.constant 2 : index
      %c3_479 = arith.constant 3 : index
      %c0_480 = arith.constant 0 : index
      %581 = vector.load %arg8[%c1_477, %c2_478, %c3_479, %c0_480] : memref<2x7x22x16xf32, #tpu.memory_space<vmem>>, vector<1x1x16x16xf32>
      %582 = vector.shape_cast %581 : vector<1x1x16x16xf32> to vector<16x16xf32>
      %583 = vector.broadcast %580 : f32 to vector<16x16xf32>
      %584 = arith.mulf %583, %582 : vector<16x16xf32>
      %585 = arith.addf %579, %584 : vector<16x16xf32>
      %c73 = arith.constant 73 : index
      %586 = memref.load %arg2[%c73] : memref<98xf32, #tpu.memory_space<smem>>
      %c1_481 = arith.constant 1 : index
      %c3_482 = arith.constant 3 : index
      %c3_483 = arith.constant 3 : index
      %c0_484 = arith.constant 0 : index
      %587 = vector.load %arg8[%c1_481, %c3_482, %c3_483, %c0_484] : memref<2x7x22x16xf32, #tpu.memory_space<vmem>>, vector<1x1x16x16xf32>
      %588 = vector.shape_cast %587 : vector<1x1x16x16xf32> to vector<16x16xf32>
      %589 = vector.broadcast %586 : f32 to vector<16x16xf32>
      %590 = arith.mulf %589, %588 : vector<16x16xf32>
      %591 = arith.addf %585, %590 : vector<16x16xf32>
      %c74 = arith.constant 74 : index
      %592 = memref.load %arg2[%c74] : memref<98xf32, #tpu.memory_space<smem>>
      %c1_485 = arith.constant 1 : index
      %c4_486 = arith.constant 4 : index
      %c3_487 = arith.constant 3 : index
      %c0_488 = arith.constant 0 : index
      %593 = vector.load %arg8[%c1_485, %c4_486, %c3_487, %c0_488] : memref<2x7x22x16xf32, #tpu.memory_space<vmem>>, vector<1x1x16x16xf32>
      %594 = vector.shape_cast %593 : vector<1x1x16x16xf32> to vector<16x16xf32>
      %595 = vector.broadcast %592 : f32 to vector<16x16xf32>
      %596 = arith.mulf %595, %594 : vector<16x16xf32>
      %597 = arith.addf %591, %596 : vector<16x16xf32>
      %c75 = arith.constant 75 : index
      %598 = memref.load %arg2[%c75] : memref<98xf32, #tpu.memory_space<smem>>
      %c1_489 = arith.constant 1 : index
      %c5_490 = arith.constant 5 : index
      %c3_491 = arith.constant 3 : index
      %c0_492 = arith.constant 0 : index
      %599 = vector.load %arg8[%c1_489, %c5_490, %c3_491, %c0_492] : memref<2x7x22x16xf32, #tpu.memory_space<vmem>>, vector<1x1x16x16xf32>
      %600 = vector.shape_cast %599 : vector<1x1x16x16xf32> to vector<16x16xf32>
      %601 = vector.broadcast %598 : f32 to vector<16x16xf32>
      %602 = arith.mulf %601, %600 : vector<16x16xf32>
      %603 = arith.addf %597, %602 : vector<16x16xf32>
      %c76 = arith.constant 76 : index
      %604 = memref.load %arg2[%c76] : memref<98xf32, #tpu.memory_space<smem>>
      %c1_493 = arith.constant 1 : index
      %c6_494 = arith.constant 6 : index
      %c3_495 = arith.constant 3 : index
      %c0_496 = arith.constant 0 : index
      %605 = vector.load %arg8[%c1_493, %c6_494, %c3_495, %c0_496] : memref<2x7x22x16xf32, #tpu.memory_space<vmem>>, vector<1x1x16x16xf32>
      %606 = vector.shape_cast %605 : vector<1x1x16x16xf32> to vector<16x16xf32>
      %607 = vector.broadcast %604 : f32 to vector<16x16xf32>
      %608 = arith.mulf %607, %606 : vector<16x16xf32>
      %609 = arith.addf %603, %608 : vector<16x16xf32>
      %c28 = arith.constant 28 : index
      %610 = memref.load %arg2[%c28] : memref<98xf32, #tpu.memory_space<smem>>
      %c0_497 = arith.constant 0 : index
      %c0_498 = arith.constant 0 : index
      %c4_499 = arith.constant 4 : index
      %c0_500 = arith.constant 0 : index
      %611 = vector.load %arg8[%c0_497, %c0_498, %c4_499, %c0_500] : memref<2x7x22x16xf32, #tpu.memory_space<vmem>>, vector<1x1x16x16xf32>
      %612 = vector.shape_cast %611 : vector<1x1x16x16xf32> to vector<16x16xf32>
      %613 = vector.broadcast %610 : f32 to vector<16x16xf32>
      %614 = arith.mulf %613, %612 : vector<16x16xf32>
      %615 = arith.addf %609, %614 : vector<16x16xf32>
      %c29 = arith.constant 29 : index
      %616 = memref.load %arg2[%c29] : memref<98xf32, #tpu.memory_space<smem>>
      %c0_501 = arith.constant 0 : index
      %c1_502 = arith.constant 1 : index
      %c4_503 = arith.constant 4 : index
      %c0_504 = arith.constant 0 : index
      %617 = vector.load %arg8[%c0_501, %c1_502, %c4_503, %c0_504] : memref<2x7x22x16xf32, #tpu.memory_space<vmem>>, vector<1x1x16x16xf32>
      %618 = vector.shape_cast %617 : vector<1x1x16x16xf32> to vector<16x16xf32>
      %619 = vector.broadcast %616 : f32 to vector<16x16xf32>
      %620 = arith.mulf %619, %618 : vector<16x16xf32>
      %621 = arith.addf %615, %620 : vector<16x16xf32>
      %c30 = arith.constant 30 : index
      %622 = memref.load %arg2[%c30] : memref<98xf32, #tpu.memory_space<smem>>
      %c0_505 = arith.constant 0 : index
      %c2_506 = arith.constant 2 : index
      %c4_507 = arith.constant 4 : index
      %c0_508 = arith.constant 0 : index
      %623 = vector.load %arg8[%c0_505, %c2_506, %c4_507, %c0_508] : memref<2x7x22x16xf32, #tpu.memory_space<vmem>>, vector<1x1x16x16xf32>
      %624 = vector.shape_cast %623 : vector<1x1x16x16xf32> to vector<16x16xf32>
      %625 = vector.broadcast %622 : f32 to vector<16x16xf32>
      %626 = arith.mulf %625, %624 : vector<16x16xf32>
      %627 = arith.addf %621, %626 : vector<16x16xf32>
      %c31 = arith.constant 31 : index
      %628 = memref.load %arg2[%c31] : memref<98xf32, #tpu.memory_space<smem>>
      %c0_509 = arith.constant 0 : index
      %c3_510 = arith.constant 3 : index
      %c4_511 = arith.constant 4 : index
      %c0_512 = arith.constant 0 : index
      %629 = vector.load %arg8[%c0_509, %c3_510, %c4_511, %c0_512] : memref<2x7x22x16xf32, #tpu.memory_space<vmem>>, vector<1x1x16x16xf32>
      %630 = vector.shape_cast %629 : vector<1x1x16x16xf32> to vector<16x16xf32>
      %631 = vector.broadcast %628 : f32 to vector<16x16xf32>
      %632 = arith.mulf %631, %630 : vector<16x16xf32>
      %633 = arith.addf %627, %632 : vector<16x16xf32>
      %c32_513 = arith.constant 32 : index
      %634 = memref.load %arg2[%c32_513] : memref<98xf32, #tpu.memory_space<smem>>
      %c0_514 = arith.constant 0 : index
      %c4_515 = arith.constant 4 : index
      %c4_516 = arith.constant 4 : index
      %c0_517 = arith.constant 0 : index
      %635 = vector.load %arg8[%c0_514, %c4_515, %c4_516, %c0_517] : memref<2x7x22x16xf32, #tpu.memory_space<vmem>>, vector<1x1x16x16xf32>
      %636 = vector.shape_cast %635 : vector<1x1x16x16xf32> to vector<16x16xf32>
      %637 = vector.broadcast %634 : f32 to vector<16x16xf32>
      %638 = arith.mulf %637, %636 : vector<16x16xf32>
      %639 = arith.addf %633, %638 : vector<16x16xf32>
      %c33 = arith.constant 33 : index
      %640 = memref.load %arg2[%c33] : memref<98xf32, #tpu.memory_space<smem>>
      %c0_518 = arith.constant 0 : index
      %c5_519 = arith.constant 5 : index
      %c4_520 = arith.constant 4 : index
      %c0_521 = arith.constant 0 : index
      %641 = vector.load %arg8[%c0_518, %c5_519, %c4_520, %c0_521] : memref<2x7x22x16xf32, #tpu.memory_space<vmem>>, vector<1x1x16x16xf32>
      %642 = vector.shape_cast %641 : vector<1x1x16x16xf32> to vector<16x16xf32>
      %643 = vector.broadcast %640 : f32 to vector<16x16xf32>
      %644 = arith.mulf %643, %642 : vector<16x16xf32>
      %645 = arith.addf %639, %644 : vector<16x16xf32>
      %c34 = arith.constant 34 : index
      %646 = memref.load %arg2[%c34] : memref<98xf32, #tpu.memory_space<smem>>
      %c0_522 = arith.constant 0 : index
      %c6_523 = arith.constant 6 : index
      %c4_524 = arith.constant 4 : index
      %c0_525 = arith.constant 0 : index
      %647 = vector.load %arg8[%c0_522, %c6_523, %c4_524, %c0_525] : memref<2x7x22x16xf32, #tpu.memory_space<vmem>>, vector<1x1x16x16xf32>
      %648 = vector.shape_cast %647 : vector<1x1x16x16xf32> to vector<16x16xf32>
      %649 = vector.broadcast %646 : f32 to vector<16x16xf32>
      %650 = arith.mulf %649, %648 : vector<16x16xf32>
      %651 = arith.addf %645, %650 : vector<16x16xf32>
      %c77 = arith.constant 77 : index
      %652 = memref.load %arg2[%c77] : memref<98xf32, #tpu.memory_space<smem>>
      %c1_526 = arith.constant 1 : index
      %c0_527 = arith.constant 0 : index
      %c4_528 = arith.constant 4 : index
      %c0_529 = arith.constant 0 : index
      %653 = vector.load %arg8[%c1_526, %c0_527, %c4_528, %c0_529] : memref<2x7x22x16xf32, #tpu.memory_space<vmem>>, vector<1x1x16x16xf32>
      %654 = vector.shape_cast %653 : vector<1x1x16x16xf32> to vector<16x16xf32>
      %655 = vector.broadcast %652 : f32 to vector<16x16xf32>
      %656 = arith.mulf %655, %654 : vector<16x16xf32>
      %657 = arith.addf %651, %656 : vector<16x16xf32>
      %c78 = arith.constant 78 : index
      %658 = memref.load %arg2[%c78] : memref<98xf32, #tpu.memory_space<smem>>
      %c1_530 = arith.constant 1 : index
      %c1_531 = arith.constant 1 : index
      %c4_532 = arith.constant 4 : index
      %c0_533 = arith.constant 0 : index
      %659 = vector.load %arg8[%c1_530, %c1_531, %c4_532, %c0_533] : memref<2x7x22x16xf32, #tpu.memory_space<vmem>>, vector<1x1x16x16xf32>
      %660 = vector.shape_cast %659 : vector<1x1x16x16xf32> to vector<16x16xf32>
      %661 = vector.broadcast %658 : f32 to vector<16x16xf32>
      %662 = arith.mulf %661, %660 : vector<16x16xf32>
      %663 = arith.addf %657, %662 : vector<16x16xf32>
      %c79 = arith.constant 79 : index
      %664 = memref.load %arg2[%c79] : memref<98xf32, #tpu.memory_space<smem>>
      %c1_534 = arith.constant 1 : index
      %c2_535 = arith.constant 2 : index
      %c4_536 = arith.constant 4 : index
      %c0_537 = arith.constant 0 : index
      %665 = vector.load %arg8[%c1_534, %c2_535, %c4_536, %c0_537] : memref<2x7x22x16xf32, #tpu.memory_space<vmem>>, vector<1x1x16x16xf32>
      %666 = vector.shape_cast %665 : vector<1x1x16x16xf32> to vector<16x16xf32>
      %667 = vector.broadcast %664 : f32 to vector<16x16xf32>
      %668 = arith.mulf %667, %666 : vector<16x16xf32>
      %669 = arith.addf %663, %668 : vector<16x16xf32>
      %c80_538 = arith.constant 80 : index
      %670 = memref.load %arg2[%c80_538] : memref<98xf32, #tpu.memory_space<smem>>
      %c1_539 = arith.constant 1 : index
      %c3_540 = arith.constant 3 : index
      %c4_541 = arith.constant 4 : index
      %c0_542 = arith.constant 0 : index
      %671 = vector.load %arg8[%c1_539, %c3_540, %c4_541, %c0_542] : memref<2x7x22x16xf32, #tpu.memory_space<vmem>>, vector<1x1x16x16xf32>
      %672 = vector.shape_cast %671 : vector<1x1x16x16xf32> to vector<16x16xf32>
      %673 = vector.broadcast %670 : f32 to vector<16x16xf32>
      %674 = arith.mulf %673, %672 : vector<16x16xf32>
      %675 = arith.addf %669, %674 : vector<16x16xf32>
      %c81 = arith.constant 81 : index
      %676 = memref.load %arg2[%c81] : memref<98xf32, #tpu.memory_space<smem>>
      %c1_543 = arith.constant 1 : index
      %c4_544 = arith.constant 4 : index
      %c4_545 = arith.constant 4 : index
      %c0_546 = arith.constant 0 : index
      %677 = vector.load %arg8[%c1_543, %c4_544, %c4_545, %c0_546] : memref<2x7x22x16xf32, #tpu.memory_space<vmem>>, vector<1x1x16x16xf32>
      %678 = vector.shape_cast %677 : vector<1x1x16x16xf32> to vector<16x16xf32>
      %679 = vector.broadcast %676 : f32 to vector<16x16xf32>
      %680 = arith.mulf %679, %678 : vector<16x16xf32>
      %681 = arith.addf %675, %680 : vector<16x16xf32>
      %c82 = arith.constant 82 : index
      %682 = memref.load %arg2[%c82] : memref<98xf32, #tpu.memory_space<smem>>
      %c1_547 = arith.constant 1 : index
      %c5_548 = arith.constant 5 : index
      %c4_549 = arith.constant 4 : index
      %c0_550 = arith.constant 0 : index
      %683 = vector.load %arg8[%c1_547, %c5_548, %c4_549, %c0_550] : memref<2x7x22x16xf32, #tpu.memory_space<vmem>>, vector<1x1x16x16xf32>
      %684 = vector.shape_cast %683 : vector<1x1x16x16xf32> to vector<16x16xf32>
      %685 = vector.broadcast %682 : f32 to vector<16x16xf32>
      %686 = arith.mulf %685, %684 : vector<16x16xf32>
      %687 = arith.addf %681, %686 : vector<16x16xf32>
      %c83 = arith.constant 83 : index
      %688 = memref.load %arg2[%c83] : memref<98xf32, #tpu.memory_space<smem>>
      %c1_551 = arith.constant 1 : index
      %c6_552 = arith.constant 6 : index
      %c4_553 = arith.constant 4 : index
      %c0_554 = arith.constant 0 : index
      %689 = vector.load %arg8[%c1_551, %c6_552, %c4_553, %c0_554] : memref<2x7x22x16xf32, #tpu.memory_space<vmem>>, vector<1x1x16x16xf32>
      %690 = vector.shape_cast %689 : vector<1x1x16x16xf32> to vector<16x16xf32>
      %691 = vector.broadcast %688 : f32 to vector<16x16xf32>
      %692 = arith.mulf %691, %690 : vector<16x16xf32>
      %693 = arith.addf %687, %692 : vector<16x16xf32>
      %c35 = arith.constant 35 : index
      %694 = memref.load %arg2[%c35] : memref<98xf32, #tpu.memory_space<smem>>
      %c0_555 = arith.constant 0 : index
      %c0_556 = arith.constant 0 : index
      %c5_557 = arith.constant 5 : index
      %c0_558 = arith.constant 0 : index
      %695 = vector.load %arg8[%c0_555, %c0_556, %c5_557, %c0_558] : memref<2x7x22x16xf32, #tpu.memory_space<vmem>>, vector<1x1x16x16xf32>
      %696 = vector.shape_cast %695 : vector<1x1x16x16xf32> to vector<16x16xf32>
      %697 = vector.broadcast %694 : f32 to vector<16x16xf32>
      %698 = arith.mulf %697, %696 : vector<16x16xf32>
      %699 = arith.addf %693, %698 : vector<16x16xf32>
      %c36 = arith.constant 36 : index
      %700 = memref.load %arg2[%c36] : memref<98xf32, #tpu.memory_space<smem>>
      %c0_559 = arith.constant 0 : index
      %c1_560 = arith.constant 1 : index
      %c5_561 = arith.constant 5 : index
      %c0_562 = arith.constant 0 : index
      %701 = vector.load %arg8[%c0_559, %c1_560, %c5_561, %c0_562] : memref<2x7x22x16xf32, #tpu.memory_space<vmem>>, vector<1x1x16x16xf32>
      %702 = vector.shape_cast %701 : vector<1x1x16x16xf32> to vector<16x16xf32>
      %703 = vector.broadcast %700 : f32 to vector<16x16xf32>
      %704 = arith.mulf %703, %702 : vector<16x16xf32>
      %705 = arith.addf %699, %704 : vector<16x16xf32>
      %c37 = arith.constant 37 : index
      %706 = memref.load %arg2[%c37] : memref<98xf32, #tpu.memory_space<smem>>
      %c0_563 = arith.constant 0 : index
      %c2_564 = arith.constant 2 : index
      %c5_565 = arith.constant 5 : index
      %c0_566 = arith.constant 0 : index
      %707 = vector.load %arg8[%c0_563, %c2_564, %c5_565, %c0_566] : memref<2x7x22x16xf32, #tpu.memory_space<vmem>>, vector<1x1x16x16xf32>
      %708 = vector.shape_cast %707 : vector<1x1x16x16xf32> to vector<16x16xf32>
      %709 = vector.broadcast %706 : f32 to vector<16x16xf32>
      %710 = arith.mulf %709, %708 : vector<16x16xf32>
      %711 = arith.addf %705, %710 : vector<16x16xf32>
      %c38 = arith.constant 38 : index
      %712 = memref.load %arg2[%c38] : memref<98xf32, #tpu.memory_space<smem>>
      %c0_567 = arith.constant 0 : index
      %c3_568 = arith.constant 3 : index
      %c5_569 = arith.constant 5 : index
      %c0_570 = arith.constant 0 : index
      %713 = vector.load %arg8[%c0_567, %c3_568, %c5_569, %c0_570] : memref<2x7x22x16xf32, #tpu.memory_space<vmem>>, vector<1x1x16x16xf32>
      %714 = vector.shape_cast %713 : vector<1x1x16x16xf32> to vector<16x16xf32>
      %715 = vector.broadcast %712 : f32 to vector<16x16xf32>
      %716 = arith.mulf %715, %714 : vector<16x16xf32>
      %717 = arith.addf %711, %716 : vector<16x16xf32>
      %c39 = arith.constant 39 : index
      %718 = memref.load %arg2[%c39] : memref<98xf32, #tpu.memory_space<smem>>
      %c0_571 = arith.constant 0 : index
      %c4_572 = arith.constant 4 : index
      %c5_573 = arith.constant 5 : index
      %c0_574 = arith.constant 0 : index
      %719 = vector.load %arg8[%c0_571, %c4_572, %c5_573, %c0_574] : memref<2x7x22x16xf32, #tpu.memory_space<vmem>>, vector<1x1x16x16xf32>
      %720 = vector.shape_cast %719 : vector<1x1x16x16xf32> to vector<16x16xf32>
      %721 = vector.broadcast %718 : f32 to vector<16x16xf32>
      %722 = arith.mulf %721, %720 : vector<16x16xf32>
      %723 = arith.addf %717, %722 : vector<16x16xf32>
      %c40 = arith.constant 40 : index
      %724 = memref.load %arg2[%c40] : memref<98xf32, #tpu.memory_space<smem>>
      %c0_575 = arith.constant 0 : index
      %c5_576 = arith.constant 5 : index
      %c5_577 = arith.constant 5 : index
      %c0_578 = arith.constant 0 : index
      %725 = vector.load %arg8[%c0_575, %c5_576, %c5_577, %c0_578] : memref<2x7x22x16xf32, #tpu.memory_space<vmem>>, vector<1x1x16x16xf32>
      %726 = vector.shape_cast %725 : vector<1x1x16x16xf32> to vector<16x16xf32>
      %727 = vector.broadcast %724 : f32 to vector<16x16xf32>
      %728 = arith.mulf %727, %726 : vector<16x16xf32>
      %729 = arith.addf %723, %728 : vector<16x16xf32>
      %c41 = arith.constant 41 : index
      %730 = memref.load %arg2[%c41] : memref<98xf32, #tpu.memory_space<smem>>
      %c0_579 = arith.constant 0 : index
      %c6_580 = arith.constant 6 : index
      %c5_581 = arith.constant 5 : index
      %c0_582 = arith.constant 0 : index
      %731 = vector.load %arg8[%c0_579, %c6_580, %c5_581, %c0_582] : memref<2x7x22x16xf32, #tpu.memory_space<vmem>>, vector<1x1x16x16xf32>
      %732 = vector.shape_cast %731 : vector<1x1x16x16xf32> to vector<16x16xf32>
      %733 = vector.broadcast %730 : f32 to vector<16x16xf32>
      %734 = arith.mulf %733, %732 : vector<16x16xf32>
      %735 = arith.addf %729, %734 : vector<16x16xf32>
      %c84 = arith.constant 84 : index
      %736 = memref.load %arg2[%c84] : memref<98xf32, #tpu.memory_space<smem>>
      %c1_583 = arith.constant 1 : index
      %c0_584 = arith.constant 0 : index
      %c5_585 = arith.constant 5 : index
      %c0_586 = arith.constant 0 : index
      %737 = vector.load %arg8[%c1_583, %c0_584, %c5_585, %c0_586] : memref<2x7x22x16xf32, #tpu.memory_space<vmem>>, vector<1x1x16x16xf32>
      %738 = vector.shape_cast %737 : vector<1x1x16x16xf32> to vector<16x16xf32>
      %739 = vector.broadcast %736 : f32 to vector<16x16xf32>
      %740 = arith.mulf %739, %738 : vector<16x16xf32>
      %741 = arith.addf %735, %740 : vector<16x16xf32>
      %c85 = arith.constant 85 : index
      %742 = memref.load %arg2[%c85] : memref<98xf32, #tpu.memory_space<smem>>
      %c1_587 = arith.constant 1 : index
      %c1_588 = arith.constant 1 : index
      %c5_589 = arith.constant 5 : index
      %c0_590 = arith.constant 0 : index
      %743 = vector.load %arg8[%c1_587, %c1_588, %c5_589, %c0_590] : memref<2x7x22x16xf32, #tpu.memory_space<vmem>>, vector<1x1x16x16xf32>
      %744 = vector.shape_cast %743 : vector<1x1x16x16xf32> to vector<16x16xf32>
      %745 = vector.broadcast %742 : f32 to vector<16x16xf32>
      %746 = arith.mulf %745, %744 : vector<16x16xf32>
      %747 = arith.addf %741, %746 : vector<16x16xf32>
      %c86 = arith.constant 86 : index
      %748 = memref.load %arg2[%c86] : memref<98xf32, #tpu.memory_space<smem>>
      %c1_591 = arith.constant 1 : index
      %c2_592 = arith.constant 2 : index
      %c5_593 = arith.constant 5 : index
      %c0_594 = arith.constant 0 : index
      %749 = vector.load %arg8[%c1_591, %c2_592, %c5_593, %c0_594] : memref<2x7x22x16xf32, #tpu.memory_space<vmem>>, vector<1x1x16x16xf32>
      %750 = vector.shape_cast %749 : vector<1x1x16x16xf32> to vector<16x16xf32>
      %751 = vector.broadcast %748 : f32 to vector<16x16xf32>
      %752 = arith.mulf %751, %750 : vector<16x16xf32>
      %753 = arith.addf %747, %752 : vector<16x16xf32>
      %c87 = arith.constant 87 : index
      %754 = memref.load %arg2[%c87] : memref<98xf32, #tpu.memory_space<smem>>
      %c1_595 = arith.constant 1 : index
      %c3_596 = arith.constant 3 : index
      %c5_597 = arith.constant 5 : index
      %c0_598 = arith.constant 0 : index
      %755 = vector.load %arg8[%c1_595, %c3_596, %c5_597, %c0_598] : memref<2x7x22x16xf32, #tpu.memory_space<vmem>>, vector<1x1x16x16xf32>
      %756 = vector.shape_cast %755 : vector<1x1x16x16xf32> to vector<16x16xf32>
      %757 = vector.broadcast %754 : f32 to vector<16x16xf32>
      %758 = arith.mulf %757, %756 : vector<16x16xf32>
      %759 = arith.addf %753, %758 : vector<16x16xf32>
      %c88 = arith.constant 88 : index
      %760 = memref.load %arg2[%c88] : memref<98xf32, #tpu.memory_space<smem>>
      %c1_599 = arith.constant 1 : index
      %c4_600 = arith.constant 4 : index
      %c5_601 = arith.constant 5 : index
      %c0_602 = arith.constant 0 : index
      %761 = vector.load %arg8[%c1_599, %c4_600, %c5_601, %c0_602] : memref<2x7x22x16xf32, #tpu.memory_space<vmem>>, vector<1x1x16x16xf32>
      %762 = vector.shape_cast %761 : vector<1x1x16x16xf32> to vector<16x16xf32>
      %763 = vector.broadcast %760 : f32 to vector<16x16xf32>
      %764 = arith.mulf %763, %762 : vector<16x16xf32>
      %765 = arith.addf %759, %764 : vector<16x16xf32>
      %c89 = arith.constant 89 : index
      %766 = memref.load %arg2[%c89] : memref<98xf32, #tpu.memory_space<smem>>
      %c1_603 = arith.constant 1 : index
      %c5_604 = arith.constant 5 : index
      %c5_605 = arith.constant 5 : index
      %c0_606 = arith.constant 0 : index
      %767 = vector.load %arg8[%c1_603, %c5_604, %c5_605, %c0_606] : memref<2x7x22x16xf32, #tpu.memory_space<vmem>>, vector<1x1x16x16xf32>
      %768 = vector.shape_cast %767 : vector<1x1x16x16xf32> to vector<16x16xf32>
      %769 = vector.broadcast %766 : f32 to vector<16x16xf32>
      %770 = arith.mulf %769, %768 : vector<16x16xf32>
      %771 = arith.addf %765, %770 : vector<16x16xf32>
      %c90 = arith.constant 90 : index
      %772 = memref.load %arg2[%c90] : memref<98xf32, #tpu.memory_space<smem>>
      %c1_607 = arith.constant 1 : index
      %c6_608 = arith.constant 6 : index
      %c5_609 = arith.constant 5 : index
      %c0_610 = arith.constant 0 : index
      %773 = vector.load %arg8[%c1_607, %c6_608, %c5_609, %c0_610] : memref<2x7x22x16xf32, #tpu.memory_space<vmem>>, vector<1x1x16x16xf32>
      %774 = vector.shape_cast %773 : vector<1x1x16x16xf32> to vector<16x16xf32>
      %775 = vector.broadcast %772 : f32 to vector<16x16xf32>
      %776 = arith.mulf %775, %774 : vector<16x16xf32>
      %777 = arith.addf %771, %776 : vector<16x16xf32>
      %c42 = arith.constant 42 : index
      %778 = memref.load %arg2[%c42] : memref<98xf32, #tpu.memory_space<smem>>
      %c0_611 = arith.constant 0 : index
      %c0_612 = arith.constant 0 : index
      %c6_613 = arith.constant 6 : index
      %c0_614 = arith.constant 0 : index
      %779 = vector.load %arg8[%c0_611, %c0_612, %c6_613, %c0_614] : memref<2x7x22x16xf32, #tpu.memory_space<vmem>>, vector<1x1x16x16xf32>
      %780 = vector.shape_cast %779 : vector<1x1x16x16xf32> to vector<16x16xf32>
      %781 = vector.broadcast %778 : f32 to vector<16x16xf32>
      %782 = arith.mulf %781, %780 : vector<16x16xf32>
      %783 = arith.addf %777, %782 : vector<16x16xf32>
      %c43 = arith.constant 43 : index
      %784 = memref.load %arg2[%c43] : memref<98xf32, #tpu.memory_space<smem>>
      %c0_615 = arith.constant 0 : index
      %c1_616 = arith.constant 1 : index
      %c6_617 = arith.constant 6 : index
      %c0_618 = arith.constant 0 : index
      %785 = vector.load %arg8[%c0_615, %c1_616, %c6_617, %c0_618] : memref<2x7x22x16xf32, #tpu.memory_space<vmem>>, vector<1x1x16x16xf32>
      %786 = vector.shape_cast %785 : vector<1x1x16x16xf32> to vector<16x16xf32>
      %787 = vector.broadcast %784 : f32 to vector<16x16xf32>
      %788 = arith.mulf %787, %786 : vector<16x16xf32>
      %789 = arith.addf %783, %788 : vector<16x16xf32>
      %c44 = arith.constant 44 : index
      %790 = memref.load %arg2[%c44] : memref<98xf32, #tpu.memory_space<smem>>
      %c0_619 = arith.constant 0 : index
      %c2_620 = arith.constant 2 : index
      %c6_621 = arith.constant 6 : index
      %c0_622 = arith.constant 0 : index
      %791 = vector.load %arg8[%c0_619, %c2_620, %c6_621, %c0_622] : memref<2x7x22x16xf32, #tpu.memory_space<vmem>>, vector<1x1x16x16xf32>
      %792 = vector.shape_cast %791 : vector<1x1x16x16xf32> to vector<16x16xf32>
      %793 = vector.broadcast %790 : f32 to vector<16x16xf32>
      %794 = arith.mulf %793, %792 : vector<16x16xf32>
      %795 = arith.addf %789, %794 : vector<16x16xf32>
      %c45 = arith.constant 45 : index
      %796 = memref.load %arg2[%c45] : memref<98xf32, #tpu.memory_space<smem>>
      %c0_623 = arith.constant 0 : index
      %c3_624 = arith.constant 3 : index
      %c6_625 = arith.constant 6 : index
      %c0_626 = arith.constant 0 : index
      %797 = vector.load %arg8[%c0_623, %c3_624, %c6_625, %c0_626] : memref<2x7x22x16xf32, #tpu.memory_space<vmem>>, vector<1x1x16x16xf32>
      %798 = vector.shape_cast %797 : vector<1x1x16x16xf32> to vector<16x16xf32>
      %799 = vector.broadcast %796 : f32 to vector<16x16xf32>
      %800 = arith.mulf %799, %798 : vector<16x16xf32>
      %801 = arith.addf %795, %800 : vector<16x16xf32>
      %c46 = arith.constant 46 : index
      %802 = memref.load %arg2[%c46] : memref<98xf32, #tpu.memory_space<smem>>
      %c0_627 = arith.constant 0 : index
      %c4_628 = arith.constant 4 : index
      %c6_629 = arith.constant 6 : index
      %c0_630 = arith.constant 0 : index
      %803 = vector.load %arg8[%c0_627, %c4_628, %c6_629, %c0_630] : memref<2x7x22x16xf32, #tpu.memory_space<vmem>>, vector<1x1x16x16xf32>
      %804 = vector.shape_cast %803 : vector<1x1x16x16xf32> to vector<16x16xf32>
      %805 = vector.broadcast %802 : f32 to vector<16x16xf32>
      %806 = arith.mulf %805, %804 : vector<16x16xf32>
      %807 = arith.addf %801, %806 : vector<16x16xf32>
      %c47 = arith.constant 47 : index
      %808 = memref.load %arg2[%c47] : memref<98xf32, #tpu.memory_space<smem>>
      %c0_631 = arith.constant 0 : index
      %c5_632 = arith.constant 5 : index
      %c6_633 = arith.constant 6 : index
      %c0_634 = arith.constant 0 : index
      %809 = vector.load %arg8[%c0_631, %c5_632, %c6_633, %c0_634] : memref<2x7x22x16xf32, #tpu.memory_space<vmem>>, vector<1x1x16x16xf32>
      %810 = vector.shape_cast %809 : vector<1x1x16x16xf32> to vector<16x16xf32>
      %811 = vector.broadcast %808 : f32 to vector<16x16xf32>
      %812 = arith.mulf %811, %810 : vector<16x16xf32>
      %813 = arith.addf %807, %812 : vector<16x16xf32>
      %c48_635 = arith.constant 48 : index
      %814 = memref.load %arg2[%c48_635] : memref<98xf32, #tpu.memory_space<smem>>
      %c0_636 = arith.constant 0 : index
      %c6_637 = arith.constant 6 : index
      %c6_638 = arith.constant 6 : index
      %c0_639 = arith.constant 0 : index
      %815 = vector.load %arg8[%c0_636, %c6_637, %c6_638, %c0_639] : memref<2x7x22x16xf32, #tpu.memory_space<vmem>>, vector<1x1x16x16xf32>
      %816 = vector.shape_cast %815 : vector<1x1x16x16xf32> to vector<16x16xf32>
      %817 = vector.broadcast %814 : f32 to vector<16x16xf32>
      %818 = arith.mulf %817, %816 : vector<16x16xf32>
      %819 = arith.addf %813, %818 : vector<16x16xf32>
      %c91 = arith.constant 91 : index
      %820 = memref.load %arg2[%c91] : memref<98xf32, #tpu.memory_space<smem>>
      %c1_640 = arith.constant 1 : index
      %c0_641 = arith.constant 0 : index
      %c6_642 = arith.constant 6 : index
      %c0_643 = arith.constant 0 : index
      %821 = vector.load %arg8[%c1_640, %c0_641, %c6_642, %c0_643] : memref<2x7x22x16xf32, #tpu.memory_space<vmem>>, vector<1x1x16x16xf32>
      %822 = vector.shape_cast %821 : vector<1x1x16x16xf32> to vector<16x16xf32>
      %823 = vector.broadcast %820 : f32 to vector<16x16xf32>
      %824 = arith.mulf %823, %822 : vector<16x16xf32>
      %825 = arith.addf %819, %824 : vector<16x16xf32>
      %c92 = arith.constant 92 : index
      %826 = memref.load %arg2[%c92] : memref<98xf32, #tpu.memory_space<smem>>
      %c1_644 = arith.constant 1 : index
      %c1_645 = arith.constant 1 : index
      %c6_646 = arith.constant 6 : index
      %c0_647 = arith.constant 0 : index
      %827 = vector.load %arg8[%c1_644, %c1_645, %c6_646, %c0_647] : memref<2x7x22x16xf32, #tpu.memory_space<vmem>>, vector<1x1x16x16xf32>
      %828 = vector.shape_cast %827 : vector<1x1x16x16xf32> to vector<16x16xf32>
      %829 = vector.broadcast %826 : f32 to vector<16x16xf32>
      %830 = arith.mulf %829, %828 : vector<16x16xf32>
      %831 = arith.addf %825, %830 : vector<16x16xf32>
      %c93 = arith.constant 93 : index
      %832 = memref.load %arg2[%c93] : memref<98xf32, #tpu.memory_space<smem>>
      %c1_648 = arith.constant 1 : index
      %c2_649 = arith.constant 2 : index
      %c6_650 = arith.constant 6 : index
      %c0_651 = arith.constant 0 : index
      %833 = vector.load %arg8[%c1_648, %c2_649, %c6_650, %c0_651] : memref<2x7x22x16xf32, #tpu.memory_space<vmem>>, vector<1x1x16x16xf32>
      %834 = vector.shape_cast %833 : vector<1x1x16x16xf32> to vector<16x16xf32>
      %835 = vector.broadcast %832 : f32 to vector<16x16xf32>
      %836 = arith.mulf %835, %834 : vector<16x16xf32>
      %837 = arith.addf %831, %836 : vector<16x16xf32>
      %c94 = arith.constant 94 : index
      %838 = memref.load %arg2[%c94] : memref<98xf32, #tpu.memory_space<smem>>
      %c1_652 = arith.constant 1 : index
      %c3_653 = arith.constant 3 : index
      %c6_654 = arith.constant 6 : index
      %c0_655 = arith.constant 0 : index
      %839 = vector.load %arg8[%c1_652, %c3_653, %c6_654, %c0_655] : memref<2x7x22x16xf32, #tpu.memory_space<vmem>>, vector<1x1x16x16xf32>
      %840 = vector.shape_cast %839 : vector<1x1x16x16xf32> to vector<16x16xf32>
      %841 = vector.broadcast %838 : f32 to vector<16x16xf32>
      %842 = arith.mulf %841, %840 : vector<16x16xf32>
      %843 = arith.addf %837, %842 : vector<16x16xf32>
      %c95 = arith.constant 95 : index
      %844 = memref.load %arg2[%c95] : memref<98xf32, #tpu.memory_space<smem>>
      %c1_656 = arith.constant 1 : index
      %c4_657 = arith.constant 4 : index
      %c6_658 = arith.constant 6 : index
      %c0_659 = arith.constant 0 : index
      %845 = vector.load %arg8[%c1_656, %c4_657, %c6_658, %c0_659] : memref<2x7x22x16xf32, #tpu.memory_space<vmem>>, vector<1x1x16x16xf32>
      %846 = vector.shape_cast %845 : vector<1x1x16x16xf32> to vector<16x16xf32>
      %847 = vector.broadcast %844 : f32 to vector<16x16xf32>
      %848 = arith.mulf %847, %846 : vector<16x16xf32>
      %849 = arith.addf %843, %848 : vector<16x16xf32>
      %c96_660 = arith.constant 96 : index
      %850 = memref.load %arg2[%c96_660] : memref<98xf32, #tpu.memory_space<smem>>
      %c1_661 = arith.constant 1 : index
      %c5_662 = arith.constant 5 : index
      %c6_663 = arith.constant 6 : index
      %c0_664 = arith.constant 0 : index
      %851 = vector.load %arg8[%c1_661, %c5_662, %c6_663, %c0_664] : memref<2x7x22x16xf32, #tpu.memory_space<vmem>>, vector<1x1x16x16xf32>
      %852 = vector.shape_cast %851 : vector<1x1x16x16xf32> to vector<16x16xf32>
      %853 = vector.broadcast %850 : f32 to vector<16x16xf32>
      %854 = arith.mulf %853, %852 : vector<16x16xf32>
      %855 = arith.addf %849, %854 : vector<16x16xf32>
      %c97 = arith.constant 97 : index
      %856 = memref.load %arg2[%c97] : memref<98xf32, #tpu.memory_space<smem>>
      %c1_665 = arith.constant 1 : index
      %c6_666 = arith.constant 6 : index
      %c6_667 = arith.constant 6 : index
      %c0_668 = arith.constant 0 : index
      %857 = vector.load %arg8[%c1_665, %c6_666, %c6_667, %c0_668] : memref<2x7x22x16xf32, #tpu.memory_space<vmem>>, vector<1x1x16x16xf32>
      %858 = vector.shape_cast %857 : vector<1x1x16x16xf32> to vector<16x16xf32>
      %859 = vector.broadcast %856 : f32 to vector<16x16xf32>
      %860 = arith.mulf %859, %858 : vector<16x16xf32>
      %861 = arith.addf %855, %860 : vector<16x16xf32>
      %862 = arith.negf %861 : vector<16x16xf32>
      %863 = math.exp %862 : vector<16x16xf32>
      %cst_669 = arith.constant 1.000000e+00 : f32
      %864 = vector.broadcast %cst_669 : f32 to vector<16x16xf32>
      %865 = arith.addf %864, %863 : vector<16x16xf32>
      %866 = arith.divf %864, %865 : vector<16x16xf32>
      %867 = vector.extract_strided_slice %866 {offsets = [0, 0], sizes = [1, 16], strides = [1, 1]} : vector<16x16xf32> to vector<1x16xf32>
      %868 = vector.shape_cast %867 : vector<1x16xf32> to vector<16xf32>
      %c0_670 = arith.constant 0 : index
      %c0_671 = arith.constant 0 : index
      %c0_672 = arith.constant 0 : index
      %869 = vector.load %arg4[%c0_670, %c0_671, %c0_672] : memref<2x1x256xf32, #tpu.memory_space<vmem>>, vector<1x1x16xf32>
      %870 = vector.shape_cast %869 : vector<1x1x16xf32> to vector<16xf32>
      %871 = vector.shape_cast %868 : vector<16xf32> to vector<1x1x16xf32>
      tpu.vector_store %arg4[%c0_670, %c0_671, %c0_672], %871 {strides = array<i32>} : memref<2x1x256xf32, #tpu.memory_space<vmem>>, vector<1x1x16xf32>,
      %872 = vector.extract_strided_slice %866 {offsets = [1, 0], sizes = [1, 16], strides = [1, 1]} : vector<16x16xf32> to vector<1x16xf32>
      %873 = vector.shape_cast %872 : vector<1x16xf32> to vector<16xf32>
      %c0_673 = arith.constant 0 : index
      %c0_674 = arith.constant 0 : index
      %c16_675 = arith.constant 16 : index
      %874 = vector.load %arg4[%c0_673, %c0_674, %c16_675] : memref<2x1x256xf32, #tpu.memory_space<vmem>>, vector<1x1x16xf32>
      %875 = vector.shape_cast %874 : vector<1x1x16xf32> to vector<16xf32>
      %876 = vector.shape_cast %873 : vector<16xf32> to vector<1x1x16xf32>
      tpu.vector_store %arg4[%c0_673, %c0_674, %c16_675], %876 {strides = array<i32>} : memref<2x1x256xf32, #tpu.memory_space<vmem>>, vector<1x1x16xf32>,
      %877 = vector.extract_strided_slice %866 {offsets = [2, 0], sizes = [1, 16], strides = [1, 1]} : vector<16x16xf32> to vector<1x16xf32>
      %878 = vector.shape_cast %877 : vector<1x16xf32> to vector<16xf32>
      %c0_676 = arith.constant 0 : index
      %c0_677 = arith.constant 0 : index
      %c32_678 = arith.constant 32 : index
      %879 = vector.load %arg4[%c0_676, %c0_677, %c32_678] : memref<2x1x256xf32, #tpu.memory_space<vmem>>, vector<1x1x16xf32>
      %880 = vector.shape_cast %879 : vector<1x1x16xf32> to vector<16xf32>
      %881 = vector.shape_cast %878 : vector<16xf32> to vector<1x1x16xf32>
      tpu.vector_store %arg4[%c0_676, %c0_677, %c32_678], %881 {strides = array<i32>} : memref<2x1x256xf32, #tpu.memory_space<vmem>>, vector<1x1x16xf32>,
      %882 = vector.extract_strided_slice %866 {offsets = [3, 0], sizes = [1, 16], strides = [1, 1]} : vector<16x16xf32> to vector<1x16xf32>
      %883 = vector.shape_cast %882 : vector<1x16xf32> to vector<16xf32>
      %c0_679 = arith.constant 0 : index
      %c0_680 = arith.constant 0 : index
      %c48_681 = arith.constant 48 : index
      %884 = vector.load %arg4[%c0_679, %c0_680, %c48_681] : memref<2x1x256xf32, #tpu.memory_space<vmem>>, vector<1x1x16xf32>
      %885 = vector.shape_cast %884 : vector<1x1x16xf32> to vector<16xf32>
      %886 = vector.shape_cast %883 : vector<16xf32> to vector<1x1x16xf32>
      tpu.vector_store %arg4[%c0_679, %c0_680, %c48_681], %886 {strides = array<i32>} : memref<2x1x256xf32, #tpu.memory_space<vmem>>, vector<1x1x16xf32>,
      %887 = vector.extract_strided_slice %866 {offsets = [4, 0], sizes = [1, 16], strides = [1, 1]} : vector<16x16xf32> to vector<1x16xf32>
      %888 = vector.shape_cast %887 : vector<1x16xf32> to vector<16xf32>
      %c0_682 = arith.constant 0 : index
      %c0_683 = arith.constant 0 : index
      %c64_684 = arith.constant 64 : index
      %889 = vector.load %arg4[%c0_682, %c0_683, %c64_684] : memref<2x1x256xf32, #tpu.memory_space<vmem>>, vector<1x1x16xf32>
      %890 = vector.shape_cast %889 : vector<1x1x16xf32> to vector<16xf32>
      %891 = vector.shape_cast %888 : vector<16xf32> to vector<1x1x16xf32>
      tpu.vector_store %arg4[%c0_682, %c0_683, %c64_684], %891 {strides = array<i32>} : memref<2x1x256xf32, #tpu.memory_space<vmem>>, vector<1x1x16xf32>,
      %892 = vector.extract_strided_slice %866 {offsets = [5, 0], sizes = [1, 16], strides = [1, 1]} : vector<16x16xf32> to vector<1x16xf32>
      %893 = vector.shape_cast %892 : vector<1x16xf32> to vector<16xf32>
      %c0_685 = arith.constant 0 : index
      %c0_686 = arith.constant 0 : index
      %c80_687 = arith.constant 80 : index
      %894 = vector.load %arg4[%c0_685, %c0_686, %c80_687] : memref<2x1x256xf32, #tpu.memory_space<vmem>>, vector<1x1x16xf32>
      %895 = vector.shape_cast %894 : vector<1x1x16xf32> to vector<16xf32>
      %896 = vector.shape_cast %893 : vector<16xf32> to vector<1x1x16xf32>
      tpu.vector_store %arg4[%c0_685, %c0_686, %c80_687], %896 {strides = array<i32>} : memref<2x1x256xf32, #tpu.memory_space<vmem>>, vector<1x1x16xf32>,
      %897 = vector.extract_strided_slice %866 {offsets = [6, 0], sizes = [1, 16], strides = [1, 1]} : vector<16x16xf32> to vector<1x16xf32>
      %898 = vector.shape_cast %897 : vector<1x16xf32> to vector<16xf32>
      %c0_688 = arith.constant 0 : index
      %c0_689 = arith.constant 0 : index
      %c96_690 = arith.constant 96 : index
      %899 = vector.load %arg4[%c0_688, %c0_689, %c96_690] : memref<2x1x256xf32, #tpu.memory_space<vmem>>, vector<1x1x16xf32>
      %900 = vector.shape_cast %899 : vector<1x1x16xf32> to vector<16xf32>
      %901 = vector.shape_cast %898 : vector<16xf32> to vector<1x1x16xf32>
      tpu.vector_store %arg4[%c0_688, %c0_689, %c96_690], %901 {strides = array<i32>} : memref<2x1x256xf32, #tpu.memory_space<vmem>>, vector<1x1x16xf32>,
      %902 = vector.extract_strided_slice %866 {offsets = [7, 0], sizes = [1, 16], strides = [1, 1]} : vector<16x16xf32> to vector<1x16xf32>
      %903 = vector.shape_cast %902 : vector<1x16xf32> to vector<16xf32>
      %c0_691 = arith.constant 0 : index
      %c0_692 = arith.constant 0 : index
      %c112_693 = arith.constant 112 : index
      %904 = vector.load %arg4[%c0_691, %c0_692, %c112_693] : memref<2x1x256xf32, #tpu.memory_space<vmem>>, vector<1x1x16xf32>
      %905 = vector.shape_cast %904 : vector<1x1x16xf32> to vector<16xf32>
      %906 = vector.shape_cast %903 : vector<16xf32> to vector<1x1x16xf32>
      tpu.vector_store %arg4[%c0_691, %c0_692, %c112_693], %906 {strides = array<i32>} : memref<2x1x256xf32, #tpu.memory_space<vmem>>, vector<1x1x16xf32>,
      %907 = vector.extract_strided_slice %866 {offsets = [8, 0], sizes = [1, 16], strides = [1, 1]} : vector<16x16xf32> to vector<1x16xf32>
      %908 = vector.shape_cast %907 : vector<1x16xf32> to vector<16xf32>
      %c0_694 = arith.constant 0 : index
      %c0_695 = arith.constant 0 : index
      %c128_696 = arith.constant 128 : index
      %909 = vector.load %arg4[%c0_694, %c0_695, %c128_696] : memref<2x1x256xf32, #tpu.memory_space<vmem>>, vector<1x1x16xf32>
      %910 = vector.shape_cast %909 : vector<1x1x16xf32> to vector<16xf32>
      %911 = vector.shape_cast %908 : vector<16xf32> to vector<1x1x16xf32>
      tpu.vector_store %arg4[%c0_694, %c0_695, %c128_696], %911 {strides = array<i32>} : memref<2x1x256xf32, #tpu.memory_space<vmem>>, vector<1x1x16xf32>,
      %912 = vector.extract_strided_slice %866 {offsets = [9, 0], sizes = [1, 16], strides = [1, 1]} : vector<16x16xf32> to vector<1x16xf32>
      %913 = vector.shape_cast %912 : vector<1x16xf32> to vector<16xf32>
      %c0_697 = arith.constant 0 : index
      %c0_698 = arith.constant 0 : index
      %c144_699 = arith.constant 144 : index
      %914 = vector.load %arg4[%c0_697, %c0_698, %c144_699] : memref<2x1x256xf32, #tpu.memory_space<vmem>>, vector<1x1x16xf32>
      %915 = vector.shape_cast %914 : vector<1x1x16xf32> to vector<16xf32>
      %916 = vector.shape_cast %913 : vector<16xf32> to vector<1x1x16xf32>
      tpu.vector_store %arg4[%c0_697, %c0_698, %c144_699], %916 {strides = array<i32>} : memref<2x1x256xf32, #tpu.memory_space<vmem>>, vector<1x1x16xf32>,
      %917 = vector.extract_strided_slice %866 {offsets = [10, 0], sizes = [1, 16], strides = [1, 1]} : vector<16x16xf32> to vector<1x16xf32>
      %918 = vector.shape_cast %917 : vector<1x16xf32> to vector<16xf32>
      %c0_700 = arith.constant 0 : index
      %c0_701 = arith.constant 0 : index
      %c160_702 = arith.constant 160 : index
      %919 = vector.load %arg4[%c0_700, %c0_701, %c160_702] : memref<2x1x256xf32, #tpu.memory_space<vmem>>, vector<1x1x16xf32>
      %920 = vector.shape_cast %919 : vector<1x1x16xf32> to vector<16xf32>
      %921 = vector.shape_cast %918 : vector<16xf32> to vector<1x1x16xf32>
      tpu.vector_store %arg4[%c0_700, %c0_701, %c160_702], %921 {strides = array<i32>} : memref<2x1x256xf32, #tpu.memory_space<vmem>>, vector<1x1x16xf32>,
      %922 = vector.extract_strided_slice %866 {offsets = [11, 0], sizes = [1, 16], strides = [1, 1]} : vector<16x16xf32> to vector<1x16xf32>
      %923 = vector.shape_cast %922 : vector<1x16xf32> to vector<16xf32>
      %c0_703 = arith.constant 0 : index
      %c0_704 = arith.constant 0 : index
      %c176_705 = arith.constant 176 : index
      %924 = vector.load %arg4[%c0_703, %c0_704, %c176_705] : memref<2x1x256xf32, #tpu.memory_space<vmem>>, vector<1x1x16xf32>
      %925 = vector.shape_cast %924 : vector<1x1x16xf32> to vector<16xf32>
      %926 = vector.shape_cast %923 : vector<16xf32> to vector<1x1x16xf32>
      tpu.vector_store %arg4[%c0_703, %c0_704, %c176_705], %926 {strides = array<i32>} : memref<2x1x256xf32, #tpu.memory_space<vmem>>, vector<1x1x16xf32>,
      %927 = vector.extract_strided_slice %866 {offsets = [12, 0], sizes = [1, 16], strides = [1, 1]} : vector<16x16xf32> to vector<1x16xf32>
      %928 = vector.shape_cast %927 : vector<1x16xf32> to vector<16xf32>
      %c0_706 = arith.constant 0 : index
      %c0_707 = arith.constant 0 : index
      %c192_708 = arith.constant 192 : index
      %929 = vector.load %arg4[%c0_706, %c0_707, %c192_708] : memref<2x1x256xf32, #tpu.memory_space<vmem>>, vector<1x1x16xf32>
      %930 = vector.shape_cast %929 : vector<1x1x16xf32> to vector<16xf32>
      %931 = vector.shape_cast %928 : vector<16xf32> to vector<1x1x16xf32>
      tpu.vector_store %arg4[%c0_706, %c0_707, %c192_708], %931 {strides = array<i32>} : memref<2x1x256xf32, #tpu.memory_space<vmem>>, vector<1x1x16xf32>,
      %932 = vector.extract_strided_slice %866 {offsets = [13, 0], sizes = [1, 16], strides = [1, 1]} : vector<16x16xf32> to vector<1x16xf32>
      %933 = vector.shape_cast %932 : vector<1x16xf32> to vector<16xf32>
      %c0_709 = arith.constant 0 : index
      %c0_710 = arith.constant 0 : index
      %c208_711 = arith.constant 208 : index
      %934 = vector.load %arg4[%c0_709, %c0_710, %c208_711] : memref<2x1x256xf32, #tpu.memory_space<vmem>>, vector<1x1x16xf32>
      %935 = vector.shape_cast %934 : vector<1x1x16xf32> to vector<16xf32>
      %936 = vector.shape_cast %933 : vector<16xf32> to vector<1x1x16xf32>
      tpu.vector_store %arg4[%c0_709, %c0_710, %c208_711], %936 {strides = array<i32>} : memref<2x1x256xf32, #tpu.memory_space<vmem>>, vector<1x1x16xf32>,
      %937 = vector.extract_strided_slice %866 {offsets = [14, 0], sizes = [1, 16], strides = [1, 1]} : vector<16x16xf32> to vector<1x16xf32>
      %938 = vector.shape_cast %937 : vector<1x16xf32> to vector<16xf32>
      %c0_712 = arith.constant 0 : index
      %c0_713 = arith.constant 0 : index
      %c224_714 = arith.constant 224 : index
      %939 = vector.load %arg4[%c0_712, %c0_713, %c224_714] : memref<2x1x256xf32, #tpu.memory_space<vmem>>, vector<1x1x16xf32>
      %940 = vector.shape_cast %939 : vector<1x1x16xf32> to vector<16xf32>
      %941 = vector.shape_cast %938 : vector<16xf32> to vector<1x1x16xf32>
      tpu.vector_store %arg4[%c0_712, %c0_713, %c224_714], %941 {strides = array<i32>} : memref<2x1x256xf32, #tpu.memory_space<vmem>>, vector<1x1x16xf32>,
      %942 = vector.extract_strided_slice %866 {offsets = [15, 0], sizes = [1, 16], strides = [1, 1]} : vector<16x16xf32> to vector<1x16xf32>
      %943 = vector.shape_cast %942 : vector<1x16xf32> to vector<16xf32>
      %c0_715 = arith.constant 0 : index
      %c0_716 = arith.constant 0 : index
      %c240_717 = arith.constant 240 : index
      %944 = vector.load %arg4[%c0_715, %c0_716, %c240_717] : memref<2x1x256xf32, #tpu.memory_space<vmem>>, vector<1x1x16xf32>
      %945 = vector.shape_cast %944 : vector<1x1x16xf32> to vector<16xf32>
      %946 = vector.shape_cast %943 : vector<16xf32> to vector<1x1x16xf32>
      tpu.vector_store %arg4[%c0_715, %c0_716, %c240_717], %946 {strides = array<i32>} : memref<2x1x256xf32, #tpu.memory_space<vmem>>, vector<1x1x16xf32>,
      %c1_718 = arith.constant 1 : index
      %c0_719 = arith.constant 0 : index
      %947 = vector.load %arg5[%c1_718, %c0_719] : memref<2x256xf32, #tpu.memory_space<vmem>>, vector<1x16xf32>
      %948 = vector.shape_cast %947 : vector<1x16xf32> to vector<16xf32>
      %cst_720 = arith.constant 2.500000e-01 : f32
      %949 = vector.broadcast %cst_720 : f32 to vector<16xf32>
      %950 = arith.mulf %948, %949 : vector<16xf32>
      %c0_721 = arith.constant 0 : index
      %c3_722 = arith.constant 3 : index
      %c3_723 = arith.constant 3 : index
      %951 = vector.load %arg7[%c0_721, %c3_722, %c3_723] : memref<2x22x22xf32, #tpu.memory_space<vmem>>, vector<1x1x16xf32>
      %952 = vector.shape_cast %951 : vector<1x1x16xf32> to vector<16xf32>
      %953 = vector.shape_cast %950 : vector<16xf32> to vector<1x1x16xf32>
      tpu.vector_store %arg7[%c0_721, %c3_722, %c3_723], %953 {strides = array<i32>} : memref<2x22x22xf32, #tpu.memory_space<vmem>>, vector<1x1x16xf32>,
      %c1_724 = arith.constant 1 : index
      %c0_725 = arith.constant 0 : index
      %954 = vector.load %arg6[%c1_724, %c0_725] : memref<2x256xf32, #tpu.memory_space<vmem>>, vector<1x16xf32>
      %955 = vector.shape_cast %954 : vector<1x16xf32> to vector<16xf32>
      %c1_726 = arith.constant 1 : index
      %c3_727 = arith.constant 3 : index
      %c3_728 = arith.constant 3 : index
      %956 = vector.load %arg7[%c1_726, %c3_727, %c3_728] : memref<2x22x22xf32, #tpu.memory_space<vmem>>, vector<1x1x16xf32>
      %957 = vector.shape_cast %956 : vector<1x1x16xf32> to vector<16xf32>
      %958 = vector.shape_cast %955 : vector<16xf32> to vector<1x1x16xf32>
      tpu.vector_store %arg7[%c1_726, %c3_727, %c3_728], %958 {strides = array<i32>} : memref<2x22x22xf32, #tpu.memory_space<vmem>>, vector<1x1x16xf32>,
      %c1_729 = arith.constant 1 : index
      %c16_730 = arith.constant 16 : index
      %959 = vector.load %arg5[%c1_729, %c16_730] : memref<2x256xf32, #tpu.memory_space<vmem>>, vector<1x16xf32>
      %960 = vector.shape_cast %959 : vector<1x16xf32> to vector<16xf32>
      %cst_731 = arith.constant 2.500000e-01 : f32
      %961 = vector.broadcast %cst_731 : f32 to vector<16xf32>
      %962 = arith.mulf %960, %961 : vector<16xf32>
      %c0_732 = arith.constant 0 : index
      %c4_733 = arith.constant 4 : index
      %c3_734 = arith.constant 3 : index
      %963 = vector.load %arg7[%c0_732, %c4_733, %c3_734] : memref<2x22x22xf32, #tpu.memory_space<vmem>>, vector<1x1x16xf32>
      %964 = vector.shape_cast %963 : vector<1x1x16xf32> to vector<16xf32>
      %965 = vector.shape_cast %962 : vector<16xf32> to vector<1x1x16xf32>
      tpu.vector_store %arg7[%c0_732, %c4_733, %c3_734], %965 {strides = array<i32>} : memref<2x22x22xf32, #tpu.memory_space<vmem>>, vector<1x1x16xf32>,
      %c1_735 = arith.constant 1 : index
      %c16_736 = arith.constant 16 : index
      %966 = vector.load %arg6[%c1_735, %c16_736] : memref<2x256xf32, #tpu.memory_space<vmem>>, vector<1x16xf32>
      %967 = vector.shape_cast %966 : vector<1x16xf32> to vector<16xf32>
      %c1_737 = arith.constant 1 : index
      %c4_738 = arith.constant 4 : index
      %c3_739 = arith.constant 3 : index
      %968 = vector.load %arg7[%c1_737, %c4_738, %c3_739] : memref<2x22x22xf32, #tpu.memory_space<vmem>>, vector<1x1x16xf32>
      %969 = vector.shape_cast %968 : vector<1x1x16xf32> to vector<16xf32>
      %970 = vector.shape_cast %967 : vector<16xf32> to vector<1x1x16xf32>
      tpu.vector_store %arg7[%c1_737, %c4_738, %c3_739], %970 {strides = array<i32>} : memref<2x22x22xf32, #tpu.memory_space<vmem>>, vector<1x1x16xf32>,
      %c1_740 = arith.constant 1 : index
      %c32_741 = arith.constant 32 : index
      %971 = vector.load %arg5[%c1_740, %c32_741] : memref<2x256xf32, #tpu.memory_space<vmem>>, vector<1x16xf32>
      %972 = vector.shape_cast %971 : vector<1x16xf32> to vector<16xf32>
      %cst_742 = arith.constant 2.500000e-01 : f32
      %973 = vector.broadcast %cst_742 : f32 to vector<16xf32>
      %974 = arith.mulf %972, %973 : vector<16xf32>
      %c0_743 = arith.constant 0 : index
      %c5_744 = arith.constant 5 : index
      %c3_745 = arith.constant 3 : index
      %975 = vector.load %arg7[%c0_743, %c5_744, %c3_745] : memref<2x22x22xf32, #tpu.memory_space<vmem>>, vector<1x1x16xf32>
      %976 = vector.shape_cast %975 : vector<1x1x16xf32> to vector<16xf32>
      %977 = vector.shape_cast %974 : vector<16xf32> to vector<1x1x16xf32>
      tpu.vector_store %arg7[%c0_743, %c5_744, %c3_745], %977 {strides = array<i32>} : memref<2x22x22xf32, #tpu.memory_space<vmem>>, vector<1x1x16xf32>,
      %c1_746 = arith.constant 1 : index
      %c32_747 = arith.constant 32 : index
      %978 = vector.load %arg6[%c1_746, %c32_747] : memref<2x256xf32, #tpu.memory_space<vmem>>, vector<1x16xf32>
      %979 = vector.shape_cast %978 : vector<1x16xf32> to vector<16xf32>
      %c1_748 = arith.constant 1 : index
      %c5_749 = arith.constant 5 : index
      %c3_750 = arith.constant 3 : index
      %980 = vector.load %arg7[%c1_748, %c5_749, %c3_750] : memref<2x22x22xf32, #tpu.memory_space<vmem>>, vector<1x1x16xf32>
      %981 = vector.shape_cast %980 : vector<1x1x16xf32> to vector<16xf32>
      %982 = vector.shape_cast %979 : vector<16xf32> to vector<1x1x16xf32>
      tpu.vector_store %arg7[%c1_748, %c5_749, %c3_750], %982 {strides = array<i32>} : memref<2x22x22xf32, #tpu.memory_space<vmem>>, vector<1x1x16xf32>,
      %c1_751 = arith.constant 1 : index
      %c48_752 = arith.constant 48 : index
      %983 = vector.load %arg5[%c1_751, %c48_752] : memref<2x256xf32, #tpu.memory_space<vmem>>, vector<1x16xf32>
      %984 = vector.shape_cast %983 : vector<1x16xf32> to vector<16xf32>
      %cst_753 = arith.constant 2.500000e-01 : f32
      %985 = vector.broadcast %cst_753 : f32 to vector<16xf32>
      %986 = arith.mulf %984, %985 : vector<16xf32>
      %c0_754 = arith.constant 0 : index
      %c6_755 = arith.constant 6 : index
      %c3_756 = arith.constant 3 : index
      %987 = vector.load %arg7[%c0_754, %c6_755, %c3_756] : memref<2x22x22xf32, #tpu.memory_space<vmem>>, vector<1x1x16xf32>
      %988 = vector.shape_cast %987 : vector<1x1x16xf32> to vector<16xf32>
      %989 = vector.shape_cast %986 : vector<16xf32> to vector<1x1x16xf32>
      tpu.vector_store %arg7[%c0_754, %c6_755, %c3_756], %989 {strides = array<i32>} : memref<2x22x22xf32, #tpu.memory_space<vmem>>, vector<1x1x16xf32>,
      %c1_757 = arith.constant 1 : index
      %c48_758 = arith.constant 48 : index
      %990 = vector.load %arg6[%c1_757, %c48_758] : memref<2x256xf32, #tpu.memory_space<vmem>>, vector<1x16xf32>
      %991 = vector.shape_cast %990 : vector<1x16xf32> to vector<16xf32>
      %c1_759 = arith.constant 1 : index
      %c6_760 = arith.constant 6 : index
      %c3_761 = arith.constant 3 : index
      %992 = vector.load %arg7[%c1_759, %c6_760, %c3_761] : memref<2x22x22xf32, #tpu.memory_space<vmem>>, vector<1x1x16xf32>
      %993 = vector.shape_cast %992 : vector<1x1x16xf32> to vector<16xf32>
      %994 = vector.shape_cast %991 : vector<16xf32> to vector<1x1x16xf32>
      tpu.vector_store %arg7[%c1_759, %c6_760, %c3_761], %994 {strides = array<i32>} : memref<2x22x22xf32, #tpu.memory_space<vmem>>, vector<1x1x16xf32>,
      %c1_762 = arith.constant 1 : index
      %c64_763 = arith.constant 64 : index
      %995 = vector.load %arg5[%c1_762, %c64_763] : memref<2x256xf32, #tpu.memory_space<vmem>>, vector<1x16xf32>
      %996 = vector.shape_cast %995 : vector<1x16xf32> to vector<16xf32>
      %cst_764 = arith.constant 2.500000e-01 : f32
      %997 = vector.broadcast %cst_764 : f32 to vector<16xf32>
      %998 = arith.mulf %996, %997 : vector<16xf32>
      %c0_765 = arith.constant 0 : index
      %c7_766 = arith.constant 7 : index
      %c3_767 = arith.constant 3 : index
      %999 = vector.load %arg7[%c0_765, %c7_766, %c3_767] : memref<2x22x22xf32, #tpu.memory_space<vmem>>, vector<1x1x16xf32>
      %1000 = vector.shape_cast %999 : vector<1x1x16xf32> to vector<16xf32>
      %1001 = vector.shape_cast %998 : vector<16xf32> to vector<1x1x16xf32>
      tpu.vector_store %arg7[%c0_765, %c7_766, %c3_767], %1001 {strides = array<i32>} : memref<2x22x22xf32, #tpu.memory_space<vmem>>, vector<1x1x16xf32>,
      %c1_768 = arith.constant 1 : index
      %c64_769 = arith.constant 64 : index
      %1002 = vector.load %arg6[%c1_768, %c64_769] : memref<2x256xf32, #tpu.memory_space<vmem>>, vector<1x16xf32>
      %1003 = vector.shape_cast %1002 : vector<1x16xf32> to vector<16xf32>
      %c1_770 = arith.constant 1 : index
      %c7_771 = arith.constant 7 : index
      %c3_772 = arith.constant 3 : index
      %1004 = vector.load %arg7[%c1_770, %c7_771, %c3_772] : memref<2x22x22xf32, #tpu.memory_space<vmem>>, vector<1x1x16xf32>
      %1005 = vector.shape_cast %1004 : vector<1x1x16xf32> to vector<16xf32>
      %1006 = vector.shape_cast %1003 : vector<16xf32> to vector<1x1x16xf32>
      tpu.vector_store %arg7[%c1_770, %c7_771, %c3_772], %1006 {strides = array<i32>} : memref<2x22x22xf32, #tpu.memory_space<vmem>>, vector<1x1x16xf32>,
      %c1_773 = arith.constant 1 : index
      %c80_774 = arith.constant 80 : index
      %1007 = vector.load %arg5[%c1_773, %c80_774] : memref<2x256xf32, #tpu.memory_space<vmem>>, vector<1x16xf32>
      %1008 = vector.shape_cast %1007 : vector<1x16xf32> to vector<16xf32>
      %cst_775 = arith.constant 2.500000e-01 : f32
      %1009 = vector.broadcast %cst_775 : f32 to vector<16xf32>
      %1010 = arith.mulf %1008, %1009 : vector<16xf32>
      %c0_776 = arith.constant 0 : index
      %c8_777 = arith.constant 8 : index
      %c3_778 = arith.constant 3 : index
      %1011 = vector.load %arg7[%c0_776, %c8_777, %c3_778] : memref<2x22x22xf32, #tpu.memory_space<vmem>>, vector<1x1x16xf32>
      %1012 = vector.shape_cast %1011 : vector<1x1x16xf32> to vector<16xf32>
      %1013 = vector.shape_cast %1010 : vector<16xf32> to vector<1x1x16xf32>
      tpu.vector_store %arg7[%c0_776, %c8_777, %c3_778], %1013 {strides = array<i32>} : memref<2x22x22xf32, #tpu.memory_space<vmem>>, vector<1x1x16xf32>,
      %c1_779 = arith.constant 1 : index
      %c80_780 = arith.constant 80 : index
      %1014 = vector.load %arg6[%c1_779, %c80_780] : memref<2x256xf32, #tpu.memory_space<vmem>>, vector<1x16xf32>
      %1015 = vector.shape_cast %1014 : vector<1x16xf32> to vector<16xf32>
      %c1_781 = arith.constant 1 : index
      %c8_782 = arith.constant 8 : index
      %c3_783 = arith.constant 3 : index
      %1016 = vector.load %arg7[%c1_781, %c8_782, %c3_783] : memref<2x22x22xf32, #tpu.memory_space<vmem>>, vector<1x1x16xf32>
      %1017 = vector.shape_cast %1016 : vector<1x1x16xf32> to vector<16xf32>
      %1018 = vector.shape_cast %1015 : vector<16xf32> to vector<1x1x16xf32>
      tpu.vector_store %arg7[%c1_781, %c8_782, %c3_783], %1018 {strides = array<i32>} : memref<2x22x22xf32, #tpu.memory_space<vmem>>, vector<1x1x16xf32>,
      %c1_784 = arith.constant 1 : index
      %c96_785 = arith.constant 96 : index
      %1019 = vector.load %arg5[%c1_784, %c96_785] : memref<2x256xf32, #tpu.memory_space<vmem>>, vector<1x16xf32>
      %1020 = vector.shape_cast %1019 : vector<1x16xf32> to vector<16xf32>
      %cst_786 = arith.constant 2.500000e-01 : f32
      %1021 = vector.broadcast %cst_786 : f32 to vector<16xf32>
      %1022 = arith.mulf %1020, %1021 : vector<16xf32>
      %c0_787 = arith.constant 0 : index
      %c9_788 = arith.constant 9 : index
      %c3_789 = arith.constant 3 : index
      %1023 = vector.load %arg7[%c0_787, %c9_788, %c3_789] : memref<2x22x22xf32, #tpu.memory_space<vmem>>, vector<1x1x16xf32>
      %1024 = vector.shape_cast %1023 : vector<1x1x16xf32> to vector<16xf32>
      %1025 = vector.shape_cast %1022 : vector<16xf32> to vector<1x1x16xf32>
      tpu.vector_store %arg7[%c0_787, %c9_788, %c3_789], %1025 {strides = array<i32>} : memref<2x22x22xf32, #tpu.memory_space<vmem>>, vector<1x1x16xf32>,
      %c1_790 = arith.constant 1 : index
      %c96_791 = arith.constant 96 : index
      %1026 = vector.load %arg6[%c1_790, %c96_791] : memref<2x256xf32, #tpu.memory_space<vmem>>, vector<1x16xf32>
      %1027 = vector.shape_cast %1026 : vector<1x16xf32> to vector<16xf32>
      %c1_792 = arith.constant 1 : index
      %c9_793 = arith.constant 9 : index
      %c3_794 = arith.constant 3 : index
      %1028 = vector.load %arg7[%c1_792, %c9_793, %c3_794] : memref<2x22x22xf32, #tpu.memory_space<vmem>>, vector<1x1x16xf32>
      %1029 = vector.shape_cast %1028 : vector<1x1x16xf32> to vector<16xf32>
      %1030 = vector.shape_cast %1027 : vector<16xf32> to vector<1x1x16xf32>
      tpu.vector_store %arg7[%c1_792, %c9_793, %c3_794], %1030 {strides = array<i32>} : memref<2x22x22xf32, #tpu.memory_space<vmem>>, vector<1x1x16xf32>,
      %c1_795 = arith.constant 1 : index
      %c112_796 = arith.constant 112 : index
      %1031 = vector.load %arg5[%c1_795, %c112_796] : memref<2x256xf32, #tpu.memory_space<vmem>>, vector<1x16xf32>
      %1032 = vector.shape_cast %1031 : vector<1x16xf32> to vector<16xf32>
      %cst_797 = arith.constant 2.500000e-01 : f32
      %1033 = vector.broadcast %cst_797 : f32 to vector<16xf32>
      %1034 = arith.mulf %1032, %1033 : vector<16xf32>
      %c0_798 = arith.constant 0 : index
      %c10_799 = arith.constant 10 : index
      %c3_800 = arith.constant 3 : index
      %1035 = vector.load %arg7[%c0_798, %c10_799, %c3_800] : memref<2x22x22xf32, #tpu.memory_space<vmem>>, vector<1x1x16xf32>
      %1036 = vector.shape_cast %1035 : vector<1x1x16xf32> to vector<16xf32>
      %1037 = vector.shape_cast %1034 : vector<16xf32> to vector<1x1x16xf32>
      tpu.vector_store %arg7[%c0_798, %c10_799, %c3_800], %1037 {strides = array<i32>} : memref<2x22x22xf32, #tpu.memory_space<vmem>>, vector<1x1x16xf32>,
      %c1_801 = arith.constant 1 : index
      %c112_802 = arith.constant 112 : index
      %1038 = vector.load %arg6[%c1_801, %c112_802] : memref<2x256xf32, #tpu.memory_space<vmem>>, vector<1x16xf32>
      %1039 = vector.shape_cast %1038 : vector<1x16xf32> to vector<16xf32>
      %c1_803 = arith.constant 1 : index
      %c10_804 = arith.constant 10 : index
      %c3_805 = arith.constant 3 : index
      %1040 = vector.load %arg7[%c1_803, %c10_804, %c3_805] : memref<2x22x22xf32, #tpu.memory_space<vmem>>, vector<1x1x16xf32>
      %1041 = vector.shape_cast %1040 : vector<1x1x16xf32> to vector<16xf32>
      %1042 = vector.shape_cast %1039 : vector<16xf32> to vector<1x1x16xf32>
      tpu.vector_store %arg7[%c1_803, %c10_804, %c3_805], %1042 {strides = array<i32>} : memref<2x22x22xf32, #tpu.memory_space<vmem>>, vector<1x1x16xf32>,
      %c1_806 = arith.constant 1 : index
      %c128_807 = arith.constant 128 : index
      %1043 = vector.load %arg5[%c1_806, %c128_807] : memref<2x256xf32, #tpu.memory_space<vmem>>, vector<1x16xf32>
      %1044 = vector.shape_cast %1043 : vector<1x16xf32> to vector<16xf32>
      %cst_808 = arith.constant 2.500000e-01 : f32
      %1045 = vector.broadcast %cst_808 : f32 to vector<16xf32>
      %1046 = arith.mulf %1044, %1045 : vector<16xf32>
      %c0_809 = arith.constant 0 : index
      %c11_810 = arith.constant 11 : index
      %c3_811 = arith.constant 3 : index
      %1047 = vector.load %arg7[%c0_809, %c11_810, %c3_811] : memref<2x22x22xf32, #tpu.memory_space<vmem>>, vector<1x1x16xf32>
      %1048 = vector.shape_cast %1047 : vector<1x1x16xf32> to vector<16xf32>
      %1049 = vector.shape_cast %1046 : vector<16xf32> to vector<1x1x16xf32>
      tpu.vector_store %arg7[%c0_809, %c11_810, %c3_811], %1049 {strides = array<i32>} : memref<2x22x22xf32, #tpu.memory_space<vmem>>, vector<1x1x16xf32>,
      %c1_812 = arith.constant 1 : index
      %c128_813 = arith.constant 128 : index
      %1050 = vector.load %arg6[%c1_812, %c128_813] : memref<2x256xf32, #tpu.memory_space<vmem>>, vector<1x16xf32>
      %1051 = vector.shape_cast %1050 : vector<1x16xf32> to vector<16xf32>
      %c1_814 = arith.constant 1 : index
      %c11_815 = arith.constant 11 : index
      %c3_816 = arith.constant 3 : index
      %1052 = vector.load %arg7[%c1_814, %c11_815, %c3_816] : memref<2x22x22xf32, #tpu.memory_space<vmem>>, vector<1x1x16xf32>
      %1053 = vector.shape_cast %1052 : vector<1x1x16xf32> to vector<16xf32>
      %1054 = vector.shape_cast %1051 : vector<16xf32> to vector<1x1x16xf32>
      tpu.vector_store %arg7[%c1_814, %c11_815, %c3_816], %1054 {strides = array<i32>} : memref<2x22x22xf32, #tpu.memory_space<vmem>>, vector<1x1x16xf32>,
      %c1_817 = arith.constant 1 : index
      %c144_818 = arith.constant 144 : index
      %1055 = vector.load %arg5[%c1_817, %c144_818] : memref<2x256xf32, #tpu.memory_space<vmem>>, vector<1x16xf32>
      %1056 = vector.shape_cast %1055 : vector<1x16xf32> to vector<16xf32>
      %cst_819 = arith.constant 2.500000e-01 : f32
      %1057 = vector.broadcast %cst_819 : f32 to vector<16xf32>
      %1058 = arith.mulf %1056, %1057 : vector<16xf32>
      %c0_820 = arith.constant 0 : index
      %c12_821 = arith.constant 12 : index
      %c3_822 = arith.constant 3 : index
      %1059 = vector.load %arg7[%c0_820, %c12_821, %c3_822] : memref<2x22x22xf32, #tpu.memory_space<vmem>>, vector<1x1x16xf32>
      %1060 = vector.shape_cast %1059 : vector<1x1x16xf32> to vector<16xf32>
      %1061 = vector.shape_cast %1058 : vector<16xf32> to vector<1x1x16xf32>
      tpu.vector_store %arg7[%c0_820, %c12_821, %c3_822], %1061 {strides = array<i32>} : memref<2x22x22xf32, #tpu.memory_space<vmem>>, vector<1x1x16xf32>,
      %c1_823 = arith.constant 1 : index
      %c144_824 = arith.constant 144 : index
      %1062 = vector.load %arg6[%c1_823, %c144_824] : memref<2x256xf32, #tpu.memory_space<vmem>>, vector<1x16xf32>
      %1063 = vector.shape_cast %1062 : vector<1x16xf32> to vector<16xf32>
      %c1_825 = arith.constant 1 : index
      %c12_826 = arith.constant 12 : index
      %c3_827 = arith.constant 3 : index
      %1064 = vector.load %arg7[%c1_825, %c12_826, %c3_827] : memref<2x22x22xf32, #tpu.memory_space<vmem>>, vector<1x1x16xf32>
      %1065 = vector.shape_cast %1064 : vector<1x1x16xf32> to vector<16xf32>
      %1066 = vector.shape_cast %1063 : vector<16xf32> to vector<1x1x16xf32>
      tpu.vector_store %arg7[%c1_825, %c12_826, %c3_827], %1066 {strides = array<i32>} : memref<2x22x22xf32, #tpu.memory_space<vmem>>, vector<1x1x16xf32>,
      %c1_828 = arith.constant 1 : index
      %c160_829 = arith.constant 160 : index
      %1067 = vector.load %arg5[%c1_828, %c160_829] : memref<2x256xf32, #tpu.memory_space<vmem>>, vector<1x16xf32>
      %1068 = vector.shape_cast %1067 : vector<1x16xf32> to vector<16xf32>
      %cst_830 = arith.constant 2.500000e-01 : f32
      %1069 = vector.broadcast %cst_830 : f32 to vector<16xf32>
      %1070 = arith.mulf %1068, %1069 : vector<16xf32>
      %c0_831 = arith.constant 0 : index
      %c13_832 = arith.constant 13 : index
      %c3_833 = arith.constant 3 : index
      %1071 = vector.load %arg7[%c0_831, %c13_832, %c3_833] : memref<2x22x22xf32, #tpu.memory_space<vmem>>, vector<1x1x16xf32>
      %1072 = vector.shape_cast %1071 : vector<1x1x16xf32> to vector<16xf32>
      %1073 = vector.shape_cast %1070 : vector<16xf32> to vector<1x1x16xf32>
      tpu.vector_store %arg7[%c0_831, %c13_832, %c3_833], %1073 {strides = array<i32>} : memref<2x22x22xf32, #tpu.memory_space<vmem>>, vector<1x1x16xf32>,
      %c1_834 = arith.constant 1 : index
      %c160_835 = arith.constant 160 : index
      %1074 = vector.load %arg6[%c1_834, %c160_835] : memref<2x256xf32, #tpu.memory_space<vmem>>, vector<1x16xf32>
      %1075 = vector.shape_cast %1074 : vector<1x16xf32> to vector<16xf32>
      %c1_836 = arith.constant 1 : index
      %c13_837 = arith.constant 13 : index
      %c3_838 = arith.constant 3 : index
      %1076 = vector.load %arg7[%c1_836, %c13_837, %c3_838] : memref<2x22x22xf32, #tpu.memory_space<vmem>>, vector<1x1x16xf32>
      %1077 = vector.shape_cast %1076 : vector<1x1x16xf32> to vector<16xf32>
      %1078 = vector.shape_cast %1075 : vector<16xf32> to vector<1x1x16xf32>
      tpu.vector_store %arg7[%c1_836, %c13_837, %c3_838], %1078 {strides = array<i32>} : memref<2x22x22xf32, #tpu.memory_space<vmem>>, vector<1x1x16xf32>,
      %c1_839 = arith.constant 1 : index
      %c176_840 = arith.constant 176 : index
      %1079 = vector.load %arg5[%c1_839, %c176_840] : memref<2x256xf32, #tpu.memory_space<vmem>>, vector<1x16xf32>
      %1080 = vector.shape_cast %1079 : vector<1x16xf32> to vector<16xf32>
      %cst_841 = arith.constant 2.500000e-01 : f32
      %1081 = vector.broadcast %cst_841 : f32 to vector<16xf32>
      %1082 = arith.mulf %1080, %1081 : vector<16xf32>
      %c0_842 = arith.constant 0 : index
      %c14_843 = arith.constant 14 : index
      %c3_844 = arith.constant 3 : index
      %1083 = vector.load %arg7[%c0_842, %c14_843, %c3_844] : memref<2x22x22xf32, #tpu.memory_space<vmem>>, vector<1x1x16xf32>
      %1084 = vector.shape_cast %1083 : vector<1x1x16xf32> to vector<16xf32>
      %1085 = vector.shape_cast %1082 : vector<16xf32> to vector<1x1x16xf32>
      tpu.vector_store %arg7[%c0_842, %c14_843, %c3_844], %1085 {strides = array<i32>} : memref<2x22x22xf32, #tpu.memory_space<vmem>>, vector<1x1x16xf32>,
      %c1_845 = arith.constant 1 : index
      %c176_846 = arith.constant 176 : index
      %1086 = vector.load %arg6[%c1_845, %c176_846] : memref<2x256xf32, #tpu.memory_space<vmem>>, vector<1x16xf32>
      %1087 = vector.shape_cast %1086 : vector<1x16xf32> to vector<16xf32>
      %c1_847 = arith.constant 1 : index
      %c14_848 = arith.constant 14 : index
      %c3_849 = arith.constant 3 : index
      %1088 = vector.load %arg7[%c1_847, %c14_848, %c3_849] : memref<2x22x22xf32, #tpu.memory_space<vmem>>, vector<1x1x16xf32>
      %1089 = vector.shape_cast %1088 : vector<1x1x16xf32> to vector<16xf32>
      %1090 = vector.shape_cast %1087 : vector<16xf32> to vector<1x1x16xf32>
      tpu.vector_store %arg7[%c1_847, %c14_848, %c3_849], %1090 {strides = array<i32>} : memref<2x22x22xf32, #tpu.memory_space<vmem>>, vector<1x1x16xf32>,
      %c1_850 = arith.constant 1 : index
      %c192_851 = arith.constant 192 : index
      %1091 = vector.load %arg5[%c1_850, %c192_851] : memref<2x256xf32, #tpu.memory_space<vmem>>, vector<1x16xf32>
      %1092 = vector.shape_cast %1091 : vector<1x16xf32> to vector<16xf32>
      %cst_852 = arith.constant 2.500000e-01 : f32
      %1093 = vector.broadcast %cst_852 : f32 to vector<16xf32>
      %1094 = arith.mulf %1092, %1093 : vector<16xf32>
      %c0_853 = arith.constant 0 : index
      %c15_854 = arith.constant 15 : index
      %c3_855 = arith.constant 3 : index
      %1095 = vector.load %arg7[%c0_853, %c15_854, %c3_855] : memref<2x22x22xf32, #tpu.memory_space<vmem>>, vector<1x1x16xf32>
      %1096 = vector.shape_cast %1095 : vector<1x1x16xf32> to vector<16xf32>
      %1097 = vector.shape_cast %1094 : vector<16xf32> to vector<1x1x16xf32>
      tpu.vector_store %arg7[%c0_853, %c15_854, %c3_855], %1097 {strides = array<i32>} : memref<2x22x22xf32, #tpu.memory_space<vmem>>, vector<1x1x16xf32>,
      %c1_856 = arith.constant 1 : index
      %c192_857 = arith.constant 192 : index
      %1098 = vector.load %arg6[%c1_856, %c192_857] : memref<2x256xf32, #tpu.memory_space<vmem>>, vector<1x16xf32>
      %1099 = vector.shape_cast %1098 : vector<1x16xf32> to vector<16xf32>
      %c1_858 = arith.constant 1 : index
      %c15_859 = arith.constant 15 : index
      %c3_860 = arith.constant 3 : index
      %1100 = vector.load %arg7[%c1_858, %c15_859, %c3_860] : memref<2x22x22xf32, #tpu.memory_space<vmem>>, vector<1x1x16xf32>
      %1101 = vector.shape_cast %1100 : vector<1x1x16xf32> to vector<16xf32>
      %1102 = vector.shape_cast %1099 : vector<16xf32> to vector<1x1x16xf32>
      tpu.vector_store %arg7[%c1_858, %c15_859, %c3_860], %1102 {strides = array<i32>} : memref<2x22x22xf32, #tpu.memory_space<vmem>>, vector<1x1x16xf32>,
      %c1_861 = arith.constant 1 : index
      %c208_862 = arith.constant 208 : index
      %1103 = vector.load %arg5[%c1_861, %c208_862] : memref<2x256xf32, #tpu.memory_space<vmem>>, vector<1x16xf32>
      %1104 = vector.shape_cast %1103 : vector<1x16xf32> to vector<16xf32>
      %cst_863 = arith.constant 2.500000e-01 : f32
      %1105 = vector.broadcast %cst_863 : f32 to vector<16xf32>
      %1106 = arith.mulf %1104, %1105 : vector<16xf32>
      %c0_864 = arith.constant 0 : index
      %c16_865 = arith.constant 16 : index
      %c3_866 = arith.constant 3 : index
      %1107 = vector.load %arg7[%c0_864, %c16_865, %c3_866] : memref<2x22x22xf32, #tpu.memory_space<vmem>>, vector<1x1x16xf32>
      %1108 = vector.shape_cast %1107 : vector<1x1x16xf32> to vector<16xf32>
      %1109 = vector.shape_cast %1106 : vector<16xf32> to vector<1x1x16xf32>
      tpu.vector_store %arg7[%c0_864, %c16_865, %c3_866], %1109 {strides = array<i32>} : memref<2x22x22xf32, #tpu.memory_space<vmem>>, vector<1x1x16xf32>,
      %c1_867 = arith.constant 1 : index
      %c208_868 = arith.constant 208 : index
      %1110 = vector.load %arg6[%c1_867, %c208_868] : memref<2x256xf32, #tpu.memory_space<vmem>>, vector<1x16xf32>
      %1111 = vector.shape_cast %1110 : vector<1x16xf32> to vector<16xf32>
      %c1_869 = arith.constant 1 : index
      %c16_870 = arith.constant 16 : index
      %c3_871 = arith.constant 3 : index
      %1112 = vector.load %arg7[%c1_869, %c16_870, %c3_871] : memref<2x22x22xf32, #tpu.memory_space<vmem>>, vector<1x1x16xf32>
      %1113 = vector.shape_cast %1112 : vector<1x1x16xf32> to vector<16xf32>
      %1114 = vector.shape_cast %1111 : vector<16xf32> to vector<1x1x16xf32>
      tpu.vector_store %arg7[%c1_869, %c16_870, %c3_871], %1114 {strides = array<i32>} : memref<2x22x22xf32, #tpu.memory_space<vmem>>, vector<1x1x16xf32>,
      %c1_872 = arith.constant 1 : index
      %c224_873 = arith.constant 224 : index
      %1115 = vector.load %arg5[%c1_872, %c224_873] : memref<2x256xf32, #tpu.memory_space<vmem>>, vector<1x16xf32>
      %1116 = vector.shape_cast %1115 : vector<1x16xf32> to vector<16xf32>
      %cst_874 = arith.constant 2.500000e-01 : f32
      %1117 = vector.broadcast %cst_874 : f32 to vector<16xf32>
      %1118 = arith.mulf %1116, %1117 : vector<16xf32>
      %c0_875 = arith.constant 0 : index
      %c17_876 = arith.constant 17 : index
      %c3_877 = arith.constant 3 : index
      %1119 = vector.load %arg7[%c0_875, %c17_876, %c3_877] : memref<2x22x22xf32, #tpu.memory_space<vmem>>, vector<1x1x16xf32>
      %1120 = vector.shape_cast %1119 : vector<1x1x16xf32> to vector<16xf32>
      %1121 = vector.shape_cast %1118 : vector<16xf32> to vector<1x1x16xf32>
      tpu.vector_store %arg7[%c0_875, %c17_876, %c3_877], %1121 {strides = array<i32>} : memref<2x22x22xf32, #tpu.memory_space<vmem>>, vector<1x1x16xf32>,
      %c1_878 = arith.constant 1 : index
      %c224_879 = arith.constant 224 : index
      %1122 = vector.load %arg6[%c1_878, %c224_879] : memref<2x256xf32, #tpu.memory_space<vmem>>, vector<1x16xf32>
      %1123 = vector.shape_cast %1122 : vector<1x16xf32> to vector<16xf32>
      %c1_880 = arith.constant 1 : index
      %c17_881 = arith.constant 17 : index
      %c3_882 = arith.constant 3 : index
      %1124 = vector.load %arg7[%c1_880, %c17_881, %c3_882] : memref<2x22x22xf32, #tpu.memory_space<vmem>>, vector<1x1x16xf32>
      %1125 = vector.shape_cast %1124 : vector<1x1x16xf32> to vector<16xf32>
      %1126 = vector.shape_cast %1123 : vector<16xf32> to vector<1x1x16xf32>
      tpu.vector_store %arg7[%c1_880, %c17_881, %c3_882], %1126 {strides = array<i32>} : memref<2x22x22xf32, #tpu.memory_space<vmem>>, vector<1x1x16xf32>,
      %c1_883 = arith.constant 1 : index
      %c240_884 = arith.constant 240 : index
      %1127 = vector.load %arg5[%c1_883, %c240_884] : memref<2x256xf32, #tpu.memory_space<vmem>>, vector<1x16xf32>
      %1128 = vector.shape_cast %1127 : vector<1x16xf32> to vector<16xf32>
      %cst_885 = arith.constant 2.500000e-01 : f32
      %1129 = vector.broadcast %cst_885 : f32 to vector<16xf32>
      %1130 = arith.mulf %1128, %1129 : vector<16xf32>
      %c0_886 = arith.constant 0 : index
      %c18_887 = arith.constant 18 : index
      %c3_888 = arith.constant 3 : index
      %1131 = vector.load %arg7[%c0_886, %c18_887, %c3_888] : memref<2x22x22xf32, #tpu.memory_space<vmem>>, vector<1x1x16xf32>
      %1132 = vector.shape_cast %1131 : vector<1x1x16xf32> to vector<16xf32>
      %1133 = vector.shape_cast %1130 : vector<16xf32> to vector<1x1x16xf32>
      tpu.vector_store %arg7[%c0_886, %c18_887, %c3_888], %1133 {strides = array<i32>} : memref<2x22x22xf32, #tpu.memory_space<vmem>>, vector<1x1x16xf32>,
      %c1_889 = arith.constant 1 : index
      %c240_890 = arith.constant 240 : index
      %1134 = vector.load %arg6[%c1_889, %c240_890] : memref<2x256xf32, #tpu.memory_space<vmem>>, vector<1x16xf32>
      %1135 = vector.shape_cast %1134 : vector<1x16xf32> to vector<16xf32>
      %c1_891 = arith.constant 1 : index
      %c18_892 = arith.constant 18 : index
      %c3_893 = arith.constant 3 : index
      %1136 = vector.load %arg7[%c1_891, %c18_892, %c3_893] : memref<2x22x22xf32, #tpu.memory_space<vmem>>, vector<1x1x16xf32>
      %1137 = vector.shape_cast %1136 : vector<1x1x16xf32> to vector<16xf32>
      %1138 = vector.shape_cast %1135 : vector<16xf32> to vector<1x1x16xf32>
      tpu.vector_store %arg7[%c1_891, %c18_892, %c3_893], %1138 {strides = array<i32>} : memref<2x22x22xf32, #tpu.memory_space<vmem>>, vector<1x1x16xf32>,
      %c0_894 = arith.constant 0 : index
      %c0_895 = arith.constant 0 : index
      %c0_896 = arith.constant 0 : index
      %1139 = vector.load %arg7[%c0_894, %c0_895, %c0_896] : memref<2x22x22xf32, #tpu.memory_space<vmem>>, vector<1x22x16xf32>
      %1140 = vector.shape_cast %1139 : vector<1x22x16xf32> to vector<22x16xf32>
      %c0_897 = arith.constant 0 : index
      %c0_898 = arith.constant 0 : index
      %c0_899 = arith.constant 0 : index
      %c0_900 = arith.constant 0 : index
      %1141 = vector.load %arg8[%c0_897, %c0_898, %c0_899, %c0_900] : memref<2x7x22x16xf32, #tpu.memory_space<vmem>>, vector<1x1x22x16xf32>
      %1142 = vector.shape_cast %1141 : vector<1x1x22x16xf32> to vector<22x16xf32>
      %1143 = vector.shape_cast %1140 : vector<22x16xf32> to vector<1x1x22x16xf32>
      tpu.vector_store %arg8[%c0_897, %c0_898, %c0_899, %c0_900], %1143 {strides = array<i32>} : memref<2x7x22x16xf32, #tpu.memory_space<vmem>>, vector<1x1x22x16xf32>,
      %c0_901 = arith.constant 0 : index
      %c0_902 = arith.constant 0 : index
      %c1_903 = arith.constant 1 : index
      %1144 = vector.load %arg7[%c0_901, %c0_902, %c1_903] : memref<2x22x22xf32, #tpu.memory_space<vmem>>, vector<1x22x16xf32>
      %1145 = vector.shape_cast %1144 : vector<1x22x16xf32> to vector<22x16xf32>
      %c0_904 = arith.constant 0 : index
      %c1_905 = arith.constant 1 : index
      %c0_906 = arith.constant 0 : index
      %c0_907 = arith.constant 0 : index
      %1146 = vector.load %arg8[%c0_904, %c1_905, %c0_906, %c0_907] : memref<2x7x22x16xf32, #tpu.memory_space<vmem>>, vector<1x1x22x16xf32>
      %1147 = vector.shape_cast %1146 : vector<1x1x22x16xf32> to vector<22x16xf32>
      %1148 = vector.shape_cast %1145 : vector<22x16xf32> to vector<1x1x22x16xf32>
      tpu.vector_store %arg8[%c0_904, %c1_905, %c0_906, %c0_907], %1148 {strides = array<i32>} : memref<2x7x22x16xf32, #tpu.memory_space<vmem>>, vector<1x1x22x16xf32>,
      %c0_908 = arith.constant 0 : index
      %c0_909 = arith.constant 0 : index
      %c2_910 = arith.constant 2 : index
      %1149 = vector.load %arg7[%c0_908, %c0_909, %c2_910] : memref<2x22x22xf32, #tpu.memory_space<vmem>>, vector<1x22x16xf32>
      %1150 = vector.shape_cast %1149 : vector<1x22x16xf32> to vector<22x16xf32>
      %c0_911 = arith.constant 0 : index
      %c2_912 = arith.constant 2 : index
      %c0_913 = arith.constant 0 : index
      %c0_914 = arith.constant 0 : index
      %1151 = vector.load %arg8[%c0_911, %c2_912, %c0_913, %c0_914] : memref<2x7x22x16xf32, #tpu.memory_space<vmem>>, vector<1x1x22x16xf32>
      %1152 = vector.shape_cast %1151 : vector<1x1x22x16xf32> to vector<22x16xf32>
      %1153 = vector.shape_cast %1150 : vector<22x16xf32> to vector<1x1x22x16xf32>
      tpu.vector_store %arg8[%c0_911, %c2_912, %c0_913, %c0_914], %1153 {strides = array<i32>} : memref<2x7x22x16xf32, #tpu.memory_space<vmem>>, vector<1x1x22x16xf32>,
      %c0_915 = arith.constant 0 : index
      %c0_916 = arith.constant 0 : index
      %c3_917 = arith.constant 3 : index
      %1154 = vector.load %arg7[%c0_915, %c0_916, %c3_917] : memref<2x22x22xf32, #tpu.memory_space<vmem>>, vector<1x22x16xf32>
      %1155 = vector.shape_cast %1154 : vector<1x22x16xf32> to vector<22x16xf32>
      %c0_918 = arith.constant 0 : index
      %c3_919 = arith.constant 3 : index
      %c0_920 = arith.constant 0 : index
      %c0_921 = arith.constant 0 : index
      %1156 = vector.load %arg8[%c0_918, %c3_919, %c0_920, %c0_921] : memref<2x7x22x16xf32, #tpu.memory_space<vmem>>, vector<1x1x22x16xf32>
      %1157 = vector.shape_cast %1156 : vector<1x1x22x16xf32> to vector<22x16xf32>
      %1158 = vector.shape_cast %1155 : vector<22x16xf32> to vector<1x1x22x16xf32>
      tpu.vector_store %arg8[%c0_918, %c3_919, %c0_920, %c0_921], %1158 {strides = array<i32>} : memref<2x7x22x16xf32, #tpu.memory_space<vmem>>, vector<1x1x22x16xf32>,
      %c0_922 = arith.constant 0 : index
      %c0_923 = arith.constant 0 : index
      %c4_924 = arith.constant 4 : index
      %1159 = vector.load %arg7[%c0_922, %c0_923, %c4_924] : memref<2x22x22xf32, #tpu.memory_space<vmem>>, vector<1x22x16xf32>
      %1160 = vector.shape_cast %1159 : vector<1x22x16xf32> to vector<22x16xf32>
      %c0_925 = arith.constant 0 : index
      %c4_926 = arith.constant 4 : index
      %c0_927 = arith.constant 0 : index
      %c0_928 = arith.constant 0 : index
      %1161 = vector.load %arg8[%c0_925, %c4_926, %c0_927, %c0_928] : memref<2x7x22x16xf32, #tpu.memory_space<vmem>>, vector<1x1x22x16xf32>
      %1162 = vector.shape_cast %1161 : vector<1x1x22x16xf32> to vector<22x16xf32>
      %1163 = vector.shape_cast %1160 : vector<22x16xf32> to vector<1x1x22x16xf32>
      tpu.vector_store %arg8[%c0_925, %c4_926, %c0_927, %c0_928], %1163 {strides = array<i32>} : memref<2x7x22x16xf32, #tpu.memory_space<vmem>>, vector<1x1x22x16xf32>,
      %c0_929 = arith.constant 0 : index
      %c0_930 = arith.constant 0 : index
      %c5_931 = arith.constant 5 : index
      %1164 = vector.load %arg7[%c0_929, %c0_930, %c5_931] : memref<2x22x22xf32, #tpu.memory_space<vmem>>, vector<1x22x16xf32>
      %1165 = vector.shape_cast %1164 : vector<1x22x16xf32> to vector<22x16xf32>
      %c0_932 = arith.constant 0 : index
      %c5_933 = arith.constant 5 : index
      %c0_934 = arith.constant 0 : index
      %c0_935 = arith.constant 0 : index
      %1166 = vector.load %arg8[%c0_932, %c5_933, %c0_934, %c0_935] : memref<2x7x22x16xf32, #tpu.memory_space<vmem>>, vector<1x1x22x16xf32>
      %1167 = vector.shape_cast %1166 : vector<1x1x22x16xf32> to vector<22x16xf32>
      %1168 = vector.shape_cast %1165 : vector<22x16xf32> to vector<1x1x22x16xf32>
      tpu.vector_store %arg8[%c0_932, %c5_933, %c0_934, %c0_935], %1168 {strides = array<i32>} : memref<2x7x22x16xf32, #tpu.memory_space<vmem>>, vector<1x1x22x16xf32>,
      %c0_936 = arith.constant 0 : index
      %c0_937 = arith.constant 0 : index
      %c6_938 = arith.constant 6 : index
      %1169 = vector.load %arg7[%c0_936, %c0_937, %c6_938] : memref<2x22x22xf32, #tpu.memory_space<vmem>>, vector<1x22x16xf32>
      %1170 = vector.shape_cast %1169 : vector<1x22x16xf32> to vector<22x16xf32>
      %c0_939 = arith.constant 0 : index
      %c6_940 = arith.constant 6 : index
      %c0_941 = arith.constant 0 : index
      %c0_942 = arith.constant 0 : index
      %1171 = vector.load %arg8[%c0_939, %c6_940, %c0_941, %c0_942] : memref<2x7x22x16xf32, #tpu.memory_space<vmem>>, vector<1x1x22x16xf32>
      %1172 = vector.shape_cast %1171 : vector<1x1x22x16xf32> to vector<22x16xf32>
      %1173 = vector.shape_cast %1170 : vector<22x16xf32> to vector<1x1x22x16xf32>
      tpu.vector_store %arg8[%c0_939, %c6_940, %c0_941, %c0_942], %1173 {strides = array<i32>} : memref<2x7x22x16xf32, #tpu.memory_space<vmem>>, vector<1x1x22x16xf32>,
      %c1_943 = arith.constant 1 : index
      %c0_944 = arith.constant 0 : index
      %c0_945 = arith.constant 0 : index
      %1174 = vector.load %arg7[%c1_943, %c0_944, %c0_945] : memref<2x22x22xf32, #tpu.memory_space<vmem>>, vector<1x22x16xf32>
      %1175 = vector.shape_cast %1174 : vector<1x22x16xf32> to vector<22x16xf32>
      %c1_946 = arith.constant 1 : index
      %c0_947 = arith.constant 0 : index
      %c0_948 = arith.constant 0 : index
      %c0_949 = arith.constant 0 : index
      %1176 = vector.load %arg8[%c1_946, %c0_947, %c0_948, %c0_949] : memref<2x7x22x16xf32, #tpu.memory_space<vmem>>, vector<1x1x22x16xf32>
      %1177 = vector.shape_cast %1176 : vector<1x1x22x16xf32> to vector<22x16xf32>
      %1178 = vector.shape_cast %1175 : vector<22x16xf32> to vector<1x1x22x16xf32>
      tpu.vector_store %arg8[%c1_946, %c0_947, %c0_948, %c0_949], %1178 {strides = array<i32>} : memref<2x7x22x16xf32, #tpu.memory_space<vmem>>, vector<1x1x22x16xf32>,
      %c1_950 = arith.constant 1 : index
      %c0_951 = arith.constant 0 : index
      %c1_952 = arith.constant 1 : index
      %1179 = vector.load %arg7[%c1_950, %c0_951, %c1_952] : memref<2x22x22xf32, #tpu.memory_space<vmem>>, vector<1x22x16xf32>
      %1180 = vector.shape_cast %1179 : vector<1x22x16xf32> to vector<22x16xf32>
      %c1_953 = arith.constant 1 : index
      %c1_954 = arith.constant 1 : index
      %c0_955 = arith.constant 0 : index
      %c0_956 = arith.constant 0 : index
      %1181 = vector.load %arg8[%c1_953, %c1_954, %c0_955, %c0_956] : memref<2x7x22x16xf32, #tpu.memory_space<vmem>>, vector<1x1x22x16xf32>
      %1182 = vector.shape_cast %1181 : vector<1x1x22x16xf32> to vector<22x16xf32>
      %1183 = vector.shape_cast %1180 : vector<22x16xf32> to vector<1x1x22x16xf32>
      tpu.vector_store %arg8[%c1_953, %c1_954, %c0_955, %c0_956], %1183 {strides = array<i32>} : memref<2x7x22x16xf32, #tpu.memory_space<vmem>>, vector<1x1x22x16xf32>,
      %c1_957 = arith.constant 1 : index
      %c0_958 = arith.constant 0 : index
      %c2_959 = arith.constant 2 : index
      %1184 = vector.load %arg7[%c1_957, %c0_958, %c2_959] : memref<2x22x22xf32, #tpu.memory_space<vmem>>, vector<1x22x16xf32>
      %1185 = vector.shape_cast %1184 : vector<1x22x16xf32> to vector<22x16xf32>
      %c1_960 = arith.constant 1 : index
      %c2_961 = arith.constant 2 : index
      %c0_962 = arith.constant 0 : index
      %c0_963 = arith.constant 0 : index
      %1186 = vector.load %arg8[%c1_960, %c2_961, %c0_962, %c0_963] : memref<2x7x22x16xf32, #tpu.memory_space<vmem>>, vector<1x1x22x16xf32>
      %1187 = vector.shape_cast %1186 : vector<1x1x22x16xf32> to vector<22x16xf32>
      %1188 = vector.shape_cast %1185 : vector<22x16xf32> to vector<1x1x22x16xf32>
      tpu.vector_store %arg8[%c1_960, %c2_961, %c0_962, %c0_963], %1188 {strides = array<i32>} : memref<2x7x22x16xf32, #tpu.memory_space<vmem>>, vector<1x1x22x16xf32>,
      %c1_964 = arith.constant 1 : index
      %c0_965 = arith.constant 0 : index
      %c3_966 = arith.constant 3 : index
      %1189 = vector.load %arg7[%c1_964, %c0_965, %c3_966] : memref<2x22x22xf32, #tpu.memory_space<vmem>>, vector<1x22x16xf32>
      %1190 = vector.shape_cast %1189 : vector<1x22x16xf32> to vector<22x16xf32>
      %c1_967 = arith.constant 1 : index
      %c3_968 = arith.constant 3 : index
      %c0_969 = arith.constant 0 : index
      %c0_970 = arith.constant 0 : index
      %1191 = vector.load %arg8[%c1_967, %c3_968, %c0_969, %c0_970] : memref<2x7x22x16xf32, #tpu.memory_space<vmem>>, vector<1x1x22x16xf32>
      %1192 = vector.shape_cast %1191 : vector<1x1x22x16xf32> to vector<22x16xf32>
      %1193 = vector.shape_cast %1190 : vector<22x16xf32> to vector<1x1x22x16xf32>
      tpu.vector_store %arg8[%c1_967, %c3_968, %c0_969, %c0_970], %1193 {strides = array<i32>} : memref<2x7x22x16xf32, #tpu.memory_space<vmem>>, vector<1x1x22x16xf32>,
      %c1_971 = arith.constant 1 : index
      %c0_972 = arith.constant 0 : index
      %c4_973 = arith.constant 4 : index
      %1194 = vector.load %arg7[%c1_971, %c0_972, %c4_973] : memref<2x22x22xf32, #tpu.memory_space<vmem>>, vector<1x22x16xf32>
      %1195 = vector.shape_cast %1194 : vector<1x22x16xf32> to vector<22x16xf32>
      %c1_974 = arith.constant 1 : index
      %c4_975 = arith.constant 4 : index
      %c0_976 = arith.constant 0 : index
      %c0_977 = arith.constant 0 : index
      %1196 = vector.load %arg8[%c1_974, %c4_975, %c0_976, %c0_977] : memref<2x7x22x16xf32, #tpu.memory_space<vmem>>, vector<1x1x22x16xf32>
      %1197 = vector.shape_cast %1196 : vector<1x1x22x16xf32> to vector<22x16xf32>
      %1198 = vector.shape_cast %1195 : vector<22x16xf32> to vector<1x1x22x16xf32>
      tpu.vector_store %arg8[%c1_974, %c4_975, %c0_976, %c0_977], %1198 {strides = array<i32>} : memref<2x7x22x16xf32, #tpu.memory_space<vmem>>, vector<1x1x22x16xf32>,
      %c1_978 = arith.constant 1 : index
      %c0_979 = arith.constant 0 : index
      %c5_980 = arith.constant 5 : index
      %1199 = vector.load %arg7[%c1_978, %c0_979, %c5_980] : memref<2x22x22xf32, #tpu.memory_space<vmem>>, vector<1x22x16xf32>
      %1200 = vector.shape_cast %1199 : vector<1x22x16xf32> to vector<22x16xf32>
      %c1_981 = arith.constant 1 : index
      %c5_982 = arith.constant 5 : index
      %c0_983 = arith.constant 0 : index
      %c0_984 = arith.constant 0 : index
      %1201 = vector.load %arg8[%c1_981, %c5_982, %c0_983, %c0_984] : memref<2x7x22x16xf32, #tpu.memory_space<vmem>>, vector<1x1x22x16xf32>
      %1202 = vector.shape_cast %1201 : vector<1x1x22x16xf32> to vector<22x16xf32>
      %1203 = vector.shape_cast %1200 : vector<22x16xf32> to vector<1x1x22x16xf32>
      tpu.vector_store %arg8[%c1_981, %c5_982, %c0_983, %c0_984], %1203 {strides = array<i32>} : memref<2x7x22x16xf32, #tpu.memory_space<vmem>>, vector<1x1x22x16xf32>,
      %c1_985 = arith.constant 1 : index
      %c0_986 = arith.constant 0 : index
      %c6_987 = arith.constant 6 : index
      %1204 = vector.load %arg7[%c1_985, %c0_986, %c6_987] : memref<2x22x22xf32, #tpu.memory_space<vmem>>, vector<1x22x16xf32>
      %1205 = vector.shape_cast %1204 : vector<1x22x16xf32> to vector<22x16xf32>
      %c1_988 = arith.constant 1 : index
      %c6_989 = arith.constant 6 : index
      %c0_990 = arith.constant 0 : index
      %c0_991 = arith.constant 0 : index
      %1206 = vector.load %arg8[%c1_988, %c6_989, %c0_990, %c0_991] : memref<2x7x22x16xf32, #tpu.memory_space<vmem>>, vector<1x1x22x16xf32>
      %1207 = vector.shape_cast %1206 : vector<1x1x22x16xf32> to vector<22x16xf32>
      %1208 = vector.shape_cast %1205 : vector<22x16xf32> to vector<1x1x22x16xf32>
      tpu.vector_store %arg8[%c1_988, %c6_989, %c0_990, %c0_991], %1208 {strides = array<i32>} : memref<2x7x22x16xf32, #tpu.memory_space<vmem>>, vector<1x1x22x16xf32>,
      %cst_992 = arith.constant 0.000000e+00 : f32
      %1209 = vector.broadcast %cst_992 : f32 to vector<16x16xf32>
      %c0_993 = arith.constant 0 : index
      %1210 = memref.load %arg2[%c0_993] : memref<98xf32, #tpu.memory_space<smem>>
      %c0_994 = arith.constant 0 : index
      %c0_995 = arith.constant 0 : index
      %c0_996 = arith.constant 0 : index
      %c0_997 = arith.constant 0 : index
      %1211 = vector.load %arg8[%c0_994, %c0_995, %c0_996, %c0_997] : memref<2x7x22x16xf32, #tpu.memory_space<vmem>>, vector<1x1x16x16xf32>
      %1212 = vector.shape_cast %1211 : vector<1x1x16x16xf32> to vector<16x16xf32>
      %1213 = vector.broadcast %1210 : f32 to vector<16x16xf32>
      %1214 = arith.mulf %1213, %1212 : vector<16x16xf32>
      %1215 = arith.addf %1209, %1214 : vector<16x16xf32>
      %c1_998 = arith.constant 1 : index
      %1216 = memref.load %arg2[%c1_998] : memref<98xf32, #tpu.memory_space<smem>>
      %c0_999 = arith.constant 0 : index
      %c1_1000 = arith.constant 1 : index
      %c0_1001 = arith.constant 0 : index
      %c0_1002 = arith.constant 0 : index
      %1217 = vector.load %arg8[%c0_999, %c1_1000, %c0_1001, %c0_1002] : memref<2x7x22x16xf32, #tpu.memory_space<vmem>>, vector<1x1x16x16xf32>
      %1218 = vector.shape_cast %1217 : vector<1x1x16x16xf32> to vector<16x16xf32>
      %1219 = vector.broadcast %1216 : f32 to vector<16x16xf32>
      %1220 = arith.mulf %1219, %1218 : vector<16x16xf32>
      %1221 = arith.addf %1215, %1220 : vector<16x16xf32>
      %c2_1003 = arith.constant 2 : index
      %1222 = memref.load %arg2[%c2_1003] : memref<98xf32, #tpu.memory_space<smem>>
      %c0_1004 = arith.constant 0 : index
      %c2_1005 = arith.constant 2 : index
      %c0_1006 = arith.constant 0 : index
      %c0_1007 = arith.constant 0 : index
      %1223 = vector.load %arg8[%c0_1004, %c2_1005, %c0_1006, %c0_1007] : memref<2x7x22x16xf32, #tpu.memory_space<vmem>>, vector<1x1x16x16xf32>
      %1224 = vector.shape_cast %1223 : vector<1x1x16x16xf32> to vector<16x16xf32>
      %1225 = vector.broadcast %1222 : f32 to vector<16x16xf32>
      %1226 = arith.mulf %1225, %1224 : vector<16x16xf32>
      %1227 = arith.addf %1221, %1226 : vector<16x16xf32>
      %c3_1008 = arith.constant 3 : index
      %1228 = memref.load %arg2[%c3_1008] : memref<98xf32, #tpu.memory_space<smem>>
      %c0_1009 = arith.constant 0 : index
      %c3_1010 = arith.constant 3 : index
      %c0_1011 = arith.constant 0 : index
      %c0_1012 = arith.constant 0 : index
      %1229 = vector.load %arg8[%c0_1009, %c3_1010, %c0_1011, %c0_1012] : memref<2x7x22x16xf32, #tpu.memory_space<vmem>>, vector<1x1x16x16xf32>
      %1230 = vector.shape_cast %1229 : vector<1x1x16x16xf32> to vector<16x16xf32>
      %1231 = vector.broadcast %1228 : f32 to vector<16x16xf32>
      %1232 = arith.mulf %1231, %1230 : vector<16x16xf32>
      %1233 = arith.addf %1227, %1232 : vector<16x16xf32>
      %c4_1013 = arith.constant 4 : index
      %1234 = memref.load %arg2[%c4_1013] : memref<98xf32, #tpu.memory_space<smem>>
      %c0_1014 = arith.constant 0 : index
      %c4_1015 = arith.constant 4 : index
      %c0_1016 = arith.constant 0 : index
      %c0_1017 = arith.constant 0 : index
      %1235 = vector.load %arg8[%c0_1014, %c4_1015, %c0_1016, %c0_1017] : memref<2x7x22x16xf32, #tpu.memory_space<vmem>>, vector<1x1x16x16xf32>
      %1236 = vector.shape_cast %1235 : vector<1x1x16x16xf32> to vector<16x16xf32>
      %1237 = vector.broadcast %1234 : f32 to vector<16x16xf32>
      %1238 = arith.mulf %1237, %1236 : vector<16x16xf32>
      %1239 = arith.addf %1233, %1238 : vector<16x16xf32>
      %c5_1018 = arith.constant 5 : index
      %1240 = memref.load %arg2[%c5_1018] : memref<98xf32, #tpu.memory_space<smem>>
      %c0_1019 = arith.constant 0 : index
      %c5_1020 = arith.constant 5 : index
      %c0_1021 = arith.constant 0 : index
      %c0_1022 = arith.constant 0 : index
      %1241 = vector.load %arg8[%c0_1019, %c5_1020, %c0_1021, %c0_1022] : memref<2x7x22x16xf32, #tpu.memory_space<vmem>>, vector<1x1x16x16xf32>
      %1242 = vector.shape_cast %1241 : vector<1x1x16x16xf32> to vector<16x16xf32>
      %1243 = vector.broadcast %1240 : f32 to vector<16x16xf32>
      %1244 = arith.mulf %1243, %1242 : vector<16x16xf32>
      %1245 = arith.addf %1239, %1244 : vector<16x16xf32>
      %c6_1023 = arith.constant 6 : index
      %1246 = memref.load %arg2[%c6_1023] : memref<98xf32, #tpu.memory_space<smem>>
      %c0_1024 = arith.constant 0 : index
      %c6_1025 = arith.constant 6 : index
      %c0_1026 = arith.constant 0 : index
      %c0_1027 = arith.constant 0 : index
      %1247 = vector.load %arg8[%c0_1024, %c6_1025, %c0_1026, %c0_1027] : memref<2x7x22x16xf32, #tpu.memory_space<vmem>>, vector<1x1x16x16xf32>
      %1248 = vector.shape_cast %1247 : vector<1x1x16x16xf32> to vector<16x16xf32>
      %1249 = vector.broadcast %1246 : f32 to vector<16x16xf32>
      %1250 = arith.mulf %1249, %1248 : vector<16x16xf32>
      %1251 = arith.addf %1245, %1250 : vector<16x16xf32>
      %c49_1028 = arith.constant 49 : index
      %1252 = memref.load %arg2[%c49_1028] : memref<98xf32, #tpu.memory_space<smem>>
      %c1_1029 = arith.constant 1 : index
      %c0_1030 = arith.constant 0 : index
      %c0_1031 = arith.constant 0 : index
      %c0_1032 = arith.constant 0 : index
      %1253 = vector.load %arg8[%c1_1029, %c0_1030, %c0_1031, %c0_1032] : memref<2x7x22x16xf32, #tpu.memory_space<vmem>>, vector<1x1x16x16xf32>
      %1254 = vector.shape_cast %1253 : vector<1x1x16x16xf32> to vector<16x16xf32>
      %1255 = vector.broadcast %1252 : f32 to vector<16x16xf32>
      %1256 = arith.mulf %1255, %1254 : vector<16x16xf32>
      %1257 = arith.addf %1251, %1256 : vector<16x16xf32>
      %c50_1033 = arith.constant 50 : index
      %1258 = memref.load %arg2[%c50_1033] : memref<98xf32, #tpu.memory_space<smem>>
      %c1_1034 = arith.constant 1 : index
      %c1_1035 = arith.constant 1 : index
      %c0_1036 = arith.constant 0 : index
      %c0_1037 = arith.constant 0 : index
      %1259 = vector.load %arg8[%c1_1034, %c1_1035, %c0_1036, %c0_1037] : memref<2x7x22x16xf32, #tpu.memory_space<vmem>>, vector<1x1x16x16xf32>
      %1260 = vector.shape_cast %1259 : vector<1x1x16x16xf32> to vector<16x16xf32>
      %1261 = vector.broadcast %1258 : f32 to vector<16x16xf32>
      %1262 = arith.mulf %1261, %1260 : vector<16x16xf32>
      %1263 = arith.addf %1257, %1262 : vector<16x16xf32>
      %c51_1038 = arith.constant 51 : index
      %1264 = memref.load %arg2[%c51_1038] : memref<98xf32, #tpu.memory_space<smem>>
      %c1_1039 = arith.constant 1 : index
      %c2_1040 = arith.constant 2 : index
      %c0_1041 = arith.constant 0 : index
      %c0_1042 = arith.constant 0 : index
      %1265 = vector.load %arg8[%c1_1039, %c2_1040, %c0_1041, %c0_1042] : memref<2x7x22x16xf32, #tpu.memory_space<vmem>>, vector<1x1x16x16xf32>
      %1266 = vector.shape_cast %1265 : vector<1x1x16x16xf32> to vector<16x16xf32>
      %1267 = vector.broadcast %1264 : f32 to vector<16x16xf32>
      %1268 = arith.mulf %1267, %1266 : vector<16x16xf32>
      %1269 = arith.addf %1263, %1268 : vector<16x16xf32>
      %c52_1043 = arith.constant 52 : index
      %1270 = memref.load %arg2[%c52_1043] : memref<98xf32, #tpu.memory_space<smem>>
      %c1_1044 = arith.constant 1 : index
      %c3_1045 = arith.constant 3 : index
      %c0_1046 = arith.constant 0 : index
      %c0_1047 = arith.constant 0 : index
      %1271 = vector.load %arg8[%c1_1044, %c3_1045, %c0_1046, %c0_1047] : memref<2x7x22x16xf32, #tpu.memory_space<vmem>>, vector<1x1x16x16xf32>
      %1272 = vector.shape_cast %1271 : vector<1x1x16x16xf32> to vector<16x16xf32>
      %1273 = vector.broadcast %1270 : f32 to vector<16x16xf32>
      %1274 = arith.mulf %1273, %1272 : vector<16x16xf32>
      %1275 = arith.addf %1269, %1274 : vector<16x16xf32>
      %c53_1048 = arith.constant 53 : index
      %1276 = memref.load %arg2[%c53_1048] : memref<98xf32, #tpu.memory_space<smem>>
      %c1_1049 = arith.constant 1 : index
      %c4_1050 = arith.constant 4 : index
      %c0_1051 = arith.constant 0 : index
      %c0_1052 = arith.constant 0 : index
      %1277 = vector.load %arg8[%c1_1049, %c4_1050, %c0_1051, %c0_1052] : memref<2x7x22x16xf32, #tpu.memory_space<vmem>>, vector<1x1x16x16xf32>
      %1278 = vector.shape_cast %1277 : vector<1x1x16x16xf32> to vector<16x16xf32>
      %1279 = vector.broadcast %1276 : f32 to vector<16x16xf32>
      %1280 = arith.mulf %1279, %1278 : vector<16x16xf32>
      %1281 = arith.addf %1275, %1280 : vector<16x16xf32>
      %c54_1053 = arith.constant 54 : index
      %1282 = memref.load %arg2[%c54_1053] : memref<98xf32, #tpu.memory_space<smem>>
      %c1_1054 = arith.constant 1 : index
      %c5_1055 = arith.constant 5 : index
      %c0_1056 = arith.constant 0 : index
      %c0_1057 = arith.constant 0 : index
      %1283 = vector.load %arg8[%c1_1054, %c5_1055, %c0_1056, %c0_1057] : memref<2x7x22x16xf32, #tpu.memory_space<vmem>>, vector<1x1x16x16xf32>
      %1284 = vector.shape_cast %1283 : vector<1x1x16x16xf32> to vector<16x16xf32>
      %1285 = vector.broadcast %1282 : f32 to vector<16x16xf32>
      %1286 = arith.mulf %1285, %1284 : vector<16x16xf32>
      %1287 = arith.addf %1281, %1286 : vector<16x16xf32>
      %c55_1058 = arith.constant 55 : index
      %1288 = memref.load %arg2[%c55_1058] : memref<98xf32, #tpu.memory_space<smem>>
      %c1_1059 = arith.constant 1 : index
      %c6_1060 = arith.constant 6 : index
      %c0_1061 = arith.constant 0 : index
      %c0_1062 = arith.constant 0 : index
      %1289 = vector.load %arg8[%c1_1059, %c6_1060, %c0_1061, %c0_1062] : memref<2x7x22x16xf32, #tpu.memory_space<vmem>>, vector<1x1x16x16xf32>
      %1290 = vector.shape_cast %1289 : vector<1x1x16x16xf32> to vector<16x16xf32>
      %1291 = vector.broadcast %1288 : f32 to vector<16x16xf32>
      %1292 = arith.mulf %1291, %1290 : vector<16x16xf32>
      %1293 = arith.addf %1287, %1292 : vector<16x16xf32>
      %c7_1063 = arith.constant 7 : index
      %1294 = memref.load %arg2[%c7_1063] : memref<98xf32, #tpu.memory_space<smem>>
      %c0_1064 = arith.constant 0 : index
      %c0_1065 = arith.constant 0 : index
      %c1_1066 = arith.constant 1 : index
      %c0_1067 = arith.constant 0 : index
      %1295 = vector.load %arg8[%c0_1064, %c0_1065, %c1_1066, %c0_1067] : memref<2x7x22x16xf32, #tpu.memory_space<vmem>>, vector<1x1x16x16xf32>
      %1296 = vector.shape_cast %1295 : vector<1x1x16x16xf32> to vector<16x16xf32>
      %1297 = vector.broadcast %1294 : f32 to vector<16x16xf32>
      %1298 = arith.mulf %1297, %1296 : vector<16x16xf32>
      %1299 = arith.addf %1293, %1298 : vector<16x16xf32>
      %c8_1068 = arith.constant 8 : index
      %1300 = memref.load %arg2[%c8_1068] : memref<98xf32, #tpu.memory_space<smem>>
      %c0_1069 = arith.constant 0 : index
      %c1_1070 = arith.constant 1 : index
      %c1_1071 = arith.constant 1 : index
      %c0_1072 = arith.constant 0 : index
      %1301 = vector.load %arg8[%c0_1069, %c1_1070, %c1_1071, %c0_1072] : memref<2x7x22x16xf32, #tpu.memory_space<vmem>>, vector<1x1x16x16xf32>
      %1302 = vector.shape_cast %1301 : vector<1x1x16x16xf32> to vector<16x16xf32>
      %1303 = vector.broadcast %1300 : f32 to vector<16x16xf32>
      %1304 = arith.mulf %1303, %1302 : vector<16x16xf32>
      %1305 = arith.addf %1299, %1304 : vector<16x16xf32>
      %c9_1073 = arith.constant 9 : index
      %1306 = memref.load %arg2[%c9_1073] : memref<98xf32, #tpu.memory_space<smem>>
      %c0_1074 = arith.constant 0 : index
      %c2_1075 = arith.constant 2 : index
      %c1_1076 = arith.constant 1 : index
      %c0_1077 = arith.constant 0 : index
      %1307 = vector.load %arg8[%c0_1074, %c2_1075, %c1_1076, %c0_1077] : memref<2x7x22x16xf32, #tpu.memory_space<vmem>>, vector<1x1x16x16xf32>
      %1308 = vector.shape_cast %1307 : vector<1x1x16x16xf32> to vector<16x16xf32>
      %1309 = vector.broadcast %1306 : f32 to vector<16x16xf32>
      %1310 = arith.mulf %1309, %1308 : vector<16x16xf32>
      %1311 = arith.addf %1305, %1310 : vector<16x16xf32>
      %c10_1078 = arith.constant 10 : index
      %1312 = memref.load %arg2[%c10_1078] : memref<98xf32, #tpu.memory_space<smem>>
      %c0_1079 = arith.constant 0 : index
      %c3_1080 = arith.constant 3 : index
      %c1_1081 = arith.constant 1 : index
      %c0_1082 = arith.constant 0 : index
      %1313 = vector.load %arg8[%c0_1079, %c3_1080, %c1_1081, %c0_1082] : memref<2x7x22x16xf32, #tpu.memory_space<vmem>>, vector<1x1x16x16xf32>
      %1314 = vector.shape_cast %1313 : vector<1x1x16x16xf32> to vector<16x16xf32>
      %1315 = vector.broadcast %1312 : f32 to vector<16x16xf32>
      %1316 = arith.mulf %1315, %1314 : vector<16x16xf32>
      %1317 = arith.addf %1311, %1316 : vector<16x16xf32>
      %c11_1083 = arith.constant 11 : index
      %1318 = memref.load %arg2[%c11_1083] : memref<98xf32, #tpu.memory_space<smem>>
      %c0_1084 = arith.constant 0 : index
      %c4_1085 = arith.constant 4 : index
      %c1_1086 = arith.constant 1 : index
      %c0_1087 = arith.constant 0 : index
      %1319 = vector.load %arg8[%c0_1084, %c4_1085, %c1_1086, %c0_1087] : memref<2x7x22x16xf32, #tpu.memory_space<vmem>>, vector<1x1x16x16xf32>
      %1320 = vector.shape_cast %1319 : vector<1x1x16x16xf32> to vector<16x16xf32>
      %1321 = vector.broadcast %1318 : f32 to vector<16x16xf32>
      %1322 = arith.mulf %1321, %1320 : vector<16x16xf32>
      %1323 = arith.addf %1317, %1322 : vector<16x16xf32>
      %c12_1088 = arith.constant 12 : index
      %1324 = memref.load %arg2[%c12_1088] : memref<98xf32, #tpu.memory_space<smem>>
      %c0_1089 = arith.constant 0 : index
      %c5_1090 = arith.constant 5 : index
      %c1_1091 = arith.constant 1 : index
      %c0_1092 = arith.constant 0 : index
      %1325 = vector.load %arg8[%c0_1089, %c5_1090, %c1_1091, %c0_1092] : memref<2x7x22x16xf32, #tpu.memory_space<vmem>>, vector<1x1x16x16xf32>
      %1326 = vector.shape_cast %1325 : vector<1x1x16x16xf32> to vector<16x16xf32>
      %1327 = vector.broadcast %1324 : f32 to vector<16x16xf32>
      %1328 = arith.mulf %1327, %1326 : vector<16x16xf32>
      %1329 = arith.addf %1323, %1328 : vector<16x16xf32>
      %c13_1093 = arith.constant 13 : index
      %1330 = memref.load %arg2[%c13_1093] : memref<98xf32, #tpu.memory_space<smem>>
      %c0_1094 = arith.constant 0 : index
      %c6_1095 = arith.constant 6 : index
      %c1_1096 = arith.constant 1 : index
      %c0_1097 = arith.constant 0 : index
      %1331 = vector.load %arg8[%c0_1094, %c6_1095, %c1_1096, %c0_1097] : memref<2x7x22x16xf32, #tpu.memory_space<vmem>>, vector<1x1x16x16xf32>
      %1332 = vector.shape_cast %1331 : vector<1x1x16x16xf32> to vector<16x16xf32>
      %1333 = vector.broadcast %1330 : f32 to vector<16x16xf32>
      %1334 = arith.mulf %1333, %1332 : vector<16x16xf32>
      %1335 = arith.addf %1329, %1334 : vector<16x16xf32>
      %c56_1098 = arith.constant 56 : index
      %1336 = memref.load %arg2[%c56_1098] : memref<98xf32, #tpu.memory_space<smem>>
      %c1_1099 = arith.constant 1 : index
      %c0_1100 = arith.constant 0 : index
      %c1_1101 = arith.constant 1 : index
      %c0_1102 = arith.constant 0 : index
      %1337 = vector.load %arg8[%c1_1099, %c0_1100, %c1_1101, %c0_1102] : memref<2x7x22x16xf32, #tpu.memory_space<vmem>>, vector<1x1x16x16xf32>
      %1338 = vector.shape_cast %1337 : vector<1x1x16x16xf32> to vector<16x16xf32>
      %1339 = vector.broadcast %1336 : f32 to vector<16x16xf32>
      %1340 = arith.mulf %1339, %1338 : vector<16x16xf32>
      %1341 = arith.addf %1335, %1340 : vector<16x16xf32>
      %c57_1103 = arith.constant 57 : index
      %1342 = memref.load %arg2[%c57_1103] : memref<98xf32, #tpu.memory_space<smem>>
      %c1_1104 = arith.constant 1 : index
      %c1_1105 = arith.constant 1 : index
      %c1_1106 = arith.constant 1 : index
      %c0_1107 = arith.constant 0 : index
      %1343 = vector.load %arg8[%c1_1104, %c1_1105, %c1_1106, %c0_1107] : memref<2x7x22x16xf32, #tpu.memory_space<vmem>>, vector<1x1x16x16xf32>
      %1344 = vector.shape_cast %1343 : vector<1x1x16x16xf32> to vector<16x16xf32>
      %1345 = vector.broadcast %1342 : f32 to vector<16x16xf32>
      %1346 = arith.mulf %1345, %1344 : vector<16x16xf32>
      %1347 = arith.addf %1341, %1346 : vector<16x16xf32>
      %c58_1108 = arith.constant 58 : index
      %1348 = memref.load %arg2[%c58_1108] : memref<98xf32, #tpu.memory_space<smem>>
      %c1_1109 = arith.constant 1 : index
      %c2_1110 = arith.constant 2 : index
      %c1_1111 = arith.constant 1 : index
      %c0_1112 = arith.constant 0 : index
      %1349 = vector.load %arg8[%c1_1109, %c2_1110, %c1_1111, %c0_1112] : memref<2x7x22x16xf32, #tpu.memory_space<vmem>>, vector<1x1x16x16xf32>
      %1350 = vector.shape_cast %1349 : vector<1x1x16x16xf32> to vector<16x16xf32>
      %1351 = vector.broadcast %1348 : f32 to vector<16x16xf32>
      %1352 = arith.mulf %1351, %1350 : vector<16x16xf32>
      %1353 = arith.addf %1347, %1352 : vector<16x16xf32>
      %c59_1113 = arith.constant 59 : index
      %1354 = memref.load %arg2[%c59_1113] : memref<98xf32, #tpu.memory_space<smem>>
      %c1_1114 = arith.constant 1 : index
      %c3_1115 = arith.constant 3 : index
      %c1_1116 = arith.constant 1 : index
      %c0_1117 = arith.constant 0 : index
      %1355 = vector.load %arg8[%c1_1114, %c3_1115, %c1_1116, %c0_1117] : memref<2x7x22x16xf32, #tpu.memory_space<vmem>>, vector<1x1x16x16xf32>
      %1356 = vector.shape_cast %1355 : vector<1x1x16x16xf32> to vector<16x16xf32>
      %1357 = vector.broadcast %1354 : f32 to vector<16x16xf32>
      %1358 = arith.mulf %1357, %1356 : vector<16x16xf32>
      %1359 = arith.addf %1353, %1358 : vector<16x16xf32>
      %c60_1118 = arith.constant 60 : index
      %1360 = memref.load %arg2[%c60_1118] : memref<98xf32, #tpu.memory_space<smem>>
      %c1_1119 = arith.constant 1 : index
      %c4_1120 = arith.constant 4 : index
      %c1_1121 = arith.constant 1 : index
      %c0_1122 = arith.constant 0 : index
      %1361 = vector.load %arg8[%c1_1119, %c4_1120, %c1_1121, %c0_1122] : memref<2x7x22x16xf32, #tpu.memory_space<vmem>>, vector<1x1x16x16xf32>
      %1362 = vector.shape_cast %1361 : vector<1x1x16x16xf32> to vector<16x16xf32>
      %1363 = vector.broadcast %1360 : f32 to vector<16x16xf32>
      %1364 = arith.mulf %1363, %1362 : vector<16x16xf32>
      %1365 = arith.addf %1359, %1364 : vector<16x16xf32>
      %c61_1123 = arith.constant 61 : index
      %1366 = memref.load %arg2[%c61_1123] : memref<98xf32, #tpu.memory_space<smem>>
      %c1_1124 = arith.constant 1 : index
      %c5_1125 = arith.constant 5 : index
      %c1_1126 = arith.constant 1 : index
      %c0_1127 = arith.constant 0 : index
      %1367 = vector.load %arg8[%c1_1124, %c5_1125, %c1_1126, %c0_1127] : memref<2x7x22x16xf32, #tpu.memory_space<vmem>>, vector<1x1x16x16xf32>
      %1368 = vector.shape_cast %1367 : vector<1x1x16x16xf32> to vector<16x16xf32>
      %1369 = vector.broadcast %1366 : f32 to vector<16x16xf32>
      %1370 = arith.mulf %1369, %1368 : vector<16x16xf32>
      %1371 = arith.addf %1365, %1370 : vector<16x16xf32>
      %c62_1128 = arith.constant 62 : index
      %1372 = memref.load %arg2[%c62_1128] : memref<98xf32, #tpu.memory_space<smem>>
      %c1_1129 = arith.constant 1 : index
      %c6_1130 = arith.constant 6 : index
      %c1_1131 = arith.constant 1 : index
      %c0_1132 = arith.constant 0 : index
      %1373 = vector.load %arg8[%c1_1129, %c6_1130, %c1_1131, %c0_1132] : memref<2x7x22x16xf32, #tpu.memory_space<vmem>>, vector<1x1x16x16xf32>
      %1374 = vector.shape_cast %1373 : vector<1x1x16x16xf32> to vector<16x16xf32>
      %1375 = vector.broadcast %1372 : f32 to vector<16x16xf32>
      %1376 = arith.mulf %1375, %1374 : vector<16x16xf32>
      %1377 = arith.addf %1371, %1376 : vector<16x16xf32>
      %c14_1133 = arith.constant 14 : index
      %1378 = memref.load %arg2[%c14_1133] : memref<98xf32, #tpu.memory_space<smem>>
      %c0_1134 = arith.constant 0 : index
      %c0_1135 = arith.constant 0 : index
      %c2_1136 = arith.constant 2 : index
      %c0_1137 = arith.constant 0 : index
      %1379 = vector.load %arg8[%c0_1134, %c0_1135, %c2_1136, %c0_1137] : memref<2x7x22x16xf32, #tpu.memory_space<vmem>>, vector<1x1x16x16xf32>
      %1380 = vector.shape_cast %1379 : vector<1x1x16x16xf32> to vector<16x16xf32>
      %1381 = vector.broadcast %1378 : f32 to vector<16x16xf32>
      %1382 = arith.mulf %1381, %1380 : vector<16x16xf32>
      %1383 = arith.addf %1377, %1382 : vector<16x16xf32>
      %c15_1138 = arith.constant 15 : index
      %1384 = memref.load %arg2[%c15_1138] : memref<98xf32, #tpu.memory_space<smem>>
      %c0_1139 = arith.constant 0 : index
      %c1_1140 = arith.constant 1 : index
      %c2_1141 = arith.constant 2 : index
      %c0_1142 = arith.constant 0 : index
      %1385 = vector.load %arg8[%c0_1139, %c1_1140, %c2_1141, %c0_1142] : memref<2x7x22x16xf32, #tpu.memory_space<vmem>>, vector<1x1x16x16xf32>
      %1386 = vector.shape_cast %1385 : vector<1x1x16x16xf32> to vector<16x16xf32>
      %1387 = vector.broadcast %1384 : f32 to vector<16x16xf32>
      %1388 = arith.mulf %1387, %1386 : vector<16x16xf32>
      %1389 = arith.addf %1383, %1388 : vector<16x16xf32>
      %c16_1143 = arith.constant 16 : index
      %1390 = memref.load %arg2[%c16_1143] : memref<98xf32, #tpu.memory_space<smem>>
      %c0_1144 = arith.constant 0 : index
      %c2_1145 = arith.constant 2 : index
      %c2_1146 = arith.constant 2 : index
      %c0_1147 = arith.constant 0 : index
      %1391 = vector.load %arg8[%c0_1144, %c2_1145, %c2_1146, %c0_1147] : memref<2x7x22x16xf32, #tpu.memory_space<vmem>>, vector<1x1x16x16xf32>
      %1392 = vector.shape_cast %1391 : vector<1x1x16x16xf32> to vector<16x16xf32>
      %1393 = vector.broadcast %1390 : f32 to vector<16x16xf32>
      %1394 = arith.mulf %1393, %1392 : vector<16x16xf32>
      %1395 = arith.addf %1389, %1394 : vector<16x16xf32>
      %c17_1148 = arith.constant 17 : index
      %1396 = memref.load %arg2[%c17_1148] : memref<98xf32, #tpu.memory_space<smem>>
      %c0_1149 = arith.constant 0 : index
      %c3_1150 = arith.constant 3 : index
      %c2_1151 = arith.constant 2 : index
      %c0_1152 = arith.constant 0 : index
      %1397 = vector.load %arg8[%c0_1149, %c3_1150, %c2_1151, %c0_1152] : memref<2x7x22x16xf32, #tpu.memory_space<vmem>>, vector<1x1x16x16xf32>
      %1398 = vector.shape_cast %1397 : vector<1x1x16x16xf32> to vector<16x16xf32>
      %1399 = vector.broadcast %1396 : f32 to vector<16x16xf32>
      %1400 = arith.mulf %1399, %1398 : vector<16x16xf32>
      %1401 = arith.addf %1395, %1400 : vector<16x16xf32>
      %c18_1153 = arith.constant 18 : index
      %1402 = memref.load %arg2[%c18_1153] : memref<98xf32, #tpu.memory_space<smem>>
      %c0_1154 = arith.constant 0 : index
      %c4_1155 = arith.constant 4 : index
      %c2_1156 = arith.constant 2 : index
      %c0_1157 = arith.constant 0 : index
      %1403 = vector.load %arg8[%c0_1154, %c4_1155, %c2_1156, %c0_1157] : memref<2x7x22x16xf32, #tpu.memory_space<vmem>>, vector<1x1x16x16xf32>
      %1404 = vector.shape_cast %1403 : vector<1x1x16x16xf32> to vector<16x16xf32>
      %1405 = vector.broadcast %1402 : f32 to vector<16x16xf32>
      %1406 = arith.mulf %1405, %1404 : vector<16x16xf32>
      %1407 = arith.addf %1401, %1406 : vector<16x16xf32>
      %c19_1158 = arith.constant 19 : index
      %1408 = memref.load %arg2[%c19_1158] : memref<98xf32, #tpu.memory_space<smem>>
      %c0_1159 = arith.constant 0 : index
      %c5_1160 = arith.constant 5 : index
      %c2_1161 = arith.constant 2 : index
      %c0_1162 = arith.constant 0 : index
      %1409 = vector.load %arg8[%c0_1159, %c5_1160, %c2_1161, %c0_1162] : memref<2x7x22x16xf32, #tpu.memory_space<vmem>>, vector<1x1x16x16xf32>
      %1410 = vector.shape_cast %1409 : vector<1x1x16x16xf32> to vector<16x16xf32>
      %1411 = vector.broadcast %1408 : f32 to vector<16x16xf32>
      %1412 = arith.mulf %1411, %1410 : vector<16x16xf32>
      %1413 = arith.addf %1407, %1412 : vector<16x16xf32>
      %c20_1163 = arith.constant 20 : index
      %1414 = memref.load %arg2[%c20_1163] : memref<98xf32, #tpu.memory_space<smem>>
      %c0_1164 = arith.constant 0 : index
      %c6_1165 = arith.constant 6 : index
      %c2_1166 = arith.constant 2 : index
      %c0_1167 = arith.constant 0 : index
      %1415 = vector.load %arg8[%c0_1164, %c6_1165, %c2_1166, %c0_1167] : memref<2x7x22x16xf32, #tpu.memory_space<vmem>>, vector<1x1x16x16xf32>
      %1416 = vector.shape_cast %1415 : vector<1x1x16x16xf32> to vector<16x16xf32>
      %1417 = vector.broadcast %1414 : f32 to vector<16x16xf32>
      %1418 = arith.mulf %1417, %1416 : vector<16x16xf32>
      %1419 = arith.addf %1413, %1418 : vector<16x16xf32>
      %c63_1168 = arith.constant 63 : index
      %1420 = memref.load %arg2[%c63_1168] : memref<98xf32, #tpu.memory_space<smem>>
      %c1_1169 = arith.constant 1 : index
      %c0_1170 = arith.constant 0 : index
      %c2_1171 = arith.constant 2 : index
      %c0_1172 = arith.constant 0 : index
      %1421 = vector.load %arg8[%c1_1169, %c0_1170, %c2_1171, %c0_1172] : memref<2x7x22x16xf32, #tpu.memory_space<vmem>>, vector<1x1x16x16xf32>
      %1422 = vector.shape_cast %1421 : vector<1x1x16x16xf32> to vector<16x16xf32>
      %1423 = vector.broadcast %1420 : f32 to vector<16x16xf32>
      %1424 = arith.mulf %1423, %1422 : vector<16x16xf32>
      %1425 = arith.addf %1419, %1424 : vector<16x16xf32>
      %c64_1173 = arith.constant 64 : index
      %1426 = memref.load %arg2[%c64_1173] : memref<98xf32, #tpu.memory_space<smem>>
      %c1_1174 = arith.constant 1 : index
      %c1_1175 = arith.constant 1 : index
      %c2_1176 = arith.constant 2 : index
      %c0_1177 = arith.constant 0 : index
      %1427 = vector.load %arg8[%c1_1174, %c1_1175, %c2_1176, %c0_1177] : memref<2x7x22x16xf32, #tpu.memory_space<vmem>>, vector<1x1x16x16xf32>
      %1428 = vector.shape_cast %1427 : vector<1x1x16x16xf32> to vector<16x16xf32>
      %1429 = vector.broadcast %1426 : f32 to vector<16x16xf32>
      %1430 = arith.mulf %1429, %1428 : vector<16x16xf32>
      %1431 = arith.addf %1425, %1430 : vector<16x16xf32>
      %c65_1178 = arith.constant 65 : index
      %1432 = memref.load %arg2[%c65_1178] : memref<98xf32, #tpu.memory_space<smem>>
      %c1_1179 = arith.constant 1 : index
      %c2_1180 = arith.constant 2 : index
      %c2_1181 = arith.constant 2 : index
      %c0_1182 = arith.constant 0 : index
      %1433 = vector.load %arg8[%c1_1179, %c2_1180, %c2_1181, %c0_1182] : memref<2x7x22x16xf32, #tpu.memory_space<vmem>>, vector<1x1x16x16xf32>
      %1434 = vector.shape_cast %1433 : vector<1x1x16x16xf32> to vector<16x16xf32>
      %1435 = vector.broadcast %1432 : f32 to vector<16x16xf32>
      %1436 = arith.mulf %1435, %1434 : vector<16x16xf32>
      %1437 = arith.addf %1431, %1436 : vector<16x16xf32>
      %c66_1183 = arith.constant 66 : index
      %1438 = memref.load %arg2[%c66_1183] : memref<98xf32, #tpu.memory_space<smem>>
      %c1_1184 = arith.constant 1 : index
      %c3_1185 = arith.constant 3 : index
      %c2_1186 = arith.constant 2 : index
      %c0_1187 = arith.constant 0 : index
      %1439 = vector.load %arg8[%c1_1184, %c3_1185, %c2_1186, %c0_1187] : memref<2x7x22x16xf32, #tpu.memory_space<vmem>>, vector<1x1x16x16xf32>
      %1440 = vector.shape_cast %1439 : vector<1x1x16x16xf32> to vector<16x16xf32>
      %1441 = vector.broadcast %1438 : f32 to vector<16x16xf32>
      %1442 = arith.mulf %1441, %1440 : vector<16x16xf32>
      %1443 = arith.addf %1437, %1442 : vector<16x16xf32>
      %c67_1188 = arith.constant 67 : index
      %1444 = memref.load %arg2[%c67_1188] : memref<98xf32, #tpu.memory_space<smem>>
      %c1_1189 = arith.constant 1 : index
      %c4_1190 = arith.constant 4 : index
      %c2_1191 = arith.constant 2 : index
      %c0_1192 = arith.constant 0 : index
      %1445 = vector.load %arg8[%c1_1189, %c4_1190, %c2_1191, %c0_1192] : memref<2x7x22x16xf32, #tpu.memory_space<vmem>>, vector<1x1x16x16xf32>
      %1446 = vector.shape_cast %1445 : vector<1x1x16x16xf32> to vector<16x16xf32>
      %1447 = vector.broadcast %1444 : f32 to vector<16x16xf32>
      %1448 = arith.mulf %1447, %1446 : vector<16x16xf32>
      %1449 = arith.addf %1443, %1448 : vector<16x16xf32>
      %c68_1193 = arith.constant 68 : index
      %1450 = memref.load %arg2[%c68_1193] : memref<98xf32, #tpu.memory_space<smem>>
      %c1_1194 = arith.constant 1 : index
      %c5_1195 = arith.constant 5 : index
      %c2_1196 = arith.constant 2 : index
      %c0_1197 = arith.constant 0 : index
      %1451 = vector.load %arg8[%c1_1194, %c5_1195, %c2_1196, %c0_1197] : memref<2x7x22x16xf32, #tpu.memory_space<vmem>>, vector<1x1x16x16xf32>
      %1452 = vector.shape_cast %1451 : vector<1x1x16x16xf32> to vector<16x16xf32>
      %1453 = vector.broadcast %1450 : f32 to vector<16x16xf32>
      %1454 = arith.mulf %1453, %1452 : vector<16x16xf32>
      %1455 = arith.addf %1449, %1454 : vector<16x16xf32>
      %c69_1198 = arith.constant 69 : index
      %1456 = memref.load %arg2[%c69_1198] : memref<98xf32, #tpu.memory_space<smem>>
      %c1_1199 = arith.constant 1 : index
      %c6_1200 = arith.constant 6 : index
      %c2_1201 = arith.constant 2 : index
      %c0_1202 = arith.constant 0 : index
      %1457 = vector.load %arg8[%c1_1199, %c6_1200, %c2_1201, %c0_1202] : memref<2x7x22x16xf32, #tpu.memory_space<vmem>>, vector<1x1x16x16xf32>
      %1458 = vector.shape_cast %1457 : vector<1x1x16x16xf32> to vector<16x16xf32>
      %1459 = vector.broadcast %1456 : f32 to vector<16x16xf32>
      %1460 = arith.mulf %1459, %1458 : vector<16x16xf32>
      %1461 = arith.addf %1455, %1460 : vector<16x16xf32>
      %c21_1203 = arith.constant 21 : index
      %1462 = memref.load %arg2[%c21_1203] : memref<98xf32, #tpu.memory_space<smem>>
      %c0_1204 = arith.constant 0 : index
      %c0_1205 = arith.constant 0 : index
      %c3_1206 = arith.constant 3 : index
      %c0_1207 = arith.constant 0 : index
      %1463 = vector.load %arg8[%c0_1204, %c0_1205, %c3_1206, %c0_1207] : memref<2x7x22x16xf32, #tpu.memory_space<vmem>>, vector<1x1x16x16xf32>
      %1464 = vector.shape_cast %1463 : vector<1x1x16x16xf32> to vector<16x16xf32>
      %1465 = vector.broadcast %1462 : f32 to vector<16x16xf32>
      %1466 = arith.mulf %1465, %1464 : vector<16x16xf32>
      %1467 = arith.addf %1461, %1466 : vector<16x16xf32>
      %c22_1208 = arith.constant 22 : index
      %1468 = memref.load %arg2[%c22_1208] : memref<98xf32, #tpu.memory_space<smem>>
      %c0_1209 = arith.constant 0 : index
      %c1_1210 = arith.constant 1 : index
      %c3_1211 = arith.constant 3 : index
      %c0_1212 = arith.constant 0 : index
      %1469 = vector.load %arg8[%c0_1209, %c1_1210, %c3_1211, %c0_1212] : memref<2x7x22x16xf32, #tpu.memory_space<vmem>>, vector<1x1x16x16xf32>
      %1470 = vector.shape_cast %1469 : vector<1x1x16x16xf32> to vector<16x16xf32>
      %1471 = vector.broadcast %1468 : f32 to vector<16x16xf32>
      %1472 = arith.mulf %1471, %1470 : vector<16x16xf32>
      %1473 = arith.addf %1467, %1472 : vector<16x16xf32>
      %c23_1213 = arith.constant 23 : index
      %1474 = memref.load %arg2[%c23_1213] : memref<98xf32, #tpu.memory_space<smem>>
      %c0_1214 = arith.constant 0 : index
      %c2_1215 = arith.constant 2 : index
      %c3_1216 = arith.constant 3 : index
      %c0_1217 = arith.constant 0 : index
      %1475 = vector.load %arg8[%c0_1214, %c2_1215, %c3_1216, %c0_1217] : memref<2x7x22x16xf32, #tpu.memory_space<vmem>>, vector<1x1x16x16xf32>
      %1476 = vector.shape_cast %1475 : vector<1x1x16x16xf32> to vector<16x16xf32>
      %1477 = vector.broadcast %1474 : f32 to vector<16x16xf32>
      %1478 = arith.mulf %1477, %1476 : vector<16x16xf32>
      %1479 = arith.addf %1473, %1478 : vector<16x16xf32>
      %c24_1218 = arith.constant 24 : index
      %1480 = memref.load %arg2[%c24_1218] : memref<98xf32, #tpu.memory_space<smem>>
      %c0_1219 = arith.constant 0 : index
      %c3_1220 = arith.constant 3 : index
      %c3_1221 = arith.constant 3 : index
      %c0_1222 = arith.constant 0 : index
      %1481 = vector.load %arg8[%c0_1219, %c3_1220, %c3_1221, %c0_1222] : memref<2x7x22x16xf32, #tpu.memory_space<vmem>>, vector<1x1x16x16xf32>
      %1482 = vector.shape_cast %1481 : vector<1x1x16x16xf32> to vector<16x16xf32>
      %1483 = vector.broadcast %1480 : f32 to vector<16x16xf32>
      %1484 = arith.mulf %1483, %1482 : vector<16x16xf32>
      %1485 = arith.addf %1479, %1484 : vector<16x16xf32>
      %c25_1223 = arith.constant 25 : index
      %1486 = memref.load %arg2[%c25_1223] : memref<98xf32, #tpu.memory_space<smem>>
      %c0_1224 = arith.constant 0 : index
      %c4_1225 = arith.constant 4 : index
      %c3_1226 = arith.constant 3 : index
      %c0_1227 = arith.constant 0 : index
      %1487 = vector.load %arg8[%c0_1224, %c4_1225, %c3_1226, %c0_1227] : memref<2x7x22x16xf32, #tpu.memory_space<vmem>>, vector<1x1x16x16xf32>
      %1488 = vector.shape_cast %1487 : vector<1x1x16x16xf32> to vector<16x16xf32>
      %1489 = vector.broadcast %1486 : f32 to vector<16x16xf32>
      %1490 = arith.mulf %1489, %1488 : vector<16x16xf32>
      %1491 = arith.addf %1485, %1490 : vector<16x16xf32>
      %c26_1228 = arith.constant 26 : index
      %1492 = memref.load %arg2[%c26_1228] : memref<98xf32, #tpu.memory_space<smem>>
      %c0_1229 = arith.constant 0 : index
      %c5_1230 = arith.constant 5 : index
      %c3_1231 = arith.constant 3 : index
      %c0_1232 = arith.constant 0 : index
      %1493 = vector.load %arg8[%c0_1229, %c5_1230, %c3_1231, %c0_1232] : memref<2x7x22x16xf32, #tpu.memory_space<vmem>>, vector<1x1x16x16xf32>
      %1494 = vector.shape_cast %1493 : vector<1x1x16x16xf32> to vector<16x16xf32>
      %1495 = vector.broadcast %1492 : f32 to vector<16x16xf32>
      %1496 = arith.mulf %1495, %1494 : vector<16x16xf32>
      %1497 = arith.addf %1491, %1496 : vector<16x16xf32>
      %c27_1233 = arith.constant 27 : index
      %1498 = memref.load %arg2[%c27_1233] : memref<98xf32, #tpu.memory_space<smem>>
      %c0_1234 = arith.constant 0 : index
      %c6_1235 = arith.constant 6 : index
      %c3_1236 = arith.constant 3 : index
      %c0_1237 = arith.constant 0 : index
      %1499 = vector.load %arg8[%c0_1234, %c6_1235, %c3_1236, %c0_1237] : memref<2x7x22x16xf32, #tpu.memory_space<vmem>>, vector<1x1x16x16xf32>
      %1500 = vector.shape_cast %1499 : vector<1x1x16x16xf32> to vector<16x16xf32>
      %1501 = vector.broadcast %1498 : f32 to vector<16x16xf32>
      %1502 = arith.mulf %1501, %1500 : vector<16x16xf32>
      %1503 = arith.addf %1497, %1502 : vector<16x16xf32>
      %c70_1238 = arith.constant 70 : index
      %1504 = memref.load %arg2[%c70_1238] : memref<98xf32, #tpu.memory_space<smem>>
      %c1_1239 = arith.constant 1 : index
      %c0_1240 = arith.constant 0 : index
      %c3_1241 = arith.constant 3 : index
      %c0_1242 = arith.constant 0 : index
      %1505 = vector.load %arg8[%c1_1239, %c0_1240, %c3_1241, %c0_1242] : memref<2x7x22x16xf32, #tpu.memory_space<vmem>>, vector<1x1x16x16xf32>
      %1506 = vector.shape_cast %1505 : vector<1x1x16x16xf32> to vector<16x16xf32>
      %1507 = vector.broadcast %1504 : f32 to vector<16x16xf32>
      %1508 = arith.mulf %1507, %1506 : vector<16x16xf32>
      %1509 = arith.addf %1503, %1508 : vector<16x16xf32>
      %c71_1243 = arith.constant 71 : index
      %1510 = memref.load %arg2[%c71_1243] : memref<98xf32, #tpu.memory_space<smem>>
      %c1_1244 = arith.constant 1 : index
      %c1_1245 = arith.constant 1 : index
      %c3_1246 = arith.constant 3 : index
      %c0_1247 = arith.constant 0 : index
      %1511 = vector.load %arg8[%c1_1244, %c1_1245, %c3_1246, %c0_1247] : memref<2x7x22x16xf32, #tpu.memory_space<vmem>>, vector<1x1x16x16xf32>
      %1512 = vector.shape_cast %1511 : vector<1x1x16x16xf32> to vector<16x16xf32>
      %1513 = vector.broadcast %1510 : f32 to vector<16x16xf32>
      %1514 = arith.mulf %1513, %1512 : vector<16x16xf32>
      %1515 = arith.addf %1509, %1514 : vector<16x16xf32>
      %c72_1248 = arith.constant 72 : index
      %1516 = memref.load %arg2[%c72_1248] : memref<98xf32, #tpu.memory_space<smem>>
      %c1_1249 = arith.constant 1 : index
      %c2_1250 = arith.constant 2 : index
      %c3_1251 = arith.constant 3 : index
      %c0_1252 = arith.constant 0 : index
      %1517 = vector.load %arg8[%c1_1249, %c2_1250, %c3_1251, %c0_1252] : memref<2x7x22x16xf32, #tpu.memory_space<vmem>>, vector<1x1x16x16xf32>
      %1518 = vector.shape_cast %1517 : vector<1x1x16x16xf32> to vector<16x16xf32>
      %1519 = vector.broadcast %1516 : f32 to vector<16x16xf32>
      %1520 = arith.mulf %1519, %1518 : vector<16x16xf32>
      %1521 = arith.addf %1515, %1520 : vector<16x16xf32>
      %c73_1253 = arith.constant 73 : index
      %1522 = memref.load %arg2[%c73_1253] : memref<98xf32, #tpu.memory_space<smem>>
      %c1_1254 = arith.constant 1 : index
      %c3_1255 = arith.constant 3 : index
      %c3_1256 = arith.constant 3 : index
      %c0_1257 = arith.constant 0 : index
      %1523 = vector.load %arg8[%c1_1254, %c3_1255, %c3_1256, %c0_1257] : memref<2x7x22x16xf32, #tpu.memory_space<vmem>>, vector<1x1x16x16xf32>
      %1524 = vector.shape_cast %1523 : vector<1x1x16x16xf32> to vector<16x16xf32>
      %1525 = vector.broadcast %1522 : f32 to vector<16x16xf32>
      %1526 = arith.mulf %1525, %1524 : vector<16x16xf32>
      %1527 = arith.addf %1521, %1526 : vector<16x16xf32>
      %c74_1258 = arith.constant 74 : index
      %1528 = memref.load %arg2[%c74_1258] : memref<98xf32, #tpu.memory_space<smem>>
      %c1_1259 = arith.constant 1 : index
      %c4_1260 = arith.constant 4 : index
      %c3_1261 = arith.constant 3 : index
      %c0_1262 = arith.constant 0 : index
      %1529 = vector.load %arg8[%c1_1259, %c4_1260, %c3_1261, %c0_1262] : memref<2x7x22x16xf32, #tpu.memory_space<vmem>>, vector<1x1x16x16xf32>
      %1530 = vector.shape_cast %1529 : vector<1x1x16x16xf32> to vector<16x16xf32>
      %1531 = vector.broadcast %1528 : f32 to vector<16x16xf32>
      %1532 = arith.mulf %1531, %1530 : vector<16x16xf32>
      %1533 = arith.addf %1527, %1532 : vector<16x16xf32>
      %c75_1263 = arith.constant 75 : index
      %1534 = memref.load %arg2[%c75_1263] : memref<98xf32, #tpu.memory_space<smem>>
      %c1_1264 = arith.constant 1 : index
      %c5_1265 = arith.constant 5 : index
      %c3_1266 = arith.constant 3 : index
      %c0_1267 = arith.constant 0 : index
      %1535 = vector.load %arg8[%c1_1264, %c5_1265, %c3_1266, %c0_1267] : memref<2x7x22x16xf32, #tpu.memory_space<vmem>>, vector<1x1x16x16xf32>
      %1536 = vector.shape_cast %1535 : vector<1x1x16x16xf32> to vector<16x16xf32>
      %1537 = vector.broadcast %1534 : f32 to vector<16x16xf32>
      %1538 = arith.mulf %1537, %1536 : vector<16x16xf32>
      %1539 = arith.addf %1533, %1538 : vector<16x16xf32>
      %c76_1268 = arith.constant 76 : index
      %1540 = memref.load %arg2[%c76_1268] : memref<98xf32, #tpu.memory_space<smem>>
      %c1_1269 = arith.constant 1 : index
      %c6_1270 = arith.constant 6 : index
      %c3_1271 = arith.constant 3 : index
      %c0_1272 = arith.constant 0 : index
      %1541 = vector.load %arg8[%c1_1269, %c6_1270, %c3_1271, %c0_1272] : memref<2x7x22x16xf32, #tpu.memory_space<vmem>>, vector<1x1x16x16xf32>
      %1542 = vector.shape_cast %1541 : vector<1x1x16x16xf32> to vector<16x16xf32>
      %1543 = vector.broadcast %1540 : f32 to vector<16x16xf32>
      %1544 = arith.mulf %1543, %1542 : vector<16x16xf32>
      %1545 = arith.addf %1539, %1544 : vector<16x16xf32>
      %c28_1273 = arith.constant 28 : index
      %1546 = memref.load %arg2[%c28_1273] : memref<98xf32, #tpu.memory_space<smem>>
      %c0_1274 = arith.constant 0 : index
      %c0_1275 = arith.constant 0 : index
      %c4_1276 = arith.constant 4 : index
      %c0_1277 = arith.constant 0 : index
      %1547 = vector.load %arg8[%c0_1274, %c0_1275, %c4_1276, %c0_1277] : memref<2x7x22x16xf32, #tpu.memory_space<vmem>>, vector<1x1x16x16xf32>
      %1548 = vector.shape_cast %1547 : vector<1x1x16x16xf32> to vector<16x16xf32>
      %1549 = vector.broadcast %1546 : f32 to vector<16x16xf32>
      %1550 = arith.mulf %1549, %1548 : vector<16x16xf32>
      %1551 = arith.addf %1545, %1550 : vector<16x16xf32>
      %c29_1278 = arith.constant 29 : index
      %1552 = memref.load %arg2[%c29_1278] : memref<98xf32, #tpu.memory_space<smem>>
      %c0_1279 = arith.constant 0 : index
      %c1_1280 = arith.constant 1 : index
      %c4_1281 = arith.constant 4 : index
      %c0_1282 = arith.constant 0 : index
      %1553 = vector.load %arg8[%c0_1279, %c1_1280, %c4_1281, %c0_1282] : memref<2x7x22x16xf32, #tpu.memory_space<vmem>>, vector<1x1x16x16xf32>
      %1554 = vector.shape_cast %1553 : vector<1x1x16x16xf32> to vector<16x16xf32>
      %1555 = vector.broadcast %1552 : f32 to vector<16x16xf32>
      %1556 = arith.mulf %1555, %1554 : vector<16x16xf32>
      %1557 = arith.addf %1551, %1556 : vector<16x16xf32>
      %c30_1283 = arith.constant 30 : index
      %1558 = memref.load %arg2[%c30_1283] : memref<98xf32, #tpu.memory_space<smem>>
      %c0_1284 = arith.constant 0 : index
      %c2_1285 = arith.constant 2 : index
      %c4_1286 = arith.constant 4 : index
      %c0_1287 = arith.constant 0 : index
      %1559 = vector.load %arg8[%c0_1284, %c2_1285, %c4_1286, %c0_1287] : memref<2x7x22x16xf32, #tpu.memory_space<vmem>>, vector<1x1x16x16xf32>
      %1560 = vector.shape_cast %1559 : vector<1x1x16x16xf32> to vector<16x16xf32>
      %1561 = vector.broadcast %1558 : f32 to vector<16x16xf32>
      %1562 = arith.mulf %1561, %1560 : vector<16x16xf32>
      %1563 = arith.addf %1557, %1562 : vector<16x16xf32>
      %c31_1288 = arith.constant 31 : index
      %1564 = memref.load %arg2[%c31_1288] : memref<98xf32, #tpu.memory_space<smem>>
      %c0_1289 = arith.constant 0 : index
      %c3_1290 = arith.constant 3 : index
      %c4_1291 = arith.constant 4 : index
      %c0_1292 = arith.constant 0 : index
      %1565 = vector.load %arg8[%c0_1289, %c3_1290, %c4_1291, %c0_1292] : memref<2x7x22x16xf32, #tpu.memory_space<vmem>>, vector<1x1x16x16xf32>
      %1566 = vector.shape_cast %1565 : vector<1x1x16x16xf32> to vector<16x16xf32>
      %1567 = vector.broadcast %1564 : f32 to vector<16x16xf32>
      %1568 = arith.mulf %1567, %1566 : vector<16x16xf32>
      %1569 = arith.addf %1563, %1568 : vector<16x16xf32>
      %c32_1293 = arith.constant 32 : index
      %1570 = memref.load %arg2[%c32_1293] : memref<98xf32, #tpu.memory_space<smem>>
      %c0_1294 = arith.constant 0 : index
      %c4_1295 = arith.constant 4 : index
      %c4_1296 = arith.constant 4 : index
      %c0_1297 = arith.constant 0 : index
      %1571 = vector.load %arg8[%c0_1294, %c4_1295, %c4_1296, %c0_1297] : memref<2x7x22x16xf32, #tpu.memory_space<vmem>>, vector<1x1x16x16xf32>
      %1572 = vector.shape_cast %1571 : vector<1x1x16x16xf32> to vector<16x16xf32>
      %1573 = vector.broadcast %1570 : f32 to vector<16x16xf32>
      %1574 = arith.mulf %1573, %1572 : vector<16x16xf32>
      %1575 = arith.addf %1569, %1574 : vector<16x16xf32>
      %c33_1298 = arith.constant 33 : index
      %1576 = memref.load %arg2[%c33_1298] : memref<98xf32, #tpu.memory_space<smem>>
      %c0_1299 = arith.constant 0 : index
      %c5_1300 = arith.constant 5 : index
      %c4_1301 = arith.constant 4 : index
      %c0_1302 = arith.constant 0 : index
      %1577 = vector.load %arg8[%c0_1299, %c5_1300, %c4_1301, %c0_1302] : memref<2x7x22x16xf32, #tpu.memory_space<vmem>>, vector<1x1x16x16xf32>
      %1578 = vector.shape_cast %1577 : vector<1x1x16x16xf32> to vector<16x16xf32>
      %1579 = vector.broadcast %1576 : f32 to vector<16x16xf32>
      %1580 = arith.mulf %1579, %1578 : vector<16x16xf32>
      %1581 = arith.addf %1575, %1580 : vector<16x16xf32>
      %c34_1303 = arith.constant 34 : index
      %1582 = memref.load %arg2[%c34_1303] : memref<98xf32, #tpu.memory_space<smem>>
      %c0_1304 = arith.constant 0 : index
      %c6_1305 = arith.constant 6 : index
      %c4_1306 = arith.constant 4 : index
      %c0_1307 = arith.constant 0 : index
      %1583 = vector.load %arg8[%c0_1304, %c6_1305, %c4_1306, %c0_1307] : memref<2x7x22x16xf32, #tpu.memory_space<vmem>>, vector<1x1x16x16xf32>
      %1584 = vector.shape_cast %1583 : vector<1x1x16x16xf32> to vector<16x16xf32>
      %1585 = vector.broadcast %1582 : f32 to vector<16x16xf32>
      %1586 = arith.mulf %1585, %1584 : vector<16x16xf32>
      %1587 = arith.addf %1581, %1586 : vector<16x16xf32>
      %c77_1308 = arith.constant 77 : index
      %1588 = memref.load %arg2[%c77_1308] : memref<98xf32, #tpu.memory_space<smem>>
      %c1_1309 = arith.constant 1 : index
      %c0_1310 = arith.constant 0 : index
      %c4_1311 = arith.constant 4 : index
      %c0_1312 = arith.constant 0 : index
      %1589 = vector.load %arg8[%c1_1309, %c0_1310, %c4_1311, %c0_1312] : memref<2x7x22x16xf32, #tpu.memory_space<vmem>>, vector<1x1x16x16xf32>
      %1590 = vector.shape_cast %1589 : vector<1x1x16x16xf32> to vector<16x16xf32>
      %1591 = vector.broadcast %1588 : f32 to vector<16x16xf32>
      %1592 = arith.mulf %1591, %1590 : vector<16x16xf32>
      %1593 = arith.addf %1587, %1592 : vector<16x16xf32>
      %c78_1313 = arith.constant 78 : index
      %1594 = memref.load %arg2[%c78_1313] : memref<98xf32, #tpu.memory_space<smem>>
      %c1_1314 = arith.constant 1 : index
      %c1_1315 = arith.constant 1 : index
      %c4_1316 = arith.constant 4 : index
      %c0_1317 = arith.constant 0 : index
      %1595 = vector.load %arg8[%c1_1314, %c1_1315, %c4_1316, %c0_1317] : memref<2x7x22x16xf32, #tpu.memory_space<vmem>>, vector<1x1x16x16xf32>
      %1596 = vector.shape_cast %1595 : vector<1x1x16x16xf32> to vector<16x16xf32>
      %1597 = vector.broadcast %1594 : f32 to vector<16x16xf32>
      %1598 = arith.mulf %1597, %1596 : vector<16x16xf32>
      %1599 = arith.addf %1593, %1598 : vector<16x16xf32>
      %c79_1318 = arith.constant 79 : index
      %1600 = memref.load %arg2[%c79_1318] : memref<98xf32, #tpu.memory_space<smem>>
      %c1_1319 = arith.constant 1 : index
      %c2_1320 = arith.constant 2 : index
      %c4_1321 = arith.constant 4 : index
      %c0_1322 = arith.constant 0 : index
      %1601 = vector.load %arg8[%c1_1319, %c2_1320, %c4_1321, %c0_1322] : memref<2x7x22x16xf32, #tpu.memory_space<vmem>>, vector<1x1x16x16xf32>
      %1602 = vector.shape_cast %1601 : vector<1x1x16x16xf32> to vector<16x16xf32>
      %1603 = vector.broadcast %1600 : f32 to vector<16x16xf32>
      %1604 = arith.mulf %1603, %1602 : vector<16x16xf32>
      %1605 = arith.addf %1599, %1604 : vector<16x16xf32>
      %c80_1323 = arith.constant 80 : index
      %1606 = memref.load %arg2[%c80_1323] : memref<98xf32, #tpu.memory_space<smem>>
      %c1_1324 = arith.constant 1 : index
      %c3_1325 = arith.constant 3 : index
      %c4_1326 = arith.constant 4 : index
      %c0_1327 = arith.constant 0 : index
      %1607 = vector.load %arg8[%c1_1324, %c3_1325, %c4_1326, %c0_1327] : memref<2x7x22x16xf32, #tpu.memory_space<vmem>>, vector<1x1x16x16xf32>
      %1608 = vector.shape_cast %1607 : vector<1x1x16x16xf32> to vector<16x16xf32>
      %1609 = vector.broadcast %1606 : f32 to vector<16x16xf32>
      %1610 = arith.mulf %1609, %1608 : vector<16x16xf32>
      %1611 = arith.addf %1605, %1610 : vector<16x16xf32>
      %c81_1328 = arith.constant 81 : index
      %1612 = memref.load %arg2[%c81_1328] : memref<98xf32, #tpu.memory_space<smem>>
      %c1_1329 = arith.constant 1 : index
      %c4_1330 = arith.constant 4 : index
      %c4_1331 = arith.constant 4 : index
      %c0_1332 = arith.constant 0 : index
      %1613 = vector.load %arg8[%c1_1329, %c4_1330, %c4_1331, %c0_1332] : memref<2x7x22x16xf32, #tpu.memory_space<vmem>>, vector<1x1x16x16xf32>
      %1614 = vector.shape_cast %1613 : vector<1x1x16x16xf32> to vector<16x16xf32>
      %1615 = vector.broadcast %1612 : f32 to vector<16x16xf32>
      %1616 = arith.mulf %1615, %1614 : vector<16x16xf32>
      %1617 = arith.addf %1611, %1616 : vector<16x16xf32>
      %c82_1333 = arith.constant 82 : index
      %1618 = memref.load %arg2[%c82_1333] : memref<98xf32, #tpu.memory_space<smem>>
      %c1_1334 = arith.constant 1 : index
      %c5_1335 = arith.constant 5 : index
      %c4_1336 = arith.constant 4 : index
      %c0_1337 = arith.constant 0 : index
      %1619 = vector.load %arg8[%c1_1334, %c5_1335, %c4_1336, %c0_1337] : memref<2x7x22x16xf32, #tpu.memory_space<vmem>>, vector<1x1x16x16xf32>
      %1620 = vector.shape_cast %1619 : vector<1x1x16x16xf32> to vector<16x16xf32>
      %1621 = vector.broadcast %1618 : f32 to vector<16x16xf32>
      %1622 = arith.mulf %1621, %1620 : vector<16x16xf32>
      %1623 = arith.addf %1617, %1622 : vector<16x16xf32>
      %c83_1338 = arith.constant 83 : index
      %1624 = memref.load %arg2[%c83_1338] : memref<98xf32, #tpu.memory_space<smem>>
      %c1_1339 = arith.constant 1 : index
      %c6_1340 = arith.constant 6 : index
      %c4_1341 = arith.constant 4 : index
      %c0_1342 = arith.constant 0 : index
      %1625 = vector.load %arg8[%c1_1339, %c6_1340, %c4_1341, %c0_1342] : memref<2x7x22x16xf32, #tpu.memory_space<vmem>>, vector<1x1x16x16xf32>
      %1626 = vector.shape_cast %1625 : vector<1x1x16x16xf32> to vector<16x16xf32>
      %1627 = vector.broadcast %1624 : f32 to vector<16x16xf32>
      %1628 = arith.mulf %1627, %1626 : vector<16x16xf32>
      %1629 = arith.addf %1623, %1628 : vector<16x16xf32>
      %c35_1343 = arith.constant 35 : index
      %1630 = memref.load %arg2[%c35_1343] : memref<98xf32, #tpu.memory_space<smem>>
      %c0_1344 = arith.constant 0 : index
      %c0_1345 = arith.constant 0 : index
      %c5_1346 = arith.constant 5 : index
      %c0_1347 = arith.constant 0 : index
      %1631 = vector.load %arg8[%c0_1344, %c0_1345, %c5_1346, %c0_1347] : memref<2x7x22x16xf32, #tpu.memory_space<vmem>>, vector<1x1x16x16xf32>
      %1632 = vector.shape_cast %1631 : vector<1x1x16x16xf32> to vector<16x16xf32>
      %1633 = vector.broadcast %1630 : f32 to vector<16x16xf32>
      %1634 = arith.mulf %1633, %1632 : vector<16x16xf32>
      %1635 = arith.addf %1629, %1634 : vector<16x16xf32>
      %c36_1348 = arith.constant 36 : index
      %1636 = memref.load %arg2[%c36_1348] : memref<98xf32, #tpu.memory_space<smem>>
      %c0_1349 = arith.constant 0 : index
      %c1_1350 = arith.constant 1 : index
      %c5_1351 = arith.constant 5 : index
      %c0_1352 = arith.constant 0 : index
      %1637 = vector.load %arg8[%c0_1349, %c1_1350, %c5_1351, %c0_1352] : memref<2x7x22x16xf32, #tpu.memory_space<vmem>>, vector<1x1x16x16xf32>
      %1638 = vector.shape_cast %1637 : vector<1x1x16x16xf32> to vector<16x16xf32>
      %1639 = vector.broadcast %1636 : f32 to vector<16x16xf32>
      %1640 = arith.mulf %1639, %1638 : vector<16x16xf32>
      %1641 = arith.addf %1635, %1640 : vector<16x16xf32>
      %c37_1353 = arith.constant 37 : index
      %1642 = memref.load %arg2[%c37_1353] : memref<98xf32, #tpu.memory_space<smem>>
      %c0_1354 = arith.constant 0 : index
      %c2_1355 = arith.constant 2 : index
      %c5_1356 = arith.constant 5 : index
      %c0_1357 = arith.constant 0 : index
      %1643 = vector.load %arg8[%c0_1354, %c2_1355, %c5_1356, %c0_1357] : memref<2x7x22x16xf32, #tpu.memory_space<vmem>>, vector<1x1x16x16xf32>
      %1644 = vector.shape_cast %1643 : vector<1x1x16x16xf32> to vector<16x16xf32>
      %1645 = vector.broadcast %1642 : f32 to vector<16x16xf32>
      %1646 = arith.mulf %1645, %1644 : vector<16x16xf32>
      %1647 = arith.addf %1641, %1646 : vector<16x16xf32>
      %c38_1358 = arith.constant 38 : index
      %1648 = memref.load %arg2[%c38_1358] : memref<98xf32, #tpu.memory_space<smem>>
      %c0_1359 = arith.constant 0 : index
      %c3_1360 = arith.constant 3 : index
      %c5_1361 = arith.constant 5 : index
      %c0_1362 = arith.constant 0 : index
      %1649 = vector.load %arg8[%c0_1359, %c3_1360, %c5_1361, %c0_1362] : memref<2x7x22x16xf32, #tpu.memory_space<vmem>>, vector<1x1x16x16xf32>
      %1650 = vector.shape_cast %1649 : vector<1x1x16x16xf32> to vector<16x16xf32>
      %1651 = vector.broadcast %1648 : f32 to vector<16x16xf32>
      %1652 = arith.mulf %1651, %1650 : vector<16x16xf32>
      %1653 = arith.addf %1647, %1652 : vector<16x16xf32>
      %c39_1363 = arith.constant 39 : index
      %1654 = memref.load %arg2[%c39_1363] : memref<98xf32, #tpu.memory_space<smem>>
      %c0_1364 = arith.constant 0 : index
      %c4_1365 = arith.constant 4 : index
      %c5_1366 = arith.constant 5 : index
      %c0_1367 = arith.constant 0 : index
      %1655 = vector.load %arg8[%c0_1364, %c4_1365, %c5_1366, %c0_1367] : memref<2x7x22x16xf32, #tpu.memory_space<vmem>>, vector<1x1x16x16xf32>
      %1656 = vector.shape_cast %1655 : vector<1x1x16x16xf32> to vector<16x16xf32>
      %1657 = vector.broadcast %1654 : f32 to vector<16x16xf32>
      %1658 = arith.mulf %1657, %1656 : vector<16x16xf32>
      %1659 = arith.addf %1653, %1658 : vector<16x16xf32>
      %c40_1368 = arith.constant 40 : index
      %1660 = memref.load %arg2[%c40_1368] : memref<98xf32, #tpu.memory_space<smem>>
      %c0_1369 = arith.constant 0 : index
      %c5_1370 = arith.constant 5 : index
      %c5_1371 = arith.constant 5 : index
      %c0_1372 = arith.constant 0 : index
      %1661 = vector.load %arg8[%c0_1369, %c5_1370, %c5_1371, %c0_1372] : memref<2x7x22x16xf32, #tpu.memory_space<vmem>>, vector<1x1x16x16xf32>
      %1662 = vector.shape_cast %1661 : vector<1x1x16x16xf32> to vector<16x16xf32>
      %1663 = vector.broadcast %1660 : f32 to vector<16x16xf32>
      %1664 = arith.mulf %1663, %1662 : vector<16x16xf32>
      %1665 = arith.addf %1659, %1664 : vector<16x16xf32>
      %c41_1373 = arith.constant 41 : index
      %1666 = memref.load %arg2[%c41_1373] : memref<98xf32, #tpu.memory_space<smem>>
      %c0_1374 = arith.constant 0 : index
      %c6_1375 = arith.constant 6 : index
      %c5_1376 = arith.constant 5 : index
      %c0_1377 = arith.constant 0 : index
      %1667 = vector.load %arg8[%c0_1374, %c6_1375, %c5_1376, %c0_1377] : memref<2x7x22x16xf32, #tpu.memory_space<vmem>>, vector<1x1x16x16xf32>
      %1668 = vector.shape_cast %1667 : vector<1x1x16x16xf32> to vector<16x16xf32>
      %1669 = vector.broadcast %1666 : f32 to vector<16x16xf32>
      %1670 = arith.mulf %1669, %1668 : vector<16x16xf32>
      %1671 = arith.addf %1665, %1670 : vector<16x16xf32>
      %c84_1378 = arith.constant 84 : index
      %1672 = memref.load %arg2[%c84_1378] : memref<98xf32, #tpu.memory_space<smem>>
      %c1_1379 = arith.constant 1 : index
      %c0_1380 = arith.constant 0 : index
      %c5_1381 = arith.constant 5 : index
      %c0_1382 = arith.constant 0 : index
      %1673 = vector.load %arg8[%c1_1379, %c0_1380, %c5_1381, %c0_1382] : memref<2x7x22x16xf32, #tpu.memory_space<vmem>>, vector<1x1x16x16xf32>
      %1674 = vector.shape_cast %1673 : vector<1x1x16x16xf32> to vector<16x16xf32>
      %1675 = vector.broadcast %1672 : f32 to vector<16x16xf32>
      %1676 = arith.mulf %1675, %1674 : vector<16x16xf32>
      %1677 = arith.addf %1671, %1676 : vector<16x16xf32>
      %c85_1383 = arith.constant 85 : index
      %1678 = memref.load %arg2[%c85_1383] : memref<98xf32, #tpu.memory_space<smem>>
      %c1_1384 = arith.constant 1 : index
      %c1_1385 = arith.constant 1 : index
      %c5_1386 = arith.constant 5 : index
      %c0_1387 = arith.constant 0 : index
      %1679 = vector.load %arg8[%c1_1384, %c1_1385, %c5_1386, %c0_1387] : memref<2x7x22x16xf32, #tpu.memory_space<vmem>>, vector<1x1x16x16xf32>
      %1680 = vector.shape_cast %1679 : vector<1x1x16x16xf32> to vector<16x16xf32>
      %1681 = vector.broadcast %1678 : f32 to vector<16x16xf32>
      %1682 = arith.mulf %1681, %1680 : vector<16x16xf32>
      %1683 = arith.addf %1677, %1682 : vector<16x16xf32>
      %c86_1388 = arith.constant 86 : index
      %1684 = memref.load %arg2[%c86_1388] : memref<98xf32, #tpu.memory_space<smem>>
      %c1_1389 = arith.constant 1 : index
      %c2_1390 = arith.constant 2 : index
      %c5_1391 = arith.constant 5 : index
      %c0_1392 = arith.constant 0 : index
      %1685 = vector.load %arg8[%c1_1389, %c2_1390, %c5_1391, %c0_1392] : memref<2x7x22x16xf32, #tpu.memory_space<vmem>>, vector<1x1x16x16xf32>
      %1686 = vector.shape_cast %1685 : vector<1x1x16x16xf32> to vector<16x16xf32>
      %1687 = vector.broadcast %1684 : f32 to vector<16x16xf32>
      %1688 = arith.mulf %1687, %1686 : vector<16x16xf32>
      %1689 = arith.addf %1683, %1688 : vector<16x16xf32>
      %c87_1393 = arith.constant 87 : index
      %1690 = memref.load %arg2[%c87_1393] : memref<98xf32, #tpu.memory_space<smem>>
      %c1_1394 = arith.constant 1 : index
      %c3_1395 = arith.constant 3 : index
      %c5_1396 = arith.constant 5 : index
      %c0_1397 = arith.constant 0 : index
      %1691 = vector.load %arg8[%c1_1394, %c3_1395, %c5_1396, %c0_1397] : memref<2x7x22x16xf32, #tpu.memory_space<vmem>>, vector<1x1x16x16xf32>
      %1692 = vector.shape_cast %1691 : vector<1x1x16x16xf32> to vector<16x16xf32>
      %1693 = vector.broadcast %1690 : f32 to vector<16x16xf32>
      %1694 = arith.mulf %1693, %1692 : vector<16x16xf32>
      %1695 = arith.addf %1689, %1694 : vector<16x16xf32>
      %c88_1398 = arith.constant 88 : index
      %1696 = memref.load %arg2[%c88_1398] : memref<98xf32, #tpu.memory_space<smem>>
      %c1_1399 = arith.constant 1 : index
      %c4_1400 = arith.constant 4 : index
      %c5_1401 = arith.constant 5 : index
      %c0_1402 = arith.constant 0 : index
      %1697 = vector.load %arg8[%c1_1399, %c4_1400, %c5_1401, %c0_1402] : memref<2x7x22x16xf32, #tpu.memory_space<vmem>>, vector<1x1x16x16xf32>
      %1698 = vector.shape_cast %1697 : vector<1x1x16x16xf32> to vector<16x16xf32>
      %1699 = vector.broadcast %1696 : f32 to vector<16x16xf32>
      %1700 = arith.mulf %1699, %1698 : vector<16x16xf32>
      %1701 = arith.addf %1695, %1700 : vector<16x16xf32>
      %c89_1403 = arith.constant 89 : index
      %1702 = memref.load %arg2[%c89_1403] : memref<98xf32, #tpu.memory_space<smem>>
      %c1_1404 = arith.constant 1 : index
      %c5_1405 = arith.constant 5 : index
      %c5_1406 = arith.constant 5 : index
      %c0_1407 = arith.constant 0 : index
      %1703 = vector.load %arg8[%c1_1404, %c5_1405, %c5_1406, %c0_1407] : memref<2x7x22x16xf32, #tpu.memory_space<vmem>>, vector<1x1x16x16xf32>
      %1704 = vector.shape_cast %1703 : vector<1x1x16x16xf32> to vector<16x16xf32>
      %1705 = vector.broadcast %1702 : f32 to vector<16x16xf32>
      %1706 = arith.mulf %1705, %1704 : vector<16x16xf32>
      %1707 = arith.addf %1701, %1706 : vector<16x16xf32>
      %c90_1408 = arith.constant 90 : index
      %1708 = memref.load %arg2[%c90_1408] : memref<98xf32, #tpu.memory_space<smem>>
      %c1_1409 = arith.constant 1 : index
      %c6_1410 = arith.constant 6 : index
      %c5_1411 = arith.constant 5 : index
      %c0_1412 = arith.constant 0 : index
      %1709 = vector.load %arg8[%c1_1409, %c6_1410, %c5_1411, %c0_1412] : memref<2x7x22x16xf32, #tpu.memory_space<vmem>>, vector<1x1x16x16xf32>
      %1710 = vector.shape_cast %1709 : vector<1x1x16x16xf32> to vector<16x16xf32>
      %1711 = vector.broadcast %1708 : f32 to vector<16x16xf32>
      %1712 = arith.mulf %1711, %1710 : vector<16x16xf32>
      %1713 = arith.addf %1707, %1712 : vector<16x16xf32>
      %c42_1413 = arith.constant 42 : index
      %1714 = memref.load %arg2[%c42_1413] : memref<98xf32, #tpu.memory_space<smem>>
      %c0_1414 = arith.constant 0 : index
      %c0_1415 = arith.constant 0 : index
      %c6_1416 = arith.constant 6 : index
      %c0_1417 = arith.constant 0 : index
      %1715 = vector.load %arg8[%c0_1414, %c0_1415, %c6_1416, %c0_1417] : memref<2x7x22x16xf32, #tpu.memory_space<vmem>>, vector<1x1x16x16xf32>
      %1716 = vector.shape_cast %1715 : vector<1x1x16x16xf32> to vector<16x16xf32>
      %1717 = vector.broadcast %1714 : f32 to vector<16x16xf32>
      %1718 = arith.mulf %1717, %1716 : vector<16x16xf32>
      %1719 = arith.addf %1713, %1718 : vector<16x16xf32>
      %c43_1418 = arith.constant 43 : index
      %1720 = memref.load %arg2[%c43_1418] : memref<98xf32, #tpu.memory_space<smem>>
      %c0_1419 = arith.constant 0 : index
      %c1_1420 = arith.constant 1 : index
      %c6_1421 = arith.constant 6 : index
      %c0_1422 = arith.constant 0 : index
      %1721 = vector.load %arg8[%c0_1419, %c1_1420, %c6_1421, %c0_1422] : memref<2x7x22x16xf32, #tpu.memory_space<vmem>>, vector<1x1x16x16xf32>
      %1722 = vector.shape_cast %1721 : vector<1x1x16x16xf32> to vector<16x16xf32>
      %1723 = vector.broadcast %1720 : f32 to vector<16x16xf32>
      %1724 = arith.mulf %1723, %1722 : vector<16x16xf32>
      %1725 = arith.addf %1719, %1724 : vector<16x16xf32>
      %c44_1423 = arith.constant 44 : index
      %1726 = memref.load %arg2[%c44_1423] : memref<98xf32, #tpu.memory_space<smem>>
      %c0_1424 = arith.constant 0 : index
      %c2_1425 = arith.constant 2 : index
      %c6_1426 = arith.constant 6 : index
      %c0_1427 = arith.constant 0 : index
      %1727 = vector.load %arg8[%c0_1424, %c2_1425, %c6_1426, %c0_1427] : memref<2x7x22x16xf32, #tpu.memory_space<vmem>>, vector<1x1x16x16xf32>
      %1728 = vector.shape_cast %1727 : vector<1x1x16x16xf32> to vector<16x16xf32>
      %1729 = vector.broadcast %1726 : f32 to vector<16x16xf32>
      %1730 = arith.mulf %1729, %1728 : vector<16x16xf32>
      %1731 = arith.addf %1725, %1730 : vector<16x16xf32>
      %c45_1428 = arith.constant 45 : index
      %1732 = memref.load %arg2[%c45_1428] : memref<98xf32, #tpu.memory_space<smem>>
      %c0_1429 = arith.constant 0 : index
      %c3_1430 = arith.constant 3 : index
      %c6_1431 = arith.constant 6 : index
      %c0_1432 = arith.constant 0 : index
      %1733 = vector.load %arg8[%c0_1429, %c3_1430, %c6_1431, %c0_1432] : memref<2x7x22x16xf32, #tpu.memory_space<vmem>>, vector<1x1x16x16xf32>
      %1734 = vector.shape_cast %1733 : vector<1x1x16x16xf32> to vector<16x16xf32>
      %1735 = vector.broadcast %1732 : f32 to vector<16x16xf32>
      %1736 = arith.mulf %1735, %1734 : vector<16x16xf32>
      %1737 = arith.addf %1731, %1736 : vector<16x16xf32>
      %c46_1433 = arith.constant 46 : index
      %1738 = memref.load %arg2[%c46_1433] : memref<98xf32, #tpu.memory_space<smem>>
      %c0_1434 = arith.constant 0 : index
      %c4_1435 = arith.constant 4 : index
      %c6_1436 = arith.constant 6 : index
      %c0_1437 = arith.constant 0 : index
      %1739 = vector.load %arg8[%c0_1434, %c4_1435, %c6_1436, %c0_1437] : memref<2x7x22x16xf32, #tpu.memory_space<vmem>>, vector<1x1x16x16xf32>
      %1740 = vector.shape_cast %1739 : vector<1x1x16x16xf32> to vector<16x16xf32>
      %1741 = vector.broadcast %1738 : f32 to vector<16x16xf32>
      %1742 = arith.mulf %1741, %1740 : vector<16x16xf32>
      %1743 = arith.addf %1737, %1742 : vector<16x16xf32>
      %c47_1438 = arith.constant 47 : index
      %1744 = memref.load %arg2[%c47_1438] : memref<98xf32, #tpu.memory_space<smem>>
      %c0_1439 = arith.constant 0 : index
      %c5_1440 = arith.constant 5 : index
      %c6_1441 = arith.constant 6 : index
      %c0_1442 = arith.constant 0 : index
      %1745 = vector.load %arg8[%c0_1439, %c5_1440, %c6_1441, %c0_1442] : memref<2x7x22x16xf32, #tpu.memory_space<vmem>>, vector<1x1x16x16xf32>
      %1746 = vector.shape_cast %1745 : vector<1x1x16x16xf32> to vector<16x16xf32>
      %1747 = vector.broadcast %1744 : f32 to vector<16x16xf32>
      %1748 = arith.mulf %1747, %1746 : vector<16x16xf32>
      %1749 = arith.addf %1743, %1748 : vector<16x16xf32>
      %c48_1443 = arith.constant 48 : index
      %1750 = memref.load %arg2[%c48_1443] : memref<98xf32, #tpu.memory_space<smem>>
      %c0_1444 = arith.constant 0 : index
      %c6_1445 = arith.constant 6 : index
      %c6_1446 = arith.constant 6 : index
      %c0_1447 = arith.constant 0 : index
      %1751 = vector.load %arg8[%c0_1444, %c6_1445, %c6_1446, %c0_1447] : memref<2x7x22x16xf32, #tpu.memory_space<vmem>>, vector<1x1x16x16xf32>
      %1752 = vector.shape_cast %1751 : vector<1x1x16x16xf32> to vector<16x16xf32>
      %1753 = vector.broadcast %1750 : f32 to vector<16x16xf32>
      %1754 = arith.mulf %1753, %1752 : vector<16x16xf32>
      %1755 = arith.addf %1749, %1754 : vector<16x16xf32>
      %c91_1448 = arith.constant 91 : index
      %1756 = memref.load %arg2[%c91_1448] : memref<98xf32, #tpu.memory_space<smem>>
      %c1_1449 = arith.constant 1 : index
      %c0_1450 = arith.constant 0 : index
      %c6_1451 = arith.constant 6 : index
      %c0_1452 = arith.constant 0 : index
      %1757 = vector.load %arg8[%c1_1449, %c0_1450, %c6_1451, %c0_1452] : memref<2x7x22x16xf32, #tpu.memory_space<vmem>>, vector<1x1x16x16xf32>
      %1758 = vector.shape_cast %1757 : vector<1x1x16x16xf32> to vector<16x16xf32>
      %1759 = vector.broadcast %1756 : f32 to vector<16x16xf32>
      %1760 = arith.mulf %1759, %1758 : vector<16x16xf32>
      %1761 = arith.addf %1755, %1760 : vector<16x16xf32>
      %c92_1453 = arith.constant 92 : index
      %1762 = memref.load %arg2[%c92_1453] : memref<98xf32, #tpu.memory_space<smem>>
      %c1_1454 = arith.constant 1 : index
      %c1_1455 = arith.constant 1 : index
      %c6_1456 = arith.constant 6 : index
      %c0_1457 = arith.constant 0 : index
      %1763 = vector.load %arg8[%c1_1454, %c1_1455, %c6_1456, %c0_1457] : memref<2x7x22x16xf32, #tpu.memory_space<vmem>>, vector<1x1x16x16xf32>
      %1764 = vector.shape_cast %1763 : vector<1x1x16x16xf32> to vector<16x16xf32>
      %1765 = vector.broadcast %1762 : f32 to vector<16x16xf32>
      %1766 = arith.mulf %1765, %1764 : vector<16x16xf32>
      %1767 = arith.addf %1761, %1766 : vector<16x16xf32>
      %c93_1458 = arith.constant 93 : index
      %1768 = memref.load %arg2[%c93_1458] : memref<98xf32, #tpu.memory_space<smem>>
      %c1_1459 = arith.constant 1 : index
      %c2_1460 = arith.constant 2 : index
      %c6_1461 = arith.constant 6 : index
      %c0_1462 = arith.constant 0 : index
      %1769 = vector.load %arg8[%c1_1459, %c2_1460, %c6_1461, %c0_1462] : memref<2x7x22x16xf32, #tpu.memory_space<vmem>>, vector<1x1x16x16xf32>
      %1770 = vector.shape_cast %1769 : vector<1x1x16x16xf32> to vector<16x16xf32>
      %1771 = vector.broadcast %1768 : f32 to vector<16x16xf32>
      %1772 = arith.mulf %1771, %1770 : vector<16x16xf32>
      %1773 = arith.addf %1767, %1772 : vector<16x16xf32>
      %c94_1463 = arith.constant 94 : index
      %1774 = memref.load %arg2[%c94_1463] : memref<98xf32, #tpu.memory_space<smem>>
      %c1_1464 = arith.constant 1 : index
      %c3_1465 = arith.constant 3 : index
      %c6_1466 = arith.constant 6 : index
      %c0_1467 = arith.constant 0 : index
      %1775 = vector.load %arg8[%c1_1464, %c3_1465, %c6_1466, %c0_1467] : memref<2x7x22x16xf32, #tpu.memory_space<vmem>>, vector<1x1x16x16xf32>
      %1776 = vector.shape_cast %1775 : vector<1x1x16x16xf32> to vector<16x16xf32>
      %1777 = vector.broadcast %1774 : f32 to vector<16x16xf32>
      %1778 = arith.mulf %1777, %1776 : vector<16x16xf32>
      %1779 = arith.addf %1773, %1778 : vector<16x16xf32>
      %c95_1468 = arith.constant 95 : index
      %1780 = memref.load %arg2[%c95_1468] : memref<98xf32, #tpu.memory_space<smem>>
      %c1_1469 = arith.constant 1 : index
      %c4_1470 = arith.constant 4 : index
      %c6_1471 = arith.constant 6 : index
      %c0_1472 = arith.constant 0 : index
      %1781 = vector.load %arg8[%c1_1469, %c4_1470, %c6_1471, %c0_1472] : memref<2x7x22x16xf32, #tpu.memory_space<vmem>>, vector<1x1x16x16xf32>
      %1782 = vector.shape_cast %1781 : vector<1x1x16x16xf32> to vector<16x16xf32>
      %1783 = vector.broadcast %1780 : f32 to vector<16x16xf32>
      %1784 = arith.mulf %1783, %1782 : vector<16x16xf32>
      %1785 = arith.addf %1779, %1784 : vector<16x16xf32>
      %c96_1473 = arith.constant 96 : index
      %1786 = memref.load %arg2[%c96_1473] : memref<98xf32, #tpu.memory_space<smem>>
      %c1_1474 = arith.constant 1 : index
      %c5_1475 = arith.constant 5 : index
      %c6_1476 = arith.constant 6 : index
      %c0_1477 = arith.constant 0 : index
      %1787 = vector.load %arg8[%c1_1474, %c5_1475, %c6_1476, %c0_1477] : memref<2x7x22x16xf32, #tpu.memory_space<vmem>>, vector<1x1x16x16xf32>
      %1788 = vector.shape_cast %1787 : vector<1x1x16x16xf32> to vector<16x16xf32>
      %1789 = vector.broadcast %1786 : f32 to vector<16x16xf32>
      %1790 = arith.mulf %1789, %1788 : vector<16x16xf32>
      %1791 = arith.addf %1785, %1790 : vector<16x16xf32>
      %c97_1478 = arith.constant 97 : index
      %1792 = memref.load %arg2[%c97_1478] : memref<98xf32, #tpu.memory_space<smem>>
      %c1_1479 = arith.constant 1 : index
      %c6_1480 = arith.constant 6 : index
      %c6_1481 = arith.constant 6 : index
      %c0_1482 = arith.constant 0 : index
      %1793 = vector.load %arg8[%c1_1479, %c6_1480, %c6_1481, %c0_1482] : memref<2x7x22x16xf32, #tpu.memory_space<vmem>>, vector<1x1x16x16xf32>
      %1794 = vector.shape_cast %1793 : vector<1x1x16x16xf32> to vector<16x16xf32>
      %1795 = vector.broadcast %1792 : f32 to vector<16x16xf32>
      %1796 = arith.mulf %1795, %1794 : vector<16x16xf32>
      %1797 = arith.addf %1791, %1796 : vector<16x16xf32>
      %1798 = arith.negf %1797 : vector<16x16xf32>
      %1799 = math.exp %1798 : vector<16x16xf32>
      %cst_1483 = arith.constant 1.000000e+00 : f32
      %1800 = vector.broadcast %cst_1483 : f32 to vector<16x16xf32>
      %1801 = arith.addf %1800, %1799 : vector<16x16xf32>
      %1802 = arith.divf %1800, %1801 : vector<16x16xf32>
      %1803 = vector.extract_strided_slice %1802 {offsets = [0, 0], sizes = [1, 16], strides = [1, 1]} : vector<16x16xf32> to vector<1x16xf32>
      %1804 = vector.shape_cast %1803 : vector<1x16xf32> to vector<16xf32>
      %c1_1484 = arith.constant 1 : index
      %c0_1485 = arith.constant 0 : index
      %c0_1486 = arith.constant 0 : index
      %1805 = vector.load %arg4[%c1_1484, %c0_1485, %c0_1486] : memref<2x1x256xf32, #tpu.memory_space<vmem>>, vector<1x1x16xf32>
      %1806 = vector.shape_cast %1805 : vector<1x1x16xf32> to vector<16xf32>
      %1807 = vector.shape_cast %1804 : vector<16xf32> to vector<1x1x16xf32>
      tpu.vector_store %arg4[%c1_1484, %c0_1485, %c0_1486], %1807 {strides = array<i32>} : memref<2x1x256xf32, #tpu.memory_space<vmem>>, vector<1x1x16xf32>,
      %1808 = vector.extract_strided_slice %1802 {offsets = [1, 0], sizes = [1, 16], strides = [1, 1]} : vector<16x16xf32> to vector<1x16xf32>
      %1809 = vector.shape_cast %1808 : vector<1x16xf32> to vector<16xf32>
      %c1_1487 = arith.constant 1 : index
      %c0_1488 = arith.constant 0 : index
      %c16_1489 = arith.constant 16 : index
      %1810 = vector.load %arg4[%c1_1487, %c0_1488, %c16_1489] : memref<2x1x256xf32, #tpu.memory_space<vmem>>, vector<1x1x16xf32>
      %1811 = vector.shape_cast %1810 : vector<1x1x16xf32> to vector<16xf32>
      %1812 = vector.shape_cast %1809 : vector<16xf32> to vector<1x1x16xf32>
      tpu.vector_store %arg4[%c1_1487, %c0_1488, %c16_1489], %1812 {strides = array<i32>} : memref<2x1x256xf32, #tpu.memory_space<vmem>>, vector<1x1x16xf32>,
      %1813 = vector.extract_strided_slice %1802 {offsets = [2, 0], sizes = [1, 16], strides = [1, 1]} : vector<16x16xf32> to vector<1x16xf32>
      %1814 = vector.shape_cast %1813 : vector<1x16xf32> to vector<16xf32>
      %c1_1490 = arith.constant 1 : index
      %c0_1491 = arith.constant 0 : index
      %c32_1492 = arith.constant 32 : index
      %1815 = vector.load %arg4[%c1_1490, %c0_1491, %c32_1492] : memref<2x1x256xf32, #tpu.memory_space<vmem>>, vector<1x1x16xf32>
      %1816 = vector.shape_cast %1815 : vector<1x1x16xf32> to vector<16xf32>
      %1817 = vector.shape_cast %1814 : vector<16xf32> to vector<1x1x16xf32>
      tpu.vector_store %arg4[%c1_1490, %c0_1491, %c32_1492], %1817 {strides = array<i32>} : memref<2x1x256xf32, #tpu.memory_space<vmem>>, vector<1x1x16xf32>,
      %1818 = vector.extract_strided_slice %1802 {offsets = [3, 0], sizes = [1, 16], strides = [1, 1]} : vector<16x16xf32> to vector<1x16xf32>
      %1819 = vector.shape_cast %1818 : vector<1x16xf32> to vector<16xf32>
      %c1_1493 = arith.constant 1 : index
      %c0_1494 = arith.constant 0 : index
      %c48_1495 = arith.constant 48 : index
      %1820 = vector.load %arg4[%c1_1493, %c0_1494, %c48_1495] : memref<2x1x256xf32, #tpu.memory_space<vmem>>, vector<1x1x16xf32>
      %1821 = vector.shape_cast %1820 : vector<1x1x16xf32> to vector<16xf32>
      %1822 = vector.shape_cast %1819 : vector<16xf32> to vector<1x1x16xf32>
      tpu.vector_store %arg4[%c1_1493, %c0_1494, %c48_1495], %1822 {strides = array<i32>} : memref<2x1x256xf32, #tpu.memory_space<vmem>>, vector<1x1x16xf32>,
      %1823 = vector.extract_strided_slice %1802 {offsets = [4, 0], sizes = [1, 16], strides = [1, 1]} : vector<16x16xf32> to vector<1x16xf32>
      %1824 = vector.shape_cast %1823 : vector<1x16xf32> to vector<16xf32>
      %c1_1496 = arith.constant 1 : index
      %c0_1497 = arith.constant 0 : index
      %c64_1498 = arith.constant 64 : index
      %1825 = vector.load %arg4[%c1_1496, %c0_1497, %c64_1498] : memref<2x1x256xf32, #tpu.memory_space<vmem>>, vector<1x1x16xf32>
      %1826 = vector.shape_cast %1825 : vector<1x1x16xf32> to vector<16xf32>
      %1827 = vector.shape_cast %1824 : vector<16xf32> to vector<1x1x16xf32>
      tpu.vector_store %arg4[%c1_1496, %c0_1497, %c64_1498], %1827 {strides = array<i32>} : memref<2x1x256xf32, #tpu.memory_space<vmem>>, vector<1x1x16xf32>,
      %1828 = vector.extract_strided_slice %1802 {offsets = [5, 0], sizes = [1, 16], strides = [1, 1]} : vector<16x16xf32> to vector<1x16xf32>
      %1829 = vector.shape_cast %1828 : vector<1x16xf32> to vector<16xf32>
      %c1_1499 = arith.constant 1 : index
      %c0_1500 = arith.constant 0 : index
      %c80_1501 = arith.constant 80 : index
      %1830 = vector.load %arg4[%c1_1499, %c0_1500, %c80_1501] : memref<2x1x256xf32, #tpu.memory_space<vmem>>, vector<1x1x16xf32>
      %1831 = vector.shape_cast %1830 : vector<1x1x16xf32> to vector<16xf32>
      %1832 = vector.shape_cast %1829 : vector<16xf32> to vector<1x1x16xf32>
      tpu.vector_store %arg4[%c1_1499, %c0_1500, %c80_1501], %1832 {strides = array<i32>} : memref<2x1x256xf32, #tpu.memory_space<vmem>>, vector<1x1x16xf32>,
      %1833 = vector.extract_strided_slice %1802 {offsets = [6, 0], sizes = [1, 16], strides = [1, 1]} : vector<16x16xf32> to vector<1x16xf32>
      %1834 = vector.shape_cast %1833 : vector<1x16xf32> to vector<16xf32>
      %c1_1502 = arith.constant 1 : index
      %c0_1503 = arith.constant 0 : index
      %c96_1504 = arith.constant 96 : index
      %1835 = vector.load %arg4[%c1_1502, %c0_1503, %c96_1504] : memref<2x1x256xf32, #tpu.memory_space<vmem>>, vector<1x1x16xf32>
      %1836 = vector.shape_cast %1835 : vector<1x1x16xf32> to vector<16xf32>
      %1837 = vector.shape_cast %1834 : vector<16xf32> to vector<1x1x16xf32>
      tpu.vector_store %arg4[%c1_1502, %c0_1503, %c96_1504], %1837 {strides = array<i32>} : memref<2x1x256xf32, #tpu.memory_space<vmem>>, vector<1x1x16xf32>,
      %1838 = vector.extract_strided_slice %1802 {offsets = [7, 0], sizes = [1, 16], strides = [1, 1]} : vector<16x16xf32> to vector<1x16xf32>
      %1839 = vector.shape_cast %1838 : vector<1x16xf32> to vector<16xf32>
      %c1_1505 = arith.constant 1 : index
      %c0_1506 = arith.constant 0 : index
      %c112_1507 = arith.constant 112 : index
      %1840 = vector.load %arg4[%c1_1505, %c0_1506, %c112_1507] : memref<2x1x256xf32, #tpu.memory_space<vmem>>, vector<1x1x16xf32>
      %1841 = vector.shape_cast %1840 : vector<1x1x16xf32> to vector<16xf32>
      %1842 = vector.shape_cast %1839 : vector<16xf32> to vector<1x1x16xf32>
      tpu.vector_store %arg4[%c1_1505, %c0_1506, %c112_1507], %1842 {strides = array<i32>} : memref<2x1x256xf32, #tpu.memory_space<vmem>>, vector<1x1x16xf32>,
      %1843 = vector.extract_strided_slice %1802 {offsets = [8, 0], sizes = [1, 16], strides = [1, 1]} : vector<16x16xf32> to vector<1x16xf32>
      %1844 = vector.shape_cast %1843 : vector<1x16xf32> to vector<16xf32>
      %c1_1508 = arith.constant 1 : index
      %c0_1509 = arith.constant 0 : index
      %c128_1510 = arith.constant 128 : index
      %1845 = vector.load %arg4[%c1_1508, %c0_1509, %c128_1510] : memref<2x1x256xf32, #tpu.memory_space<vmem>>, vector<1x1x16xf32>
      %1846 = vector.shape_cast %1845 : vector<1x1x16xf32> to vector<16xf32>
      %1847 = vector.shape_cast %1844 : vector<16xf32> to vector<1x1x16xf32>
      tpu.vector_store %arg4[%c1_1508, %c0_1509, %c128_1510], %1847 {strides = array<i32>} : memref<2x1x256xf32, #tpu.memory_space<vmem>>, vector<1x1x16xf32>,
      %1848 = vector.extract_strided_slice %1802 {offsets = [9, 0], sizes = [1, 16], strides = [1, 1]} : vector<16x16xf32> to vector<1x16xf32>
      %1849 = vector.shape_cast %1848 : vector<1x16xf32> to vector<16xf32>
      %c1_1511 = arith.constant 1 : index
      %c0_1512 = arith.constant 0 : index
      %c144_1513 = arith.constant 144 : index
      %1850 = vector.load %arg4[%c1_1511, %c0_1512, %c144_1513] : memref<2x1x256xf32, #tpu.memory_space<vmem>>, vector<1x1x16xf32>
      %1851 = vector.shape_cast %1850 : vector<1x1x16xf32> to vector<16xf32>
      %1852 = vector.shape_cast %1849 : vector<16xf32> to vector<1x1x16xf32>
      tpu.vector_store %arg4[%c1_1511, %c0_1512, %c144_1513], %1852 {strides = array<i32>} : memref<2x1x256xf32, #tpu.memory_space<vmem>>, vector<1x1x16xf32>,
      %1853 = vector.extract_strided_slice %1802 {offsets = [10, 0], sizes = [1, 16], strides = [1, 1]} : vector<16x16xf32> to vector<1x16xf32>
      %1854 = vector.shape_cast %1853 : vector<1x16xf32> to vector<16xf32>
      %c1_1514 = arith.constant 1 : index
      %c0_1515 = arith.constant 0 : index
      %c160_1516 = arith.constant 160 : index
      %1855 = vector.load %arg4[%c1_1514, %c0_1515, %c160_1516] : memref<2x1x256xf32, #tpu.memory_space<vmem>>, vector<1x1x16xf32>
      %1856 = vector.shape_cast %1855 : vector<1x1x16xf32> to vector<16xf32>
      %1857 = vector.shape_cast %1854 : vector<16xf32> to vector<1x1x16xf32>
      tpu.vector_store %arg4[%c1_1514, %c0_1515, %c160_1516], %1857 {strides = array<i32>} : memref<2x1x256xf32, #tpu.memory_space<vmem>>, vector<1x1x16xf32>,
      %1858 = vector.extract_strided_slice %1802 {offsets = [11, 0], sizes = [1, 16], strides = [1, 1]} : vector<16x16xf32> to vector<1x16xf32>
      %1859 = vector.shape_cast %1858 : vector<1x16xf32> to vector<16xf32>
      %c1_1517 = arith.constant 1 : index
      %c0_1518 = arith.constant 0 : index
      %c176_1519 = arith.constant 176 : index
      %1860 = vector.load %arg4[%c1_1517, %c0_1518, %c176_1519] : memref<2x1x256xf32, #tpu.memory_space<vmem>>, vector<1x1x16xf32>
      %1861 = vector.shape_cast %1860 : vector<1x1x16xf32> to vector<16xf32>
      %1862 = vector.shape_cast %1859 : vector<16xf32> to vector<1x1x16xf32>
      tpu.vector_store %arg4[%c1_1517, %c0_1518, %c176_1519], %1862 {strides = array<i32>} : memref<2x1x256xf32, #tpu.memory_space<vmem>>, vector<1x1x16xf32>,
      %1863 = vector.extract_strided_slice %1802 {offsets = [12, 0], sizes = [1, 16], strides = [1, 1]} : vector<16x16xf32> to vector<1x16xf32>
      %1864 = vector.shape_cast %1863 : vector<1x16xf32> to vector<16xf32>
      %c1_1520 = arith.constant 1 : index
      %c0_1521 = arith.constant 0 : index
      %c192_1522 = arith.constant 192 : index
      %1865 = vector.load %arg4[%c1_1520, %c0_1521, %c192_1522] : memref<2x1x256xf32, #tpu.memory_space<vmem>>, vector<1x1x16xf32>
      %1866 = vector.shape_cast %1865 : vector<1x1x16xf32> to vector<16xf32>
      %1867 = vector.shape_cast %1864 : vector<16xf32> to vector<1x1x16xf32>
      tpu.vector_store %arg4[%c1_1520, %c0_1521, %c192_1522], %1867 {strides = array<i32>} : memref<2x1x256xf32, #tpu.memory_space<vmem>>, vector<1x1x16xf32>,
      %1868 = vector.extract_strided_slice %1802 {offsets = [13, 0], sizes = [1, 16], strides = [1, 1]} : vector<16x16xf32> to vector<1x16xf32>
      %1869 = vector.shape_cast %1868 : vector<1x16xf32> to vector<16xf32>
      %c1_1523 = arith.constant 1 : index
      %c0_1524 = arith.constant 0 : index
      %c208_1525 = arith.constant 208 : index
      %1870 = vector.load %arg4[%c1_1523, %c0_1524, %c208_1525] : memref<2x1x256xf32, #tpu.memory_space<vmem>>, vector<1x1x16xf32>
      %1871 = vector.shape_cast %1870 : vector<1x1x16xf32> to vector<16xf32>
      %1872 = vector.shape_cast %1869 : vector<16xf32> to vector<1x1x16xf32>
      tpu.vector_store %arg4[%c1_1523, %c0_1524, %c208_1525], %1872 {strides = array<i32>} : memref<2x1x256xf32, #tpu.memory_space<vmem>>, vector<1x1x16xf32>,
      %1873 = vector.extract_strided_slice %1802 {offsets = [14, 0], sizes = [1, 16], strides = [1, 1]} : vector<16x16xf32> to vector<1x16xf32>
      %1874 = vector.shape_cast %1873 : vector<1x16xf32> to vector<16xf32>
      %c1_1526 = arith.constant 1 : index
      %c0_1527 = arith.constant 0 : index
      %c224_1528 = arith.constant 224 : index
      %1875 = vector.load %arg4[%c1_1526, %c0_1527, %c224_1528] : memref<2x1x256xf32, #tpu.memory_space<vmem>>, vector<1x1x16xf32>
      %1876 = vector.shape_cast %1875 : vector<1x1x16xf32> to vector<16xf32>
      %1877 = vector.shape_cast %1874 : vector<16xf32> to vector<1x1x16xf32>
      tpu.vector_store %arg4[%c1_1526, %c0_1527, %c224_1528], %1877 {strides = array<i32>} : memref<2x1x256xf32, #tpu.memory_space<vmem>>, vector<1x1x16xf32>,
      %1878 = vector.extract_strided_slice %1802 {offsets = [15, 0], sizes = [1, 16], strides = [1, 1]} : vector<16x16xf32> to vector<1x16xf32>
      %1879 = vector.shape_cast %1878 : vector<1x16xf32> to vector<16xf32>
      %c1_1529 = arith.constant 1 : index
      %c0_1530 = arith.constant 0 : index
      %c240_1531 = arith.constant 240 : index
      %1880 = vector.load %arg4[%c1_1529, %c0_1530, %c240_1531] : memref<2x1x256xf32, #tpu.memory_space<vmem>>, vector<1x1x16xf32>
      %1881 = vector.shape_cast %1880 : vector<1x1x16xf32> to vector<16xf32>
      %1882 = vector.shape_cast %1879 : vector<16xf32> to vector<1x1x16xf32>
      tpu.vector_store %arg4[%c1_1529, %c0_1530, %c240_1531], %1882 {strides = array<i32>} : memref<2x1x256xf32, #tpu.memory_space<vmem>>, vector<1x1x16xf32>,
    } else {
    }
    return
  }
  func.func @transform_0(%arg0: i32, %arg1: i32) -> i32 {
    %c0_i32 = arith.constant 0 : i32
    %c0_i32_0 = arith.constant 0 : i32
    return %c0_i32 : i32
  }
  func.func @transform_1(%arg0: i32, %arg1: i32) -> (i32, i32, i32) {
    %c0_i32 = arith.constant 0 : i32
    %c0_i32_0 = arith.constant 0 : i32
    return %arg0, %arg1, %c0_i32 : i32, i32, i32
  }
  func.func @transform_2(%arg0: i32, %arg1: i32) -> (i32, i32, i32) {
    %c0_i32 = arith.constant 0 : i32
    %c0_i32_0 = arith.constant 0 : i32
    %c0_i32_1 = arith.constant 0 : i32
    return %arg0, %c0_i32, %c0_i32_0 : i32, i32, i32
  }
}

</mosaic_0001>

<bundles_post_ra>
// kernel: tpu_custom_call.1
= control target key start
LH: loop header
LB: loop body
LE: loop exit
PB: predicated region body
PF: predicated region fallthrough
CT: control target
= control target key end

     0   :  { %s6058_s0 = inlined_call_operand.hbm [shape: f32[98], index: 0, kind: input, shape index: {}]   ;;  %s6059_s1 = inlined_call_operand.hbm [shape: f32[2,4,256], index: 1, kind: input, shape index: {}]   ;;  %s6060_s2 = inlined_call_operand.hbm [shape: f32[2,1,256], index: 2, kind: output, shape index: {}]  }
   0x1   :  { %6209 = sst [smem:[#allocation229_spill]] %s6060_s2 }
   0x2   :  { %7 = vsyncpa [#allocation9], 0 }
   0x3   :  { %8 = vsyncpa [#allocation7], 0 }
   0x4   :  { %9 = vsyncpa [#allocation8], 0  ;;  %s3553_s11 = scalar_lea.hbm %s6058_s0, 16 }
   0x5   :  { %p3554_p0 = scmp.ne.s32.totalorder %s6058_s0, %s3553_s11  ;;  %p3557_p1 = scmp.lt.u32.totalorder %s3553_s11, %s6058_s0 }
   0x7   :  { %p3559_p2 = pnand %p3557_p1, %p3554_p0 }
   0x9   :  { %3562 = shalt.err (!%p3559_p2)
}
   0xa   :  { %s3613_s16 = smov [#allocation6]   ;;  %s3614_s19 = smov [#allocation10]  }
   0xb   :  { %17 = dma.hbm_to_smem %s6058_s0, 16, %s3613_s16, [#allocation9]  }
   0xc   :  { %s23_s20 = sshll.u32 %s3614_s19, 4  ;;  %s3563_s23 = scalar_lea.hbm %s6059_s1, 256  ;;  %s24_s20 = int_to_ptr.vmem [resolvable:$true] %s23_s20 }
   0xd   :  { %p3564_p3 = scmp.ne.s32.totalorder %s6059_s1, %s3563_s23  ;;  %p3567_p4 = scmp.lt.u32.totalorder %s3563_s23, %s6059_s1 }
   0xf   :  { %p3569_p5 = pnand %p3567_p4, %p3564_p3 }
  0x11   :  { %3572 = shalt.err (!%p3569_p5)
}
  0x12   :  { %s3573_s28 = scalar_lea.vmem %s24_s20, 256  ;;  %p3578_p7 = scmp.lt.s32.totalorder %s24_s20, %s24_s20 }
  0x13   :  { %p3574_p6 = scmp.ne.s32.totalorder %s24_s20, %s3573_s28  ;;  %p3579_p8 = scmp.lt.s32.totalorder %s3573_s28, %s3573_s28 }
  0x15   :  { %p3580_p9 = por %p3579_p8, %p3578_p7 }
  0x17   :  { %p3581_p10 = pnand %p3580_p9, %p3574_p6 }
  0x19   :  { %3584 = shalt.err (!%p3581_p10)
}
  0x1a   :  { %s3615_s0 = smov 128   ;;  %s3616_s29 = smov 8  }
  0x1b   :  { %29 = dma.hbm_to_vmem [thread:$0]  %s6059_s1, 256, %s24_s20, [#allocation7], %s3615_s0, %s3615_s0, %s3616_s29  }
  0x1c   :  { %3607 = dma.done.wait [#allocation9], 16  }
  0x1d   :  { %3608 = vsyncadd [#allocation9], 4294967280 }
  0x1e   :  { %3609 = dma.done.wait [#allocation7], 256  }
  0x1f   :  { %3610 = vsyncadd [#allocation7], 4294967040 }
  0x20   :  { %36 = sfence }
  0x21   :  { %v37_v0 = vld [vmem:[#allocation10] sm:$0xff]  ;;  %v38_v1 = vld [vmem:[#allocation10 + $0x8] sm:$0xff]  ;;  %vm45_vm0 = vcmask 1043456   ;;  %v6061_v10 = vlaneseq  ;;  %v3617_v15 = vmov 1983009808   ;;  %vm131_vm1 = vcmask 1041409  }
  0x22   :  { %v41_v2 = vcombine.high %v37_v0, %v37_v0  ;;  %v42_v3 = vcombine.high %v38_v1, %v38_v1  ;;  %v46_v4 = vsel %vm45_vm0, %v37_v0, 0.0  ;;  %v60_v5 = vsel %vm45_vm0, %v38_v1, 0.0  ;;  %s3619_s1 = smov 99   ;;  %s3620_s4 = smov 3  }
  0x23   :  { %v47_v6 = vrot.slane %v46_v4, 4  ;;  %v61_v7 = vrot.slane %v60_v5, 4  ;;  %v112_v16 = vunpack.c.l.s4 %v3617_v15  ;;  %v3687_v21 = vshrl.u32 %v6061_v10, 7  ;;  %s3621_s5 = smov 83   ;;  %s3622_s6 = smov 115  }
  0x24   :  { %v53_v8 = vsel %vm45_vm0, %v41_v2, 0.0  ;;  %v67_v9 = vsel %vm45_vm0, %v42_v3, 0.0  ;;  %v74_v22 = vsel %vm45_vm0, %v37_v0, -inf  ;;  %v81_v23 = vsel %vm45_vm0, %v41_v2, -inf  ;;  %s3623_s7 = smov 51   ;;  %s3624_s8 = smov 67  }
  0x25   :  { %v48_v11 = vadd.f32 %v47_v6, %v46_v4  ;;  %v54_v12 = vrot.slane %v53_v8, 4  ;;  %v62_v13 = vadd.f32 %v61_v7, %v60_v5  ;;  %v68_v14 = vrot.slane %v67_v9, 4  ;;  %6210 = vst [vmem:[#allocation15_spill] sm:$0xff] %v3687_v21  ;;  %s3625_s9 = smov 19   ;;  %s3626_s10 = smov 35  }
  0x26   :  { %v113_v28 = vunpack.c.0.s8 %v112_v16  ;;  %v75_v29 = vrot.slane %v74_v22, 4  ;;  %v82_v30 = vrot.slane %v81_v23, 4  ;;  %v88_v31 = vsel %vm45_vm0, %v38_v1, -inf  ;;  %s3627_s11 = smov 127   ;;  %s3628_s12 = smov 126  }
  0x27   :  { %v49_v17 = vrot.slane %v48_v11, 2  ;;  %v55_v18 = vadd.f32 %v54_v12, %v53_v8  ;;  %v63_v19 = vrot.slane %v62_v13, 2  ;;  %v69_v20 = vadd.f32 %v68_v14, %v67_v9  ;;  %s3629_s13 = smov 125   ;;  %s3630_s14 = smov 124  }
  0x28   :  { %v76_v36 = vmax.f32 %v74_v22, %v75_v29  ;;  %v83_v37 = vmax.f32 %v81_v23, %v82_v30  ;;  %v89_v38 = vrot.slane %v88_v31, 4  ;;  %v95_v46 = vsel %vm45_vm0, %v42_v3, -inf  ;;  %s3631_s15 = smov 123   ;;  %s3632_s16 = smov 122  }
  0x29   :  { %v50_v24 = vadd.f32 %v49_v17, %v48_v11  ;;  %v56_v25 = vrot.slane %v55_v18, 2  ;;  %v64_v26 = vadd.f32 %v63_v19, %v62_v13  ;;  %v70_v27 = vrot.slane %v69_v20, 2  ;;  %s3291_s17 = sld [smem:[#allocation6 + $0x1]]  ;;  %s4071_s18 = sld [smem:[#allocation6]] }
  0x2a   :  { %v77_v43 = vrot.slane %v76_v36, 2  ;;  %v84_v44 = vrot.slane %v83_v37, 2  ;;  %v90_v45 = vmax.f32 %v88_v31, %v89_v38  ;;  %v116_v49 = vsub.s32 %v113_v28, %v3687_v21  ;;  %s3292_s19 = sld [smem:[#allocation6 + $0x2]]  ;;  %s3293_s20 = sld [smem:[#allocation6 + $0x3]] }
  0x2b   :  { %v51_v32 = vrot.slane %v50_v24, 1  ;;  %v57_v33 = vadd.f32 %v56_v25, %v55_v18  ;;  %v65_v34 = vrot.slane %v64_v26, 1  ;;  %v71_v35 = vadd.f32 %v70_v27, %v69_v20  ;;  %s4077_s21 = sld [smem:[#allocation6 + $0x4]]  ;;  %s4085_s22 = sld [smem:[#allocation6 + $0x5]] }
  0x2c   :  { %v96_v50 = vrot.slane %v95_v46, 4  ;;  %v78_v51 = vmax.f32 %v76_v36, %v77_v43  ;;  %v85_v52 = vmax.f32 %v83_v37, %v84_v44  ;;  %v91_v53 = vrot.slane %v90_v45, 2  ;;  %s4097_s23 = sld [smem:[#allocation6 + $0x6]]  ;;  %s4104_s24 = sld [smem:[#allocation6 + $0x31]] }
  0x2d   :  { %v52_v39 = vadd.f32 %v51_v32, %v50_v24  ;;  %v58_v40 = vrot.slane %v57_v33, 1  ;;  %v66_v41 = vadd.f32 %v65_v34, %v64_v26  ;;  %v72_v42 = vrot.slane %v71_v35, 1  ;;  %s4153_s25 = sld [smem:[#allocation6 + $0x7]]  ;;  %s4159_s26 = sld [smem:[#allocation6 + $0xe]] }
  0x2e   :  { %v97_v56 = vmax.f32 %v95_v46, %v96_v50  ;;  %v79_v57 = vrot.slane %v78_v51, 1  ;;  %v86_v58 = vrot.slane %v85_v52, 1  ;;  %v92_v59 = vmax.f32 %v90_v45, %v91_v53  ;;  %s4161_s27 = sld [smem:[#allocation6 + $0x15]]  ;;  %s4178_s28 = sld [smem:[#allocation6 + $0x1c]] }
  0x2f   :  { %v59_v47 = vadd.f32 %v58_v40, %v57_v33  ;;  %v73_v48 = vadd.f32 %v72_v42, %v71_v35  ;;  %vm133_vm2 = vcmask 1043459   ;;  %vm135_vm3 = vcmask 1045509   ;;  %s4187_s0 = sld [smem:[#allocation6 + $0x23]]  ;;  %s4193_s29 = sld [smem:[#allocation6 + $0x2a]] }
  0x30   :  { %v98_v62 = vrot.slane %v97_v56, 2  ;;  %v93_v63 = vrot.slane %v92_v59, 1  ;;  %v80_v1 = vmax.f32 %v78_v51, %v79_v57  ;;  %v87_v2 = vmax.f32 %v85_v52, %v86_v58  ;;  %s4200_s30 = sld [smem:[#allocation6]]  ;;  %s4202_s3 = sld [smem:[#allocation6 + $0xe]] }
  0x31   :  { %v110_v54 = vcombine.low %v52_v39, %v59_v47  ;;  %v118_v55 = vcombine.low %v66_v41, %v73_v48  ;;  %vm137_vm4 = vcmask 1047559   ;;  %vm170_vm5 = vcmask 179200   ;;  %s4278_s2 = sld [smem:[#allocation6 + $0x10]] }
  0x32   :  { %v99_v3 = vmax.f32 %v97_v56, %v98_v62  ;;  %v94_v4 = vmax.f32 %v92_v59, %v93_v63  ;;  %v3618_v8 = vmov 0.0   ;;  %v145_v12 = vcombine.low %v80_v1, %v87_v2 }
  0x33   :  { %v117_v60 = vrot.slane %v110_v54, %v116_v49  ;;  %v125_v61 = vrot.slane %v118_v55, %v116_v49  ;;  %171 = vst.msk [vmem:[#allocation4] sm:$0xff] %vm170_vm5, %v3618_v8  ;;  %172 = vst.msk [vmem:[#allocation4 + $0x8] sm:$0xff] %vm170_vm5, %v3618_v8  ;;  %v3703_v18 = vsub.s32 0, %v3687_v21  ;;  %vm173_vm6 = vcmask 177152  }
  0x34   :  { %v100_v6 = vrot.slane %v99_v3, 1  ;;  %175 = vst.msk [vmem:[#allocation4 + $0x18] sm:$0xff] %vm170_vm5, %v3618_v8  ;;  %176 = vst.msk [vmem:[#allocation4 + $0x20] sm:$0xff] %vm170_vm5, %v3618_v8  ;;  %v152_v15 = vrot.slane %v145_v12, %v116_v49  ;;  %vm188_vm7 = vcmask 147480   ;;  %vm519_vm8 = vcmask 130048  }
  0x35   :  { %v130_v0 = vrot.slane %v125_v61, 7  ;;  %174 = vst.msk [vmem:[#allocation4 + $0x10] sm:$0x3f] %vm173_vm6, %v3618_v8  ;;  %177 = vst.msk [vmem:[#allocation4 + $0x28] sm:$0x3f] %vm173_vm6, %v3618_v8  ;;  %vm522_vm9 = vcmask 128000  }
  0x36   :  { %v101_v11 = vmax.f32 %v99_v3, %v100_v6  ;;  %6229 = sst [smem:[#allocation34_spill]] %s4200_s30  ;;  %s4541_s30 = sld [smem:[#allocation6 + $0x55]] }
  0x37   :  { %v132_v5 = vsel %vm131_vm1, %v130_v0, %v117_v60  ;;  %6230 = sst [smem:[#allocation35_spill]] %s4202_s3  ;;  %s4413_s3 = sld [smem:[#allocation6 + $0x16]] }
  0x38   :  { %v134_v7 = vsel %vm133_vm2, %v130_v0, %v132_v5  ;;  %v153_v14 = vcombine.low %v94_v4, %v101_v11  ;;  %6263 = sst [smem:[#allocation68_spill]] %s4278_s2  ;;  %s4297_s2 = sld [smem:[#allocation6 + $0x26]] }
  0x39   :  { %v136_v9 = vsel %vm135_vm3, %v130_v0, %v134_v7 }
  0x3a   :  { %v138_v13 = vsel %vm137_vm4, %v130_v0, %v136_v9  ;;  %v160_v16 = vrot.slane %v153_v14, %v116_v49 }
  0x3b   :  { %140 = vst [vmem:[#allocation2] sm:$0xf] %v138_v13 }
  0x3c   :  { %v163_v17 = vrot.slane %v160_v16, 7  ;;  %6374 = sst [smem:[#allocation147_spill]] %s4541_s30  ;;  %s4565_s30 = sld [smem:[#allocation6 + $0x3a]] }
  0x3d   :  { %6319 = sst [smem:[#allocation119_spill]] %s4413_s3  ;;  %s4620_s3 = sld [smem:[#allocation6 + $0x19]] }
  0x3e   :  { %v164_v19 = vsel %vm131_vm1, %v163_v17, %v152_v15  ;;  %6272 = sst [smem:[#allocation77_spill]] %s4297_s2 }
  0x3f   :  { %v165_v24 = vsel %vm133_vm2, %v163_v17, %v164_v19  ;;  %s4318_s2 = sld [smem:[#allocation6 + $0x19]] }
  0x40   :  { %v166_v29 = vsel %vm135_vm3, %v163_v17, %v165_v24 }
  0x41   :  { %v167_v33 = vsel %vm137_vm4, %v163_v17, %v166_v29 }
  0x42   :  { %v222_v20 = vld [vmem:[#allocation2] sm:$0x1]  ;;  %169 = vst [vmem:[#allocation3] sm:$0xf] %v167_v33  ;;  %v369_v46 = vld [vmem:[#allocation2 + $0x2] sm:$0x1] }
  0x43   :  { %v178_v22 = vld [vmem:[#allocation2] sm:$0x1]  ;;  %v223_v25 = vmul.f32 0.25, %v222_v20  ;;  %v348_v47 = vld [vmem:[#allocation2 + $0x2] sm:$0x1]  ;;  %v370_v50 = vmul.f32 0.25, %v369_v46 }
  0x44   :  { %v243_v23 = vld [vmem:[#allocation2] sm:$0x1]  ;;  %v179_v26 = vmul.f32 0.25, %v178_v22  ;;  %v349_v51 = vmul.f32 0.25, %v348_v47  ;;  %v411_v52 = vld [vmem:[#allocation2 + $0x2] sm:$0x1] }
  0x45   :  { %v244_v27 = vmul.f32 0.25, %v243_v23  ;;  %v201_v28 = vld [vmem:[#allocation2] sm:$0x1]  ;;  %v228_v34 = vrot.slane %v223_v25, %v3703_v18  ;;  %v390_v53 = vld [vmem:[#allocation2 + $0x2] sm:$0x1]  ;;  %v375_v54 = vrot.slane %v370_v50, %v3703_v18  ;;  %v412_v56 = vmul.f32 0.25, %v411_v52 }
  0x46   :  { %v202_v30 = vmul.f32 0.25, %v201_v28  ;;  %v285_v31 = vld [vmem:[#allocation2] sm:$0x1]  ;;  %v184_v35 = vrot.slane %v179_v26, %v3703_v18  ;;  %v354_v55 = vrot.slane %v349_v51, %v3703_v18  ;;  %v391_v57 = vmul.f32 0.25, %v390_v53  ;;  %v453_v58 = vld [vmem:[#allocation2 + $0x2] sm:$0x1] }
  0x47   :  { %v264_v32 = vld [vmem:[#allocation2] sm:$0x1]  ;;  %229 = vrot.lane.b32.xlu1 %v228_v34, %s3619_s1  ;;  %v249_v36 = vrot.slane %v244_v27, %v3703_v18  ;;  %v286_v38 = vmul.f32 0.25, %v285_v31  ;;  %v432_v59 = vld [vmem:[#allocation2 + $0x2] sm:$0x1]  ;;  %v417_v60 = vrot.slane %v412_v56, %v3703_v18  ;;  %v454_v62 = vmul.f32 0.25, %v453_v58 }
  0x48   :  { %185 = vrot.lane.b32.xlu0 %v184_v35, %s3620_s4  ;;  %v207_v37 = vrot.slane %v202_v30, %v3703_v18  ;;  %v265_v39 = vmul.f32 0.25, %v264_v32  ;;  %v327_v40 = vld [vmem:[#allocation2] sm:$0x1]  ;;  %v396_v61 = vrot.slane %v391_v57, %v3703_v18  ;;  %v433_v63 = vmul.f32 0.25, %v432_v59  ;;  %v495_v0 = vld [vmem:[#allocation2 + $0x2] sm:$0x1] }
  0x49   :  { %v306_v41 = vld [vmem:[#allocation2] sm:$0x1]  ;;  %v291_v42 = vrot.slane %v286_v38, %v3703_v18  ;;  %v328_v44 = vmul.f32 0.25, %v327_v40  ;;  %v474_v1 = vld [vmem:[#allocation2 + $0x2] sm:$0x1]  ;;  %v459_v2 = vrot.slane %v454_v62, %v3703_v18  ;;  %v496_v4 = vmul.f32 0.25, %v495_v0 }
  0x4a   :  { %v270_v43 = vrot.slane %v265_v39, %v3703_v18  ;;  %v307_v45 = vmul.f32 0.25, %v306_v41  ;;  %v438_v3 = vrot.slane %v433_v63, %v3703_v18  ;;  %v475_v5 = vmul.f32 0.25, %v474_v1  ;;  %v1759_v6 = vld [vmem:[#allocation2 + $0x1] sm:$0x1]  ;;  %v1927_v33 = vld [vmem:[#allocation2 + $0x3] sm:$0x1] }
  0x4b   :  { %250 = vrot.lane.b32.xlu1 %v249_v36, %s3621_s5  ;;  %v333_v48 = vrot.slane %v328_v44, %v3703_v18  ;;  %v1738_v7 = vld [vmem:[#allocation2 + $0x1] sm:$0x1]  ;;  %v501_v8 = vrot.slane %v496_v4, %v3703_v18  ;;  %v1760_v11 = vmul.f32 0.25, %v1759_v6  ;;  %v1906_v34 = vld [vmem:[#allocation2 + $0x3] sm:$0x1]  ;;  %6281 = sst [smem:[#allocation86_spill]] %s4318_s2 }
  0x4c   :  { %208 = vrot.lane.b32.xlu0 %v207_v37, %s3622_s6  ;;  %v312_v49 = vrot.slane %v307_v45, %v3703_v18  ;;  %v480_v9 = vrot.slane %v475_v5, %v3703_v18  ;;  %v1739_v12 = vmul.f32 0.25, %v1738_v7  ;;  %v1801_v13 = vld [vmem:[#allocation2 + $0x1] sm:$0x1]  ;;  %v1928_v37 = vmul.f32 0.25, %v1927_v33  ;;  %v1969_v39 = vld [vmem:[#allocation2 + $0x3] sm:$0x1] }
  0x4d   :  { %v1780_v14 = vld [vmem:[#allocation2 + $0x1] sm:$0x1]  ;;  %v1765_v15 = vrot.slane %v1760_v11, %v3703_v18  ;;  %v1802_v17 = vmul.f32 0.25, %v1801_v13  ;;  %v1907_v38 = vmul.f32 0.25, %v1906_v34  ;;  %v1948_v40 = vld [vmem:[#allocation2 + $0x3] sm:$0x1] }
  0x4e   :  { %v1744_v16 = vrot.slane %v1739_v12, %v3703_v18  ;;  %v1781_v19 = vmul.f32 0.25, %v1780_v14  ;;  %v1843_v20 = vld [vmem:[#allocation2 + $0x1] sm:$0x1]  ;;  %v1933_v41 = vrot.slane %v1928_v37, %v3703_v18  ;;  %v1949_v44 = vmul.f32 0.25, %v1948_v40  ;;  %v1990_v45 = vld [vmem:[#allocation2 + $0x3] sm:$0x1] }
  0x4f   :  { %292 = vrot.lane.b32.xlu1 %v291_v42, %s3623_s7  ;;  %v1822_v22 = vld [vmem:[#allocation2 + $0x1] sm:$0x1]  ;;  %v1807_v23 = vrot.slane %v1802_v17, %v3703_v18  ;;  %v1844_v25 = vmul.f32 0.25, %v1843_v20  ;;  %v1912_v42 = vrot.slane %v1907_v38, %v3703_v18  ;;  %v3275_v50 = vld [vmem:[#allocation3] ss:$0 sm:$0xff]  ;;  %s4336_s2 = sld [smem:[#allocation6 + $0x28]] }
  0x50   :  { %271 = vrot.lane.b32.xlu0 %v270_v43, %s3624_s8  ;;  %v1786_v24 = vrot.slane %v1781_v19, %v3703_v18  ;;  %v1823_v26 = vmul.f32 0.25, %v1822_v22  ;;  %v1885_v27 = vld [vmem:[#allocation2 + $0x1] sm:$0x1]  ;;  %v1970_v43 = vmul.f32 0.25, %v1969_v39  ;;  %v1954_v47 = vrot.slane %v1949_v44, %v3703_v18  ;;  %v3283_v51 = vld [vmem:[#allocation3 + $0x2] ss:$0 sm:$0xff] }
  0x51   :  { %v1864_v28 = vld [vmem:[#allocation2 + $0x1] sm:$0x1]  ;;  %v1849_v29 = vrot.slane %v1844_v25, %v3703_v18  ;;  %v1886_v31 = vmul.f32 0.25, %v1885_v27  ;;  %v3390_v52 = vld [vmem:[#allocation3 + $0x1] ss:$0 sm:$0xff] }
  0x52   :  { %v1828_v30 = vrot.slane %v1823_v26, %v3703_v18  ;;  %v1865_v32 = vmul.f32 0.25, %v1864_v28  ;;  %v1975_v46 = vrot.slane %v1970_v43, %v3703_v18  ;;  %v3398_v53 = vld [vmem:[#allocation3 + $0x3] ss:$0 sm:$0xff]  ;;  %v2053_v58 = vld [vmem:[#allocation2 + $0x3] sm:$0x1] }
  0x53   :  { %334 = vrot.lane.b32.xlu1 %v333_v48, %s3625_s9  ;;  %v1891_v35 = vrot.slane %v1886_v31, %v3703_v18  ;;  %v1991_v48 = vmul.f32 0.25, %v1990_v45 }
  0x54   :  { %313 = vrot.lane.b32.xlu0 %v312_v49, %s3626_s10  ;;  %v1870_v36 = vrot.slane %v1865_v32, %v3703_v18 }
  0x55   :  { %v1996_v49 = vrot.slane %v1991_v48, %v3703_v18  ;;  %6289 = sst [smem:[#allocation94_spill]] %s4336_s2  ;;  %s4358_s2 = sld [smem:[#allocation6 + $0x22]] }
  0x57   :  { %376 = vrot.lane.b32.xlu1 %v375_v54, %s3622_s6  ;;  %v2032_v54 = vld [vmem:[#allocation2 + $0x3] sm:$0x1] }
  0x58   :  { %355 = vrot.lane.b32.xlu0 %v354_v55, %s3620_s4  ;;  %v2011_v55 = vld [vmem:[#allocation2 + $0x3] sm:$0x1]  ;;  %v2033_v56 = vmul.f32 0.25, %v2032_v54 }
  0x59   :  { %v2012_v57 = vmul.f32 0.25, %v2011_v55 }
  0x5a   :  { %v2038_v59 = vrot.slane %v2033_v56, %v3703_v18 }
  0x5b   :  { %418 = vrot.lane.b32.xlu1 %v417_v60, %s3621_s5  ;;  %v2017_v60 = vrot.slane %v2012_v57, %v3703_v18  ;;  %6299 = sst [smem:[#allocation104_spill]] %s4358_s2  ;;  %s4374_s2 = sld [smem:[#allocation6 + $0x29]] }
  0x5c   :  { %397 = vrot.lane.b32.xlu0 %v396_v61, %s3619_s1  ;;  %v2054_v61 = vmul.f32 0.25, %v2053_v58 }
  0x5e   :  { %v2059_v0 = vrot.slane %v2054_v61, %v3703_v18 }
  0x5f   :  { %460 = vrot.lane.b32.xlu1 %v459_v2, %s3623_s7 }
  0x60   :  { %439 = vrot.lane.b32.xlu0 %v438_v3, %s3624_s8 }
  0x61   :  { %6305 = sst [smem:[#allocation110_spill]] %s4374_s2 }
  0x63   :  { %502 = vrot.lane.b32.xlu1 %v501_v8, %s3625_s9 }
  0x64   :  { %481 = vrot.lane.b32.xlu0 %v480_v9, %s3626_s10 }
  0x67   :  { %1766 = vrot.lane.b32.xlu1 %v1765_v15, %s3622_s6 }
  0x68   :  { %1745 = vrot.lane.b32.xlu0 %v1744_v16, %s3620_s4 }
  0x6b   :  { %1808 = vrot.lane.b32.xlu1 %v1807_v23, %s3621_s5 }
  0x6c   :  { %1787 = vrot.lane.b32.xlu0 %v1786_v24, %s3619_s1 }
  0x6f   :  { %1850 = vrot.lane.b32.xlu1 %v1849_v29, %s3623_s7 }
  0x70   :  { %1829 = vrot.lane.b32.xlu0 %v1828_v30, %s3624_s8 }
  0x73   :  { %1892 = vrot.lane.b32.xlu1 %v1891_v35, %s3625_s9 }
  0x74   :  { %1871 = vrot.lane.b32.xlu0 %v1870_v36, %s3626_s10 }
  0x77   :  { %1934 = vrot.lane.b32.xlu1 %v1933_v41, %s3622_s6 }
  0x78   :  { %1913 = vrot.lane.b32.xlu0 %v1912_v42, %s3620_s4 }
  0x7b   :  { %1976 = vrot.lane.b32.xlu1 %v1975_v46, %s3621_s5 }
  0x7c   :  { %1955 = vrot.lane.b32.xlu0 %v1954_v47, %s3619_s1 }
  0x7f   :  { %196 = vrot.lane.b32.xlu1 %v3275_v50, %s3620_s4 }
  0x80   :  { %1997 = vrot.lane.b32.xlu0 %v1996_v49, %s3624_s8 }
  0x83   :  { %239 = vrot.lane.b32.xlu1 %v3275_v50, %s3619_s1 }
  0x84   :  { %218 = vrot.lane.b32.xlu0 %v3275_v50, %s3622_s6 }
  0x87   :  { %281 = vrot.lane.b32.xlu1 %v3275_v50, %s3624_s8 }
  0x88   :  { %260 = vrot.lane.b32.xlu0 %v3275_v50, %s3621_s5 }
  0x8b   :  { %323 = vrot.lane.b32.xlu1 %v3275_v50, %s3626_s10 }
  0x8c   :  { %302 = vrot.lane.b32.xlu0 %v3275_v50, %s3623_s7 }
  0x8f   :  { %365 = vrot.lane.b32.xlu1 %v3283_v51, %s3620_s4 }
  0x90   :  { %344 = vrot.lane.b32.xlu0 %v3275_v50, %s3625_s9 }
  0x93   :  { %407 = vrot.lane.b32.xlu1 %v3283_v51, %s3619_s1 }
  0x94   :  { %386 = vrot.lane.b32.xlu0 %v3283_v51, %s3622_s6 }
  0x97   :  { %449 = vrot.lane.b32.xlu1 %v3283_v51, %s3624_s8 }
  0x98   :  { %428 = vrot.lane.b32.xlu0 %v3283_v51, %s3621_s5 }
  0x9b   :  { %491 = vrot.lane.b32.xlu1 %v3283_v51, %s3626_s10 }
  0x9c   :  { %470 = vrot.lane.b32.xlu0 %v3283_v51, %s3623_s7 }
  0x9f   :  { %1755 = vrot.lane.b32.xlu1 %v3390_v52, %s3620_s4 }
  0xa0   :  { %512 = vrot.lane.b32.xlu0 %v3283_v51, %s3625_s9 }
  0xa3   :  { %1797 = vrot.lane.b32.xlu1 %v3390_v52, %s3619_s1 }
  0xa4   :  { %1776 = vrot.lane.b32.xlu0 %v3390_v52, %s3622_s6 }
  0xa7   :  { %1839 = vrot.lane.b32.xlu1 %v3390_v52, %s3624_s8 }
  0xa8   :  { %1818 = vrot.lane.b32.xlu0 %v3390_v52, %s3621_s5 }
  0xab   :  { %1881 = vrot.lane.b32.xlu1 %v3390_v52, %s3626_s10 }
  0xac   :  { %1860 = vrot.lane.b32.xlu0 %v3390_v52, %s3623_s7 }
  0xaf   :  { %1923 = vrot.lane.b32.xlu1 %v3398_v53, %s3620_s4  ;;  %s4225_s4 = sld [smem:[#allocation6 + $0x1c]] }
  0xb0   :  { %1902 = vrot.lane.b32.xlu0 %v3390_v52, %s3625_s9 }
  0xb3   :  { %1965 = vrot.lane.b32.xlu1 %v3398_v53, %s3619_s1  ;;  %s4216_s1 = sld [smem:[#allocation6 + $0x15]] }
  0xb4   :  { %1944 = vrot.lane.b32.xlu0 %v3398_v53, %s3622_s6  ;;  %s4239_s6 = sld [smem:[#allocation6 + $0x38]] }
  0xb5   :  { %6239 = sst [smem:[#allocation44_spill]] %s4225_s4  ;;  %s4418_s4 = sld [smem:[#allocation6 + $0x1d]] }
  0xb6   :  { %s6406_s2 = sld [smem:[#allocation44_spill]] }
  0xb7   :  { %2007 = vrot.lane.b32.xlu1 %v3398_v53, %s3624_s8  ;;  %s4243_s8 = sld [smem:[#allocation6 + $0x46]] }
  0xb8   :  { %1986 = vrot.lane.b32.xlu0 %v3398_v53, %s3621_s5  ;;  %s4233_s5 = sld [smem:[#allocation6 + $0x23]] }
  0xb9   :  { %v230_v62 = vpop.permute.xlu1 %229  ;;  %6236 = sst [smem:[#allocation41_spill]] %s4216_s1  ;;  %s4445_s1 = sld [smem:[#allocation6 + $0x25]] }
  0xba   :  { %v186_v63 = vpop.permute.xlu0 %185  ;;  %232 = vst.msk [vmem:[#allocation4 + $0x5] sm:$0x1] %vm188_vm7, %v230_v62  ;;  %6244 = sst [smem:[#allocation49_spill]] %s4239_s6  ;;  %s4425_s6 = sld [smem:[#allocation6 + $0x10]] }
  0xbb   :  { %189 = vst.msk [vmem:[#allocation4 + $0x3] sm:$0x1] %vm188_vm7, %v186_v63  ;;  %2039 = vrot.lane.b32.xlu1 %v2038_v59, %s3626_s10  ;;  %6321 = sst [smem:[#allocation120_spill]] %s4418_s4  ;;  %s4437_s4 = sld [smem:[#allocation6 + $0x1e]] }
  0xbc   :  { %2018 = vrot.lane.b32.xlu0 %v2017_v60, %s3623_s7 }
  0xbd   :  { %v251_v1 = vpop.permute.xlu1 %250  ;;  %6246 = sst [smem:[#allocation51_spill]] %s4243_s8  ;;  %s4423_s8 = sld [smem:[#allocation6 + $0x9]] }
  0xbe   :  { %v209_v2 = vpop.permute.xlu0 %208  ;;  %253 = vst.msk [vmem:[#allocation4 + $0x6] sm:$0x1] %vm188_vm7, %v251_v1  ;;  %6243 = sst [smem:[#allocation48_spill]] %s4233_s5  ;;  %s4610_s5 = sld [smem:[#allocation6 + $0xb]] }
  0xbf   :  { %211 = vst.msk [vmem:[#allocation4 + $0x4] sm:$0x1] %vm188_vm7, %v209_v2  ;;  %2028 = vrot.lane.b32.xlu1 %v3398_v53, %s3623_s7  ;;  %s4241_s7 = sld [smem:[#allocation6 + $0x3f]]  ;;  %6334 = sst [smem:[#allocation126_spill]] %s4445_s1 }
  0xc0   :  { %2060 = vrot.lane.b32.xlu0 %v2059_v0, %s3625_s9  ;;  %6326 = sst [smem:[#allocation123_spill]] %s4425_s6  ;;  %s6408_s6 = sld [smem:[#allocation48_spill]] }
  0xc1   :  { %v293_v3 = vpop.permute.xlu1 %292  ;;  %6333 = sst [smem:[#allocation125_spill]] %s4437_s4  ;;  %s4688_s4 = sld [smem:[#allocation6 + $0x50]] }
  0xc2   :  { %v272_v4 = vpop.permute.xlu0 %271  ;;  %295 = vst.msk [vmem:[#allocation4 + $0x8] sm:$0x1] %vm188_vm7, %v293_v3 }
  0xc3   :  { %274 = vst.msk [vmem:[#allocation4 + $0x7] sm:$0x1] %vm188_vm7, %v272_v4  ;;  %2070 = vrot.lane.b32.xlu1 %v3398_v53, %s3625_s9  ;;  %s4245_s9 = sld [smem:[#allocation6 + $0x4d]]  ;;  %6324 = sst [smem:[#allocation122_spill]] %s4423_s8 }
  0xc4   :  { %2049 = vrot.lane.b32.xlu0 %v3398_v53, %s3626_s10  ;;  %s4247_s10 = sld [smem:[#allocation6 + $0x54]]  ;;  %s4745_s8 = sld [smem:[#allocation6 + $0x1a]] }
  0xc5   :  { %v335_v18 = vpop.permute.xlu1 %334  ;;  %6245 = sst [smem:[#allocation50_spill]] %s4241_s7  ;;  %s4453_s7 = sld [smem:[#allocation6 + $0x11]] }
  0xc6   :  { %v314_v5 = vpop.permute.xlu0 %313  ;;  %337 = vst.msk [vmem:[#allocation4 + $0xa] sm:$0x1] %vm188_vm7, %v335_v18 }
  0xc7   :  { %316 = vst.msk [vmem:[#allocation4 + $0x9] sm:$0x1] %vm188_vm7, %v314_v5 }
  0xc9   :  { %v377_v7 = vpop.permute.xlu1 %376  ;;  %6247 = sst [smem:[#allocation52_spill]] %s4245_s9  ;;  %s4525_s9 = sld [smem:[#allocation6 + $0x47]] }
  0xca   :  { %v3815_v6 = vld [vmem:[#allocation4] sm:$0xff]  ;;  %v356_v8 = vpop.permute.xlu0 %355  ;;  %379 = vst.msk [vmem:[#allocation4 + $0xc] sm:$0x1] %vm188_vm7, %v377_v7  ;;  %6248 = sst [smem:[#allocation53_spill]] %s4247_s10  ;;  %s4482_s10 = sld [smem:[#allocation6 + $0x1f]] }
  0xcb   :  { %520 = vst.msk [vmem:[#allocation5] sm:$0xff] %vm519_vm8, %v3815_v6  ;;  %530 = vrot.lane.b32.xlu0 %v3815_v6, %s3627_s11  ;;  %6338 = sst [smem:[#allocation128_spill]] %s4453_s7  ;;  %s6422_s7 = sld [smem:[#allocation49_spill]] }
  0xcc   :  { %358 = vst.msk [vmem:[#allocation4 + $0xb] sm:$0x1] %vm188_vm7, %v356_v8  ;;  %6429 = sst [smem:[#allocation49_spill]] %s4688_s4  ;;  %s6434_s1 = sld [smem:[#allocation53_spill]] }
  0xcd   :  { %v419_v9 = vpop.permute.xlu1 %418  ;;  %s4983_s4 = sld [smem:[#allocation6 + $0x59]] }
  0xce   :  { %v398_v11 = vpop.permute.xlu0 %397  ;;  %421 = vst.msk [vmem:[#allocation4 + $0xe] sm:$0x1] %vm188_vm7, %v419_v9 }
  0xcf   :  { %400 = vst.msk [vmem:[#allocation4 + $0xd] sm:$0x1] %vm188_vm7, %v398_v11  ;;  %6366 = sst [smem:[#allocation143_spill]] %s4525_s9  ;;  %s4766_s9 = sld [smem:[#allocation6 + $0x28]] }
  0xd0   :  { %6349 = sst [smem:[#allocation134_spill]] %s4482_s10  ;;  %s6424_s10 = sld [smem:[#allocation50_spill]] }
  0xd1   :  { %v461_v12 = vpop.permute.xlu1 %460 }
  0xd2   :  { %v440_v13 = vpop.permute.xlu0 %439  ;;  %463 = vst.msk [vmem:[#allocation4 + $0x10] sm:$0x1] %vm188_vm7, %v461_v12  ;;  %v3854_v31 = vld [vmem:[#allocation5] sm:$0xff] }
  0xd3   :  { %442 = vst.msk [vmem:[#allocation4 + $0xf] sm:$0x1] %vm188_vm7, %v440_v13 }
  0xd5   :  { %v503_v14 = vpop.permute.xlu1 %502  ;;  %6457 = sst [smem:[#allocation53_spill]] %s4766_s9 }
  0xd6   :  { %v482_v15 = vpop.permute.xlu0 %481  ;;  %505 = vst.msk [vmem:[#allocation4 + $0x12] sm:$0x1] %vm188_vm7, %v503_v14 }
  0xd7   :  { %484 = vst.msk [vmem:[#allocation4 + $0x11] sm:$0x1] %vm188_vm7, %v482_v15 }
  0xd9   :  { %v1767_v17 = vpop.permute.xlu1 %1766 }
  0xda   :  { %v3829_v16 = vld [vmem:[#allocation4 + $0x8] sm:$0xff]  ;;  %v1746_v19 = vpop.permute.xlu0 %1745  ;;  %1769 = vst.msk [vmem:[#allocation4 + $0x4] sm:$0x1] %vm188_vm7, %v1767_v17 }
  0xdb   :  { %521 = vst.msk [vmem:[#allocation5 + $0x8] sm:$0xff] %vm519_vm8, %v3829_v16  ;;  %532 = vrot.lane.b32.xlu1 %v3829_v16, %s3627_s11 }
  0xdc   :  { %1748 = vst.msk [vmem:[#allocation4 + $0x3] sm:$0x1] %vm188_vm7, %v1746_v19 }
  0xdd   :  { %v1809_v22 = vpop.permute.xlu1 %1808 }
  0xde   :  { %v518_v20 = vld [vmem:[#allocation4 + $0x10] sm:$0x3f]  ;;  %v1788_v23 = vpop.permute.xlu0 %1787  ;;  %1811 = vst.msk [vmem:[#allocation4 + $0x6] sm:$0x1] %vm188_vm7, %v1809_v22 }
  0xdf   :  { %v526_v24 = vld [vmem:[#allocation4 + $0x10] sm:$0x3f]  ;;  %523 = vst.msk [vmem:[#allocation5 + $0x10] sm:$0x3f] %vm522_vm9, %v518_v20  ;;  %549 = vrot.lane.b32.xlu1 %v3815_v6, %s3628_s12 }
  0xe0   :  { %534 = vrot.lane.b32.xlu0 %v526_v24, %s3627_s11  ;;  %1790 = vst.msk [vmem:[#allocation4 + $0x5] sm:$0x1] %vm188_vm7, %v1788_v23  ;;  %v545_v27 = vld [vmem:[#allocation4 + $0x10] sm:$0x3f] }
  0xe1   :  { %v1851_v25 = vpop.permute.xlu1 %1850  ;;  %v564_v30 = vld [vmem:[#allocation4 + $0x10] sm:$0x3f] }
  0xe2   :  { %v1830_v26 = vpop.permute.xlu0 %1829  ;;  %1853 = vst.msk [vmem:[#allocation4 + $0x8] sm:$0x1] %vm188_vm7, %v1851_v25  ;;  %v3856_v32 = vld [vmem:[#allocation5 + $0x1] sm:$0xff] }
  0xe3   :  { %553 = vrot.lane.b32.xlu1 %v545_v27, %s3628_s12  ;;  %1832 = vst.msk [vmem:[#allocation4 + $0x7] sm:$0x1] %vm188_vm7, %v1830_v26  ;;  %v3858_v33 = vld [vmem:[#allocation5 + $0x2] sm:$0xff] }
  0xe4   :  { %551 = vrot.lane.b32.xlu0 %v3829_v16, %s3628_s12  ;;  %v3860_v34 = vld [vmem:[#allocation5 + $0x3] sm:$0xff] }
  0xe5   :  { %v1893_v28 = vpop.permute.xlu1 %1892  ;;  %v3862_v35 = vld [vmem:[#allocation5 + $0x4] sm:$0xff] }
  0xe6   :  { %v1872_v29 = vpop.permute.xlu0 %1871  ;;  %1895 = vst.msk [vmem:[#allocation4 + $0xa] sm:$0x1] %vm188_vm7, %v1893_v28  ;;  %v3866_v39 = vld [vmem:[#allocation5 + $0x5] sm:$0xff]  ;;  %v3905_v58 = vld [vmem:[#allocation5 + $0xd] sm:$0xff] }
  0xe7   :  { %570 = vrot.lane.b32.xlu1 %v3829_v16, %s3629_s13  ;;  %1874 = vst.msk [vmem:[#allocation4 + $0x9] sm:$0x1] %vm188_vm7, %v1872_v29  ;;  %v3868_v40 = vld [vmem:[#allocation5 + $0x6] sm:$0xff]  ;;  %v583_v43 = vld [vmem:[#allocation4 + $0x10] sm:$0x3f]  ;;  %v3907_v59 = vld [vmem:[#allocation5 + $0xe] sm:$0xff] }
  0xe8   :  { %568 = vrot.lane.b32.xlu0 %v3815_v6, %s3629_s13  ;;  %v602_v48 = vld [vmem:[#allocation4 + $0x10] sm:$0x3f]  ;;  %v3893_v50 = vld [vmem:[#allocation5 + $0x8] sm:$0xff] }
  0xe9   :  { %v1935_v36 = vpop.permute.xlu1 %1934  ;;  %v621_v49 = vld [vmem:[#allocation4 + $0x10] sm:$0x3f]  ;;  %v3895_v51 = vld [vmem:[#allocation5 + $0x9] sm:$0xff] }
  0xea   :  { %v1914_v37 = vpop.permute.xlu0 %1913  ;;  %v3864_v38 = vld [vmem:[#allocation4] sm:$0xff]  ;;  %1937 = vst.msk [vmem:[#allocation4 + $0xc] sm:$0x1] %vm188_vm7, %v1935_v36 }
  0xeb   :  { %587 = vrot.lane.b32.xlu1 %v3815_v6, %s3630_s14  ;;  %1916 = vst.msk [vmem:[#allocation4 + $0xb] sm:$0x1] %vm188_vm7, %v1914_v37  ;;  %v3897_v52 = vld [vmem:[#allocation5 + $0xa] sm:$0xff] }
  0xec   :  { %572 = vrot.lane.b32.xlu0 %v564_v30, %s3629_s13  ;;  %2077 = vst.msk [vmem:[#allocation5] sm:$0xff] %vm519_vm8, %v3864_v38  ;;  %v3899_v53 = vld [vmem:[#allocation5 + $0xb] sm:$0xff] }
  0xed   :  { %v1977_v41 = vpop.permute.xlu1 %1976  ;;  %v3901_v54 = vld [vmem:[#allocation5 + $0xc] sm:$0xff] }
  0xee   :  { %v1956_v42 = vpop.permute.xlu0 %1955  ;;  %1979 = vst.msk [vmem:[#allocation4 + $0xe] sm:$0x1] %vm188_vm7, %v1977_v41 }
  0xef   :  { %591 = vrot.lane.b32.xlu1 %v583_v43, %s3630_s14  ;;  %1958 = vst.msk [vmem:[#allocation4 + $0xd] sm:$0x1] %vm188_vm7, %v1956_v42 }
  0xf0   :  { %589 = vrot.lane.b32.xlu0 %v3829_v16, %s3630_s14 }
  0xf1   :  { %v197_v44 = vpop.permute.xlu1 %196 }
  0xf2   :  { %v1998_v45 = vpop.permute.xlu0 %1997  ;;  %200 = vst.msk [vmem:[#allocation4 + $0x1b] sm:$0x1] %vm188_vm7, %v197_v44 }
  0xf3   :  { %608 = vrot.lane.b32.xlu1 %v3829_v16, %s3631_s15  ;;  %2000 = vst.msk [vmem:[#allocation4 + $0xf] sm:$0x1] %vm188_vm7, %v1998_v45 }
  0xf4   :  { %606 = vrot.lane.b32.xlu0 %v3815_v6, %s3631_s15 }
  0xf5   :  { %v240_v46 = vpop.permute.xlu1 %239 }
  0xf6   :  { %v219_v47 = vpop.permute.xlu0 %218  ;;  %242 = vst.msk [vmem:[#allocation4 + $0x1d] sm:$0x1] %vm188_vm7, %v240_v46 }
  0xf7   :  { %221 = vst.msk [vmem:[#allocation4 + $0x1c] sm:$0x1] %vm188_vm7, %v219_v47  ;;  %625 = vrot.lane.b32.xlu1 %v3815_v6, %s3632_s16 }
  0xf8   :  { %610 = vrot.lane.b32.xlu0 %v602_v48, %s3631_s15 }
  0xf9   :  { %v282_v55 = vpop.permute.xlu1 %281 }
  0xfa   :  { %v261_v56 = vpop.permute.xlu0 %260  ;;  %v3903_v57 = vld [vmem:[#allocation4 + $0x8] sm:$0xff]  ;;  %284 = vst.msk [vmem:[#allocation4 + $0x1f] sm:$0x1] %vm188_vm7, %v282_v55 }
  0xfb   :  { %263 = vst.msk [vmem:[#allocation4 + $0x1e] sm:$0x1] %vm188_vm7, %v261_v56  ;;  %629 = vrot.lane.b32.xlu1 %v621_v49, %s3632_s16 }
  0xfc   :  { %627 = vrot.lane.b32.xlu0 %v3829_v16, %s3632_s16  ;;  %2078 = vst.msk [vmem:[#allocation5 + $0x8] sm:$0xff] %vm519_vm8, %v3903_v57 }
  0xfd   :  { %v324_v60 = vpop.permute.xlu1 %323 }
  0xfe   :  { %v303_v61 = vpop.permute.xlu0 %302  ;;  %326 = vst.msk [vmem:[#allocation4 + $0x21] sm:$0x1] %vm188_vm7, %v324_v60 }
  0xff   :  { %305 = vst.msk [vmem:[#allocation4 + $0x20] sm:$0x1] %vm188_vm7, %v303_v61  ;;  %2086 = vrot.lane.b32.xlu1 %v3864_v38, %s3627_s11 }
 0x100   :  { %2088 = vrot.lane.b32.xlu0 %v3903_v57, %s3627_s11 }
 0x101   :  { %v366_v63 = vpop.permute.xlu1 %365 }
 0x102   :  { %v3922_v62 = vld [vmem:[#allocation4 + $0x18] sm:$0xff]  ;;  %v345_v0 = vpop.permute.xlu0 %344  ;;  %368 = vst.msk [vmem:[#allocation4 + $0x23] sm:$0x1] %vm188_vm7, %v366_v63 }
 0x103   :  { %642 = vst.msk [vmem:[#allocation5 + $0xa8] sm:$0xff] %vm519_vm8, %v3922_v62  ;;  %2106 = vrot.lane.b32.xlu1 %v3903_v57, %s3628_s12 }
 0x104   :  { %347 = vst.msk [vmem:[#allocation4 + $0x22] sm:$0x1] %vm188_vm7, %v345_v0  ;;  %2104 = vrot.lane.b32.xlu0 %v3864_v38, %s3628_s12 }
 0x105   :  { %v408_v1 = vpop.permute.xlu1 %407 }
 0x106   :  { %v387_v2 = vpop.permute.xlu0 %386  ;;  %410 = vst.msk [vmem:[#allocation4 + $0x25] sm:$0x1] %vm188_vm7, %v408_v1 }
 0x107   :  { %389 = vst.msk [vmem:[#allocation4 + $0x24] sm:$0x1] %vm188_vm7, %v387_v2  ;;  %2124 = vrot.lane.b32.xlu1 %v3903_v57, %s3629_s13 }
 0x108   :  { %2122 = vrot.lane.b32.xlu0 %v3864_v38, %s3629_s13 }
 0x109   :  { %v450_v3 = vpop.permute.xlu1 %449 }
 0x10a   :  { %v429_v4 = vpop.permute.xlu0 %428  ;;  %452 = vst.msk [vmem:[#allocation4 + $0x27] sm:$0x1] %vm188_vm7, %v450_v3  ;;  %v3967_v20 = vld [vmem:[#allocation5 + $0xa8] sm:$0xff] }
 0x10b   :  { %431 = vst.msk [vmem:[#allocation4 + $0x26] sm:$0x1] %vm188_vm7, %v429_v4 }
 0x10c   :  { %651 = vrot.lane.b32.xlu0 %v3922_v62, %s3627_s11 }
 0x10d   :  { %v492_v18 = vpop.permute.xlu1 %491 }
 0x10e   :  { %v471_v5 = vpop.permute.xlu0 %470  ;;  %494 = vst.msk [vmem:[#allocation4 + $0x29] sm:$0x1] %vm188_vm7, %v492_v18 }
 0x10f   :  { %473 = vst.msk [vmem:[#allocation4 + $0x28] sm:$0x1] %vm188_vm7, %v471_v5 }
 0x111   :  { %v1756_v7 = vpop.permute.xlu1 %1755 }
 0x112   :  { %v3944_v6 = vld [vmem:[#allocation4 + $0x20] sm:$0xff]  ;;  %v513_v8 = vpop.permute.xlu0 %512  ;;  %1758 = vst.msk [vmem:[#allocation4 + $0x1b] sm:$0x1] %vm188_vm7, %v1756_v7 }
 0x113   :  { %643 = vst.msk [vmem:[#allocation5 + $0xb0] sm:$0xff] %vm519_vm8, %v3944_v6  ;;  %653 = vrot.lane.b32.xlu1 %v3944_v6, %s3627_s11 }
 0x114   :  { %515 = vst.msk [vmem:[#allocation4 + $0x2a] sm:$0x1] %vm188_vm7, %v513_v8 }
 0x115   :  { %v1798_v9 = vpop.permute.xlu1 %1797 }
 0x116   :  { %v1777_v11 = vpop.permute.xlu0 %1776  ;;  %1800 = vst.msk [vmem:[#allocation4 + $0x1d] sm:$0x1] %vm188_vm7, %v1798_v9 }
 0x117   :  { %2140 = vrot.lane.b32.xlu1 %v3864_v38, %s3630_s14  ;;  %1779 = vst.msk [vmem:[#allocation4 + $0x1c] sm:$0x1] %vm188_vm7, %v1777_v11 }
 0x119   :  { %v1840_v13 = vpop.permute.xlu1 %1839 }
 0x11a   :  { %v1819_v14 = vpop.permute.xlu0 %1818  ;;  %1842 = vst.msk [vmem:[#allocation4 + $0x1f] sm:$0x1] %vm188_vm7, %v1840_v13  ;;  %v3969_v22 = vld [vmem:[#allocation5 + $0xa9] sm:$0xff] }
 0x11b   :  { %v640_v12 = vld [vmem:[#allocation4 + $0x28] sm:$0x3f]  ;;  %670 = vrot.lane.b32.xlu1 %v3922_v62, %s3628_s12  ;;  %1821 = vst.msk [vmem:[#allocation4 + $0x1e] sm:$0x1] %vm188_vm7, %v1819_v14  ;;  %v3971_v23 = vld [vmem:[#allocation5 + $0xaa] sm:$0xff] }
 0x11c   :  { %v647_v15 = vld [vmem:[#allocation4 + $0x28] sm:$0x3f]  ;;  %644 = vst.msk [vmem:[#allocation5 + $0xb8] sm:$0x3f] %vm522_vm9, %v640_v12  ;;  %v3973_v24 = vld [vmem:[#allocation5 + $0xab] sm:$0xff] }
 0x11d   :  { %655 = vrot.lane.b32.xlu0 %v647_v15, %s3627_s11  ;;  %v1882_v16 = vpop.permute.xlu1 %1881  ;;  %v666_v19 = vld [vmem:[#allocation4 + $0x28] sm:$0x3f]  ;;  %v3975_v25 = vld [vmem:[#allocation5 + $0xac] sm:$0xff] }
 0x11e   :  { %v1861_v17 = vpop.permute.xlu0 %1860  ;;  %1884 = vst.msk [vmem:[#allocation4 + $0x21] sm:$0x1] %vm188_vm7, %v1882_v16  ;;  %v3979_v29 = vld [vmem:[#allocation5 + $0xad] sm:$0xff]  ;;  %v685_v45 = vld [vmem:[#allocation4 + $0x28] sm:$0x3f] }
 0x11f   :  { %674 = vrot.lane.b32.xlu1 %v666_v19, %s3628_s12  ;;  %1863 = vst.msk [vmem:[#allocation4 + $0x20] sm:$0x1] %vm188_vm7, %v1861_v17  ;;  %v3981_v30 = vld [vmem:[#allocation5 + $0xae] sm:$0xff]  ;;  %v723_v46 = vld [vmem:[#allocation4 + $0x28] sm:$0x3f] }
 0x120   :  { %v742_v47 = vld [vmem:[#allocation4 + $0x28] sm:$0x3f]  ;;  %v4008_v48 = vld [vmem:[#allocation5 + $0xb0] sm:$0xff] }
 0x121   :  { %2142 = vrot.lane.b32.xlu0 %v3903_v57, %s3630_s14  ;;  %v1924_v26 = vpop.permute.xlu1 %1923 }
 0x122   :  { %v1903_v27 = vpop.permute.xlu0 %1902  ;;  %v3977_v28 = vld [vmem:[#allocation4 + $0x18] sm:$0xff]  ;;  %1926 = vst.msk [vmem:[#allocation4 + $0x23] sm:$0x1] %vm188_vm7, %v1924_v26 }
 0x123   :  { %2160 = vrot.lane.b32.xlu1 %v3903_v57, %s3631_s15  ;;  %1905 = vst.msk [vmem:[#allocation4 + $0x22] sm:$0x1] %vm188_vm7, %v1903_v27  ;;  %v4010_v49 = vld [vmem:[#allocation5 + $0xb1] sm:$0xff] }
 0x124   :  { %2191 = vst.msk [vmem:[#allocation5 + $0xa8] sm:$0xff] %vm519_vm8, %v3977_v28  ;;  %v4012_v55 = vld [vmem:[#allocation5 + $0xb2] sm:$0xff] }
 0x125   :  { %672 = vrot.lane.b32.xlu0 %v3944_v6, %s3628_s12  ;;  %v1966_v36 = vpop.permute.xlu1 %1965  ;;  %v4014_v56 = vld [vmem:[#allocation5 + $0xb3] sm:$0xff] }
 0x126   :  { %v1945_v37 = vpop.permute.xlu0 %1944  ;;  %1968 = vst.msk [vmem:[#allocation4 + $0x25] sm:$0x1] %vm188_vm7, %v1966_v36  ;;  %v4016_v60 = vld [vmem:[#allocation5 + $0xb4] sm:$0xff]  ;;  %v4081_v36 = vstv %s3291_s17  ;;  %s4262_s17 = sld [smem:[#allocation6 + $0x54]] }
 0x127   :  { %691 = vrot.lane.b32.xlu1 %v3944_v6, %s3629_s13  ;;  %1947 = vst.msk [vmem:[#allocation4 + $0x24] sm:$0x1] %vm188_vm7, %v1945_v37  ;;  %v4018_v1 = vld [vmem:[#allocation5 + $0xb5] sm:$0xff] }
 0x128   :  { %v4020_v2 = vld [vmem:[#allocation5 + $0xb6] sm:$0xff] }
 0x129   :  { %2158 = vrot.lane.b32.xlu0 %v3864_v38, %s3631_s15  ;;  %v2008_v41 = vpop.permute.xlu1 %2007 }
 0x12a   :  { %v1987_v42 = vpop.permute.xlu0 %1986  ;;  %2010 = vst.msk [vmem:[#allocation4 + $0x27] sm:$0x1] %vm188_vm7, %v2008_v41  ;;  %v762_v41 = vstv %s4071_s18  ;;  %s4264_s18 = sld [smem:[#allocation6 + $0x8]] }
 0x12b   :  { %2176 = vrot.lane.b32.xlu1 %v3864_v38, %s3632_s16  ;;  %1989 = vst.msk [vmem:[#allocation4 + $0x26] sm:$0x1] %vm188_vm7, %v1987_v42  ;;  %v704_v38 = vld [vmem:[#allocation4 + $0x28] sm:$0x3f]  ;;  %v4088_v42 = vstv %s3292_s19  ;;  %s4266_s19 = sld [smem:[#allocation6 + $0xf]] }
 0x12c   :  { %6255 = sst [smem:[#allocation60_spill]] %s4262_s17  ;;  %s4284_s17 = sld [smem:[#allocation6 + $0x25]] }
 0x12d   :  { %689 = vrot.lane.b32.xlu0 %v3922_v62, %s3629_s13  ;;  %v2040_v43 = vpop.permute.xlu1 %2039 }
 0x12e   :  { %v2019_v44 = vpop.permute.xlu0 %2018  ;;  %2042 = vst.msk [vmem:[#allocation4 + $0x11] sm:$0x1] %vm188_vm7, %v2040_v43 }
 0x12f   :  { %2021 = vst.msk [vmem:[#allocation4 + $0x10] sm:$0x1] %vm188_vm7, %v2019_v44  ;;  %708 = vrot.lane.b32.xlu1 %v3922_v62, %s3630_s14 }
 0x130   :  { %6256 = sst [smem:[#allocation61_spill]] %s4264_s18  ;;  %s4286_s18 = sld [smem:[#allocation6 + $0x2c]] }
 0x131   :  { %693 = vrot.lane.b32.xlu0 %v685_v45, %s3629_s13  ;;  %v2029_v61 = vpop.permute.xlu1 %2028  ;;  %6257 = sst [smem:[#allocation62_spill]] %s4266_s19  ;;  %s4506_s19 = sld [smem:[#allocation6 + $0x39]] }
 0x132   :  { %v2061_v63 = vpop.permute.xlu0 %2060  ;;  %v2195_v0 = vld [vmem:[#allocation4 + $0x20] sm:$0xff]  ;;  %2031 = vst.msk [vmem:[#allocation4 + $0x28] sm:$0x1] %vm188_vm7, %v2029_v61  ;;  %6266 = sst [smem:[#allocation71_spill]] %s4284_s17  ;;  %s4326_s17 = sld [smem:[#allocation6 + $0xc]] }
 0x133   :  { %2063 = vst.msk [vmem:[#allocation4 + $0x12] sm:$0x1] %vm188_vm7, %v2061_v63  ;;  %712 = vrot.lane.b32.xlu1 %v704_v38, %s3630_s14  ;;  %v4093_v63 = vstv %s3293_s20  ;;  %s4268_s20 = sld [smem:[#allocation6 + $0x16]] }
 0x134   :  { %2192 = vst.msk [vmem:[#allocation5 + $0xb0] sm:$0xff] %vm519_vm8, %v2195_v0 }
 0x135   :  { %2178 = vrot.lane.b32.xlu0 %v3903_v57, %s3632_s16  ;;  %v2071_v3 = vpop.permute.xlu1 %2070 }
 0x136   :  { %v2050_v4 = vpop.permute.xlu0 %2049  ;;  %2073 = vst.msk [vmem:[#allocation4 + $0x2a] sm:$0x1] %vm188_vm7, %v2071_v3  ;;  %v763_v3 = vmul.f32 %v762_v41, %v3854_v31  ;;  %6267 = sst [smem:[#allocation72_spill]] %s4286_s18  ;;  %s4305_s18 = sld [smem:[#allocation6 + $0x2d]] }
 0x137   :  { %729 = vrot.lane.b32.xlu1 %v3944_v6, %s3631_s15  ;;  %2052 = vst.msk [vmem:[#allocation4 + $0x29] sm:$0x1] %vm188_vm7, %v2050_v4 }
 0x138   :  { %6285 = sst [smem:[#allocation90_spill]] %s4326_s17 }
 0x139   :  { %710 = vrot.lane.b32.xlu0 %v3944_v6, %s3630_s14  ;;  %6258 = sst [smem:[#allocation63_spill]] %s4268_s20  ;;  %s4288_s20 = sld [smem:[#allocation6 + $0xa]] }
 0x13a   :  { %v2076_v18 = vld [vmem:[#allocation4 + $0x10] sm:$0x3f]  ;;  %s6404_s17 = sld [smem:[#allocation35_spill]] }
 0x13b   :  { %2200 = vrot.lane.b32.xlu1 %v3977_v28, %s3627_s11  ;;  %2079 = vst.msk [vmem:[#allocation5 + $0x10] sm:$0x3f] %vm522_vm9, %v2076_v18  ;;  %v2100_v13 = vld [vmem:[#allocation4 + $0x10] sm:$0x3f] }
 0x13c   :  { %v2136_v16 = vld [vmem:[#allocation4 + $0x10] sm:$0x3f]  ;;  %6275 = sst [smem:[#allocation80_spill]] %s4305_s18  ;;  %s4324_s18 = sld [smem:[#allocation6 + $0x2e]] }
 0x13d   :  { %727 = vrot.lane.b32.xlu0 %v3922_v62, %s3631_s15  ;;  %v531_v57 = vpop.permute.xlu0 %530  ;;  %v2082_v17 = vld [vmem:[#allocation4 + $0x10] sm:$0x3f] }
 0x13e   :  { %540 = vst.msk [vmem:[#allocation5 + $0x18] sm:$0xff] %vm519_vm8, %v531_v57  ;;  %v2190_v5 = vld [vmem:[#allocation4 + $0x28] sm:$0x3f]  ;;  %v2172_v27 = vld [vmem:[#allocation4 + $0x10] sm:$0x3f]  ;;  %v4102_v57 = vstv %s4077_s21  ;;  %s4270_s21 = sld [smem:[#allocation6 + $0x1d]] }
 0x13f   :  { %746 = vrot.lane.b32.xlu1 %v3922_v62, %s3632_s16  ;;  %2193 = vst.msk [vmem:[#allocation5 + $0xb8] sm:$0x3f] %vm522_vm9, %v2190_v5  ;;  %v2250_v31 = vld [vmem:[#allocation4 + $0x28] sm:$0x3f]  ;;  %6268 = sst [smem:[#allocation73_spill]] %s4288_s20  ;;  %s4322_s20 = sld [smem:[#allocation6 + $0x27]] }
 0x141   :  { %731 = vrot.lane.b32.xlu0 %v723_v46, %s3631_s15  ;;  %v2154_v46 = vld [vmem:[#allocation4 + $0x10] sm:$0x3f] }
 0x142   :  { %6284 = sst [smem:[#allocation89_spill]] %s4324_s18  ;;  %s6405_s18 = sld [smem:[#allocation41_spill]] }
 0x143   :  { %750 = vrot.lane.b32.xlu1 %v742_v47, %s3632_s16  ;;  %v2214_v47 = vld [vmem:[#allocation4 + $0x28] sm:$0x3f] }
 0x144   :  { %6259 = sst [smem:[#allocation64_spill]] %s4270_s21  ;;  %s4290_s21 = sld [smem:[#allocation6 + $0x11]] }
 0x145   :  { %2202 = vrot.lane.b32.xlu0 %v2195_v0, %s3627_s11  ;;  %v768_v37 = vld [vmem:[#allocation5 + $0x18] sm:$0xff]  ;;  %6283 = sst [smem:[#allocation88_spill]] %s4322_s20  ;;  %s4567_s20 = sld [smem:[#allocation6 + $0x41]] }
 0x146   :  { %v771_v38 = vmul.f32 %v4081_v36, %v768_v37 }
 0x147   :  { %2220 = vrot.lane.b32.xlu1 %v2195_v0, %s3628_s12 }
 0x149   :  { %748 = vrot.lane.b32.xlu0 %v3944_v6, %s3632_s16 }
 0x14a   :  { %6269 = sst [smem:[#allocation74_spill]] %s4290_s21  ;;  %s4320_s21 = sld [smem:[#allocation6 + $0x20]] }
 0x14b   :  { %2238 = vrot.lane.b32.xlu1 %v2195_v0, %s3629_s13 }
 0x14d   :  { %2218 = vrot.lane.b32.xlu0 %v3977_v28, %s3628_s12  ;;  %v533_v7 = vpop.permute.xlu1 %532 }
 0x14e   :  { %541 = vst.msk [vmem:[#allocation5 + $0x20] sm:$0xff] %vm519_vm8, %v533_v7 }
 0x14f   :  { %2256 = vrot.lane.b32.xlu1 %v2195_v0, %s3630_s14 }
 0x150   :  { %6282 = sst [smem:[#allocation87_spill]] %s4320_s21  ;;  %s4338_s21 = sld [smem:[#allocation6 + $0x2f]] }
 0x151   :  { %2236 = vrot.lane.b32.xlu0 %v3977_v28, %s3629_s13  ;;  %v550_v62 = vpop.permute.xlu1 %549 }
 0x152   :  { %v535_v8 = vpop.permute.xlu0 %534  ;;  %559 = vst.msk [vmem:[#allocation5 + $0x30] sm:$0xff] %vm519_vm8, %v550_v62 }
 0x153   :  { %542 = vst.msk [vmem:[#allocation5 + $0x28] sm:$0x3f] %vm522_vm9, %v535_v8  ;;  %2274 = vrot.lane.b32.xlu1 %v2195_v0, %s3631_s15  ;;  %v773_v8 = vadd.f32 %v771_v38, %v763_v3 }
 0x155   :  { %2254 = vrot.lane.b32.xlu0 %v3977_v28, %s3630_s14  ;;  %v554_v6 = vpop.permute.xlu1 %553  ;;  %v769_v61 = vld [vmem:[#allocation5 + $0x20] sm:$0xff] }
 0x156   :  { %v552_v9 = vpop.permute.xlu0 %551  ;;  %561 = vst.msk [vmem:[#allocation5 + $0x40] sm:$0x3f] %vm522_vm9, %v554_v6  ;;  %v772_v6 = vmul.f32 %v4081_v36, %v769_v61  ;;  %v4122_v38 = vld [vmem:[#allocation5 + $0x19] sm:$0xff]  ;;  %6290 = sst [smem:[#allocation95_spill]] %s4338_s21  ;;  %s4356_s21 = sld [smem:[#allocation6 + $0x1b]] }
 0x157   :  { %560 = vst.msk [vmem:[#allocation5 + $0x38] sm:$0xff] %vm519_vm8, %v552_v9  ;;  %2292 = vrot.lane.b32.xlu1 %v2195_v0, %s3632_s16  ;;  %v4128_v61 = vld [vmem:[#allocation5 + $0x1c] sm:$0xff] }
 0x158   :  { %6212 = vst [vmem:[#allocation17_spill] sm:$0xff] %v4128_v61  ;;  %v4132_v3 = vld [vmem:[#allocation5 + $0x1e] sm:$0xff] }
 0x159   :  { %2272 = vrot.lane.b32.xlu0 %v3977_v28, %s3631_s15  ;;  %v571_v11 = vpop.permute.xlu1 %570  ;;  %v776_v43 = vld [vmem:[#allocation5 + $0x30] sm:$0xff]  ;;  %6214 = vst [vmem:[#allocation19_spill] sm:$0xff] %v4132_v3 }
 0x15a   :  { %v569_v12 = vpop.permute.xlu0 %568  ;;  %579 = vst.msk [vmem:[#allocation5 + $0x50] sm:$0xff] %vm519_vm8, %v571_v11  ;;  %v779_v4 = vmul.f32 %v4088_v42, %v776_v43  ;;  %v2196_v11 = vld [vmem:[#allocation4 + $0x28] sm:$0x3f] }
 0x15b   :  { %578 = vst.msk [vmem:[#allocation5 + $0x48] sm:$0xff] %vm519_vm8, %v569_v12  ;;  %2108 = vrot.lane.b32.xlu1 %v2100_v13, %s3628_s12  ;;  %v4111_v13 = vstv %s4085_s22  ;;  %s4272_s22 = sld [smem:[#allocation6 + $0x24]] }
 0x15c   :  { %6298 = sst [smem:[#allocation103_spill]] %s4356_s21  ;;  %s4387_s21 = sld [smem:[#allocation6 + $0x30]] }
 0x15d   :  { %2290 = vrot.lane.b32.xlu0 %v3977_v28, %s3632_s16  ;;  %v588_v14 = vpop.permute.xlu1 %587  ;;  %v2118_v28 = vld [vmem:[#allocation4 + $0x10] sm:$0x3f] }
 0x15e   :  { %v573_v15 = vpop.permute.xlu0 %572  ;;  %597 = vst.msk [vmem:[#allocation5 + $0x60] sm:$0xff] %vm519_vm8, %v588_v14  ;;  %v777_v18 = vld [vmem:[#allocation5 + $0x38] sm:$0xff]  ;;  %v764_v14 = vmul.f32 %v762_v41, %v3893_v50 }
 0x15f   :  { %580 = vst.msk [vmem:[#allocation5 + $0x58] sm:$0x3f] %vm522_vm9, %v573_v15  ;;  %2144 = vrot.lane.b32.xlu1 %v2136_v16, %s3630_s14  ;;  %v781_v15 = vadd.f32 %v779_v4, %v773_v8  ;;  %v780_v16 = vmul.f32 %v4088_v42, %v777_v18  ;;  %v2286_v50 = vld [vmem:[#allocation4 + $0x28] sm:$0x3f]  ;;  %v4134_v4 = vld [vmem:[#allocation5 + $0x21] sm:$0xff] }
 0x160   :  { %v774_v37 = vadd.f32 %v772_v6, %v764_v14  ;;  %v2232_v41 = vld [vmem:[#allocation4 + $0x28] sm:$0x3f]  ;;  %v4145_v8 = vld [vmem:[#allocation5 + $0x24] sm:$0xff] }
 0x161   :  { %2090 = vrot.lane.b32.xlu0 %v2082_v17, %s3627_s11  ;;  %v592_v19 = vpop.permute.xlu1 %591  ;;  %v785_v12 = vld [vmem:[#allocation5 + $0x50] sm:$0xff]  ;;  %6217 = vst [vmem:[#allocation22_spill] sm:$0xff] %v4145_v8  ;;  %v4191_v3 = vld [vmem:[#allocation5 + $0x3e] sm:$0xff]  ;;  %6260 = sst [smem:[#allocation65_spill]] %s4272_s22  ;;  %s4455_s22 = sld [smem:[#allocation6 + $0x18]] }
 0x162   :  { %v590_v26 = vpop.permute.xlu0 %589  ;;  %599 = vst.msk [vmem:[#allocation5 + $0x70] sm:$0x3f] %vm522_vm9, %v592_v19  ;;  %v784_v0 = vld [vmem:[#allocation5 + $0x48] sm:$0xff]  ;;  %v788_v43 = vmul.f32 %v4093_v63, %v785_v12  ;;  %v782_v6 = vadd.f32 %v780_v16, %v774_v37  ;;  %v2268_v16 = vld [vmem:[#allocation4 + $0x28] sm:$0x3f]  ;;  %6228 = vst [vmem:[#allocation33_spill] sm:$0xff] %v4191_v3 }
 0x163   :  { %598 = vst.msk [vmem:[#allocation5 + $0x68] sm:$0xff] %vm519_vm8, %v590_v26  ;;  %2180 = vrot.lane.b32.xlu1 %v2172_v27, %s3632_s16  ;;  %v787_v9 = vmul.f32 %v4093_v63, %v784_v0  ;;  %v4130_v0 = vld [vmem:[#allocation5 + $0x1d] sm:$0xff]  ;;  %v4150_v12 = vld [vmem:[#allocation5 + $0x26] sm:$0xff]  ;;  %v4167_v37 = vld [vmem:[#allocation5 + $0x32] sm:$0xff]  ;;  %6308 = sst [smem:[#allocation113_spill]] %s4387_s21  ;;  %s4492_s21 = sld [smem:[#allocation6 + $0x32]] }
 0x164   :  { %6213 = vst [vmem:[#allocation18_spill] sm:$0xff] %v4130_v0  ;;  %6219 = vst [vmem:[#allocation24_spill] sm:$0xff] %v4150_v12  ;;  %v4189_v12 = vld [vmem:[#allocation5 + $0x36] sm:$0xff] }
 0x165   :  { %2126 = vrot.lane.b32.xlu0 %v2118_v28, %s3629_s13  ;;  %v609_v44 = vpop.permute.xlu1 %608  ;;  %v792_v5 = vld [vmem:[#allocation5 + $0x60] sm:$0xff]  ;;  %6227 = vst [vmem:[#allocation32_spill] sm:$0xff] %v4189_v12 }
 0x166   :  { %v607_v45 = vpop.permute.xlu0 %606  ;;  %617 = vst.msk [vmem:[#allocation5 + $0x80] sm:$0xff] %vm519_vm8, %v609_v44  ;;  %v795_v17 = vmul.f32 %v4102_v57, %v792_v5  ;;  %v789_v44 = vadd.f32 %v787_v9, %v781_v15  ;;  %v4137_v5 = vstv %s4097_s23  ;;  %v4227_v3 = vld [vmem:[#allocation5 + $0x54] sm:$0xff]  ;;  %s4274_s23 = sld [smem:[#allocation6 + $0x2b]] }
 0x167   :  { %616 = vst.msk [vmem:[#allocation5 + $0x78] sm:$0xff] %vm519_vm8, %v607_v45  ;;  %2222 = vrot.lane.b32.xlu1 %v2214_v47, %s3628_s12  ;;  %v4126_v47 = vld [vmem:[#allocation5 + $0x1b] sm:$0xff]  ;;  %6240 = vst [vmem:[#allocation45_spill] sm:$0xff] %v4227_v3  ;;  %s4251_s12 = sld [smem:[#allocation6 + $0x31]] }
 0x168   :  { %6211 = vst [vmem:[#allocation16_spill] sm:$0xff] %v4126_v47  ;;  %v797_v9 = vadd.f32 %v795_v17, %v789_v44  ;;  %v4163_v17 = vld [vmem:[#allocation5 + $0x31] sm:$0xff]  ;;  %6339 = sst [smem:[#allocation129_spill]] %s4455_s22  ;;  %s4667_s22 = sld [smem:[#allocation6 + $0x13]] }
 0x169   :  { %2162 = vrot.lane.b32.xlu0 %v2154_v46, %s3631_s15  ;;  %v626_v7 = vpop.permute.xlu1 %625  ;;  %v4124_v46 = vld [vmem:[#allocation5 + $0x1a] sm:$0xff] }
 0x16a   :  { %v611_v62 = vpop.permute.xlu0 %610  ;;  %635 = vst.msk [vmem:[#allocation5 + $0x90] sm:$0xff] %vm519_vm8, %v626_v7  ;;  %v793_v19 = vld [vmem:[#allocation5 + $0x68] sm:$0xff]  ;;  %v4171_v44 = vld [vmem:[#allocation5 + $0x33] sm:$0xff] }
 0x16b   :  { %618 = vst.msk [vmem:[#allocation5 + $0x88] sm:$0x3f] %vm522_vm9, %v611_v62  ;;  %2258 = vrot.lane.b32.xlu1 %v2250_v31, %s3630_s14  ;;  %v4141_v7 = vld [vmem:[#allocation5 + $0x22] sm:$0xff]  ;;  %v796_v31 = vmul.f32 %v4102_v57, %v793_v19  ;;  %v4165_v19 = vld [vmem:[#allocation5 + $0x39] sm:$0xff]  ;;  %6221 = vst [vmem:[#allocation26_spill] sm:$0xff] %v4171_v44  ;;  %s4256_s14 = sld [smem:[#allocation6 + $0x3f]] }
 0x16c   :  { %6215 = vst [vmem:[#allocation20_spill] sm:$0xff] %v4141_v7  ;;  %v4143_v62 = vld [vmem:[#allocation5 + $0x23] sm:$0xff]  ;;  %v4229_v12 = vld [vmem:[#allocation5 + $0x55] sm:$0xff]  ;;  %6261 = sst [smem:[#allocation66_spill]] %s4274_s23  ;;  %s4293_s23 = sld [smem:[#allocation6 + $0x18]]  ;;  %v4350_v3 = vld [vmem:[#allocation5 + $0x6d] sm:$0xff] }
 0x16d   :  { %2204 = vrot.lane.b32.xlu0 %v2196_v11, %s3627_s11  ;;  %v630_v27 = vpop.permute.xlu1 %629  ;;  %v801_v18 = vld [vmem:[#allocation5 + $0x80] sm:$0xff]  ;;  %6216 = vst [vmem:[#allocation21_spill] sm:$0xff] %v4143_v62  ;;  %6241 = vst [vmem:[#allocation46_spill] sm:$0xff] %v4229_v12  ;;  %s4249_s11 = sld [smem:[#allocation6 + $0x5b]]  ;;  %v4344_v12 = vld [vmem:[#allocation5 + $0x6b] sm:$0xff] }
 0x16e   :  { %v800_v26 = vld [vmem:[#allocation5 + $0x78] sm:$0xff]  ;;  %v628_v28 = vpop.permute.xlu0 %627  ;;  %637 = vst.msk [vmem:[#allocation5 + $0xa0] sm:$0x3f] %vm522_vm9, %v630_v27  ;;  %v4148_v11 = vld [vmem:[#allocation5 + $0x25] sm:$0xff]  ;;  %v818_v27 = vstv %s4104_s24  ;;  %6250 = sst [smem:[#allocation55_spill]] %s4251_s12  ;;  %s4276_s24 = sld [smem:[#allocation6 + $0x9]] }
 0x16f   :  { %v803_v45 = vmul.f32 %v4111_v13, %v800_v26  ;;  %636 = vst.msk [vmem:[#allocation5 + $0x98] sm:$0xff] %vm519_vm8, %v628_v28  ;;  %2294 = vrot.lane.b32.xlu1 %v2286_v50, %s3632_s16  ;;  %6218 = vst [vmem:[#allocation23_spill] sm:$0xff] %v4148_v11  ;;  %v790_v28 = vadd.f32 %v788_v43, %v782_v6  ;;  %v804_v50 = vmul.f32 %v4111_v13, %v801_v18  ;;  %v4169_v43 = vld [vmem:[#allocation5 + $0x3a] sm:$0xff]  ;;  %s4260_s16 = sld [smem:[#allocation6 + $0x4d]]  ;;  %s4539_s12 = sld [smem:[#allocation6 + $0x4e]] }
 0x170   :  { %6220 = vst [vmem:[#allocation25_spill] sm:$0xff] %v4169_v43  ;;  %v4175_v18 = vld [vmem:[#allocation5 + $0x34] sm:$0xff]  ;;  %v4180_v6 = vld [vmem:[#allocation5 + $0x3c] sm:$0xff]  ;;  %v819_v21 = vmul.f32 %v818_v27, %v3967_v20  ;;  %v4204_v20 = vld [vmem:[#allocation5 + $0x49] sm:$0xff] }
 0x171   :  { %2240 = vrot.lane.b32.xlu0 %v2232_v41, %s3629_s13  ;;  %v808_v14 = vld [vmem:[#allocation5 + $0x90] sm:$0xff]  ;;  %v2087_v15 = vpop.permute.xlu1 %2086  ;;  %v805_v41 = vadd.f32 %v803_v45, %v797_v9  ;;  %v4173_v45 = vld [vmem:[#allocation5 + $0x3b] sm:$0xff]  ;;  %6223 = vst [vmem:[#allocation28_spill] sm:$0xff] %v4175_v18  ;;  %6224 = vst [vmem:[#allocation29_spill] sm:$0xff] %v4180_v6  ;;  %s4253_s13 = sld [smem:[#allocation6 + $0x38]]  ;;  %6252 = sst [smem:[#allocation57_spill]] %s4256_s14 }
 0x172   :  { %v2089_v26 = vpop.permute.xlu0 %2088  ;;  %v811_v10 = vmul.f32 %v4137_v5, %v808_v14  ;;  %2095 = vst.msk [vmem:[#allocation5 + $0x18] sm:$0xff] %vm519_vm8, %v2087_v15  ;;  %6222 = vst [vmem:[#allocation27_spill] sm:$0xff] %v4173_v45  ;;  %v4182_v9 = vld [vmem:[#allocation5 + $0x35] sm:$0xff]  ;;  %v4184_v14 = vld [vmem:[#allocation5 + $0x3d] sm:$0xff]  ;;  %v798_v15 = vadd.f32 %v796_v31, %v790_v28  ;;  %6270 = sst [smem:[#allocation75_spill]] %s4293_s23  ;;  %s4313_s23 = sld [smem:[#allocation6 + $0xb]] }
 0x173   :  { %2096 = vst.msk [vmem:[#allocation5 + $0x20] sm:$0xff] %vm519_vm8, %v2089_v26  ;;  %6225 = vst [vmem:[#allocation30_spill] sm:$0xff] %v4182_v9  ;;  %v4206_v31 = vld [vmem:[#allocation5 + $0x4a] sm:$0xff]  ;;  %6249 = sst [smem:[#allocation54_spill]] %s4249_s11  ;;  %v4370_v18 = vld [vmem:[#allocation5 + $0x7d] sm:$0xff]  ;;  %s4576_s11 = sld [smem:[#allocation6 + $0x4f]] }
 0x174   :  { %6226 = vst [vmem:[#allocation31_spill] sm:$0xff] %v4184_v14  ;;  %v813_v26 = vadd.f32 %v811_v10, %v805_v41  ;;  %v806_v6 = vadd.f32 %v804_v50, %v798_v15  ;;  %6231 = vst [vmem:[#allocation36_spill] sm:$0xff] %v4206_v31  ;;  %v4208_v28 = vld [vmem:[#allocation5 + $0x4b] sm:$0xff]  ;;  %v4222_v15 = vld [vmem:[#allocation5 + $0x53] sm:$0xff]  ;;  %6262 = sst [smem:[#allocation67_spill]] %s4276_s24  ;;  %s4601_s14 = sld [smem:[#allocation6 + $0x5d]] }
 0x175   :  { %2276 = vrot.lane.b32.xlu0 %v2268_v16, %s3631_s15  ;;  %v2107_v16 = vpop.permute.xlu1 %2106  ;;  %6232 = vst [vmem:[#allocation37_spill] sm:$0xff] %v4208_v28  ;;  %v4210_v41 = vld [vmem:[#allocation5 + $0x4c] sm:$0xff]  ;;  %6238 = vst [vmem:[#allocation43_spill] sm:$0xff] %v4222_v15  ;;  %v4231_v14 = vld [vmem:[#allocation5 + $0x56] sm:$0xff]  ;;  %s4258_s15 = sld [smem:[#allocation6 + $0x46]]  ;;  %6254 = sst [smem:[#allocation59_spill]] %s4260_s16 }
 0x176   :  { %v809_v11 = vld [vmem:[#allocation5 + $0x98] sm:$0xff]  ;;  %v2105_v0 = vpop.permute.xlu0 %2104  ;;  %2114 = vst.msk [vmem:[#allocation5 + $0x38] sm:$0xff] %vm519_vm8, %v2107_v16  ;;  %v4198_v10 = vadd.f32 %v819_v21, %v813_v26  ;;  %6233 = vst [vmem:[#allocation38_spill] sm:$0xff] %v4210_v41  ;;  %v4212_v50 = vld [vmem:[#allocation5 + $0x4d] sm:$0xff]  ;;  %v820_v16 = vmul.f32 %v818_v27, %v4008_v48  ;;  %s4282_s16 = sld [smem:[#allocation6 + $0x1e]]  ;;  %s4295_s24 = sld [smem:[#allocation6 + $0x1f]] }
 0x177   :  { %v812_v9 = vmul.f32 %v4137_v5, %v809_v11  ;;  %2113 = vst.msk [vmem:[#allocation5 + $0x30] sm:$0xff] %vm519_vm8, %v2105_v0  ;;  %6234 = vst [vmem:[#allocation39_spill] sm:$0xff] %v4212_v50  ;;  %v4214_v11 = vld [vmem:[#allocation5 + $0x4e] sm:$0xff]  ;;  %6251 = sst [smem:[#allocation56_spill]] %s4253_s13  ;;  %v4368_v41 = vld [vmem:[#allocation5 + $0x7c] sm:$0xff]  ;;  %s4435_s13 = sld [smem:[#allocation6 + $0x17]] }
 0x178   :  { %6235 = vst [vmem:[#allocation40_spill] sm:$0xff] %v4214_v11  ;;  %v4218_v21 = vld [vmem:[#allocation5 + $0x51] sm:$0xff]  ;;  %6242 = vst [vmem:[#allocation47_spill] sm:$0xff] %v4231_v14  ;;  %6279 = sst [smem:[#allocation84_spill]] %s4313_s23  ;;  %s4332_s23 = sld [smem:[#allocation6 + $0x21]]  ;;  %v4372_v61 = vld [vmem:[#allocation5 + $0x7e] sm:$0xff] }
 0x179   :  { %v4220_v0 = vld [vmem:[#allocation5 + $0x52] sm:$0xff]  ;;  %v814_v26 = vadd.f32 %v812_v9, %v806_v6  ;;  %v2125_v11 = vpop.permute.xlu1 %2124  ;;  %v4299_v6 = vld [vmem:[#allocation5 + $0x61] sm:$0xff]  ;;  %6292 = vst [vmem:[#allocation97_spill] sm:$0xff] %v4344_v12  ;;  %6295 = vst [vmem:[#allocation100_spill] sm:$0xff] %v4350_v3  ;;  %6372 = sst [smem:[#allocation146_spill]] %s4539_s12  ;;  %s4559_s12 = sld [smem:[#allocation6 + $0x33]] }
 0x17a   :  { %6237 = vst [vmem:[#allocation42_spill] sm:$0xff] %v4220_v0  ;;  %v2123_v50 = vpop.permute.xlu0 %2122  ;;  %2132 = vst.msk [vmem:[#allocation5 + $0x50] sm:$0xff] %vm519_vm8, %v2125_v11  ;;  %v4301_v9 = vld [vmem:[#allocation5 + $0x62] sm:$0xff]  ;;  %v4362_v3 = vld [vmem:[#allocation5 + $0x79] sm:$0xff]  ;;  %6391 = sst [smem:[#allocation152_spill]] %s4576_s11  ;;  %s4733_s11 = sld [smem:[#allocation6 + $0x37]] }
 0x17b   :  { %2131 = vst.msk [vmem:[#allocation5 + $0x48] sm:$0xff] %vm519_vm8, %v2123_v50  ;;  %v4237_v8 = vadd.f32 %v820_v16, %v814_v26  ;;  %6253 = sst [smem:[#allocation58_spill]] %s4258_s15  ;;  %s4280_s15 = sld [smem:[#allocation6 + $0x17]]  ;;  %6273 = vst [vmem:[#allocation78_spill] sm:$0xff] %v4301_v9  ;;  %v4303_v50 = vld [vmem:[#allocation5 + $0x63] sm:$0xff] }
 0x17c   :  { %6265 = sst [smem:[#allocation70_spill]] %s4282_s16  ;;  %6274 = vst [vmem:[#allocation79_spill] sm:$0xff] %v4303_v50  ;;  %v4307_v11 = vld [vmem:[#allocation5 + $0x64] sm:$0xff]  ;;  %s4328_s16 = sld [smem:[#allocation6 + $0x13]]  ;;  %6302 = vst [vmem:[#allocation107_spill] sm:$0xff] %v4368_v41 }
 0x17d   :  { %6271 = sst [smem:[#allocation76_spill]] %s4295_s24  ;;  %6276 = vst [vmem:[#allocation81_spill] sm:$0xff] %v4307_v11  ;;  %v4309_v26 = vld [vmem:[#allocation5 + $0x65] sm:$0xff]  ;;  %s4315_s24 = sld [smem:[#allocation6 + $0x12]]  ;;  %6303 = vst [vmem:[#allocation108_spill] sm:$0xff] %v4370_v18 }
 0x17e   :  { %v652_v48 = vpop.permute.xlu0 %651  ;;  %6277 = vst [vmem:[#allocation82_spill] sm:$0xff] %v4309_v26  ;;  %v4311_v16 = vld [vmem:[#allocation5 + $0x66] sm:$0xff]  ;;  %6288 = sst [smem:[#allocation93_spill]] %s4332_s23  ;;  %6304 = vst [vmem:[#allocation109_spill] sm:$0xff] %v4372_v61  ;;  %s6497_s9 = sld [smem:[#allocation67_spill]] }
 0x17f   :  { %661 = vst.msk [vmem:[#allocation5 + $0xc0] sm:$0xff] %vm519_vm8, %v652_v48  ;;  %6278 = vst [vmem:[#allocation83_spill] sm:$0xff] %v4311_v16  ;;  %v4342_v16 = vld [vmem:[#allocation5 + $0x6a] sm:$0xff]  ;;  %s4354_s23 = sld [smem:[#allocation6 + $0x14]]  ;;  %v4381_v15 = vld [vmem:[#allocation5 + $0x81] sm:$0xff]  ;;  %6403 = sst [smem:[#allocation158_spill]] %s4601_s14 }
 0x180   :  { %6291 = vst [vmem:[#allocation96_spill] sm:$0xff] %v4342_v16  ;;  %v4348_v26 = vld [vmem:[#allocation5 + $0x6c] sm:$0xff]  ;;  %v4383_v45 = vld [vmem:[#allocation5 + $0x82] sm:$0xff]  ;;  %6332 = sst [smem:[#allocation124_spill]] %s4435_s13  ;;  %s4612_s14 = sld [smem:[#allocation6 + $0x12]] }
 0x181   :  { %6264 = sst [smem:[#allocation69_spill]] %s4280_s15  ;;  %s4330_s15 = sld [smem:[#allocation6 + $0x1a]]  ;;  %6294 = vst [vmem:[#allocation99_spill] sm:$0xff] %v4348_v26  ;;  %v4366_v26 = vld [vmem:[#allocation5 + $0x7b] sm:$0xff]  ;;  %6306 = vst [vmem:[#allocation111_spill] sm:$0xff] %v4383_v45  ;;  %v4393_v12 = vld [vmem:[#allocation5 + $0x84] sm:$0xff] }
 0x182   :  { %6286 = sst [smem:[#allocation91_spill]] %s4328_s16  ;;  %s4346_s16 = sld [smem:[#allocation6 + $0xd]]  ;;  %6301 = vst [vmem:[#allocation106_spill] sm:$0xff] %v4366_v26  ;;  %v4385_v26 = vld [vmem:[#allocation5 + $0x83] sm:$0xff]  ;;  %6309 = vst [vmem:[#allocation114_spill] sm:$0xff] %v4393_v12  ;;  %v4457_v45 = vld [vmem:[#allocation5 + $0x91] sm:$0xff] }
 0x183   :  { %6280 = sst [smem:[#allocation85_spill]] %s4315_s24  ;;  %6307 = vst [vmem:[#allocation112_spill] sm:$0xff] %v4385_v26  ;;  %v4395_v62 = vld [vmem:[#allocation5 + $0x85] sm:$0xff] }
 0x184   :  { %6310 = vst [vmem:[#allocation115_spill] sm:$0xff] %v4395_v62  ;;  %v4397_v50 = vld [vmem:[#allocation5 + $0x86] sm:$0xff]  ;;  %v6347_v62 = vstv %s4178_s28  ;;  %s4557_s24 = sld [smem:[#allocation6 + $0x5c]] }
 0x185   :  { %v654_v27 = vpop.permute.xlu1 %653  ;;  %6297 = sst [smem:[#allocation102_spill]] %s4354_s23  ;;  %6311 = vst [vmem:[#allocation116_spill] sm:$0xff] %v4397_v50  ;;  %s4447_s23 = sld [smem:[#allocation6 + $0xa]]  ;;  %v4480_v41 = vmul.f32 %v6347_v62, %v3862_v35  ;;  %v6355_v35 = vstv %s4187_s0  ;;  %v2327_v9 = vld [vmem:[#allocation5 + $0x48] sm:$0xff] }
 0x186   :  { %662 = vst.msk [vmem:[#allocation5 + $0xc8] sm:$0xff] %vm519_vm8, %v654_v27  ;;  %v4497_v62 = vmul.f32 %v6355_v35, %v3866_v39  ;;  %v6360_v35 = vstv %s4159_s26  ;;  %s4651_s13 = sld [smem:[#allocation6 + $0xc]] }
 0x187   :  { %6287 = sst [smem:[#allocation92_spill]] %s4330_s15  ;;  %6348 = vst [vmem:[#allocation133_spill] sm:$0xff] %v4480_v41  ;;  %s4574_s15 = sld [smem:[#allocation6 + $0x48]]  ;;  %v2863_v41 = vld [vmem:[#allocation5 + $0x5] sm:$0xff] }
 0x188   :  { %6293 = sst [smem:[#allocation98_spill]] %s4346_s16  ;;  %s4420_s16 = sld [smem:[#allocation6 + $0x24]]  ;;  %6356 = vst [vmem:[#allocation138_spill] sm:$0xff] %v4497_v62 }
 0x189   :  { %v2141_v48 = vpop.permute.xlu1 %2140 }
 0x18a   :  { %2149 = vst.msk [vmem:[#allocation5 + $0x60] sm:$0xff] %vm519_vm8, %v2141_v48  ;;  %v4340_v48 = vld [vmem:[#allocation5 + $0x69] sm:$0xff]  ;;  %6381 = sst [smem:[#allocation150_spill]] %s4557_s24 }
 0x18b   :  { %6336 = sst [smem:[#allocation127_spill]] %s4447_s23  ;;  %s4677_s23 = sld [smem:[#allocation6 + $0x49]] }
 0x18c   :  { %s6432_s24 = sld [smem:[#allocation52_spill]] }
 0x18d   :  { %v671_v27 = vpop.permute.xlu1 %670  ;;  %6390 = sst [smem:[#allocation151_spill]] %s4574_s15  ;;  %s4715_s15 = sld [smem:[#allocation6 + $0x5e]] }
 0x18e   :  { %680 = vst.msk [vmem:[#allocation5 + $0xd8] sm:$0xff] %vm519_vm8, %v671_v27  ;;  %v4352_v27 = vld [vmem:[#allocation5 + $0x6e] sm:$0xff]  ;;  %6322 = sst [smem:[#allocation121_spill]] %s4420_s16  ;;  %s4523_s16 = sld [smem:[#allocation6 + $0x40]] }
 0x18f   :  { %v656_v14 = vpop.permute.xlu0 %655  ;;  %6296 = vst [vmem:[#allocation101_spill] sm:$0xff] %v4352_v27  ;;  %v4364_v27 = vld [vmem:[#allocation5 + $0x7a] sm:$0xff] }
 0x190   :  { %663 = vst.msk [vmem:[#allocation5 + $0xd0] sm:$0x3f] %vm522_vm9, %v656_v14  ;;  %6300 = vst [vmem:[#allocation105_spill] sm:$0xff] %v4364_v27 }
 0x191   :  { %v675_v14 = vpop.permute.xlu1 %674 }
 0x192   :  { %682 = vst.msk [vmem:[#allocation5 + $0xe8] sm:$0x3f] %vm522_vm9, %v675_v14  ;;  %v4377_v14 = vstv %s4153_s25  ;;  %s4399_s25 = sld [smem:[#allocation6 + $0x8]] }
 0x193   :  { %v2143_v11 = vpop.permute.xlu0 %2142  ;;  %v4465_v50 = vmul.f32 %v4377_v14, %v3856_v32  ;;  %v4486_v32 = vld [vmem:[#allocation5 + $0x94] sm:$0xff]  ;;  %v4512_v39 = vmul.f32 %v4377_v14, %v3895_v51 }
 0x194   :  { %2150 = vst.msk [vmem:[#allocation5 + $0x68] sm:$0xff] %vm519_vm8, %v2143_v11  ;;  %v6343_v11 = vstv %s4159_s26  ;;  %6350 = vst [vmem:[#allocation135_spill] sm:$0xff] %v4486_v32  ;;  %6365 = sst [smem:[#allocation142_spill]] %s4523_s16  ;;  %s4701_s16 = sld [smem:[#allocation6 + $0x57]] }
 0x195   :  { %v2161_v28 = vpop.permute.xlu1 %2160  ;;  %v4470_v47 = vmul.f32 %v6343_v11, %v3858_v33  ;;  %v4490_v33 = vld [vmem:[#allocation5 + $0x96] sm:$0xff] }
 0x196   :  { %2168 = vst.msk [vmem:[#allocation5 + $0x80] sm:$0xff] %vm519_vm8, %v2161_v28  ;;  %v6345_v28 = vstv %s4161_s27  ;;  %6354 = vst [vmem:[#allocation137_spill] sm:$0xff] %v4490_v33  ;;  %v4586_v33 = vld [vmem:[#allocation5 + $0x99] sm:$0xff] }
 0x197   :  { %v673_v26 = vpop.permute.xlu0 %672  ;;  %v4475_v61 = vmul.f32 %v6345_v28, %v3860_v34  ;;  %v6357_v28 = vstv %s4193_s29 }
 0x198   :  { %6312 = sst [smem:[#allocation117_spill]] %s4399_s25  ;;  %681 = vst.msk [vmem:[#allocation5 + $0xe0] sm:$0xff] %vm519_vm8, %v673_v26  ;;  %s4411_s25 = sld [smem:[#allocation6 + $0xf]]  ;;  %v4502_v44 = vmul.f32 %v6357_v28, %v3868_v40  ;;  %v4517_v40 = vmul.f32 %v6360_v35, %v3897_v52  ;;  %v2415_v35 = vld [vmem:[#allocation5 + $0x1] sm:$0xff] }
 0x199   :  { %v692_v26 = vpop.permute.xlu1 %691  ;;  %6346 = vst [vmem:[#allocation132_spill] sm:$0xff] %v4475_v61  ;;  %s6393_s26 = sld [smem:[#allocation117_spill]]  ;;  %v6416_v61 = vstv %s6406_s2  ;;  %s4661_s2 = sld [smem:[#allocation6 + $0x3b]] }
 0x19a   :  { %700 = vst.msk [vmem:[#allocation5 + $0xf8] sm:$0xff] %vm519_vm8, %v692_v26  ;;  %v4459_v26 = vld [vmem:[#allocation5 + $0x92] sm:$0xff]  ;;  %6359 = vst [vmem:[#allocation139_spill] sm:$0xff] %v4502_v44  ;;  %6436 = sst [smem:[#allocation50_spill]] %s4701_s16  ;;  %s6499_s16 = sld [smem:[#allocation73_spill]] }
 0x19b   :  { %v2159_v18 = vpop.permute.xlu0 %2158  ;;  %6340 = vst [vmem:[#allocation130_spill] sm:$0xff] %v4459_v26  ;;  %6362 = vst [vmem:[#allocation140_spill] sm:$0xff] %v4517_v40 }
 0x19c   :  { %2167 = vst.msk [vmem:[#allocation5 + $0x78] sm:$0xff] %vm519_vm8, %v2159_v18  ;;  %v4461_v18 = vld [vmem:[#allocation5 + $0x93] sm:$0xff] }
 0x19d   :  { %6341 = vst [vmem:[#allocation131_spill] sm:$0xff] %v4461_v18  ;;  %v4488_v18 = vld [vmem:[#allocation5 + $0x95] sm:$0xff]  ;;  %v2177_v34 = vpop.permute.xlu1 %2176 }
 0x19e   :  { %6317 = sst [smem:[#allocation118_spill]] %s4411_s25  ;;  %6352 = vst [vmem:[#allocation136_spill] sm:$0xff] %v4488_v18  ;;  %2185 = vst.msk [vmem:[#allocation5 + $0x90] sm:$0xff] %vm519_vm8, %v2177_v34  ;;  %v6367_v34 = vstv %s4161_s27  ;;  %v6375_v18 = vstv %s4187_s0  ;;  %s6383_s0 = sld [smem:[#allocation34_spill]] }
 0x19f   :  { %v690_v11 = vpop.permute.xlu0 %689  ;;  %s4519_s25 = sld [smem:[#allocation6 + $0x26]]  ;;  %v4530_v51 = vmul.f32 %v6367_v34, %v3899_v53  ;;  %v4546_v28 = vmul.f32 %v6375_v18, %v3905_v58  ;;  %v6377_v53 = vstv %s4193_s29  ;;  %6386 = sst [smem:[#allocation34_spill]] %s4567_s20  ;;  %v2527_v18 = vld [vmem:[#allocation5 + $0x2] sm:$0xff] }
 0x1a0   :  { %699 = vst.msk [vmem:[#allocation5 + $0xf0] sm:$0xff] %vm519_vm8, %v690_v11  ;;  %v6369_v11 = vstv %s4178_s28  ;;  %v4551_v34 = vmul.f32 %v6377_v53, %v3907_v59  ;;  %v2304_v53 = vld [vmem:[#allocation5 + $0x8] sm:$0xff]  ;;  %s4592_s28 = sld [smem:[#allocation6 + $0x56]]  ;;  %s4616_s20 = sld [smem:[#allocation6 + $0x34]]  ;;  %v4873_v43 = vld [vmem:[#allocation5 + $0xde] sm:$0xff] }
 0x1a1   :  { %6368 = vst [vmem:[#allocation144_spill] sm:$0xff] %v4530_v51  ;;  %v4535_v12 = vmul.f32 %v6369_v11, %v3901_v54  ;;  %6376 = vst [vmem:[#allocation148_spill] sm:$0xff] %v4546_v28  ;;  %v2303_v54 = vld [vmem:[#allocation5] sm:$0xff]  ;;  %v709_v44 = vpop.permute.xlu1 %708  ;;  %s4630_s29 = sld [smem:[#allocation6 + $0x20]]  ;;  %s4632_s27 = sld [smem:[#allocation6 + $0x27]] }
 0x1a2   :  { %6378 = vst [vmem:[#allocation149_spill] sm:$0xff] %v4551_v34  ;;  %718 = vst.msk [vmem:[#allocation5 + $0x108] sm:$0xff] %vm519_vm8, %v709_v44  ;;  %v2639_v58 = vld [vmem:[#allocation5 + $0x3] sm:$0xff]  ;;  %v4588_v11 = vld [vmem:[#allocation5 + $0x9a] sm:$0xff] }
 0x1a3   :  { %6370 = vst [vmem:[#allocation145_spill] sm:$0xff] %v4535_v12  ;;  %v694_v62 = vpop.permute.xlu0 %693  ;;  %v2751_v34 = vld [vmem:[#allocation5 + $0x4] sm:$0xff]  ;;  %6395 = vst [vmem:[#allocation153_spill] sm:$0xff] %v4588_v11  ;;  %v4590_v12 = vld [vmem:[#allocation5 + $0x9b] sm:$0xff] }
 0x1a4   :  { %701 = vst.msk [vmem:[#allocation5 + $0x100] sm:$0x3f] %vm522_vm9, %v694_v62  ;;  %v6392_v59 = vstv %s6383_s0  ;;  %6396 = vst [vmem:[#allocation154_spill] sm:$0xff] %v4590_v12  ;;  %v4597_v44 = vld [vmem:[#allocation5 + $0x9d] sm:$0xff]  ;;  %v4627_v12 = vmul.f32 %v2415_v35, %v4377_v14  ;;  %v4875_v40 = vld [vmem:[#allocation5 + $0xe6] sm:$0xff] }
 0x1a5   :  { %6364 = sst [smem:[#allocation141_spill]] %s4519_s25  ;;  %v4580_v28 = vmul.f32 %v6392_v59, %v2303_v54  ;;  %v4595_v59 = vld [vmem:[#allocation5 + $0x9c] sm:$0xff]  ;;  %6401 = vst [vmem:[#allocation156_spill] sm:$0xff] %v4597_v44  ;;  %v713_v52 = vpop.permute.xlu1 %712  ;;  %s6426_s25 = sld [smem:[#allocation51_spill]]  ;;  %6483 = vst [vmem:[#allocation196_spill] sm:$0xff] %v4873_v43 }
 0x1a6   :  { %6397 = sst [smem:[#allocation117_spill]] %s4592_s28  ;;  %6399 = vst [vmem:[#allocation155_spill] sm:$0xff] %v4595_v59  ;;  %v4599_v62 = vld [vmem:[#allocation5 + $0x9e] sm:$0xff]  ;;  %720 = vst.msk [vmem:[#allocation5 + $0x118] sm:$0x3f] %vm522_vm9, %v713_v52  ;;  %v6414_v52 = vstv %s6405_s18  ;;  %s6438_s18 = sld [smem:[#allocation54_spill]] }
 0x1a7   :  { %6402 = vst [vmem:[#allocation157_spill] sm:$0xff] %v4599_v62  ;;  %v2179_v32 = vpop.permute.xlu0 %2178  ;;  %6409 = vst [vmem:[#allocation159_spill] sm:$0xff] %v4627_v12  ;;  %6410 = sst [smem:[#allocation35_spill]] %s4630_s29  ;;  %v6412_v62 = vstv %s6404_s17  ;;  %v4640_v54 = vmul.f32 %v6414_v52, %v2639_v58  ;;  %v4658_v52 = vstv %s4492_s21  ;;  %v4682_v11 = vld [vmem:[#allocation5 + $0xc3] sm:$0xff]  ;;  %s4717_s21 = sld [smem:[#allocation6 + $0x36]] }
 0x1a8   :  { %2186 = vst.msk [vmem:[#allocation5 + $0x98] sm:$0xff] %vm519_vm8, %v2179_v32  ;;  %v6407_v32 = vstv %s6383_s0  ;;  %6411 = sst [smem:[#allocation160_spill]] %s4632_s27  ;;  %v4636_v51 = vmul.f32 %v6412_v62, %v2527_v18  ;;  %s4646_s0 = sld [smem:[#allocation6 + $0x35]]  ;;  %v6420_v62 = vstv %s6408_s6  ;;  %v824_v18 = vld [vmem:[#allocation5 + $0xc0] sm:$0xff]  ;;  %6427 = vst [vmem:[#allocation166_spill] sm:$0xff] %v4682_v11 }
 0x1a9   :  { %v4624_v44 = vmul.f32 %v6407_v32, %v2304_v53  ;;  %6415 = vst [vmem:[#allocation162_spill] sm:$0xff] %v4640_v54  ;;  %v4644_v53 = vmul.f32 %v6416_v61, %v2751_v34  ;;  %v730_v35 = vpop.permute.xlu1 %729  ;;  %v4655_v58 = vmul.f32 %v6420_v62, %v2863_v41  ;;  %v4673_v61 = vld [vmem:[#allocation5 + $0xc1] sm:$0xff]  ;;  %s4675_s6 = sld [smem:[#allocation6 + $0x42]]  ;;  %v832_v54 = vld [vmem:[#allocation5 + $0xd8] sm:$0xff]  ;;  %6442 = sst [smem:[#allocation51_spill]] %s4715_s15  ;;  %6484 = vst [vmem:[#allocation197_spill] sm:$0xff] %v4875_v40 }
 0x1aa   :  { %6413 = vst [vmem:[#allocation161_spill] sm:$0xff] %v4636_v51  ;;  %738 = vst.msk [vmem:[#allocation5 + $0x128] sm:$0xff] %vm519_vm8, %v730_v35  ;;  %v4684_v34 = vld [vmem:[#allocation5 + $0xc4] sm:$0xff]  ;;  %v6437_v51 = vstv %s6424_s10  ;;  %s4827_s27 = sld [smem:[#allocation6 + $0x4a]]  ;;  %s4835_s28 = sld [smem:[#allocation6 + $0x51]] }
 0x1ab   :  { %6417 = vst [vmem:[#allocation163_spill] sm:$0xff] %v4644_v53  ;;  %v711_v32 = vpop.permute.xlu0 %710  ;;  %6421 = vst [vmem:[#allocation164_spill] sm:$0xff] %v4655_v58  ;;  %v6430_v58 = vstv %s6422_s7  ;;  %v4695_v53 = vld [vmem:[#allocation5 + $0xc5] sm:$0xff]  ;;  %s6472_s29 = sld [smem:[#allocation55_spill]]  ;;  %v4905_v7 = vld [vmem:[#allocation5 + $0xfa] sm:$0xff]  ;;  %s4920_s15 = sld [smem:[#allocation6 + $0x3d]] }
 0x1ac   :  { %719 = vst.msk [vmem:[#allocation5 + $0x110] sm:$0xff] %vm519_vm8, %v711_v32  ;;  %v4680_v32 = vld [vmem:[#allocation5 + $0xc2] sm:$0xff]  ;;  %6428 = vst [vmem:[#allocation167_spill] sm:$0xff] %v4684_v34  ;;  %v4693_v41 = vmul.f32 %v6430_v58, %v3969_v22  ;;  %v4706_v22 = vmul.f32 %v6437_v51, %v3971_v23  ;;  %v6440_v58 = vstv %s6426_s25  ;;  %v6443_v23 = vstv %s6432_s24  ;;  %v840_v34 = vld [vmem:[#allocation5 + $0xf0] sm:$0xff]  ;;  %s4796_s25 = sld [smem:[#allocation6 + $0x22]] }
 0x1ad   :  { %6425 = vst [vmem:[#allocation165_spill] sm:$0xff] %v4680_v32  ;;  %6431 = vst [vmem:[#allocation168_spill] sm:$0xff] %v4695_v53  ;;  %v4697_v35 = vld [vmem:[#allocation5 + $0xc6] sm:$0xff]  ;;  %v2201_v62 = vpop.permute.xlu1 %2200  ;;  %v4711_v53 = vmul.f32 %v6440_v58, %v3973_v24  ;;  %v4724_v51 = vmul.f32 %v6443_v23, %v3975_v25  ;;  %v6445_v24 = vstv %s6434_s1  ;;  %v4851_v32 = vld [vmem:[#allocation5 + $0xdc] sm:$0xff] }
 0x1ae   :  { %6433 = vst [vmem:[#allocation169_spill] sm:$0xff] %v4697_v35  ;;  %6439 = vst [vmem:[#allocation170_spill] sm:$0xff] %v4706_v22  ;;  %v827_v35 = vmul.f32 %v4658_v52, %v824_v18  ;;  %v4729_v18 = vmul.f32 %v6445_v24, %v3979_v29  ;;  %v6450_v29 = vstv %s4559_s12  ;;  %v6451_v24 = vstv %s6424_s10  ;;  %s4776_s10 = sld [smem:[#allocation6 + $0xd]]  ;;  %v4907_v40 = vld [vmem:[#allocation5 + $0xfb] sm:$0xff] }
 0x1af   :  { %v728_v59 = vpop.permute.xlu0 %727  ;;  %6441 = vst [vmem:[#allocation171_spill] sm:$0xff] %v4711_v53  ;;  %2209 = vst.msk [vmem:[#allocation5 + $0xc0] sm:$0xff] %vm519_vm8, %v2201_v62  ;;  %v6447_v53 = vstv %s6422_s7  ;;  %v835_v23 = vmul.f32 %v6450_v29, %v832_v54  ;;  %v4752_v11 = vmul.f32 %v6451_v24, %v4012_v55  ;;  %s4764_s7 = sld [smem:[#allocation6 + $0x21]]  ;;  %v4769_v54 = vstv %s4616_s20  ;;  %v848_v55 = vld [vmem:[#allocation5 + $0x108] sm:$0xff]  ;;  %s4794_s20 = sld [smem:[#allocation6 + $0x1b]]  ;;  %v4909_v43 = vld [vmem:[#allocation5 + $0xfc] sm:$0xff] }
 0x1b0   :  { %737 = vst.msk [vmem:[#allocation5 + $0x120] sm:$0xff] %vm519_vm8, %v728_v59  ;;  %6444 = vst [vmem:[#allocation172_spill] sm:$0xff] %v4724_v51  ;;  %v4738_v62 = vmul.f32 %v6447_v53, %v4010_v49  ;;  %v6448_v59 = vstv %s6438_s18  ;;  %v6454_v49 = vstv %s6432_s24  ;;  %s4778_s24 = sld [smem:[#allocation6 + $0x14]]  ;;  %v2359_v51 = vld [vmem:[#allocation5 + $0xa8] sm:$0xff]  ;;  %v6470_v22 = vstv %s4559_s12  ;;  %6471 = sst [smem:[#allocation187_spill]] %s4835_s28  ;;  %v4916_v12 = vld [vmem:[#allocation5 + $0xfe] sm:$0xff] }
 0x1b1   :  { %6446 = vst [vmem:[#allocation173_spill] sm:$0xff] %v4729_v18  ;;  %v4743_v25 = vmul.f32 %v6448_v59, %v3981_v30  ;;  %6452 = vst [vmem:[#allocation175_spill] sm:$0xff] %v4752_v11  ;;  %v4757_v18 = vmul.f32 %v6440_v58, %v4014_v56  ;;  %v4762_v53 = vmul.f32 %v6454_v49, %v4016_v60  ;;  %v825_v30 = vld [vmem:[#allocation5 + $0xc8] sm:$0xff]  ;;  %v4772_v59 = vstv %s4646_s0  ;;  %v747_v29 = vpop.permute.xlu1 %746  ;;  %s4800_s0 = sld [smem:[#allocation6 + $0x3c]]  ;;  %v2312_v11 = vld [vmem:[#allocation5 + $0x20] sm:$0xff]  ;;  %s4854_s12 = sld [smem:[#allocation6 + $0x58]] }
 0x1b2   :  { %v829_v60 = vadd.f32 %v827_v35, %v4198_v10  ;;  %v843_v49 = vmul.f32 %v4769_v54, %v840_v34  ;;  %756 = vst.msk [vmem:[#allocation5 + $0x138] sm:$0xff] %vm519_vm8, %v747_v29  ;;  %v6460_v58 = vstv %s6438_s18  ;;  %6463 = sst [smem:[#allocation180_spill]] %s4796_s25  ;;  %v4798_v10 = vld [vmem:[#allocation5 + $0xc9] sm:$0xff]  ;;  %v833_v34 = vld [vmem:[#allocation5 + $0xe0] sm:$0xff]  ;;  %v851_v29 = vmul.f32 %v4772_v59, %v848_v55  ;;  %s4816_s18 = sld [smem:[#allocation6 + $0x43]]  ;;  %6477 = vst [vmem:[#allocation192_spill] sm:$0xff] %v4851_v32 }
 0x1b3   :  { %6449 = vst [vmem:[#allocation174_spill] sm:$0xff] %v4743_v25  ;;  %6453 = vst [vmem:[#allocation176_spill] sm:$0xff] %v4757_v18  ;;  %v732_v24 = vpop.permute.xlu0 %731  ;;  %v6458_v25 = vstv %s6434_s1  ;;  %s4805_s1 = sld [smem:[#allocation6 + $0x29]]  ;;  %v4819_v35 = vld [vmem:[#allocation5 + $0xcd] sm:$0xff]  ;;  %v836_v55 = vmul.f32 %v6470_v22, %v833_v34  ;;  %v4839_v18 = vld [vmem:[#allocation5 + $0xd9] sm:$0xff]  ;;  %s4947_s25 = sld [smem:[#allocation6 + $0x4b]] }
 0x1b4   :  { %6455 = vst [vmem:[#allocation177_spill] sm:$0xff] %v4762_v53  ;;  %739 = vst.msk [vmem:[#allocation5 + $0x130] sm:$0x3f] %vm522_vm9, %v732_v24  ;;  %v4787_v56 = vmul.f32 %v6458_v25, %v4018_v1  ;;  %v4792_v53 = vmul.f32 %v6460_v58, %v4020_v2  ;;  %v828_v25 = vmul.f32 %v4658_v52, %v825_v30  ;;  %v4809_v58 = vld [vmem:[#allocation5 + $0xca] sm:$0xff]  ;;  %v841_v30 = vld [vmem:[#allocation5 + $0xf8] sm:$0xff]  ;;  %v4833_v1 = vstv %s4717_s21  ;;  %s6491_s21 = sld [smem:[#allocation61_spill]] }
 0x1b5   :  { %6456 = sst [smem:[#allocation52_spill]] %s4764_s7  ;;  %v837_v24 = vadd.f32 %v835_v23, %v829_v60  ;;  %6465 = vst [vmem:[#allocation182_spill] sm:$0xff] %v4809_v58  ;;  %6468 = vst [vmem:[#allocation185_spill] sm:$0xff] %v4819_v35  ;;  %v4821_v2 = vld [vmem:[#allocation5 + $0xce] sm:$0xff]  ;;  %v2311_v58 = vld [vmem:[#allocation5 + $0x18] sm:$0xff]  ;;  %v4858_v35 = vstv %s4733_s11  ;;  %v844_v0 = vmul.f32 %v4769_v54, %v841_v30  ;;  %s4900_s11 = sld [smem:[#allocation6 + $0x5f]] }
 0x1b6   :  { %6459 = vst [vmem:[#allocation178_spill] sm:$0xff] %v4787_v56  ;;  %6461 = vst [vmem:[#allocation179_spill] sm:$0xff] %v4792_v53  ;;  %6462 = sst [smem:[#allocation54_spill]] %s4794_s20  ;;  %v4811_v53 = vld [vmem:[#allocation5 + $0xcb] sm:$0xff]  ;;  %v4841_v60 = vld [vmem:[#allocation5 + $0xe1] sm:$0xff]  ;;  %s6510_s7 = sld [smem:[#allocation84_spill]] }
 0x1b7   :  { %6466 = vst [vmem:[#allocation183_spill] sm:$0xff] %v4811_v53  ;;  %v4813_v56 = vld [vmem:[#allocation5 + $0xcc] sm:$0xff]  ;;  %6469 = vst [vmem:[#allocation186_spill] sm:$0xff] %v4821_v2  ;;  %v751_v53 = vpop.permute.xlu1 %750  ;;  %v845_v16 = vadd.f32 %v843_v49, %v837_v24  ;;  %v856_v2 = vld [vmem:[#allocation5 + $0x120] sm:$0xff]  ;;  %6478 = sst [smem:[#allocation55_spill]] %s4854_s12  ;;  %s4963_s12 = sld [smem:[#allocation6 + $0x52]] }
 0x1b8   :  { %6467 = vst [vmem:[#allocation184_spill] sm:$0xff] %v4813_v56  ;;  %v2203_v56 = vpop.permute.xlu0 %2202  ;;  %758 = vst.msk [vmem:[#allocation5 + $0x148] sm:$0x3f] %vm522_vm9, %v751_v53  ;;  %v4843_v22 = vld [vmem:[#allocation5 + $0xda] sm:$0xff]  ;;  %v4845_v34 = vld [vmem:[#allocation5 + $0xe2] sm:$0xff]  ;;  %s4972_s28 = sld [smem:[#allocation6 + $0x33]] }
 0x1b9   :  { %6464 = sst [smem:[#allocation181_spill]] %s4805_s1  ;;  %2210 = vst.msk [vmem:[#allocation5 + $0xc8] sm:$0xff] %vm519_vm8, %v2203_v56  ;;  %6473 = vst [vmem:[#allocation188_spill] sm:$0xff] %v4843_v22  ;;  %v4847_v49 = vld [vmem:[#allocation5 + $0xdb] sm:$0xff]  ;;  %v4849_v24 = vld [vmem:[#allocation5 + $0xe3] sm:$0xff]  ;;  %v859_v56 = vmul.f32 %v4833_v1, %v856_v2  ;;  %v6479_v22 = vstv %s6472_s29  ;;  %v853_v26 = vadd.f32 %v851_v29, %v845_v16  ;;  %v2314_v2 = vmul.f32 %v2311_v58, %v4081_v36  ;;  %s4927_s1 = sld [smem:[#allocation6 + $0x44]] }
 0x1ba   :  { %6474 = vst [vmem:[#allocation189_spill] sm:$0xff] %v4845_v34  ;;  %6475 = vst [vmem:[#allocation190_spill] sm:$0xff] %v4847_v49  ;;  %v849_v53 = vld [vmem:[#allocation5 + $0x110] sm:$0xff]  ;;  %v4862_v34 = vmul.f32 %v6479_v22, %v2359_v51  ;;  %v830_v49 = vadd.f32 %v828_v25, %v4237_v8  ;;  %v4867_v32 = vld [vmem:[#allocation5 + $0xdd] sm:$0xff]  ;;  %v2315_v58 = vmul.f32 %v2312_v11, %v4081_v36  ;;  %s6512_s20 = sld [smem:[#allocation90_spill]] }
 0x1bb   :  { %6476 = vst [vmem:[#allocation191_spill] sm:$0xff] %v4849_v24  ;;  %v4865_v24 = vld [vmem:[#allocation5 + $0xe4] sm:$0xff]  ;;  %6481 = vst [vmem:[#allocation194_spill] sm:$0xff] %v4867_v32  ;;  %v864_v27 = vld [vmem:[#allocation5 + $0x138] sm:$0xff]  ;;  %v2221_v51 = vpop.permute.xlu1 %2220  ;;  %v852_v32 = vmul.f32 %v4772_v59, %v849_v53  ;;  %6490 = sst [smem:[#allocation203_spill]] %s4900_s11  ;;  %s6568_s11 = sld [smem:[#allocation85_spill]] }
 0x1bc   :  { %6480 = vst [vmem:[#allocation193_spill] sm:$0xff] %v4865_v24  ;;  %v4869_v23 = vld [vmem:[#allocation5 + $0xe5] sm:$0xff]  ;;  %v749_v22 = vpop.permute.xlu0 %748  ;;  %v2319_v24 = vld [vmem:[#allocation5 + $0x30] sm:$0xff]  ;;  %v838_v31 = vadd.f32 %v836_v55, %v830_v49  ;;  %v867_v30 = vmul.f32 %v4858_v35, %v864_v27  ;;  %v2320_v16 = vld [vmem:[#allocation5 + $0x38] sm:$0xff] }
 0x1bd   :  { %6482 = vst [vmem:[#allocation195_spill] sm:$0xff] %v4869_v23  ;;  %v861_v23 = vadd.f32 %v859_v56, %v853_v26  ;;  %2228 = vst.msk [vmem:[#allocation5 + $0xe0] sm:$0xff] %vm519_vm8, %v2221_v51  ;;  %v2328_v29 = vld [vmem:[#allocation5 + $0x50] sm:$0xff]  ;;  %v4898_v56 = vld [vmem:[#allocation5 + $0xf9] sm:$0xff]  ;;  %v2323_v51 = vmul.f32 %v2320_v16, %v4088_v42 }
 0x1be   :  { %757 = vst.msk [vmem:[#allocation5 + $0x140] sm:$0xff] %vm519_vm8, %v749_v22  ;;  %v4886_v25 = vld [vmem:[#allocation5 + $0xf1] sm:$0xff]  ;;  %v846_v8 = vadd.f32 %v844_v0, %v838_v31  ;;  %6492 = vst [vmem:[#allocation204_spill] sm:$0xff] %v4907_v40  ;;  %v857_v36 = vld [vmem:[#allocation5 + $0x128] sm:$0xff]  ;;  %v2330_v40 = vmul.f32 %v2327_v9, %v4093_v63 }
 0x1bf   :  { %v4888_v55 = vld [vmem:[#allocation5 + $0xf2] sm:$0xff]  ;;  %6493 = vst [vmem:[#allocation205_spill] sm:$0xff] %v4909_v43  ;;  %6495 = vst [vmem:[#allocation207_spill] sm:$0xff] %v4916_v12  ;;  %v2239_v0 = vpop.permute.xlu1 %2238  ;;  %v2336_v31 = vld [vmem:[#allocation5 + $0x68] sm:$0xff]  ;;  %v6503_v43 = vstv %s6497_s9 }
 0x1c0   :  { %6485 = vst [vmem:[#allocation198_spill] sm:$0xff] %v4888_v55  ;;  %v4890_v26 = vld [vmem:[#allocation5 + $0xf3] sm:$0xff]  ;;  %v4914_v55 = vld [vmem:[#allocation5 + $0xfd] sm:$0xff]  ;;  %v2219_v22 = vpop.permute.xlu0 %2218 }
 0x1c1   :  { %6486 = vst [vmem:[#allocation199_spill] sm:$0xff] %v4890_v26  ;;  %v4892_v27 = vld [vmem:[#allocation5 + $0xf4] sm:$0xff]  ;;  %v2322_v26 = vmul.f32 %v2319_v24, %v4088_v42  ;;  %6494 = vst [vmem:[#allocation206_spill] sm:$0xff] %v4914_v55  ;;  %v854_v24 = vadd.f32 %v852_v32, %v846_v8  ;;  %v2344_v11 = vld [vmem:[#allocation5 + $0x80] sm:$0xff] }
 0x1c2   :  { %6487 = vst [vmem:[#allocation200_spill] sm:$0xff] %v4892_v27  ;;  %v4894_v49 = vld [vmem:[#allocation5 + $0xf5] sm:$0xff]  ;;  %2227 = vst.msk [vmem:[#allocation5 + $0xd8] sm:$0xff] %vm519_vm8, %v2219_v22  ;;  %v4933_v42 = vld [vmem:[#allocation5 + $0x109] sm:$0xff]  ;;  %v2317_v22 = vadd.f32 %v2315_v58, %v4624_v44  ;;  %v891_v27 = vmul.f32 %v6503_v43, %v4163_v17  ;;  %v6507_v44 = vstv %s6499_s16 }
 0x1c3   :  { %6488 = vst [vmem:[#allocation201_spill] sm:$0xff] %v4894_v49  ;;  %v4896_v53 = vld [vmem:[#allocation5 + $0xf6] sm:$0xff]  ;;  %v869_v49 = vadd.f32 %v867_v30, %v861_v23  ;;  %v2335_v30 = vld [vmem:[#allocation5 + $0x60] sm:$0xff]  ;;  %v4941_v8 = vld [vmem:[#allocation5 + $0x10b] sm:$0xff]  ;;  %v2257_v43 = vpop.permute.xlu1 %2256 }
 0x1c4   :  { %6489 = vst [vmem:[#allocation202_spill] sm:$0xff] %v4896_v53  ;;  %v6496_v53 = vstv %s6491_s21  ;;  %2246 = vst.msk [vmem:[#allocation5 + $0xf8] sm:$0xff] %vm519_vm8, %v2239_v0  ;;  %v2343_v55 = vld [vmem:[#allocation5 + $0x78] sm:$0xff]  ;;  %v2331_v0 = vmul.f32 %v2328_v29, %v4093_v63  ;;  %v4968_v29 = vld [vmem:[#allocation5 + $0x10e] sm:$0xff]  ;;  %v2237_v9 = vpop.permute.xlu0 %2236 }
 0x1c5   :  { %v883_v23 = vmul.f32 %v6496_v53, %v4122_v38  ;;  %v877_v12 = vadd.f32 %v4465_v50, %v869_v49  ;;  %v4935_v16 = vld [vmem:[#allocation5 + $0x111] sm:$0xff]  ;;  %6500 = vst [vmem:[#allocation209_spill] sm:$0xff] %v4941_v8  ;;  %v2316_v53 = vadd.f32 %v2314_v2, %v4580_v28  ;;  %v899_v2 = vmul.f32 %v6507_v44, %v4204_v20  ;;  %v865_v63 = vld [vmem:[#allocation5 + $0x140] sm:$0xff] }
 0x1c6   :  { %v4937_v38 = vld [vmem:[#allocation5 + $0x10a] sm:$0xff]  ;;  %v4939_v32 = vld [vmem:[#allocation5 + $0x112] sm:$0xff]  ;;  %6508 = vst [vmem:[#allocation215_spill] sm:$0xff] %v4968_v29  ;;  %v868_v44 = vmul.f32 %v4858_v35, %v865_v63  ;;  %2245 = vst.msk [vmem:[#allocation5 + $0xf0] sm:$0xff] %vm519_vm8, %v2237_v9 }
 0x1c7   :  { %6498 = vst [vmem:[#allocation208_spill] sm:$0xff] %v4939_v32  ;;  %v4943_v50 = vld [vmem:[#allocation5 + $0x113] sm:$0xff]  ;;  %v860_v32 = vmul.f32 %v4833_v1, %v857_v36  ;;  %v885_v28 = vadd.f32 %v883_v23, %v877_v12  ;;  %v2324_v17 = vadd.f32 %v2322_v26, %v2316_v53  ;;  %v2325_v36 = vadd.f32 %v2323_v51, %v2317_v22  ;;  %v4985_v51 = vld [vmem:[#allocation5 + $0x121] sm:$0xff]  ;;  %v4999_v63 = vld [vmem:[#allocation5 + $0x129] sm:$0xff] }
 0x1c8   :  { %6501 = vst [vmem:[#allocation210_spill] sm:$0xff] %v4943_v50  ;;  %v4945_v49 = vld [vmem:[#allocation5 + $0x10c] sm:$0xff]  ;;  %v4957_v8 = vld [vmem:[#allocation5 + $0x114] sm:$0xff]  ;;  %v2338_v12 = vmul.f32 %v2335_v30, %v4102_v57  ;;  %v6511_v26 = vstv %s6510_s7  ;;  %v2346_v22 = vmul.f32 %v2343_v55, %v4111_v13  ;;  %v2275_v55 = vpop.permute.xlu1 %2274 }
 0x1c9   :  { %6502 = vst [vmem:[#allocation211_spill] sm:$0xff] %v4945_v49  ;;  %6504 = vst [vmem:[#allocation212_spill] sm:$0xff] %v4957_v8  ;;  %v4959_v50 = vld [vmem:[#allocation5 + $0x10d] sm:$0xff]  ;;  %v4961_v49 = vld [vmem:[#allocation5 + $0x115] sm:$0xff]  ;;  %v862_v20 = vadd.f32 %v860_v32, %v854_v24  ;;  %v907_v53 = vmul.f32 %v6511_v26, %v4299_v6  ;;  %v2333_v32 = vadd.f32 %v2331_v0, %v2325_v36  ;;  %v6516_v8 = vstv %s6491_s21  ;;  %s6521_s21 = sld [smem:[#allocation98_spill]] }
 0x1ca   :  { %6505 = vst [vmem:[#allocation213_spill] sm:$0xff] %v4959_v50  ;;  %6506 = vst [vmem:[#allocation214_spill] sm:$0xff] %v4961_v49  ;;  %v4970_v58 = vld [vmem:[#allocation5 + $0x116] sm:$0xff]  ;;  %v2339_v49 = vmul.f32 %v2336_v31, %v4102_v57  ;;  %v893_v50 = vadd.f32 %v891_v27, %v885_v28  ;;  %v4987_v57 = vld [vmem:[#allocation5 + $0x122] sm:$0xff]  ;;  %v2347_v6 = vmul.f32 %v2344_v11, %v4111_v13 }
 0x1cb   :  { %6509 = vst [vmem:[#allocation216_spill] sm:$0xff] %v4970_v58  ;;  %v2351_v23 = vld [vmem:[#allocation5 + $0x90] sm:$0xff]  ;;  %2264 = vst.msk [vmem:[#allocation5 + $0x110] sm:$0xff] %vm519_vm8, %v2257_v43  ;;  %v2352_v58 = vld [vmem:[#allocation5 + $0x98] sm:$0xff]  ;;  %v870_v26 = vadd.f32 %v868_v44, %v862_v20  ;;  %v2332_v29 = vadd.f32 %v2330_v40, %v2324_v17  ;;  %v6522_v44 = vstv %s6497_s9  ;;  %s5050_s9 = sld [smem:[#allocation6 + $0x3e]] }
 0x1cc   :  { %v4989_v27 = vld [vmem:[#allocation5 + $0x123] sm:$0xff]  ;;  %v901_v28 = vadd.f32 %v899_v2, %v893_v50  ;;  %v5003_v9 = vld [vmem:[#allocation5 + $0x12b] sm:$0xff]  ;;  %v2255_v50 = vpop.permute.xlu0 %2254  ;;  %v2341_v2 = vadd.f32 %v2339_v49, %v2333_v32  ;;  %v2355_v40 = vmul.f32 %v2352_v58, %v4137_v5  ;;  %v2354_v17 = vmul.f32 %v2351_v23, %v4137_v5  ;;  %v5027_v5 = vld [vmem:[#allocation5 + $0x139] sm:$0xff] }
 0x1cd   :  { %v4991_v31 = vld [vmem:[#allocation5 + $0x124] sm:$0xff]  ;;  %v5011_v0 = vld [vmem:[#allocation5 + $0x12c] sm:$0xff]  ;;  %2263 = vst.msk [vmem:[#allocation5 + $0x108] sm:$0xff] %vm519_vm8, %v2255_v50  ;;  %v5042_v50 = vld [vmem:[#allocation5 + $0x13c] sm:$0xff] }
 0x1ce   :  { %6513 = vst [vmem:[#allocation217_spill] sm:$0xff] %v4991_v31  ;;  %v4993_v30 = vld [vmem:[#allocation5 + $0x125] sm:$0xff]  ;;  %v884_v31 = vmul.f32 %v6516_v8, %v4134_v4  ;;  %6518 = vst [vmem:[#allocation220_spill] sm:$0xff] %v5011_v0  ;;  %v5013_v11 = vld [vmem:[#allocation5 + $0x12d] sm:$0xff]  ;;  %v909_v4 = vadd.f32 %v907_v53, %v901_v28  ;;  %v878_v8 = vadd.f32 %v4512_v39, %v870_v26 }
 0x1cf   :  { %6514 = vst [vmem:[#allocation218_spill] sm:$0xff] %v4993_v30  ;;  %v4995_v24 = vld [vmem:[#allocation5 + $0x126] sm:$0xff]  ;;  %v6517_v30 = vstv %s6512_s20  ;;  %6519 = vst [vmem:[#allocation221_spill] sm:$0xff] %v5013_v11  ;;  %v5015_v13 = vld [vmem:[#allocation5 + $0x12e] sm:$0xff]  ;;  %v2349_v32 = vadd.f32 %v2347_v6, %v2341_v2 }
 0x1d0   :  { %6515 = vst [vmem:[#allocation219_spill] sm:$0xff] %v4995_v24  ;;  %v5001_v43 = vld [vmem:[#allocation5 + $0x12a] sm:$0xff]  ;;  %v915_v24 = vmul.f32 %v6517_v30, %v4362_v3  ;;  %6520 = vst [vmem:[#allocation222_spill] sm:$0xff] %v5015_v13  ;;  %v2340_v3 = vadd.f32 %v2338_v12, %v2332_v29  ;;  %v892_v30 = vmul.f32 %v6522_v44, %v4165_v19  ;;  %v2367_v13 = vld [vmem:[#allocation5 + $0xc0] sm:$0xff]  ;;  %v6523_v19 = vstv %s6521_s21 }
 0x1d1   :  { %2282 = vst.msk [vmem:[#allocation5 + $0x128] sm:$0xff] %vm519_vm8, %v2275_v55  ;;  %v2360_v36 = vld [vmem:[#allocation5 + $0xb0] sm:$0xff]  ;;  %v2368_v20 = vld [vmem:[#allocation5 + $0xc8] sm:$0xff]  ;;  %v5031_v39 = vld [vmem:[#allocation5 + $0x13a] sm:$0xff]  ;;  %v923_v28 = vmul.f32 %v6523_v19, %v4457_v45  ;;  %v886_v55 = vadd.f32 %v884_v31, %v878_v8  ;;  %v2377_v31 = vstv %s4972_s28  ;;  %v2357_v8 = vadd.f32 %v2355_v40, %v2349_v32  ;;  %s6544_s28 = sld [smem:[#allocation57_spill]] }
 0x1d2   :  { %v5029_v23 = vld [vmem:[#allocation5 + $0x141] sm:$0xff]  ;;  %v917_v26 = vadd.f32 %v915_v24, %v909_v4  ;;  %6524 = vst [vmem:[#allocation223_spill] sm:$0xff] %v5042_v50  ;;  %v2348_v49 = vadd.f32 %v2346_v22, %v2340_v3  ;;  %v2293_v24 = vpop.permute.xlu1 %2292  ;;  %v2273_v4 = vpop.permute.xlu0 %2272  ;;  %v6530_v22 = vstv %s6499_s16  ;;  %v6532_v50 = vstv %s6472_s29  ;;  %s5082_s16 = sld [smem:[#allocation6 + $0x60]]  ;;  %s6545_s29 = sld [smem:[#allocation62_spill]] }
 0x1d3   :  { %v5033_v29 = vld [vmem:[#allocation5 + $0x142] sm:$0xff]  ;;  %v900_v3 = vmul.f32 %v6530_v22, %v4218_v21  ;;  %v894_v0 = vadd.f32 %v892_v30, %v886_v55  ;;  %2281 = vst.msk [vmem:[#allocation5 + $0x120] sm:$0xff] %vm519_vm8, %v2273_v4  ;;  %v2363_v40 = vmul.f32 %v6532_v50, %v2360_v36  ;;  %v2371_v32 = vmul.f32 %v2368_v20, %v4658_v52  ;;  %v2383_v36 = vld [vmem:[#allocation5 + $0xf0] sm:$0xff] }
 0x1d4   :  { %v5035_v12 = vld [vmem:[#allocation5 + $0x13b] sm:$0xff]  ;;  %v5037_v53 = vld [vmem:[#allocation5 + $0x143] sm:$0xff]  ;;  %v925_v19 = vadd.f32 %v923_v28, %v917_v26  ;;  %v2356_v11 = vadd.f32 %v2354_v17, %v2348_v49  ;;  %v6533_v21 = vstv %s4506_s19  ;;  %v2370_v30 = vmul.f32 %v2367_v13, %v4658_v52 }
 0x1d5   :  { %v5044_v44 = vld [vmem:[#allocation5 + $0x144] sm:$0xff]  ;;  %v939_v28 = vmul.f32 %v6533_v21, %v4673_v61  ;;  %v902_v49 = vadd.f32 %v900_v3, %v894_v0  ;;  %v2384_v26 = vld [vmem:[#allocation5 + $0xf8] sm:$0xff]  ;;  %v6534_v55 = vstv %s6512_s20  ;;  %v2365_v61 = vadd.f32 %v2363_v40, %v2357_v8  ;;  %s6551_s20 = sld [smem:[#allocation68_spill]] }
 0x1d6   :  { %6525 = vst [vmem:[#allocation224_spill] sm:$0xff] %v5044_v44  ;;  %v5046_v58 = vld [vmem:[#allocation5 + $0x13d] sm:$0xff]  ;;  %v5052_v6 = vld [vmem:[#allocation5 + $0x145] sm:$0xff]  ;;  %v933_v17 = vadd.f32 %v4693_v41, %v925_v19  ;;  %v2109_v20 = vpop.permute.xlu1 %2108  ;;  %v2291_v50 = vpop.permute.xlu0 %2290  ;;  %v2364_v41 = vadd.f32 %v4862_v34, %v2356_v11  ;;  %v6538_v3 = vstv %s4661_s2  ;;  %v2386_v11 = vmul.f32 %v2383_v36, %v4769_v54 }
 0x1d7   :  { %6526 = vst [vmem:[#allocation225_spill] sm:$0xff] %v5046_v58  ;;  %6527 = vst [vmem:[#allocation226_spill] sm:$0xff] %v5052_v6  ;;  %v5054_v2 = vld [vmem:[#allocation5 + $0x13e] sm:$0xff]  ;;  %v5056_v45 = vld [vmem:[#allocation5 + $0x146] sm:$0xff]  ;;  %v1418_v58 = vstv %s4983_s4  ;;  %v955_v19 = vmul.f32 %v6538_v3, %v4886_v25  ;;  %v6541_v36 = vstv %s4920_s15  ;;  %s6866_s4 = sld [smem:[#allocation126_spill]] }
 0x1d8   :  { %6528 = vst [vmem:[#allocation227_spill] sm:$0xff] %v5054_v2  ;;  %6529 = vst [vmem:[#allocation228_spill] sm:$0xff] %v5056_v45  ;;  %v2376_v2 = vld [vmem:[#allocation5 + $0xe0] sm:$0xff]  ;;  %v6531_v45 = vstv %s6510_s7  ;;  %v2375_v44 = vld [vmem:[#allocation5 + $0xd8] sm:$0xff]  ;;  %6536 = sst [smem:[#allocation61_spill]] %s5082_s16  ;;  %v941_v52 = vadd.f32 %v939_v28, %v933_v17  ;;  %v2372_v34 = vadd.f32 %v2370_v30, %v2364_v41  ;;  %v978_v17 = vstv %s5050_s9  ;;  %s6548_s7 = sld [smem:[#allocation59_spill]] }
 0x1d9   :  { %2300 = vst.msk [vmem:[#allocation5 + $0x140] sm:$0xff] %vm519_vm8, %v2293_v24  ;;  %v908_v6 = vmul.f32 %v6531_v45, %v4340_v48  ;;  %v916_v24 = vmul.f32 %v6534_v55, %v4381_v15  ;;  %v6535_v48 = vstv %s4565_s30  ;;  %v2379_v4 = vmul.f32 %v2377_v31, %v2376_v2  ;;  %2299 = vst.msk [vmem:[#allocation5 + $0x138] sm:$0xff] %vm519_vm8, %v2291_v50  ;;  %v2392_v15 = vld [vmem:[#allocation5 + $0x110] sm:$0xff]  ;;  %v2391_v8 = vld [vmem:[#allocation5 + $0x108] sm:$0xff]  ;;  %s6581_s9 = sld [smem:[#allocation102_spill]] }
 0x1da   :  { %v947_v45 = vmul.f32 %v6535_v48, %v4839_v18  ;;  %v2378_v0 = vmul.f32 %v2377_v31, %v2375_v44  ;;  %2115 = vst.msk [vmem:[#allocation5 + $0x40] sm:$0x3f] %vm522_vm9, %v2109_v20  ;;  %v6537_v18 = vstv %s6521_s21  ;;  %v2373_v2 = vadd.f32 %v2371_v32, %v2365_v61  ;;  %v2400_v44 = vld [vmem:[#allocation5 + $0x128] sm:$0xff]  ;;  %v2091_v32 = vpop.permute.xlu0 %2090  ;;  %s6557_s21 = sld [smem:[#allocation74_spill]] }
 0x1db   :  { %v910_v13 = vadd.f32 %v908_v6, %v902_v49  ;;  %v924_v22 = vmul.f32 %v6537_v18, %v4586_v33  ;;  %v2387_v6 = vmul.f32 %v2384_v26, %v4769_v54  ;;  %v6539_v31 = vstv %s4800_s0  ;;  %v2399_v33 = vld [vmem:[#allocation5 + $0x120] sm:$0xff]  ;;  %v2145_v49 = vpop.permute.xlu1 %2144  ;;  %2097 = vst.msk [vmem:[#allocation5 + $0x28] sm:$0x3f] %vm522_vm9, %v2091_v32  ;;  %v2471_v41 = vld [vmem:[#allocation5 + $0xa9] sm:$0xff] }
 0x1dc   :  { %v949_v40 = vadd.f32 %v947_v45, %v941_v52  ;;  %v963_v28 = vmul.f32 %v6539_v31, %v4933_v42  ;;  %v2381_v55 = vadd.f32 %v2379_v4, %v2373_v2  ;;  %v2395_v25 = vmul.f32 %v2392_v15, %v4772_v59  ;;  %2151 = vst.msk [vmem:[#allocation5 + $0x70] sm:$0x3f] %vm522_vm9, %v2145_v49  ;;  %v2416_v32 = vld [vmem:[#allocation5 + $0x9] sm:$0xff] }
 0x1dd   :  { %v918_v21 = vadd.f32 %v916_v24, %v910_v13  ;;  %v2380_v24 = vadd.f32 %v2378_v0, %v2372_v34  ;;  %v2394_v54 = vmul.f32 %v2391_v8, %v4772_v59  ;;  %v6540_v42 = vstv %s4506_s19  ;;  %v2583_v0 = vld [vmem:[#allocation5 + $0xaa] sm:$0xff]  ;;  %s6543_s19 = sld [smem:[#allocation56_spill]] }
 0x1de   :  { %v957_v48 = vadd.f32 %v955_v19, %v949_v40  ;;  %v940_v45 = vmul.f32 %v6540_v42, %v4798_v10  ;;  %v971_v20 = vmul.f32 %v6541_v36, %v4985_v51  ;;  %v2389_v50 = vadd.f32 %v2387_v6, %v2381_v55  ;;  %v2127_v19 = vpop.permute.xlu0 %2126  ;;  %v2807_v6 = vld [vmem:[#allocation5 + $0xac] sm:$0xff] }
 0x1df   :  { %v926_v26 = vadd.f32 %v924_v22, %v918_v21  ;;  %v2403_v61 = vmul.f32 %v2400_v44, %v4833_v1  ;;  %v2388_v13 = vadd.f32 %v2386_v11, %v2380_v24  ;;  %v2402_v59 = vmul.f32 %v2399_v33, %v4833_v1  ;;  %v2181_v3 = vpop.permute.xlu1 %2180  ;;  %2133 = vst.msk [vmem:[#allocation5 + $0x58] sm:$0x3f] %vm522_vm9, %v2127_v19 }
 0x1e0   :  { %v2408_v30 = vld [vmem:[#allocation5 + $0x140] sm:$0xff]  ;;  %v965_v4 = vadd.f32 %v963_v28, %v957_v48  ;;  %v6542_v15 = vstv %s4565_s30  ;;  %v1530_v10 = vstv %s5082_s16  ;;  %v2397_v22 = vadd.f32 %v2395_v25, %v2389_v50  ;;  %2187 = vst.msk [vmem:[#allocation5 + $0xa0] sm:$0x3f] %vm522_vm9, %v2181_v3  ;;  %s6547_s30 = sld [smem:[#allocation58_spill]]  ;;  %v2407_v34 = vld [vmem:[#allocation5 + $0x138] sm:$0xff]  ;;  %s5168_s16 = sld [smem:[#allocation6 + $0x45]] }
 0x1e1   :  { %v934_v52 = vadd.f32 %v4738_v62, %v926_v26  ;;  %v948_v18 = vmul.f32 %v6542_v15, %v4841_v60  ;;  %v2411_v51 = vmul.f32 %v2408_v30, %v4858_v35  ;;  %v979_v62 = vmul.f32 %v978_v17, %v5027_v5  ;;  %v2695_v60 = vld [vmem:[#allocation5 + $0xab] sm:$0xff]  ;;  %v2423_v48 = vld [vmem:[#allocation5 + $0x19] sm:$0xff] }
 0x1e2   :  { %v973_v8 = vadd.f32 %v971_v20, %v965_v4  ;;  %v2396_v1 = vadd.f32 %v2394_v54, %v2388_v13  ;;  %v6546_v40 = vstv %s4661_s2  ;;  %v2405_v11 = vadd.f32 %v2403_v61, %v2397_v22  ;;  %s6553_s2 = sld [smem:[#allocation60_spill]]  ;;  %v2163_v42 = vpop.permute.xlu0 %2162 }
 0x1e3   :  { %v942_v2 = vadd.f32 %v940_v45, %v934_v52  ;;  %v956_v21 = vmul.f32 %v6546_v40, %v4898_v56  ;;  %v6549_v44 = vstv %s6543_s19  ;;  %v6550_v5 = vstv %s6544_s28  ;;  %v2919_v56 = vld [vmem:[#allocation5 + $0xad] sm:$0xff]  ;;  %v2223_v30 = vpop.permute.xlu1 %2222  ;;  %2169 = vst.msk [vmem:[#allocation5 + $0x88] sm:$0x3f] %vm522_vm9, %v2163_v42 }
 0x1e4   :  { %v5127_v31 = vmul.f32 %v6549_v44, %v2471_v41  ;;  %v5131_v28 = vmul.f32 %v6550_v5, %v2583_v0  ;;  %v981_v49 = vadd.f32 %v979_v62, %v973_v8  ;;  %v2404_v55 = vadd.f32 %v2402_v59, %v2396_v1  ;;  %2229 = vst.msk [vmem:[#allocation5 + $0xe8] sm:$0x3f] %vm522_vm9, %v2223_v30  ;;  %v2432_v62 = vld [vmem:[#allocation5 + $0x39] sm:$0xff]  ;;  %v6562_v1 = vld [vmem:[#allocation159_spill] sm:$0xff] }
 0x1e5   :  { %v950_v33 = vadd.f32 %v948_v18, %v942_v2  ;;  %v2410_v25 = vmul.f32 %v2407_v34, %v4858_v35  ;;  %v6552_v26 = vstv %s6545_s29  ;;  %v2413_v54 = vadd.f32 %v2411_v51, %v2405_v11  ;;  %v2431_v2 = vld [vmem:[#allocation5 + $0x31] sm:$0xff] }
 0x1e6   :  { %v995_v24 = vmul.f32 %v6552_v26, %v4124_v46  ;;  %v6554_v45 = vstv %s6547_s30  ;;  %v6555_v20 = vstv %s6548_s7  ;;  %v6556_v35 = vstv %s4800_s0  ;;  %v2528_v46 = vld [vmem:[#allocation5 + $0xa] sm:$0xff]  ;;  %s6565_s0 = sld [smem:[#allocation122_spill]]  ;;  %v2205_v44 = vpop.permute.xlu0 %2204 }
 0x1e7   :  { %v5139_v36 = vmul.f32 %v6554_v45, %v2695_v60  ;;  %v5143_v50 = vmul.f32 %v6555_v20, %v2807_v6  ;;  %v964_v61 = vmul.f32 %v6556_v35, %v4935_v16  ;;  %v958_v4 = vadd.f32 %v956_v21, %v950_v33  ;;  %v2424_v16 = vld [vmem:[#allocation5 + $0x21] sm:$0xff]  ;;  %2211 = vst.msk [vmem:[#allocation5 + $0xd0] sm:$0x3f] %vm522_vm9, %v2205_v44  ;;  %v2440_v45 = vld [vmem:[#allocation5 + $0x51] sm:$0xff] }
 0x1e8   :  { %v989_v52 = vadd.f32 %v4470_v47, %v981_v49  ;;  %v2412_v13 = vadd.f32 %v2410_v25, %v2404_v55  ;;  %v6558_v59 = vstv %s6551_s20  ;;  %v2419_v0 = vmul.f32 %v2416_v32, %v4377_v14  ;;  %v6563_v6 = vld [vmem:[#allocation36_spill] sm:$0xff]  ;;  %v2752_v49 = vld [vmem:[#allocation5 + $0xc] sm:$0xff] }
 0x1e9   :  { %v1003_v41 = vmul.f32 %v6558_v59, %v4167_v37  ;;  %v6559_v15 = vstv %s6393_s26  ;;  %v6560_v22 = vstv %s6553_s2  ;;  %v6561_v47 = vstv %s4920_s15  ;;  %v2640_v37 = vld [vmem:[#allocation5 + $0xb] sm:$0xff]  ;;  %s6567_s15 = sld [smem:[#allocation41_spill]]  ;;  %s6570_s2 = sld [smem:[#allocation44_spill]] }
 0x1ea   :  { %v2426_v18 = vmul.f32 %v6559_v15, %v2423_v48  ;;  %v5159_v51 = vmul.f32 %v6560_v22, %v2919_v56  ;;  %v972_v3 = vmul.f32 %v6561_v47, %v4999_v63  ;;  %v966_v19 = vadd.f32 %v964_v61, %v958_v4  ;;  %v2259_v63 = vpop.permute.xlu1 %2258  ;;  %v2439_v56 = vld [vmem:[#allocation5 + $0x49] sm:$0xff]  ;;  %s6571_s26 = sld [smem:[#allocation127_spill]] }
 0x1eb   :  { %v997_v8 = vadd.f32 %v995_v24, %v989_v52  ;;  %v2420_v60 = vadd.f32 %v6562_v1, %v2412_v13  ;;  %v6564_v14 = vstv %s6557_s21  ;;  %v2421_v21 = vadd.f32 %v2419_v0, %v2413_v54  ;;  %2265 = vst.msk [vmem:[#allocation5 + $0x118] sm:$0x3f] %vm522_vm9, %v2259_v63  ;;  %v2864_v59 = vld [vmem:[#allocation5 + $0xd] sm:$0xff] }
 0x1ec   :  { %v1011_v40 = vmul.f32 %v6564_v14, %v6563_v6  ;;  %v6566_v34 = vmov %v6559_v15  ;;  %v6569_v5 = vstv %s6404_s17  ;;  %v974_v55 = vadd.f32 %v972_v3, %v966_v19  ;;  %s6574_s17 = sld [smem:[#allocation91_spill]]  ;;  %v2448_v14 = vld [vmem:[#allocation5 + $0x69] sm:$0xff] }
 0x1ed   :  { %v2427_v11 = vmul.f32 %v6566_v34, %v2424_v16  ;;  %v5174_v33 = vmul.f32 %v6569_v5, %v2528_v46  ;;  %v980_v25 = vmul.f32 %v978_v17, %v5029_v23  ;;  %v1005_v32 = vadd.f32 %v1003_v41, %v997_v8  ;;  %v6576_v23 = vld [vmem:[#allocation78_spill] sm:$0xff]  ;;  %v2241_v8 = vpop.permute.xlu0 %2240 }
 0x1ee   :  { %v2428_v48 = vadd.f32 %v2426_v18, %v2420_v60  ;;  %v6572_v26 = vstv %s6565_s0  ;;  %v6577_v17 = vstv %s6568_s11  ;;  %v6579_v41 = vld [vmem:[#allocation20_spill] sm:$0xff]  ;;  %v6580_v0 = vstv %s6545_s29  ;;  %v2447_v18 = vld [vmem:[#allocation5 + $0x61] sm:$0xff]  ;;  %s5201_s0 = sld [smem:[#allocation6 + $0x39]]  ;;  %v2295_v19 = vpop.permute.xlu1 %2294  ;;  %v6586_v60 = vld [vmem:[#allocation140_spill] sm:$0xff]  ;;  %2247 = vst.msk [vmem:[#allocation5 + $0x100] sm:$0x3f] %vm522_vm9, %v2241_v8 }
 0x1ef   :  { %v2434_v24 = vmul.f32 %v6572_v26, %v2431_v2  ;;  %v6573_v54 = vmov %v6572_v26  ;;  %v2429_v42 = vadd.f32 %v2427_v11, %v2421_v21  ;;  %v6575_v20 = vstv %s6567_s15  ;;  %s6583_s15 = sld [smem:[#allocation48_spill]]  ;;  %v6584_v2 = vld [vmem:[#allocation105_spill] sm:$0xff]  ;;  %v2472_v34 = vld [vmem:[#allocation5 + $0xb1] sm:$0xff]  ;;  %2301 = vst.msk [vmem:[#allocation5 + $0x148] sm:$0x3f] %vm522_vm9, %v2295_v19  ;;  %s5217_s29 = sld [smem:[#allocation6 + $0x3a]] }
 0x1f0   :  { %v2435_v30 = vmul.f32 %v6573_v54, %v2432_v62  ;;  %v5187_v35 = vmul.f32 %v6575_v20, %v2640_v37  ;;  %v1019_v61 = vmul.f32 %v6577_v17, %v6576_v23  ;;  %v982_v4 = vadd.f32 %v980_v25, %v974_v55  ;;  %v6588_v11 = vld [vmem:[#allocation25_spill] sm:$0xff]  ;;  %v6590_v5 = vld [vmem:[#allocation130_spill] sm:$0xff]  ;;  %v6594_v20 = vld [vmem:[#allocation42_spill] sm:$0xff] }
 0x1f1   :  { %v1013_v52 = vadd.f32 %v1011_v40, %v1005_v32  ;;  %v6578_v13 = vstv %s6570_s2  ;;  %v996_v15 = vmul.f32 %v6580_v0, %v6579_v41  ;;  %v2436_v16 = vadd.f32 %v2434_v24, %v2428_v48  ;;  %v2455_v32 = vld [vmem:[#allocation5 + $0x79] sm:$0xff]  ;;  %s5231_s2 = sld [smem:[#allocation6 + $0x3c]]  ;;  %v2277_v0 = vpop.permute.xlu0 %2276 }
 0x1f2   :  { %v5194_v46 = vmul.f32 %v6578_v13, %v2752_v49  ;;  %v2437_v22 = vadd.f32 %v2435_v30, %v2429_v42  ;;  %v6582_v47 = vstv %s6571_s26  ;;  %v6585_v62 = vstv %s6574_s17  ;;  %v2463_v13 = vld [vmem:[#allocation5 + $0x91] sm:$0xff]  ;;  %s5235_s26 = sld [smem:[#allocation6 + $0x3b]]  ;;  %2283 = vst.msk [vmem:[#allocation5 + $0x130] sm:$0x3f] %vm522_vm9, %v2277_v0 }
 0x1f3   :  { %v2442_v3 = vmul.f32 %v6582_v47, %v2439_v56  ;;  %v1027_v1 = vmul.f32 %v6585_v62, %v6584_v2  ;;  %v990_v37 = vadd.f32 %v6586_v60, %v982_v4  ;;  %v1021_v6 = vadd.f32 %v1019_v61, %v1013_v52  ;;  %v6601_v19 = vld [vmem:[#allocation96_spill] sm:$0xff]  ;;  %v6603_v62 = vld [vmem:[#allocation165_spill] sm:$0xff] }
 0x1f4   :  { %v6587_v40 = vmov %v6582_v47  ;;  %v6589_v63 = vstv %s6551_s20  ;;  %v6591_v49 = vstv %s6581_s9  ;;  %v6593_v54 = vstv %s4610_s5  ;;  %s6596_s20 = sld [smem:[#allocation142_spill]]  ;;  %s6600_s5 = sld [smem:[#allocation34_spill]] }
 0x1f5   :  { %v2443_v21 = vmul.f32 %v6587_v40, %v2440_v45  ;;  %v1004_v44 = vmul.f32 %v6589_v63, %v6588_v11  ;;  %v1035_v55 = vmul.f32 %v6591_v49, %v6590_v5  ;;  %v2444_v25 = vadd.f32 %v2442_v3, %v2436_v16  ;;  %v2456_v45 = vld [vmem:[#allocation5 + $0x81] sm:$0xff]  ;;  %v2464_v16 = vld [vmem:[#allocation5 + $0x99] sm:$0xff] }
 0x1f6   :  { %v6592_v48 = vstv %s6583_s15  ;;  %v998_v26 = vadd.f32 %v996_v15, %v990_v37  ;;  %v1029_v24 = vadd.f32 %v1027_v1, %v1021_v6  ;;  %v2450_v30 = vmul.f32 %v6593_v54, %v2447_v18  ;;  %v6608_v5 = vld [vmem:[#allocation111_spill] sm:$0xff]  ;;  %s6651_s15 = sld [smem:[#allocation103_spill]] }
 0x1f7   :  { %v5221_v56 = vmul.f32 %v6592_v48, %v2864_v59  ;;  %v2445_v42 = vadd.f32 %v2443_v21, %v2437_v22  ;;  %v6595_v23 = vstv %s6557_s21  ;;  %v1090_v61 = vstv %s5168_s16  ;;  %v6606_v21 = vld [vmem:[#allocation170_spill] sm:$0xff]  ;;  %s5296_s21 = sld [smem:[#allocation6 + $0x40]] }
 0x1f8   :  { %v1012_v17 = vmul.f32 %v6595_v23, %v6594_v20  ;;  %v6597_v4 = vmov %v6593_v54  ;;  %v6598_v59 = vstv %s6543_s19  ;;  %v1006_v15 = vadd.f32 %v1004_v44, %v998_v26  ;;  %s5248_s19 = sld [smem:[#allocation6 + $0x3d]]  ;;  %v2479_v26 = vld [vmem:[#allocation5 + $0xc1] sm:$0xff]  ;;  %v6611_v54 = vld [vmem:[#allocation188_spill] sm:$0xff]  ;;  %s6648_s16 = sld [smem:[#allocation128_spill]] }
 0x1f9   :  { %v2451_v52 = vmul.f32 %v6597_v4, %v2448_v14  ;;  %v2475_v41 = vmul.f32 %v6598_v59, %v2472_v34  ;;  %v1037_v18 = vadd.f32 %v1035_v55, %v1029_v24  ;;  %v2452_v22 = vadd.f32 %v2450_v30, %v2444_v25  ;;  %v6613_v4 = vld [vmem:[#allocation153_spill] sm:$0xff] }
 0x1fa   :  { %v6599_v47 = vstv %s4651_s13  ;;  %v6602_v8 = vstv %s6568_s11  ;;  %v6604_v1 = vstv %s6596_s20  ;;  %v1014_v40 = vadd.f32 %v1012_v17, %v1006_v15  ;;  %v2480_v17 = vld [vmem:[#allocation5 + $0xc9] sm:$0xff]  ;;  %v6615_v59 = vld [vmem:[#allocation198_spill] sm:$0xff]  ;;  %s5270_s13 = sld [smem:[#allocation6 + $0x3e]]  ;;  %s6624_s11 = sld [smem:[#allocation63_spill]] }
 0x1fb   :  { %v2458_v3 = vmul.f32 %v6599_v47, %v2455_v32  ;;  %v1020_v2 = vmul.f32 %v6602_v8, %v6601_v19  ;;  %v1051_v60 = vmul.f32 %v6604_v1, %v6603_v62  ;;  %v2453_v37 = vadd.f32 %v2451_v52, %v2445_v42  ;;  %v2488_v19 = vld [vmem:[#allocation5 + $0xe1] sm:$0xff] }
 0x1fc   :  { %v6605_v6 = vmov %v6599_v47  ;;  %v1045_v34 = vadd.f32 %v6606_v21, %v1037_v18  ;;  %v6607_v11 = vstv %s4776_s10  ;;  %v6609_v49 = vstv %s6574_s17  ;;  %s5285_s10 = sld [smem:[#allocation6 + $0x4c]]  ;;  %s6626_s17 = sld [smem:[#allocation69_spill]] }
 0x1fd   :  { %v2459_v14 = vmul.f32 %v6605_v6, %v2456_v45  ;;  %v2466_v63 = vmul.f32 %v6607_v11, %v2463_v13  ;;  %v2460_v44 = vadd.f32 %v2458_v3, %v2452_v22  ;;  %v1028_v55 = vmul.f32 %v6609_v49, %v6608_v5  ;;  %v2487_v3 = vld [vmem:[#allocation5 + $0xd9] sm:$0xff] }
 0x1fe   :  { %v6610_v25 = vmov %v6607_v11  ;;  %v2481_v24 = vstv %s5201_s0  ;;  %v6612_v30 = vstv %s6600_s5  ;;  %v1022_v45 = vadd.f32 %v1020_v2, %v1014_v40  ;;  %v2495_v11 = vld [vmem:[#allocation5 + $0xf1] sm:$0xff]  ;;  %s5323_s0 = sld [smem:[#allocation6 + $0x41]] }
 0x1ff   :  { %v2467_v32 = vmul.f32 %v6610_v25, %v2464_v16  ;;  %v2461_v48 = vadd.f32 %v2459_v14, %v2453_v37  ;;  %v1059_v42 = vmul.f32 %v6612_v30, %v6611_v54  ;;  %v1053_v20 = vadd.f32 %v1051_v60, %v1045_v34  ;;  %v2503_v54 = vld [vmem:[#allocation5 + $0x109] sm:$0xff]  ;;  %v2504_v30 = vld [vmem:[#allocation5 + $0x111] sm:$0xff] }
 0x200   :  { %v2468_v23 = vadd.f32 %v2466_v63, %v2460_v44  ;;  %v6614_v52 = vstv %s6581_s9  ;;  %v6616_v0 = vstv %s4675_s6  ;;  %v2489_v18 = vstv %s5217_s29  ;;  %v2496_v63 = vld [vmem:[#allocation5 + $0xf9] sm:$0xff]  ;;  %s6636_s9 = sld [smem:[#allocation118_spill]]  ;;  %s5350_s29 = sld [smem:[#allocation6 + $0x43]] }
 0x201   :  { %v1036_v13 = vmul.f32 %v6614_v52, %v6613_v4  ;;  %v1067_v15 = vmul.f32 %v6616_v0, %v6615_v59  ;;  %v2469_v16 = vadd.f32 %v2467_v32, %v2461_v48  ;;  %v1030_v22 = vadd.f32 %v1028_v55, %v1022_v45  ;;  %v6618_v55 = vld [vmem:[#allocation182_spill] sm:$0xff] }
 0x202   :  { %v1061_v47 = vadd.f32 %v1059_v42, %v1053_v20  ;;  %v2476_v8 = vadd.f32 %v5127_v31, %v2468_v23  ;;  %v2482_v2 = vmul.f32 %v2481_v24, %v2479_v26  ;;  %v2505_v62 = vstv %s5231_s2  ;;  %v6621_v26 = vld [vmem:[#allocation175_spill] sm:$0xff]  ;;  %s6665_s2 = sld [smem:[#allocation143_spill]] }
 0x203   :  { %v2477_v1 = vadd.f32 %v2475_v41, %v2469_v16  ;;  %v2483_v60 = vmul.f32 %v2481_v24, %v2480_v17  ;;  %v2497_v37 = vstv %s5235_s26  ;;  %v6617_v6 = vstv %s4816_s18  ;;  %v6622_v17 = vld [vmem:[#allocation189_spill] sm:$0xff]  ;;  %v2511_v0 = vld [vmem:[#allocation5 + $0x121] sm:$0xff]  ;;  %s6668_s26 = sld [smem:[#allocation151_spill]] }
 0x204   :  { %v1075_v14 = vmul.f32 %v6617_v6, %v4937_v38  ;;  %v1038_v40 = vadd.f32 %v1036_v13, %v1030_v22  ;;  %v1069_v21 = vadd.f32 %v1067_v15, %v1061_v47  ;;  %v2484_v34 = vadd.f32 %v2482_v2, %v2476_v8  ;;  %v2512_v15 = vld [vmem:[#allocation5 + $0x129] sm:$0xff] }
 0x205   :  { %v2490_v31 = vmul.f32 %v2489_v18, %v2487_v3  ;;  %v2491_v44 = vmul.f32 %v2489_v18, %v2488_v19  ;;  %v2485_v5 = vadd.f32 %v2483_v60, %v2477_v1  ;;  %v2513_v49 = vstv %s5248_s19  ;;  %v2519_v60 = vld [vmem:[#allocation5 + $0x139] sm:$0xff]  ;;  %s5429_s19 = sld [smem:[#allocation6 + $0x47]] }
 0x206   :  { %v6619_v25 = vstv %s6596_s20  ;;  %v6620_v41 = vstv %s4927_s1  ;;  %v1046_v24 = vadd.f32 %v6621_v26, %v1038_v40  ;;  %v1077_v38 = vadd.f32 %v1075_v14, %v1069_v21  ;;  %v6627_v21 = vld [vmem:[#allocation16_spill] sm:$0xff]  ;;  %v6633_v26 = vld [vmem:[#allocation26_spill] sm:$0xff]  ;;  %s5352_s20 = sld [smem:[#allocation6 + $0x42]] }
 0x207   :  { %v1052_v32 = vmul.f32 %v6619_v25, %v6618_v55  ;;  %v1083_v48 = vmul.f32 %v6620_v41, %v4987_v57  ;;  %v2492_v42 = vadd.f32 %v2490_v31, %v2484_v34  ;;  %v2493_v45 = vadd.f32 %v2491_v44, %v2485_v5  ;;  %v6631_v44 = vld [vmem:[#allocation132_spill] sm:$0xff]  ;;  %v2584_v55 = vld [vmem:[#allocation5 + $0xb2] sm:$0xff] }
 0x208   :  { %v2498_v20 = vmul.f32 %v2497_v37, %v2495_v11  ;;  %v2499_v23 = vmul.f32 %v2497_v37, %v2496_v63  ;;  %v6623_v4 = vstv %s6600_s5  ;;  %v1091_v57 = vmul.f32 %v1090_v61, %v5031_v39  ;;  %v2520_v39 = vld [vmem:[#allocation5 + $0x141] sm:$0xff]  ;;  %s5368_s5 = sld [smem:[#allocation6 + $0x44]] }
 0x209   :  { %v1060_v52 = vmul.f32 %v6623_v4, %v6622_v17  ;;  %v1054_v13 = vadd.f32 %v1052_v32, %v1046_v24  ;;  %v1085_v59 = vadd.f32 %v1083_v48, %v1077_v38  ;;  %v2506_v18 = vmul.f32 %v2505_v62, %v2503_v54  ;;  %v6629_v11 = vld [vmem:[#allocation208_spill] sm:$0xff] }
 0x20a   :  { %v2507_v16 = vmul.f32 %v2505_v62, %v2504_v30  ;;  %v2500_v22 = vadd.f32 %v2498_v20, %v2492_v42  ;;  %v2501_v47 = vadd.f32 %v2499_v23, %v2493_v45  ;;  %v6625_v3 = vstv %s4675_s6  ;;  %s6632_s6 = sld [smem:[#allocation75_spill]]  ;;  %v2535_v45 = vld [vmem:[#allocation5 + $0x1a] sm:$0xff]  ;;  %v2536_v20 = vld [vmem:[#allocation5 + $0x22] sm:$0xff] }
 0x20b   :  { %v1068_v19 = vmul.f32 %v6625_v3, %v4905_v7  ;;  %v1062_v8 = vadd.f32 %v1060_v52, %v1054_v13  ;;  %v1093_v2 = vadd.f32 %v1091_v57, %v1085_v59  ;;  %v2521_v1 = vstv %s5270_s13  ;;  %v6639_v59 = vld [vmem:[#allocation37_spill] sm:$0xff]  ;;  %s6696_s13 = sld [smem:[#allocation70_spill]] }
 0x20c   :  { %v2508_v37 = vadd.f32 %v2506_v18, %v2500_v22  ;;  %v2509_v6 = vadd.f32 %v2507_v16, %v2501_v47  ;;  %v2514_v14 = vmul.f32 %v2513_v49, %v2511_v0  ;;  %v2515_v40 = vmul.f32 %v2513_v49, %v2512_v15  ;;  %v2543_v16 = vld [vmem:[#allocation5 + $0x32] sm:$0xff]  ;;  %v2544_v22 = vld [vmem:[#allocation5 + $0x3a] sm:$0xff] }
 0x20d   :  { %v6628_v62 = vstv %s6624_s11  ;;  %v6630_v63 = vstv %s4816_s18  ;;  %v1070_v31 = vadd.f32 %v1068_v19, %v1062_v8  ;;  %v1101_v5 = vadd.f32 %v6631_v44, %v1093_v2  ;;  %s6637_s18 = sld [smem:[#allocation86_spill]]  ;;  %v6645_v2 = vld [vmem:[#allocation161_spill] sm:$0xff]  ;;  %v6652_v44 = vld [vmem:[#allocation21_spill] sm:$0xff] }
 0x20e   :  { %v1107_v34 = vmul.f32 %v6628_v62, %v6627_v21  ;;  %v1076_v7 = vmul.f32 %v6630_v63, %v6629_v11  ;;  %v2522_v25 = vmul.f32 %v2521_v1, %v2519_v60  ;;  %v2523_v32 = vmul.f32 %v2521_v1, %v2520_v39  ;;  %v6646_v39 = vld [vmem:[#allocation79_spill] sm:$0xff] }
 0x20f   :  { %v2516_v41 = vadd.f32 %v2514_v14, %v2508_v37  ;;  %v2517_v48 = vadd.f32 %v2515_v40, %v2509_v6  ;;  %v6634_v49 = vstv %s6626_s17  ;;  %v6635_v38 = vstv %s4927_s1  ;;  %s6641_s1 = sld [smem:[#allocation123_spill]]  ;;  %v2551_v14 = vld [vmem:[#allocation5 + $0x4a] sm:$0xff]  ;;  %v2552_v40 = vld [vmem:[#allocation5 + $0x52] sm:$0xff] }
 0x210   :  { %v1115_v24 = vmul.f32 %v6634_v49, %v6633_v26  ;;  %v1084_v54 = vmul.f32 %v6635_v38, %v5001_v43  ;;  %v1078_v30 = vadd.f32 %v1076_v7, %v1070_v31  ;;  %v1109_v42 = vadd.f32 %v1107_v34, %v1101_v5  ;;  %v2559_v49 = vld [vmem:[#allocation5 + $0x62] sm:$0xff] }
 0x211   :  { %v1202_v23 = vstv %s5285_s10  ;;  %v2524_v17 = vadd.f32 %v2522_v25, %v2516_v41  ;;  %v6638_v4 = vstv %s6544_s28  ;;  %v2525_v13 = vadd.f32 %v2523_v32, %v2517_v48  ;;  %s6643_s28 = sld [smem:[#allocation92_spill]]  ;;  %v6656_v41 = vld [vmem:[#allocation144_spill] sm:$0xff]  ;;  %s6717_s10 = sld [smem:[#allocation129_spill]] }
 0x212   :  { %v5315_v52 = vmul.f32 %v6638_v4, %v2584_v55  ;;  %v6640_v57 = vstv %s6632_s6  ;;  %v1086_v15 = vadd.f32 %v1084_v54, %v1078_v30  ;;  %v1092_v43 = vmul.f32 %v1090_v61, %v5033_v29  ;;  %v6654_v55 = vld [vmem:[#allocation106_spill] sm:$0xff] }
 0x213   :  { %v1123_v0 = vmul.f32 %v6640_v57, %v6639_v59  ;;  %v1117_v18 = vadd.f32 %v1115_v24, %v1109_v42  ;;  %v6642_v47 = vstv %s6636_s9  ;;  %v2532_v1 = vadd.f32 %v6645_v2, %v2524_v17  ;;  %v2560_v24 = vld [vmem:[#allocation5 + $0x6a] sm:$0xff]  ;;  %v6661_v59 = vld [vmem:[#allocation131_spill] sm:$0xff]  ;;  %s5485_s9 = sld [smem:[#allocation6 + $0x49]] }
 0x214   :  { %v2538_v3 = vmul.f32 %v6642_v47, %v2535_v45  ;;  %v6644_v19 = vmov %v6642_v47  ;;  %v2533_v60 = vadd.f32 %v5174_v33, %v2525_v13  ;;  %v6647_v37 = vstv %s6637_s18  ;;  %v6659_v17 = vld [vmem:[#allocation27_spill] sm:$0xff] }
 0x215   :  { %v2539_v8 = vmul.f32 %v6644_v19, %v2536_v20  ;;  %v1131_v6 = vmul.f32 %v6647_v37, %v6646_v39  ;;  %v1094_v29 = vadd.f32 %v1092_v43, %v1086_v15  ;;  %v1125_v61 = vadd.f32 %v1123_v0, %v1117_v18  ;;  %v2567_v18 = vld [vmem:[#allocation5 + $0x7a] sm:$0xff] }
 0x216   :  { %v2593_v21 = vstv %s5296_s21  ;;  %v6649_v62 = vstv %s6641_s1  ;;  %v2540_v7 = vadd.f32 %v2538_v3, %v2532_v1  ;;  %v6653_v33 = vstv %s6624_s11  ;;  %v6666_v1 = vld [vmem:[#allocation43_spill] sm:$0xff]  ;;  %s6705_s11 = sld [smem:[#allocation119_spill]]  ;;  %s5456_s21 = sld [smem:[#allocation6 + $0x48]] }
 0x217   :  { %v2546_v34 = vmul.f32 %v6649_v62, %v2543_v16  ;;  %v6650_v11 = vmov %v6649_v62  ;;  %v2541_v31 = vadd.f32 %v2539_v8, %v2533_v60  ;;  %v1108_v5 = vmul.f32 %v6653_v33, %v6652_v44  ;;  %v2568_v16 = vld [vmem:[#allocation5 + $0x82] sm:$0xff]  ;;  %s6737_s1 = sld [smem:[#allocation54_spill]] }
 0x218   :  { %v2547_v63 = vmul.f32 %v6650_v11, %v2544_v22  ;;  %v6655_v25 = vstv %s6643_s28  ;;  %v1102_v48 = vadd.f32 %v6656_v41, %v1094_v29  ;;  %v1133_v26 = vadd.f32 %v1131_v6, %v1125_v61  ;;  %v2575_v29 = vld [vmem:[#allocation5 + $0x92] sm:$0xff]  ;;  %v2576_v61 = vld [vmem:[#allocation5 + $0x9a] sm:$0xff] }
 0x219   :  { %v1139_v32 = vmul.f32 %v6655_v25, %v6654_v55  ;;  %v6657_v38 = vstv %s6648_s16  ;;  %v2548_v45 = vadd.f32 %v2546_v34, %v2540_v7  ;;  %v6660_v4 = vstv %s6626_s17  ;;  %v6675_v41 = vld [vmem:[#allocation171_spill] sm:$0xff]  ;;  %s6720_s17 = sld [smem:[#allocation104_spill]]  ;;  %s5532_s16 = sld [smem:[#allocation6 + $0x4c]] }
 0x21a   :  { %v2554_v54 = vmul.f32 %v6657_v38, %v2551_v14  ;;  %v6658_v30 = vmov %v6657_v38  ;;  %v2549_v20 = vadd.f32 %v2547_v63, %v2541_v31  ;;  %v1116_v13 = vmul.f32 %v6660_v4, %v6659_v17  ;;  %v6671_v31 = vld [vmem:[#allocation97_spill] sm:$0xff] }
 0x21b   :  { %v2555_v42 = vmul.f32 %v6658_v30, %v2552_v40  ;;  %v6662_v57 = vstv %s6651_s15  ;;  %v1110_v15 = vadd.f32 %v1108_v5, %v1102_v48  ;;  %v1141_v43 = vadd.f32 %v1139_v32, %v1133_v26  ;;  %v6673_v5 = vld [vmem:[#allocation166_spill] sm:$0xff]  ;;  %v6680_v17 = vld [vmem:[#allocation190_spill] sm:$0xff] }
 0x21c   :  { %v1147_v0 = vmul.f32 %v6662_v57, %v6661_v59  ;;  %v6663_v22 = vstv %s4612_s14  ;;  %v2556_v8 = vadd.f32 %v2554_v54, %v2548_v45  ;;  %v6667_v60 = vstv %s6632_s6  ;;  %s5399_s14 = sld [smem:[#allocation6 + $0x45]]  ;;  %s5483_s6 = sld [smem:[#allocation6 + $0x4a]] }
 0x21d   :  { %v2562_v47 = vmul.f32 %v6663_v22, %v2559_v49  ;;  %v6664_v3 = vmov %v6663_v22  ;;  %v2557_v2 = vadd.f32 %v2555_v42, %v2549_v20  ;;  %v1124_v39 = vmul.f32 %v6667_v60, %v6666_v1  ;;  %v6678_v42 = vld [vmem:[#allocation112_spill] sm:$0xff] }
 0x21e   :  { %v2563_v19 = vmul.f32 %v6664_v3, %v2560_v24  ;;  %v1118_v37 = vadd.f32 %v1116_v13, %v1110_v15  ;;  %v1149_v6 = vadd.f32 %v1147_v0, %v1141_v43  ;;  %v2601_v14 = vstv %s5323_s0  ;;  %v2591_v0 = vld [vmem:[#allocation5 + $0xc2] sm:$0xff]  ;;  %v2592_v15 = vld [vmem:[#allocation5 + $0xca] sm:$0xff]  ;;  %s6738_s0 = sld [smem:[#allocation152_spill]] }
 0x21f   :  { %v6669_v40 = vstv %s4667_s22  ;;  %v2564_v63 = vadd.f32 %v2562_v47, %v2556_v8  ;;  %v6672_v44 = vstv %s6637_s18  ;;  %v6674_v55 = vstv %s6665_s2  ;;  %v6682_v47 = vld [vmem:[#allocation154_spill] sm:$0xff]  ;;  %s5418_s22 = sld [smem:[#allocation6 + $0x53]]  ;;  %s6734_s18 = sld [smem:[#allocation146_spill]] }
 0x220   :  { %v2570_v62 = vmul.f32 %v6669_v40, %v2567_v18  ;;  %v6670_v34 = vmov %v6669_v40  ;;  %v2565_v7 = vadd.f32 %v2563_v19, %v2557_v2  ;;  %v1132_v33 = vmul.f32 %v6672_v44, %v6671_v31  ;;  %v6684_v8 = vld [vmem:[#allocation199_spill] sm:$0xff]  ;;  %v2607_v44 = vld [vmem:[#allocation5 + $0xf2] sm:$0xff] }
 0x221   :  { %v2571_v11 = vmul.f32 %v6670_v34, %v2568_v16  ;;  %v1163_v25 = vmul.f32 %v6674_v55, %v6673_v5  ;;  %v1126_v32 = vadd.f32 %v1124_v39, %v1118_v37  ;;  %v1157_v48 = vadd.f32 %v6675_v41, %v1149_v6  ;;  %v2599_v37 = vld [vmem:[#allocation5 + $0xda] sm:$0xff]  ;;  %v2600_v6 = vld [vmem:[#allocation5 + $0xe2] sm:$0xff]  ;;  %v6686_v34 = vld [vmem:[#allocation209_spill] sm:$0xff] }
 0x222   :  { %v6676_v26 = vstv %s4778_s24  ;;  %v2572_v54 = vadd.f32 %v2570_v62, %v2564_v63  ;;  %v6679_v45 = vstv %s6643_s28  ;;  %v6681_v4 = vstv %s6668_s26  ;;  %s6693_s24 = sld [smem:[#allocation64_spill]]  ;;  %s5501_s28 = sld [smem:[#allocation6 + $0x4b]] }
 0x223   :  { %v2578_v49 = vmul.f32 %v6676_v26, %v2575_v29  ;;  %v6677_v24 = vmov %v6676_v26  ;;  %v2573_v30 = vadd.f32 %v2571_v11, %v2565_v7  ;;  %v1140_v20 = vmul.f32 %v6679_v45, %v6678_v42  ;;  %s6777_s26 = sld [smem:[#allocation77_spill]] }
 0x224   :  { %v2579_v38 = vmul.f32 %v6677_v24, %v2576_v61  ;;  %v1171_v13 = vmul.f32 %v6681_v4, %v6680_v17  ;;  %v1134_v59 = vadd.f32 %v1132_v33, %v1126_v32  ;;  %v1165_v57 = vadd.f32 %v1163_v25, %v1157_v48  ;;  %v2608_v33 = vld [vmem:[#allocation5 + $0xfa] sm:$0xff]  ;;  %v6688_v48 = vld [vmem:[#allocation183_spill] sm:$0xff]  ;;  %v6692_v17 = vld [vmem:[#allocation191_spill] sm:$0xff] }
 0x225   :  { %v2617_v43 = vstv %s5350_s29  ;;  %v2609_v18 = vstv %s5352_s20  ;;  %v2580_v16 = vadd.f32 %v2578_v49, %v2572_v54  ;;  %v6683_v3 = vstv %s6651_s15  ;;  %v6691_v49 = vld [vmem:[#allocation176_spill] sm:$0xff]  ;;  %s5551_s15 = sld [smem:[#allocation6 + $0x5a]]  ;;  %s6768_s29 = sld [smem:[#allocation65_spill]] }
 0x226   :  { %v2581_v22 = vadd.f32 %v2579_v38, %v2573_v30  ;;  %v1148_v19 = vmul.f32 %v6683_v3, %v6682_v47  ;;  %v6685_v2 = vstv %s4677_s23  ;;  %v1142_v60 = vadd.f32 %v1140_v20, %v1134_v59  ;;  %v2615_v54 = vld [vmem:[#allocation5 + $0x10a] sm:$0xff]  ;;  %v2616_v30 = vld [vmem:[#allocation5 + $0x112] sm:$0xff]  ;;  %s6701_s23 = sld [smem:[#allocation76_spill]]  ;;  %s5562_s20 = sld [smem:[#allocation6 + $0x4f]] }
 0x227   :  { %v1179_v1 = vmul.f32 %v6685_v2, %v6684_v8  ;;  %v1173_v39 = vadd.f32 %v1171_v13, %v1165_v57  ;;  %v2594_v29 = vmul.f32 %v2593_v21, %v2591_v0  ;;  %v2595_v61 = vmul.f32 %v2593_v21, %v2592_v15  ;;  %v2623_v0 = vld [vmem:[#allocation5 + $0x122] sm:$0xff]  ;;  %v2624_v15 = vld [vmem:[#allocation5 + $0x12a] sm:$0xff] }
 0x228   :  { %v2588_v40 = vadd.f32 %v5131_v28, %v2580_v16  ;;  %v2589_v62 = vadd.f32 %v5315_v52, %v2581_v22  ;;  %v6687_v11 = vstv %s4827_s27  ;;  %v1150_v7 = vadd.f32 %v1148_v19, %v1142_v60  ;;  %s6706_s27 = sld [smem:[#allocation87_spill]] }
 0x229   :  { %v1187_v63 = vmul.f32 %v6687_v11, %v6686_v34  ;;  %v1181_v31 = vadd.f32 %v1179_v1, %v1173_v39  ;;  %v2625_v5 = vstv %s5368_s5  ;;  %v2602_v55 = vmul.f32 %v2601_v14, %v2599_v37  ;;  %v2631_v39 = vld [vmem:[#allocation5 + $0x13a] sm:$0xff]  ;;  %s6782_s5 = sld [smem:[#allocation120_spill]] }
 0x22a   :  { %v2603_v25 = vmul.f32 %v2601_v14, %v2600_v6  ;;  %v2596_v32 = vadd.f32 %v2594_v29, %v2588_v40  ;;  %v2597_v41 = vadd.f32 %v2595_v61, %v2589_v62  ;;  %v6689_v21 = vstv %s6665_s2  ;;  %v6697_v40 = vld [vmem:[#allocation17_spill] sm:$0xff]  ;;  %s6771_s2 = sld [smem:[#allocation71_spill]] }
 0x22b   :  { %v1164_v26 = vmul.f32 %v6689_v21, %v6688_v48  ;;  %v6690_v28 = vstv %s4947_s25  ;;  %v1158_v24 = vadd.f32 %v6691_v49, %v1150_v7  ;;  %v1189_v38 = vadd.f32 %v1187_v63, %v1181_v31  ;;  %v6699_v34 = vld [vmem:[#allocation210_spill] sm:$0xff]  ;;  %v6700_v31 = vld [vmem:[#allocation133_spill] sm:$0xff]  ;;  %v6702_v48 = vld [vmem:[#allocation28_spill] sm:$0xff]  ;;  %s6710_s25 = sld [smem:[#allocation124_spill]] }
 0x22c   :  { %v1195_v52 = vmul.f32 %v6690_v28, %v4989_v27  ;;  %v2610_v42 = vmul.f32 %v2609_v18, %v2607_v44  ;;  %v2611_v45 = vmul.f32 %v2609_v18, %v2608_v33  ;;  %v2604_v14 = vadd.f32 %v2602_v55, %v2596_v32  ;;  %v6694_v18 = vld [vmem:[#allocation204_spill] sm:$0xff]  ;;  %v2696_v33 = vld [vmem:[#allocation5 + $0xb3] sm:$0xff] }
 0x22d   :  { %v2605_v20 = vadd.f32 %v2603_v25, %v2597_v41  ;;  %v1172_v13 = vmul.f32 %v6681_v4, %v6692_v17  ;;  %v1166_v59 = vadd.f32 %v1164_v26, %v1158_v24  ;;  %v1203_v27 = vmul.f32 %v1202_v23, %v5035_v12  ;;  %v2632_v12 = vld [vmem:[#allocation5 + $0x142] sm:$0xff] }
 0x22e   :  { %v1197_v57 = vadd.f32 %v1195_v52, %v1189_v38  ;;  %v2618_v16 = vmul.f32 %v2617_v43, %v2615_v54  ;;  %v2619_v22 = vmul.f32 %v2617_v43, %v2616_v30  ;;  %v2612_v47 = vadd.f32 %v2610_v42, %v2604_v14  ;;  %v2647_v24 = vld [vmem:[#allocation5 + $0x1b] sm:$0xff]  ;;  %v2648_v38 = vld [vmem:[#allocation5 + $0x23] sm:$0xff] }
 0x22f   :  { %v2613_v3 = vadd.f32 %v2611_v45, %v2605_v20  ;;  %v6695_v19 = vmov %v6685_v2  ;;  %v1174_v2 = vadd.f32 %v1172_v13, %v1166_v59  ;;  %v2633_v60 = vstv %s5399_s14  ;;  %v6708_v20 = vld [vmem:[#allocation38_spill] sm:$0xff]  ;;  %s6783_s14 = sld [smem:[#allocation88_spill]] }
 0x230   :  { %v1180_v8 = vmul.f32 %v6695_v19, %v6694_v18  ;;  %v1205_v1 = vadd.f32 %v1203_v27, %v1197_v57  ;;  %v2620_v37 = vadd.f32 %v2618_v16, %v2612_v47  ;;  %v2626_v6 = vmul.f32 %v2625_v5, %v2623_v0  ;;  %v2655_v57 = vld [vmem:[#allocation5 + $0x33] sm:$0xff]  ;;  %v2656_v27 = vld [vmem:[#allocation5 + $0x3b] sm:$0xff] }
 0x231   :  { %v2621_v29 = vadd.f32 %v2619_v22, %v2613_v3  ;;  %v2627_v61 = vmul.f32 %v2625_v5, %v2624_v15  ;;  %v6698_v43 = vstv %s6693_s24  ;;  %v1188_v63 = vmul.f32 %v6687_v11, %v6699_v34  ;;  %v6714_v47 = vld [vmem:[#allocation162_spill] sm:$0xff]  ;;  %v6715_v19 = vld [vmem:[#allocation81_spill] sm:$0xff]  ;;  %v6723_v34 = vld [vmem:[#allocation107_spill] sm:$0xff] }
 0x232   :  { %v1219_v62 = vmul.f32 %v6698_v43, %v6697_v40  ;;  %v1182_v7 = vadd.f32 %v1180_v8, %v1174_v2  ;;  %v1213_v44 = vadd.f32 %v6700_v31, %v1205_v1  ;;  %v2634_v55 = vmul.f32 %v2633_v60, %v2631_v39  ;;  %v2663_v1 = vld [vmem:[#allocation5 + $0x4b] sm:$0xff]  ;;  %v6721_v43 = vld [vmem:[#allocation22_spill] sm:$0xff] }
 0x233   :  { %v2635_v25 = vmul.f32 %v2633_v60, %v2632_v12  ;;  %v2628_v32 = vadd.f32 %v2626_v6, %v2620_v37  ;;  %v2629_v41 = vadd.f32 %v2627_v61, %v2621_v29  ;;  %v6703_v5 = vstv %s6696_s13  ;;  %v2664_v60 = vld [vmem:[#allocation5 + $0x53] sm:$0xff] }
 0x234   :  { %v1227_v21 = vmul.f32 %v6703_v5, %v6702_v48  ;;  %v6704_v26 = vmov %v6690_v28  ;;  %v1190_v52 = vadd.f32 %v1188_v63, %v1182_v7  ;;  %v1221_v49 = vadd.f32 %v1219_v62, %v1213_v44  ;;  %v6725_v7 = vld [vmem:[#allocation145_spill] sm:$0xff] }
 0x235   :  { %v1196_v28 = vmul.f32 %v6704_v26, %v5003_v9  ;;  %v1314_v54 = vstv %s5418_s22  ;;  %v2636_v30 = vadd.f32 %v2634_v55, %v2628_v32  ;;  %v6707_v42 = vstv %s6547_s30  ;;  %s6712_s30 = sld [smem:[#allocation93_spill]]  ;;  %v2672_v55 = vld [vmem:[#allocation5 + $0x6b] sm:$0xff]  ;;  %v6728_v26 = vld [vmem:[#allocation29_spill] sm:$0xff]  ;;  %s6795_s22 = sld [smem:[#allocation134_spill]] }
 0x236   :  { %v5448_v45 = vmul.f32 %v6707_v42, %v2696_v33  ;;  %v2637_v14 = vadd.f32 %v2635_v25, %v2629_v41  ;;  %v6709_v17 = vstv %s6701_s23  ;;  %v1204_v9 = vmul.f32 %v1202_v23, %v5037_v53  ;;  %v2671_v33 = vld [vmem:[#allocation5 + $0x63] sm:$0xff] }
 0x237   :  { %v1235_v4 = vmul.f32 %v6709_v17, %v6708_v20  ;;  %v1198_v13 = vadd.f32 %v1196_v28, %v1190_v52  ;;  %v1229_v59 = vadd.f32 %v1227_v21, %v1221_v49  ;;  %v6711_v0 = vstv %s6705_s11  ;;  %v6730_v49 = vld [vmem:[#allocation135_spill] sm:$0xff]  ;;  %v2680_v20 = vld [vmem:[#allocation5 + $0x83] sm:$0xff]  ;;  %s5618_s11 = sld [smem:[#allocation6 + $0x50]] }
 0x238   :  { %v2650_v15 = vmul.f32 %v6711_v0, %v2647_v24  ;;  %v6713_v16 = vmov %v6711_v0  ;;  %v2644_v3 = vadd.f32 %v6714_v47, %v2636_v30  ;;  %v2645_v18 = vadd.f32 %v5187_v35, %v2637_v14  ;;  %v2679_v14 = vld [vmem:[#allocation5 + $0x7b] sm:$0xff]  ;;  %v2687_v47 = vld [vmem:[#allocation5 + $0x93] sm:$0xff] }
 0x239   :  { %v2651_v22 = vmul.f32 %v6713_v16, %v2648_v38  ;;  %v6716_v8 = vstv %s6706_s27  ;;  %v1206_v53 = vadd.f32 %v1204_v9, %v1198_v13  ;;  %v1237_v23 = vadd.f32 %v1235_v4, %v1229_v59 }
 0x23a   :  { %v1243_v2 = vmul.f32 %v6716_v8, %v6715_v19  ;;  %v2705_v39 = vstv %s5429_s19  ;;  %v6718_v12 = vstv %s6710_s25  ;;  %v2652_v61 = vadd.f32 %v2650_v15, %v2644_v3  ;;  %v2688_v3 = vld [vmem:[#allocation5 + $0x9b] sm:$0xff]  ;;  %s6798_s19 = sld [smem:[#allocation110_spill]]  ;;  %s6814_s25 = sld [smem:[#allocation147_spill]] }
 0x23b   :  { %v2658_v37 = vmul.f32 %v6718_v12, %v2655_v57  ;;  %v6719_v6 = vmov %v6718_v12  ;;  %v2653_v40 = vadd.f32 %v2651_v22, %v2645_v18  ;;  %v6722_v35 = vstv %s6693_s24  ;;  %s5589_s24 = sld [smem:[#allocation6 + $0x4e]] }
 0x23c   :  { %v2659_v29 = vmul.f32 %v6719_v6, %v2656_v27  ;;  %v1220_v62 = vmul.f32 %v6722_v35, %v6721_v43  ;;  %v6724_v11 = vstv %s6712_s30  ;;  %v1214_v31 = vadd.f32 %v6725_v7, %v1206_v53  ;;  %v6735_v27 = vld [vmem:[#allocation45_spill] sm:$0xff]  ;;  %v6743_v6 = vld [vmem:[#allocation167_spill] sm:$0xff]  ;;  %v6745_v43 = vld [vmem:[#allocation172_spill] sm:$0xff] }
 0x23d   :  { %v1251_v63 = vmul.f32 %v6724_v11, %v6723_v34  ;;  %v1245_v44 = vadd.f32 %v1243_v2, %v1237_v23  ;;  %v6726_v25 = vstv %s6717_s10  ;;  %v2660_v5 = vadd.f32 %v2658_v37, %v2652_v61  ;;  %s5634_s10 = sld [smem:[#allocation6 + $0x52]] }
 0x23e   :  { %v2666_v32 = vmul.f32 %v6726_v25, %v2663_v1  ;;  %v6727_v41 = vmov %v6726_v25  ;;  %v2661_v21 = vadd.f32 %v2659_v29, %v2653_v40  ;;  %v6729_v28 = vstv %s6696_s13  ;;  %v6751_v25 = vld [vmem:[#allocation192_spill] sm:$0xff]  ;;  %s6804_s13 = sld [smem:[#allocation35_spill]] }
 0x23f   :  { %v2667_v48 = vmul.f32 %v6727_v41, %v2664_v60  ;;  %v1228_v52 = vmul.f32 %v6729_v28, %v6728_v26  ;;  %v6731_v24 = vstv %s6720_s17  ;;  %v1222_v30 = vadd.f32 %v1220_v62, %v1214_v31  ;;  %v6741_v60 = vld [vmem:[#allocation99_spill] sm:$0xff] }
 0x240   :  { %v1259_v38 = vmul.f32 %v6731_v24, %v6730_v49  ;;  %v1253_v42 = vadd.f32 %v1251_v63, %v1245_v44  ;;  %v6732_v17 = vstv %s4620_s3  ;;  %v2668_v59 = vadd.f32 %v2666_v32, %v2660_v5  ;;  %s6747_s3 = sld [smem:[#allocation49_spill]]  ;;  %v6749_v44 = vld [vmem:[#allocation114_spill] sm:$0xff]  ;;  %v2704_v26 = vld [vmem:[#allocation5 + $0xcb] sm:$0xff] }
 0x241   :  { %v2674_v4 = vmul.f32 %v6732_v17, %v2671_v33  ;;  %v6733_v13 = vmov %v6732_v17  ;;  %v2669_v57 = vadd.f32 %v2667_v48, %v2661_v21  ;;  %v6736_v0 = vstv %s6701_s23  ;;  %v2703_v21 = vld [vmem:[#allocation5 + $0xc3] sm:$0xff]  ;;  %s5616_s23 = sld [smem:[#allocation6 + $0x51]] }
 0x242   :  { %v2675_v9 = vmul.f32 %v6733_v13, %v2672_v55  ;;  %v1236_v15 = vmul.f32 %v6736_v0, %v6735_v27  ;;  %v1230_v16 = vadd.f32 %v1228_v52, %v1222_v30  ;;  %v1261_v22 = vadd.f32 %v1259_v38, %v1253_v42  ;;  %v6754_v38 = vld [vmem:[#allocation155_spill] sm:$0xff] }
 0x243   :  { %v2713_v18 = vstv %s5456_s21  ;;  %v6739_v19 = vstv %s4745_s8  ;;  %v2676_v23 = vadd.f32 %v2674_v4, %v2668_v59  ;;  %v6742_v12 = vstv %s6706_s27  ;;  %s6753_s8 = sld [smem:[#allocation187_spill]]  ;;  %v2712_v59 = vld [vmem:[#allocation5 + $0xe3] sm:$0xff]  ;;  %s6811_s27 = sld [smem:[#allocation52_spill]] }
 0x244   :  { %v2682_v8 = vmul.f32 %v6739_v19, %v2679_v14  ;;  %v6740_v2 = vmov %v6739_v19  ;;  %v2677_v1 = vadd.f32 %v2675_v9, %v2669_v57  ;;  %v1244_v37 = vmul.f32 %v6742_v12, %v6741_v60  ;;  %v6756_v14 = vld [vmem:[#allocation200_spill] sm:$0xff]  ;;  %v2711_v9 = vld [vmem:[#allocation5 + $0xdb] sm:$0xff]  ;;  %s6817_s21 = sld [smem:[#allocation180_spill]] }
 0x245   :  { %v2683_v53 = vmul.f32 %v6740_v2, %v2680_v20  ;;  %v6744_v29 = vstv %s6734_s18  ;;  %v1238_v40 = vadd.f32 %v1236_v15, %v1230_v16  ;;  %v1269_v35 = vadd.f32 %v6745_v43, %v1261_v22  ;;  %v6758_v16 = vld [vmem:[#allocation211_spill] sm:$0xff]  ;;  %s5684_s18 = sld [smem:[#allocation6 + $0x61]] }
 0x246   :  { %v1275_v61 = vmul.f32 %v6744_v29, %v6743_v6  ;;  %v6746_v62 = vstv %s6737_s1  ;;  %v2684_v7 = vadd.f32 %v2682_v8, %v2676_v23  ;;  %v6750_v33 = vstv %s6712_s30  ;;  %v2719_v8 = vld [vmem:[#allocation5 + $0xf3] sm:$0xff]  ;;  %v2720_v2 = vld [vmem:[#allocation5 + $0xfb] sm:$0xff]  ;;  %s6818_s30 = sld [smem:[#allocation117_spill]]  ;;  %s6846_s1 = sld [smem:[#allocation66_spill]] }
 0x247   :  { %v2690_v34 = vmul.f32 %v6746_v62, %v2687_v47  ;;  %v6748_v11 = vmov %v6746_v62  ;;  %v2685_v31 = vadd.f32 %v2683_v53, %v2677_v1  ;;  %v1252_v55 = vmul.f32 %v6750_v33, %v6749_v44  ;;  %v2728_v62 = vld [vmem:[#allocation5 + $0x113] sm:$0xff] }
 0x248   :  { %v2691_v63 = vmul.f32 %v6748_v11, %v2688_v3  ;;  %v6752_v32 = vstv %s6738_s0  ;;  %v1246_v48 = vadd.f32 %v1244_v37, %v1238_v40  ;;  %v1277_v5 = vadd.f32 %v1275_v61, %v1269_v35  ;;  %v6760_v37 = vld [vmem:[#allocation184_spill] sm:$0xff]  ;;  %v6764_v61 = vld [vmem:[#allocation177_spill] sm:$0xff]  ;;  %s5695_s0 = sld [smem:[#allocation6 + $0x56]] }
 0x249   :  { %v1283_v41 = vmul.f32 %v6752_v32, %v6751_v25  ;;  %v2729_v28 = vstv %s5483_s6  ;;  %v2721_v52 = vstv %s5485_s9  ;;  %v2692_v49 = vadd.f32 %v2690_v34, %v2684_v7  ;;  %v2727_v35 = vld [vmem:[#allocation5 + $0x10b] sm:$0xff]  ;;  %v6765_v7 = vld [vmem:[#allocation193_spill] sm:$0xff]  ;;  %v6767_v25 = vld [vmem:[#allocation223_spill] sm:$0xff]  ;;  %s6833_s6 = sld [smem:[#allocation55_spill]] }
 0x24a   :  { %v2693_v24 = vadd.f32 %v2691_v63, %v2685_v31  ;;  %v6755_v30 = vstv %s6720_s17  ;;  %v6757_v20 = vstv %s6747_s3  ;;  %v1254_v4 = vadd.f32 %v1252_v55, %v1246_v48  ;;  %v2736_v48 = vld [vmem:[#allocation5 + $0x12b] sm:$0xff]  ;;  %s6827_s17 = sld [smem:[#allocation50_spill]]  ;;  %s5665_s9 = sld [smem:[#allocation6 + $0x53]] }
 0x24b   :  { %v1260_v42 = vmul.f32 %v6755_v30, %v6754_v38  ;;  %v1291_v17 = vmul.f32 %v6757_v20, %v6756_v14  ;;  %v1285_v13 = vadd.f32 %v1283_v41, %v1277_v5  ;;  %v2706_v57 = vmul.f32 %v2705_v39, %v2703_v21  ;;  %v2735_v41 = vld [vmem:[#allocation5 + $0x123] sm:$0xff]  ;;  %s6854_s3 = sld [smem:[#allocation60_spill]] }
 0x24c   :  { %v2707_v27 = vmul.f32 %v2705_v39, %v2704_v26  ;;  %v2700_v0 = vadd.f32 %v5139_v36, %v2692_v49  ;;  %v2701_v15 = vadd.f32 %v5448_v45, %v2693_v24  ;;  %v6759_v22 = vstv %s6753_s8  ;;  %v6762_v36 = vld [vmem:[#allocation217_spill] sm:$0xff]  ;;  %s6856_s8 = sld [smem:[#allocation80_spill]] }
 0x24d   :  { %v1299_v47 = vmul.f32 %v6759_v22, %v6758_v16  ;;  %v1262_v3 = vadd.f32 %v1260_v42, %v1254_v4  ;;  %v1293_v19 = vadd.f32 %v1291_v17, %v1285_v13  ;;  %v2737_v53 = vstv %s5501_s28  ;;  %v2744_v17 = vld [vmem:[#allocation5 + $0x143] sm:$0xff]  ;;  %s6849_s28 = sld [smem:[#allocation72_spill]] }
 0x24e   :  { %v2714_v23 = vmul.f32 %v2713_v18, %v2711_v9  ;;  %v2715_v1 = vmul.f32 %v2713_v18, %v2712_v59  ;;  %v2708_v60 = vadd.f32 %v2706_v57, %v2700_v0  ;;  %v2709_v12 = vadd.f32 %v2707_v27, %v2701_v15  ;;  %v6772_v57 = vld [vmem:[#allocation18_spill] sm:$0xff]  ;;  %v6774_v0 = vld [vmem:[#allocation212_spill] sm:$0xff] }
 0x24f   :  { %v6761_v39 = vmov %v6744_v29  ;;  %v6763_v29 = vstv %s4963_s12  ;;  %v1270_v40 = vadd.f32 %v6764_v61, %v1262_v3  ;;  %v1301_v43 = vadd.f32 %v1299_v47, %v1293_v19  ;;  %v6776_v47 = vld [vmem:[#allocation138_spill] sm:$0xff]  ;;  %v2808_v19 = vld [vmem:[#allocation5 + $0xb4] sm:$0xff]  ;;  %s6788_s12 = sld [smem:[#allocation125_spill]] }
 0x250   :  { %v1276_v6 = vmul.f32 %v6761_v39, %v6760_v37  ;;  %v1307_v45 = vmul.f32 %v6763_v29, %v6762_v36  ;;  %v2722_v34 = vmul.f32 %v2721_v52, %v2719_v8  ;;  %v2723_v11 = vmul.f32 %v2721_v52, %v2720_v2  ;;  %v6769_v52 = vld [vmem:[#allocation205_spill] sm:$0xff]  ;;  %v6780_v37 = vld [vmem:[#allocation220_spill] sm:$0xff] }
 0x251   :  { %v2716_v18 = vadd.f32 %v2714_v23, %v2708_v60  ;;  %v2717_v63 = vadd.f32 %v2715_v1, %v2709_v12  ;;  %v6766_v31 = vmov %v6752_v32  ;;  %v1315_v32 = vmul.f32 %v1314_v54, %v6767_v25  ;;  %v6778_v60 = vld [vmem:[#allocation30_spill] sm:$0xff]  ;;  %v2760_v61 = vld [vmem:[#allocation5 + $0x24] sm:$0xff] }
 0x252   :  { %v1284_v44 = vmul.f32 %v6766_v31, %v6765_v7  ;;  %v1278_v33 = vadd.f32 %v1276_v6, %v1270_v40  ;;  %v1309_v55 = vadd.f32 %v1307_v45, %v1301_v43  ;;  %v2730_v5 = vmul.f32 %v2729_v28, %v2727_v35  ;;  %v2759_v45 = vld [vmem:[#allocation5 + $0x1c] sm:$0xff]  ;;  %v6787_v31 = vld [vmem:[#allocation224_spill] sm:$0xff] }
 0x253   :  { %v2731_v21 = vmul.f32 %v2729_v28, %v2728_v62  ;;  %v2724_v26 = vadd.f32 %v2722_v34, %v2716_v18  ;;  %v2725_v49 = vadd.f32 %v2723_v11, %v2717_v63  ;;  %v6770_v24 = vmov %v6757_v20  ;;  %v2743_v20 = vld [vmem:[#allocation5 + $0x13b] sm:$0xff] }
 0x254   :  { %v1292_v38 = vmul.f32 %v6770_v24, %v6769_v52  ;;  %v1286_v30 = vadd.f32 %v1284_v44, %v1278_v33  ;;  %v1317_v42 = vadd.f32 %v1315_v32, %v1309_v55  ;;  %v2745_v14 = vstv %s5532_s16  ;;  %v6785_v11 = vld [vmem:[#allocation39_spill] sm:$0xff]  ;;  %v2768_v25 = vld [vmem:[#allocation5 + $0x3c] sm:$0xff]  ;;  %v6793_v52 = vld [vmem:[#allocation82_spill] sm:$0xff]  ;;  %s6860_s16 = sld [smem:[#allocation121_spill]] }
 0x255   :  { %v2732_v4 = vadd.f32 %v2730_v5, %v2724_v26  ;;  %v2738_v13 = vmul.f32 %v2737_v53, %v2735_v41  ;;  %v2733_v9 = vadd.f32 %v2731_v21, %v2725_v49  ;;  %v2739_v59 = vmul.f32 %v2737_v53, %v2736_v48  ;;  %v2767_v55 = vld [vmem:[#allocation5 + $0x34] sm:$0xff]  ;;  %v6792_v21 = vld [vmem:[#allocation163_spill] sm:$0xff] }
 0x256   :  { %v6773_v28 = vstv %s6768_s29  ;;  %v6775_v15 = vmov %v6759_v22  ;;  %v1294_v22 = vadd.f32 %v1292_v38, %v1286_v30  ;;  %v1325_v3 = vadd.f32 %v6776_v47, %v1317_v42  ;;  %v2775_v42 = vld [vmem:[#allocation5 + $0x4c] sm:$0xff] }
 0x257   :  { %v1331_v27 = vmul.f32 %v6773_v28, %v6772_v57  ;;  %v1300_v16 = vmul.f32 %v6775_v15, %v6774_v0  ;;  %v2746_v8 = vmul.f32 %v2745_v14, %v2743_v20  ;;  %v2747_v2 = vmul.f32 %v2745_v14, %v2744_v17  ;;  %v2776_v14 = vld [vmem:[#allocation5 + $0x54] sm:$0xff]  ;;  %v6799_v28 = vld [vmem:[#allocation23_spill] sm:$0xff] }
 0x258   :  { %v2740_v23 = vadd.f32 %v2738_v13, %v2732_v4  ;;  %v2741_v1 = vadd.f32 %v2739_v59, %v2733_v9  ;;  %v6779_v53 = vstv %s6771_s2  ;;  %v6781_v39 = vmov %v6763_v29  ;;  %v6801_v0 = vld [vmem:[#allocation108_spill] sm:$0xff] }
 0x259   :  { %v1339_v12 = vmul.f32 %v6779_v53, %v6778_v60  ;;  %v1308_v6 = vmul.f32 %v6781_v39, %v6780_v37  ;;  %v1302_v36 = vadd.f32 %v1300_v16, %v1294_v22  ;;  %v1333_v29 = vadd.f32 %v1331_v27, %v1325_v3  ;;  %v6803_v22 = vld [vmem:[#allocation148_spill] sm:$0xff]  ;;  %v6807_v37 = vld [vmem:[#allocation31_spill] sm:$0xff] }
 0x25a   :  { %v1426_v40 = vstv %s5551_s15  ;;  %v2748_v43 = vadd.f32 %v2746_v8, %v2740_v23  ;;  %v6784_v35 = vstv %s6548_s7  ;;  %v2749_v34 = vadd.f32 %v2747_v2, %v2741_v1  ;;  %s6790_s7 = sld [smem:[#allocation94_spill]]  ;;  %v2784_v8 = vld [vmem:[#allocation5 + $0x6c] sm:$0xff]  ;;  %s6873_s15 = sld [smem:[#allocation141_spill]] }
 0x25b   :  { %v5581_v62 = vmul.f32 %v6784_v35, %v2808_v19  ;;  %v6786_v18 = vstv %s6777_s26  ;;  %v1310_v7 = vadd.f32 %v1308_v6, %v1302_v36  ;;  %v1316_v44 = vmul.f32 %v1314_v54, %v6787_v31  ;;  %v2783_v19 = vld [vmem:[#allocation5 + $0x64] sm:$0xff]  ;;  %v6809_v36 = vld [vmem:[#allocation136_spill] sm:$0xff]  ;;  %v2791_v35 = vld [vmem:[#allocation5 + $0x7c] sm:$0xff] }
 0x25c   :  { %v1347_v63 = vmul.f32 %v6786_v18, %v6785_v11  ;;  %v1341_v33 = vadd.f32 %v1339_v12, %v1333_v29  ;;  %v6789_v32 = vstv %s6782_s5  ;;  %v2756_v26 = vadd.f32 %v6792_v21, %v2748_v43  ;;  %s6882_s5 = sld [smem:[#allocation160_spill]] }
 0x25d   :  { %v2762_v41 = vmul.f32 %v6789_v32, %v2759_v45  ;;  %v6791_v48 = vmov %v6789_v32  ;;  %v2757_v49 = vadd.f32 %v5194_v46, %v2749_v34  ;;  %v6794_v24 = vstv %s6783_s14  ;;  %v2792_v34 = vld [vmem:[#allocation5 + $0x84] sm:$0xff] }
 0x25e   :  { %v2763_v5 = vmul.f32 %v6791_v48, %v2760_v61  ;;  %v1355_v38 = vmul.f32 %v6794_v24, %v6793_v52  ;;  %v1318_v54 = vadd.f32 %v1316_v44, %v1310_v7  ;;  %v1349_v30 = vadd.f32 %v1347_v63, %v1341_v33  ;;  %v6815_v33 = vld [vmem:[#allocation46_spill] sm:$0xff]  ;;  %v2799_v48 = vld [vmem:[#allocation5 + $0x94] sm:$0xff] }
 0x25f   :  { %v2825_v20 = vstv %s5562_s20  ;;  %v6796_v17 = vstv %s6788_s12  ;;  %v2764_v59 = vadd.f32 %v2762_v41, %v2756_v26  ;;  %v6800_v46 = vstv %s6768_s29  ;;  %s6861_s29 = sld [smem:[#allocation89_spill]]  ;;  %s5722_s20 = sld [smem:[#allocation6 + $0x55]] }
 0x260   :  { %v2770_v4 = vmul.f32 %v6796_v17, %v2767_v55  ;;  %v6797_v13 = vmov %v6796_v17  ;;  %v2765_v57 = vadd.f32 %v2763_v5, %v2757_v49  ;;  %v1332_v27 = vmul.f32 %v6800_v46, %v6799_v28  ;;  %v2800_v5 = vld [vmem:[#allocation5 + $0x9c] sm:$0xff]  ;;  %v6823_v17 = vld [vmem:[#allocation168_spill] sm:$0xff]  ;;  %s5751_s12 = sld [smem:[#allocation6 + $0x57]] }
 0x261   :  { %v2771_v9 = vmul.f32 %v6797_v13, %v2768_v25  ;;  %v6802_v15 = vstv %s6790_s7  ;;  %v1326_v47 = vadd.f32 %v6803_v22, %v1318_v54  ;;  %v1357_v3 = vadd.f32 %v1355_v38, %v1349_v30  ;;  %v6821_v30 = vld [vmem:[#allocation100_spill] sm:$0xff]  ;;  %v6829_v22 = vld [vmem:[#allocation115_spill] sm:$0xff] }
 0x262   :  { %v1363_v16 = vmul.f32 %v6802_v15, %v6801_v0  ;;  %v6805_v2 = vstv %s6795_s22  ;;  %v2772_v53 = vadd.f32 %v2770_v4, %v2764_v59  ;;  %v6808_v39 = vstv %s6771_s2  ;;  %v6825_v59 = vld [vmem:[#allocation173_spill] sm:$0xff]  ;;  %s6868_s2 = sld [smem:[#allocation95_spill]] }
 0x263   :  { %v2778_v23 = vmul.f32 %v6805_v2, %v2775_v42  ;;  %v6806_v1 = vmov %v6805_v2  ;;  %v2773_v12 = vadd.f32 %v2771_v9, %v2765_v57  ;;  %v1340_v6 = vmul.f32 %v6808_v39, %v6807_v37  ;;  %s6895_s22 = sld [smem:[#allocation181_spill]] }
 0x264   :  { %v2779_v60 = vmul.f32 %v6806_v1, %v2776_v14  ;;  %v6810_v29 = vstv %s6798_s19  ;;  %v1334_v61 = vadd.f32 %v1332_v27, %v1326_v47  ;;  %v1365_v43 = vadd.f32 %v1363_v16, %v1357_v3  ;;  %s6896_s19 = sld [smem:[#allocation158_spill]] }
 0x265   :  { %v1371_v45 = vmul.f32 %v6810_v29, %v6809_v36  ;;  %v6812_v11 = vstv %s6804_s13  ;;  %v2780_v31 = vadd.f32 %v2778_v23, %v2772_v53  ;;  %v6816_v55 = vstv %s6777_s26  ;;  %v2816_v53 = vld [vmem:[#allocation5 + $0xcc] sm:$0xff]  ;;  %v6834_v36 = vld [vmem:[#allocation156_spill] sm:$0xff]  ;;  %s6876_s26 = sld [smem:[#allocation113_spill]]  ;;  %s5767_s13 = sld [smem:[#allocation6 + $0x59]] }
 0x266   :  { %v2786_v18 = vmul.f32 %v6812_v11, %v2783_v19  ;;  %v6813_v63 = vmov %v6812_v11  ;;  %v2781_v44 = vadd.f32 %v2779_v60, %v2773_v12  ;;  %v1348_v25 = vmul.f32 %v6816_v55, %v6815_v33  ;;  %v6831_v19 = vld [vmem:[#allocation194_spill] sm:$0xff]  ;;  %v2815_v60 = vld [vmem:[#allocation5 + $0xc4] sm:$0xff]  ;;  %v6837_v55 = vld [vmem:[#allocation213_spill] sm:$0xff] }
 0x267   :  { %v2787_v7 = vmul.f32 %v6813_v63, %v2784_v8  ;;  %v1342_v32 = vadd.f32 %v1340_v6, %v1334_v61  ;;  %v1373_v41 = vadd.f32 %v1371_v45, %v1365_v43  ;;  %v2817_v21 = vstv %s5589_s24  ;;  %v6835_v61 = vld [vmem:[#allocation201_spill] sm:$0xff]  ;;  %v2824_v63 = vld [vmem:[#allocation5 + $0xe4] sm:$0xff]  ;;  %s6889_s24 = sld [smem:[#allocation53_spill]] }
 0x268   :  { %v6819_v26 = vstv %s6811_s27  ;;  %v2788_v38 = vadd.f32 %v2786_v18, %v2780_v31  ;;  %v6822_v42 = vstv %s6783_s14  ;;  %v6824_v4 = vstv %s6814_s25  ;;  %v2823_v18 = vld [vmem:[#allocation5 + $0xdc] sm:$0xff]  ;;  %s5749_s14 = sld [smem:[#allocation6 + $0x58]]  ;;  %s5798_s27 = sld [smem:[#allocation6 + $0x5a]] }
 0x269   :  { %v2794_v49 = vmul.f32 %v6819_v26, %v2791_v35  ;;  %v6820_v52 = vmov %v6819_v26  ;;  %v2789_v54 = vadd.f32 %v2787_v7, %v2781_v44  ;;  %v1356_v14 = vmul.f32 %v6822_v42, %v6821_v30  ;;  %v2832_v26 = vld [vmem:[#allocation5 + $0xfc] sm:$0xff] }
 0x26a   :  { %v2795_v24 = vmul.f32 %v6820_v52, %v2792_v34  ;;  %v1387_v13 = vmul.f32 %v6824_v4, %v6823_v17  ;;  %v1350_v9 = vadd.f32 %v1348_v25, %v1342_v32  ;;  %v1381_v57 = vadd.f32 %v6825_v59, %v1373_v41 }
 0x26b   :  { %v6826_v28 = vstv %s6817_s21  ;;  %v2796_v15 = vadd.f32 %v2794_v49, %v2788_v38  ;;  %v6830_v47 = vstv %s6790_s7  ;;  %v6832_v8 = vstv %s6818_s30  ;;  %s6892_s7 = sld [smem:[#allocation150_spill]]  ;;  %s5806_s21 = sld [smem:[#allocation6 + $0x2a]] }
 0x26c   :  { %v2802_v46 = vmul.f32 %v6826_v28, %v2799_v48  ;;  %v6828_v27 = vmov %v6826_v28  ;;  %v2797_v16 = vadd.f32 %v2795_v24, %v2789_v54  ;;  %v1364_v3 = vmul.f32 %v6830_v47, %v6829_v22  ;;  %v6839_v54 = vld [vmem:[#allocation185_spill] sm:$0xff]  ;;  %v6845_v22 = vld [vmem:[#allocation225_spill] sm:$0xff]  ;;  %s5819_s30 = sld [smem:[#allocation6 + $0x2b]] }
 0x26d   :  { %v2803_v0 = vmul.f32 %v6828_v27, %v2800_v5  ;;  %v1395_v2 = vmul.f32 %v6832_v8, %v6831_v19  ;;  %v1358_v23 = vadd.f32 %v1356_v14, %v1350_v9  ;;  %v1389_v1 = vadd.f32 %v1387_v13, %v1381_v57  ;;  %v2831_v5 = vld [vmem:[#allocation5 + $0xf4] sm:$0xff]  ;;  %v2839_v13 = vld [vmem:[#allocation5 + $0x10c] sm:$0xff] }
 0x26e   :  { %v2841_v12 = vstv %s5616_s23  ;;  %v2833_v37 = vstv %s5618_s11  ;;  %v2804_v39 = vadd.f32 %v2802_v46, %v2796_v15  ;;  %v1372_v45 = vmul.f32 %v6810_v29, %v6834_v36  ;;  %v6842_v14 = vld [vmem:[#allocation178_spill] sm:$0xff]  ;;  %v6843_v46 = vld [vmem:[#allocation195_spill] sm:$0xff]  ;;  %v2848_v19 = vld [vmem:[#allocation5 + $0x12c] sm:$0xff]  ;;  %s6905_s23 = sld [smem:[#allocation51_spill]]  ;;  %s6910_s11 = sld [smem:[#allocation203_spill]] }
 0x26f   :  { %v2805_v6 = vadd.f32 %v2803_v0, %v2797_v16  ;;  %v6836_v43 = vstv %s6827_s17  ;;  %v1366_v34 = vadd.f32 %v1364_v3, %v1358_v23  ;;  %v1397_v11 = vadd.f32 %v1395_v2, %v1389_v1  ;;  %v2840_v9 = vld [vmem:[#allocation5 + $0x114] sm:$0xff]  ;;  %v2847_v3 = vld [vmem:[#allocation5 + $0x124] sm:$0xff]  ;;  %v2855_v29 = vld [vmem:[#allocation5 + $0x13c] sm:$0xff]  ;;  %s5832_s17 = sld [smem:[#allocation6 + $0x2d]] }
 0x270   :  { %v1403_v35 = vmul.f32 %v6836_v43, %v6835_v61  ;;  %v2818_v7 = vmul.f32 %v2817_v21, %v2815_v60  ;;  %v2819_v31 = vmul.f32 %v2817_v21, %v2816_v53  ;;  %v2812_v44 = vadd.f32 %v5143_v50, %v2804_v39  ;;  %v6847_v60 = vld [vmem:[#allocation206_spill] sm:$0xff] }
 0x271   :  { %v2813_v33 = vadd.f32 %v5581_v62, %v2805_v6  ;;  %v6838_v25 = vstv %s6833_s6  ;;  %v1374_v41 = vadd.f32 %v1372_v45, %v1366_v34  ;;  %v2849_v49 = vstv %s5634_s10  ;;  %v6841_v62 = vld [vmem:[#allocation218_spill] sm:$0xff]  ;;  %v2856_v45 = vld [vmem:[#allocation5 + $0x144] sm:$0xff]  ;;  %s5827_s10 = sld [smem:[#allocation6 + $0x2c]]  ;;  %s5835_s6 = sld [smem:[#allocation6 + $0x2e]] }
 0x272   :  { %v1411_v32 = vmul.f32 %v6838_v25, %v6837_v55  ;;  %v1405_v48 = vadd.f32 %v1403_v35, %v1397_v11  ;;  %v2826_v52 = vmul.f32 %v2825_v20, %v2823_v18  ;;  %v2827_v24 = vmul.f32 %v2825_v20, %v2824_v63  ;;  %v6850_v11 = vld [vmem:[#allocation19_spill] sm:$0xff]  ;;  %v6852_v63 = vld [vmem:[#allocation214_spill] sm:$0xff] }
 0x273   :  { %v2820_v38 = vadd.f32 %v2818_v7, %v2812_v44  ;;  %v2821_v21 = vadd.f32 %v2819_v31, %v2813_v33  ;;  %v6840_v50 = vmov %v6824_v4  ;;  %v1419_v42 = vmul.f32 %v1418_v58, %v6841_v62  ;;  %v6855_v33 = vld [vmem:[#allocation139_spill] sm:$0xff] }
 0x274   :  { %v1388_v30 = vmul.f32 %v6840_v50, %v6839_v54  ;;  %v1382_v17 = vadd.f32 %v6842_v14, %v1374_v41  ;;  %v1413_v4 = vadd.f32 %v1411_v32, %v1405_v48  ;;  %v2834_v59 = vmul.f32 %v2833_v37, %v2831_v5  ;;  %v2871_v50 = vld [vmem:[#allocation5 + $0x1d] sm:$0xff] }
 0x275   :  { %v2835_v57 = vmul.f32 %v2833_v37, %v2832_v26  ;;  %v2828_v20 = vadd.f32 %v2826_v52, %v2820_v38  ;;  %v2829_v28 = vadd.f32 %v2827_v24, %v2821_v21  ;;  %v6844_v27 = vmov %v6832_v8  ;;  %v6857_v26 = vld [vmem:[#allocation32_spill] sm:$0xff] }
 0x276   :  { %v1396_v0 = vmul.f32 %v6844_v27, %v6843_v46  ;;  %v1390_v15 = vadd.f32 %v1388_v30, %v1382_v17  ;;  %v1421_v16 = vadd.f32 %v1419_v42, %v1413_v4  ;;  %v1427_v47 = vmul.f32 %v1426_v40, %v6845_v22  ;;  %v6859_v24 = vld [vmem:[#allocation221_spill] sm:$0xff]  ;;  %v2879_v46 = vld [vmem:[#allocation5 + $0x35] sm:$0xff]  ;;  %v2880_v27 = vld [vmem:[#allocation5 + $0x3d] sm:$0xff] }
 0x277   :  { %v2842_v8 = vmul.f32 %v2841_v12, %v2839_v13  ;;  %v2843_v2 = vmul.f32 %v2841_v12, %v2840_v9  ;;  %v2836_v23 = vadd.f32 %v2834_v59, %v2828_v20  ;;  %v2837_v1 = vadd.f32 %v2835_v57, %v2829_v28  ;;  %v2872_v30 = vld [vmem:[#allocation5 + $0x25] sm:$0xff]  ;;  %v6863_v13 = vld [vmem:[#allocation40_spill] sm:$0xff]  ;;  %v6865_v20 = vld [vmem:[#allocation226_spill] sm:$0xff] }
 0x278   :  { %v6848_v53 = vmov %v6836_v43  ;;  %v1398_v39 = vadd.f32 %v1396_v0, %v1390_v15  ;;  %v1429_v6 = vadd.f32 %v1427_v47, %v1421_v16  ;;  %v2857_v36 = vstv %s5665_s9  ;;  %v6870_v47 = vld [vmem:[#allocation164_spill] sm:$0xff]  ;;  %s5840_s9 = sld [smem:[#allocation6 + $0x2f]] }
 0x279   :  { %v1404_v37 = vmul.f32 %v6848_v53, %v6847_v60  ;;  %v2844_v61 = vadd.f32 %v2842_v8, %v2836_v23  ;;  %v2850_v43 = vmul.f32 %v2849_v49, %v2847_v3  ;;  %v2845_v35 = vadd.f32 %v2843_v2, %v2837_v1  ;;  %v6871_v8 = vld [vmem:[#allocation83_spill] sm:$0xff]  ;;  %v2888_v53 = vld [vmem:[#allocation5 + $0x55] sm:$0xff] }
 0x27a   :  { %v2851_v34 = vmul.f32 %v2849_v49, %v2848_v19  ;;  %v6851_v12 = vstv %s6846_s1  ;;  %v6853_v7 = vmov %v6838_v25  ;;  %v1437_v55 = vadd.f32 %v6855_v33, %v1429_v6  ;;  %v2920_v25 = vld [vmem:[#allocation5 + $0xb5] sm:$0xff]  ;;  %v2887_v60 = vld [vmem:[#allocation5 + $0x4d] sm:$0xff]  ;;  %s5847_s1 = sld [smem:[#allocation6 + $0x30]] }
 0x27b   :  { %v1443_v18 = vmul.f32 %v6851_v12, %v6850_v11  ;;  %v1412_v31 = vmul.f32 %v6853_v7, %v6852_v63  ;;  %v1406_v44 = vadd.f32 %v1404_v37, %v1398_v39  ;;  %v2858_v32 = vmul.f32 %v2857_v36, %v2855_v29 }
 0x27c   :  { %v2859_v41 = vmul.f32 %v2857_v36, %v2856_v45  ;;  %v2852_v48 = vadd.f32 %v2850_v43, %v2844_v61  ;;  %v2853_v5 = vadd.f32 %v2851_v34, %v2845_v35  ;;  %v6858_v49 = vstv %s6849_s28  ;;  %v6877_v43 = vld [vmem:[#allocation24_spill] sm:$0xff]  ;;  %v6879_v34 = vld [vmem:[#allocation109_spill] sm:$0xff]  ;;  %s5860_s28 = sld [smem:[#allocation6 + $0x5d]] }
 0x27d   :  { %v1451_v52 = vmul.f32 %v6858_v49, %v6857_v26  ;;  %v1420_v38 = vmul.f32 %v1418_v58, %v6859_v24  ;;  %v1414_v21 = vadd.f32 %v1412_v31, %v1406_v44  ;;  %v1445_v54 = vadd.f32 %v1443_v18, %v1437_v55  ;;  %v6881_v18 = vld [vmem:[#allocation149_spill] sm:$0xff]  ;;  %v2895_v31 = vld [vmem:[#allocation5 + $0x65] sm:$0xff] }
 0x27e   :  { %v1538_v62 = vstv %s5684_s18  ;;  %v2860_v42 = vadd.f32 %v2858_v32, %v2852_v48  ;;  %v6862_v14 = vstv %s6854_s3  ;;  %v2861_v4 = vadd.f32 %v2859_v41, %v2853_v5  ;;  %v2896_v44 = vld [vmem:[#allocation5 + $0x6d] sm:$0xff]  ;;  %s5858_s18 = sld [smem:[#allocation6 + $0x5c]]  ;;  %s5863_s3 = sld [smem:[#allocation6 + $0x5e]] }
 0x27f   :  { %v5714_v17 = vmul.f32 %v6862_v14, %v2920_v25  ;;  %v6864_v9 = vstv %s6856_s8  ;;  %v1422_v57 = vadd.f32 %v1420_v38, %v1414_v21  ;;  %v1428_v58 = vmul.f32 %v1426_v40, %v6865_v20  ;;  %v6885_v5 = vld [vmem:[#allocation33_spill] sm:$0xff] }
 0x280   :  { %v1459_v59 = vmul.f32 %v6864_v9, %v6863_v13  ;;  %v1453_v28 = vadd.f32 %v1451_v52, %v1445_v54  ;;  %v6867_v0 = vstv %s6860_s16  ;;  %v2868_v3 = vadd.f32 %v6870_v47, %v2860_v42  ;;  %v6887_v52 = vld [vmem:[#allocation137_spill] sm:$0xff]  ;;  %s5869_s16 = sld [smem:[#allocation6 + $0x60]] }
 0x281   :  { %v2874_v15 = vmul.f32 %v6867_v0, %v2871_v50  ;;  %v6869_v16 = vmov %v6867_v0  ;;  %v2869_v19 = vadd.f32 %v5221_v56, %v2861_v4  ;;  %v6872_v2 = vstv %s6861_s29  ;;  %v2903_v50 = vld [vmem:[#allocation5 + $0x7d] sm:$0xff] }
 0x282   :  { %v2875_v22 = vmul.f32 %v6869_v16, %v2872_v30  ;;  %v1467_v23 = vmul.f32 %v6872_v2, %v6871_v8  ;;  %v1430_v40 = vadd.f32 %v1428_v58, %v1422_v57  ;;  %v1461_v1 = vadd.f32 %v1459_v59, %v1453_v28  ;;  %v2904_v30 = vld [vmem:[#allocation5 + $0x85] sm:$0xff]  ;;  %v2912_v0 = vld [vmem:[#allocation5 + $0x9d] sm:$0xff]  ;;  %v6899_v2 = vld [vmem:[#allocation101_spill] sm:$0xff] }
 0x283   :  { %v2937_v37 = vstv %s5695_s0  ;;  %v6874_v39 = vstv %s6866_s4  ;;  %v2876_v45 = vadd.f32 %v2874_v15, %v2868_v3  ;;  %v6878_v56 = vmov %v6851_v12  ;;  %v6893_v57 = vld [vmem:[#allocation47_spill] sm:$0xff]  ;;  %s5853_s0 = sld [smem:[#allocation6 + $0x5b]]  ;;  %s3634_s4 = smov 16  }
 0x284   :  { %v2882_v6 = vmul.f32 %v6874_v39, %v2879_v46  ;;  %v6875_v36 = vmov %v6874_v39  ;;  %v2877_v61 = vadd.f32 %v2875_v22, %v2869_v19  ;;  %v1444_v35 = vmul.f32 %v6878_v56, %v6877_v43 }
 0x285   :  { %v2883_v29 = vmul.f32 %v6875_v36, %v2880_v27  ;;  %v6880_v11 = vstv %s6868_s2  ;;  %v1438_v63 = vadd.f32 %v6881_v18, %v1430_v40  ;;  %v1469_v7 = vadd.f32 %v1467_v23, %v1461_v1  ;;  %v2911_v27 = vld [vmem:[#allocation5 + $0x95] sm:$0xff]  ;;  %v6901_v1 = vld [vmem:[#allocation169_spill] sm:$0xff]  ;;  %s3636_s2 = smov 64  }
 0x286   :  { %v1475_v12 = vmul.f32 %v6880_v11, %v6879_v34  ;;  %v6883_v33 = vstv %s6873_s15  ;;  %v2884_v41 = vadd.f32 %v2882_v6, %v2876_v45  ;;  %v6886_v26 = vmov %v6858_v49  ;;  %v6903_v6 = vld [vmem:[#allocation174_spill] sm:$0xff]  ;;  %v6907_v34 = vld [vmem:[#allocation116_spill] sm:$0xff]  ;;  %v6908_v18 = vld [vmem:[#allocation196_spill] sm:$0xff]  ;;  %s3637_s15 = smov 48  }
 0x287   :  { %v2890_v55 = vmul.f32 %v6883_v33, %v2887_v60  ;;  %v6884_v25 = vmov %v6883_v33  ;;  %v2885_v48 = vadd.f32 %v2883_v29, %v2877_v61  ;;  %v1452_v49 = vmul.f32 %v6886_v26, %v6885_v5  ;;  %v2927_v33 = vld [vmem:[#allocation5 + $0xc5] sm:$0xff]  ;;  %v6911_v5 = vld [vmem:[#allocation157_spill] sm:$0xff] }
 0x288   :  { %v2891_v32 = vmul.f32 %v6884_v25, %v2888_v53  ;;  %v6888_v24 = vstv %s6876_s26  ;;  %v1446_v21 = vadd.f32 %v1444_v35, %v1438_v63  ;;  %v1477_v54 = vadd.f32 %v1475_v12, %v1469_v7  ;;  %s3638_s26 = smov 80  }
 0x289   :  { %v1483_v38 = vmul.f32 %v6888_v24, %v6887_v52  ;;  %v6890_v42 = vstv %s6882_s5  ;;  %v2892_v9 = vadd.f32 %v2890_v55, %v2884_v41  ;;  %v6894_v20 = vstv %s6856_s8  ;;  %v2928_v55 = vld [vmem:[#allocation5 + $0xcd] sm:$0xff]  ;;  %v6913_v52 = vld [vmem:[#allocation202_spill] sm:$0xff]  ;;  %s5866_s8 = sld [smem:[#allocation6 + $0x5f]]  ;;  %s3639_s5 = smov 96  }
 0x28a   :  { %v2898_v14 = vmul.f32 %v6890_v42, %v2895_v31  ;;  %v6891_v4 = vmov %v6890_v42  ;;  %v2893_v59 = vadd.f32 %v2891_v32, %v2885_v48  ;;  %v1460_v58 = vmul.f32 %v6894_v20, %v6893_v57 }
 0x28b   :  { %v2899_v13 = vmul.f32 %v6891_v4, %v2896_v44  ;;  %v1454_v28 = vadd.f32 %v1452_v49, %v1446_v21  ;;  %v1485_v46 = vadd.f32 %v1483_v38, %v1477_v54  ;;  %v2929_v15 = vstv %s5722_s20  ;;  %s3635_s20 = smov 32  }
 0x28c   :  { %v6897_v16 = vstv %s6889_s24  ;;  %v2900_v19 = vadd.f32 %v2898_v14, %v2892_v9  ;;  %v6900_v23 = vstv %s6861_s29  ;;  %v6902_v60 = vstv %s6892_s7  ;;  %v6916_v9 = vld [vmem:[#allocation215_spill] sm:$0xff]  ;;  %s5873_s29 = sld [smem:[#allocation6 + $0x61]] }
 0x28d   :  { %v2906_v22 = vmul.f32 %v6897_v16, %v2903_v50  ;;  %v6898_v47 = vmov %v6897_v16  ;;  %v2901_v8 = vadd.f32 %v2899_v13, %v2893_v59  ;;  %v1468_v40 = vmul.f32 %v6900_v23, %v6899_v2  ;;  %v2935_v50 = vld [vmem:[#allocation5 + $0xdd] sm:$0xff] }
 0x28e   :  { %v2907_v3 = vmul.f32 %v6898_v47, %v2904_v30  ;;  %v1499_v53 = vmul.f32 %v6902_v60, %v6901_v1  ;;  %v1462_v39 = vadd.f32 %v1460_v58, %v1454_v28  ;;  %v1493_v36 = vadd.f32 %v6903_v6, %v1485_v46  ;;  %v2936_v30 = vld [vmem:[#allocation5 + $0xe5] sm:$0xff]  ;;  %v2943_v28 = vld [vmem:[#allocation5 + $0xf5] sm:$0xff]  ;;  %v2944_v46 = vld [vmem:[#allocation5 + $0xfd] sm:$0xff] }
 0x28f   :  { %v6904_v29 = vstv %s6895_s22  ;;  %v2908_v56 = vadd.f32 %v2906_v22, %v2900_v19  ;;  %v1476_v12 = vmul.f32 %v6880_v11, %v6907_v34  ;;  %v6909_v63 = vstv %s6896_s19  ;;  %v6918_v22 = vld [vmem:[#allocation186_spill] sm:$0xff]  ;;  %v2952_v1 = vld [vmem:[#allocation5 + $0x115] sm:$0xff]  ;;  %v2960_v34 = vld [vmem:[#allocation5 + $0x12d] sm:$0xff] }
 0x290   :  { %v2914_v45 = vmul.f32 %v6904_v29, %v2911_v27  ;;  %v6906_v61 = vmov %v6904_v29  ;;  %v2909_v35 = vadd.f32 %v2907_v3, %v2901_v8  ;;  %v1507_v7 = vmul.f32 %v6909_v63, %v6908_v18  ;;  %v6920_v3 = vld [vmem:[#allocation219_spill] sm:$0xff]  ;;  %v6922_v6 = vld [vmem:[#allocation197_spill] sm:$0xff] }
 0x291   :  { %v2915_v43 = vmul.f32 %v6906_v61, %v2912_v0  ;;  %v1470_v31 = vadd.f32 %v1468_v40, %v1462_v39  ;;  %v1501_v44 = vadd.f32 %v1499_v53, %v1493_v36  ;;  %v2953_v25 = vstv %s5749_s14  ;;  %v6921_v8 = vld [vmem:[#allocation179_spill] sm:$0xff]  ;;  %v2951_v40 = vld [vmem:[#allocation5 + $0x10d] sm:$0xff]  ;;  %s3640_s14 = smov 112  }
 0x292   :  { %v2945_v32 = vstv %s5751_s12  ;;  %v2916_v41 = vadd.f32 %v2914_v45, %v2908_v56  ;;  %v6912_v26 = vmov %v6888_v24  ;;  %v6914_v24 = vstv %s6905_s23  ;;  %s3641_s12 = smov [#allocation11]  }
 0x293   :  { %v2917_v48 = vadd.f32 %v2915_v43, %v2909_v35  ;;  %v1484_v49 = vmul.f32 %v6912_v26, %v6911_v5  ;;  %v1515_v38 = vmul.f32 %v6914_v24, %v6913_v52  ;;  %v1478_v21 = vadd.f32 %v1476_v12, %v1470_v31  ;;  %v6924_v43 = vld [vmem:[#allocation227_spill] sm:$0xff]  ;;  %v2959_v35 = vld [vmem:[#allocation5 + $0x125] sm:$0xff]  ;;  %s3262_s24 = sshll.u32 %s3641_s12, 4  ;;  %s3263_s24 = int_to_ptr.vmem [resolvable:$true] %s3262_s24 }
 0x294   :  { %v1509_v54 = vadd.f32 %v1507_v7, %v1501_v44  ;;  %v2930_v42 = vmul.f32 %v2929_v15, %v2927_v33  ;;  %v2931_v14 = vmul.f32 %v2929_v15, %v2928_v55  ;;  %v2924_v4 = vadd.f32 %v5159_v51, %v2916_v41  ;;  %v6925_v7 = vld [vmem:[#allocation207_spill] sm:$0xff]  ;;  %v6927_v52 = vld [vmem:[#allocation216_spill] sm:$0xff]  ;;  %s3585_s7 = scalar_lea.vmem %s3263_s24, 64  ;;  %p3590_p12 = scmp.lt.s32.totalorder %s3263_s24, %s3263_s24 }
 0x295   :  { %v2925_v13 = vadd.f32 %v5714_v17, %v2917_v48  ;;  %v6917_v59 = vstv %s6910_s11  ;;  %v1486_v20 = vadd.f32 %v1484_v49, %v1478_v21  ;;  %v2961_v27 = vstv %s5767_s13  ;;  %v2967_v41 = vld [vmem:[#allocation5 + $0x13d] sm:$0xff]  ;;  %v2968_v48 = vld [vmem:[#allocation5 + $0x145] sm:$0xff]  ;;  %p3586_p11 = scmp.ne.s32.totalorder %s3263_s24, %s3585_s7  ;;  %p3591_p13 = scmp.lt.s32.totalorder %s3585_s7, %s3585_s7 }
 0x296   :  { %v1523_v57 = vmul.f32 %v6917_v59, %v6916_v9  ;;  %v1517_v58 = vadd.f32 %v1515_v38, %v1509_v54  ;;  %v2938_v0 = vmul.f32 %v2937_v37, %v2935_v50  ;;  %v2939_v16 = vmul.f32 %v2937_v37, %v2936_v30  ;;  %v2975_v50 = vld [vmem:[#allocation5 + $0x6] sm:$0xff]  ;;  %v2976_v30 = vld [vmem:[#allocation5 + $0xe] sm:$0xff] }
 0x297   :  { %v2932_v15 = vadd.f32 %v2930_v42, %v2924_v4  ;;  %v2933_v51 = vadd.f32 %v2931_v14, %v2925_v13  ;;  %v6919_v17 = vmov %v6902_v60  ;;  %v1531_v19 = vmul.f32 %v1530_v10, %v6920_v3  ;;  %v2991_v3 = vld [vmem:[#allocation5 + $0x36] sm:$0xff]  ;;  %p3592_p0 = por %p3591_p13, %p3590_p12 }
 0x298   :  { %v1500_v47 = vmul.f32 %v6919_v17, %v6918_v22  ;;  %v1494_v2 = vadd.f32 %v6921_v8, %v1486_v20  ;;  %v1525_v23 = vadd.f32 %v1523_v57, %v1517_v58  ;;  %v2946_v60 = vmul.f32 %v2945_v32, %v2943_v28  ;;  %v2983_v58 = vld [vmem:[#allocation5 + $0x1e] sm:$0xff] }
 0x299   :  { %v2947_v53 = vmul.f32 %v2945_v32, %v2944_v46  ;;  %v2940_v37 = vadd.f32 %v2938_v0, %v2932_v15  ;;  %v2941_v39 = vadd.f32 %v2939_v16, %v2933_v51  ;;  %v6923_v36 = vmov %v6909_v63  ;;  %v2984_v46 = vld [vmem:[#allocation5 + $0x26] sm:$0xff]  ;;  %p3593_p1 = pnand %p3592_p0, %p3586_p11 }
 0x29a   :  { %v1508_v29 = vmul.f32 %v6923_v36, %v6922_v6  ;;  %v1502_v45 = vadd.f32 %v1500_v47, %v1494_v2  ;;  %v1533_v61 = vadd.f32 %v1531_v19, %v1525_v23  ;;  %v1539_v56 = vmul.f32 %v1538_v62, %v6924_v43  ;;  %v6930_v22 = vld [vmem:[#allocation228_spill] sm:$0xff] }
 0x29b   :  { %v2954_v11 = vmul.f32 %v2953_v25, %v2951_v40  ;;  %v2955_v12 = vmul.f32 %v2953_v25, %v2952_v1  ;;  %v2948_v18 = vadd.f32 %v2946_v60, %v2940_v37  ;;  %v2949_v63 = vadd.f32 %v2947_v53, %v2941_v39  ;;  %v2999_v1 = vld [vmem:[#allocation5 + $0x4e] sm:$0xff]  ;;  %v3000_v53 = vld [vmem:[#allocation5 + $0x56] sm:$0xff] }
 0x29c   :  { %v6926_v31 = vmov %v6914_v24  ;;  %v1510_v33 = vadd.f32 %v1508_v29, %v1502_v45  ;;  %v1541_v55 = vadd.f32 %v1539_v56, %v1533_v61  ;;  %v2969_v32 = vstv %s5798_s27  ;;  %v3007_v45 = vld [vmem:[#allocation5 + $0x66] sm:$0xff]  ;;  %v3008_v61 = vld [vmem:[#allocation5 + $0x6e] sm:$0xff] }
 0x29d   :  { %v1516_v44 = vmul.f32 %v6926_v31, %v6925_v7  ;;  %v2956_v5 = vadd.f32 %v2954_v11, %v2948_v18  ;;  %v2962_v26 = vmul.f32 %v2961_v27, %v2959_v35  ;;  %v2957_v49 = vadd.f32 %v2955_v12, %v2949_v63  ;;  %v3016_v63 = vld [vmem:[#allocation5 + $0x86] sm:$0xff] }
 0x29e   :  { %v2963_v25 = vmul.f32 %v2961_v27, %v2960_v34  ;;  %v6928_v24 = vmov %v6917_v59  ;;  %v3388_v54 = vmul.f32 -1.442695, %v1541_v55  ;;  %v2977_v42 = vstv %s5806_s21  ;;  %v6929_v59 = vld [vmem:[#allocation222_spill] sm:$0xff]  ;;  %v3015_v34 = vld [vmem:[#allocation5 + $0x7e] sm:$0xff] }
 0x29f   :  { %v1524_v38 = vmul.f32 %v6928_v24, %v6927_v52  ;;  %v1518_v21 = vadd.f32 %v1516_v44, %v1510_v33  ;;  %v2970_v14 = vmul.f32 %v2969_v32, %v2967_v41  ;;  %v2971_v4 = vmul.f32 %v2969_v32, %v2968_v48  ;;  %v3023_v44 = vld [vmem:[#allocation5 + $0x96] sm:$0xff]  ;;  %v3024_v41 = vld [vmem:[#allocation5 + $0x9e] sm:$0xff]  ;;  %v3031_v52 = vld [vmem:[#allocation5 + $0xae] sm:$0xff] }
 0x2a0   :  { %v2964_v13 = vadd.f32 %v2962_v26, %v2956_v5  ;;  %v2965_v9 = vadd.f32 %v2963_v25, %v2957_v49  ;;  %v1532_v57 = vmul.f32 %v1530_v10, %v6929_v59  ;;  %3537 = vpow2.f32 %v3388_v54  ;;  %v2992_v10 = vld [vmem:[#allocation5 + $0x3e] sm:$0xff] }
 0x2a1   :  { %v1526_v20 = vadd.f32 %v1524_v38, %v1518_v21  ;;  %v2985_v28 = vstv %s5819_s30  ;;  %v2978_v0 = vmul.f32 %v2977_v42, %v2975_v50  ;;  %v2979_v16 = vmul.f32 %v2977_v42, %v2976_v30  ;;  %v3032_v50 = vld [vmem:[#allocation5 + $0xb6] sm:$0xff] }
 0x2a2   :  { %v2972_v27 = vadd.f32 %v2970_v14, %v2964_v13  ;;  %v2973_v15 = vadd.f32 %v2971_v4, %v2965_v9  ;;  %v1540_v17 = vmul.f32 %v1538_v62, %v6930_v22  ;;  %v2993_v47 = vstv %s5827_s10  ;;  %v3040_v4 = vld [vmem:[#allocation5 + $0xce] sm:$0xff]  ;;  %v3039_v9 = vld [vmem:[#allocation5 + $0xc6] sm:$0xff]  ;;  %v3055_v22 = vld [vmem:[#allocation5 + $0xf6] sm:$0xff] }
 0x2a3   :  { %v1534_v51 = vadd.f32 %v1532_v57, %v1526_v20  ;;  %v2986_v19 = vmul.f32 %v2985_v28, %v2983_v58  ;;  %v2987_v8 = vmul.f32 %v2985_v28, %v2984_v46  ;;  %v3001_v60 = vstv %s5832_s17  ;;  %v3047_v20 = vld [vmem:[#allocation5 + $0xde] sm:$0xff] }
 0x2a4   :  { %v2980_v2 = vadd.f32 %v2978_v0, %v2972_v27  ;;  %v2981_v23 = vadd.f32 %v2979_v16, %v2973_v15  ;;  %v2994_v37 = vmul.f32 %v2993_v47, %v2991_v3  ;;  %v2995_v39 = vmul.f32 %v2993_v47, %v2992_v10  ;;  %v3048_v16 = vld [vmem:[#allocation5 + $0xe6] sm:$0xff]  ;;  %v3056_v3 = vld [vmem:[#allocation5 + $0xfe] sm:$0xff] }
 0x2a5   :  { %v1542_v40 = vadd.f32 %v1540_v17, %v1534_v51  ;;  %v3009_v29 = vstv %s5835_s6  ;;  %v3017_v43 = vstv %s5840_s9  ;;  %v3002_v56 = vmul.f32 %v3001_v60, %v2999_v1  ;;  %v6931_v1 = vld [vmem:[#allocation15_spill] sm:$0xff] }
 0x2a6   :  { %v2988_v6 = vadd.f32 %v2986_v19, %v2980_v2  ;;  %v2989_v62 = vadd.f32 %v2987_v8, %v2981_v23  ;;  %v3003_v35 = vmul.f32 %v3001_v60, %v3000_v53  ;;  %v3025_v18 = vstv %s5847_s1 }
 0x2a7   :  { %v3389_v36 = vmul.f32 -1.442695, %v1542_v40  ;;  %v3010_v7 = vmul.f32 %v3009_v29, %v3007_v45  ;;  %v3011_v31 = vmul.f32 %v3009_v29, %v3008_v61  ;;  %v3018_v48 = vmul.f32 %v3017_v43, %v3015_v34 }
 0x2a8   :  { %v2996_v11 = vadd.f32 %v2994_v37, %v2988_v6  ;;  %v2997_v12 = vadd.f32 %v2995_v39, %v2989_v62  ;;  %v3033_v5 = vstv %s5853_s0  ;;  %v3019_v26 = vmul.f32 %v3017_v43, %v3016_v63  ;;  %v3063_v37 = vld [vmem:[#allocation5 + $0x10e] sm:$0xff]  ;;  %v3064_v62 = vld [vmem:[#allocation5 + $0x116] sm:$0xff]  ;;  %v3071_v43 = vld [vmem:[#allocation5 + $0x126] sm:$0xff] }
 0x2a9   :  { %3539 = vpow2.f32 %v3389_v36  ;;  %v3633_v38 = vmov 1966171168   ;;  %v3026_v54 = vmul.f32 %v3025_v18, %v3023_v44  ;;  %v3027_v30 = vmul.f32 %v3025_v18, %v3024_v41  ;;  %v3079_v44 = vld [vmem:[#allocation5 + $0x13e] sm:$0xff] }
 0x2aa   :  { %v3004_v33 = vadd.f32 %v3002_v56, %v2996_v11  ;;  %v3005_v55 = vadd.f32 %v3003_v35, %v2997_v12  ;;  %v3538_v32 = vpop.eup %3537  ;;  %v1562_v21 = vunpack.c.l.s4 %v3633_v38  ;;  %v3034_v13 = vmul.f32 %v3033_v5, %v3031_v52  ;;  %v3072_v35 = vld [vmem:[#allocation5 + $0x12e] sm:$0xff] }
 0x2ab   :  { %v1549_v49 = vadd.f32 1.0, %v3538_v32  ;;  %v3041_v59 = vstv %s5858_s18  ;;  %v3049_v58 = vstv %s5860_s28  ;;  %v3035_v46 = vmul.f32 %v3033_v5, %v3032_v50 }
 0x2ac   :  { %v3012_v25 = vadd.f32 %v3010_v7, %v3004_v33  ;;  %v3013_v24 = vadd.f32 %v3011_v31, %v3005_v55  ;;  %v1563_v27 = vunpack.c.0.s8 %v1562_v21  ;;  %v3057_v0 = vstv %s5863_s3  ;;  %v3080_v55 = vld [vmem:[#allocation5 + $0x146] sm:$0xff] }
 0x2ad   :  { %3541 = vrcp.f32 %v1549_v49  ;;  %v3042_v51 = vmul.f32 %v3041_v59, %v3039_v9  ;;  %v3043_v47 = vmul.f32 %v3041_v59, %v3040_v4  ;;  %v3050_v19 = vmul.f32 %v3049_v58, %v3047_v20 }
 0x2ae   :  { %v3020_v42 = vadd.f32 %v3018_v48, %v3012_v25  ;;  %v3021_v14 = vadd.f32 %v3019_v26, %v3013_v24  ;;  %v3051_v40 = vmul.f32 %v3049_v58, %v3048_v16  ;;  %v5876_v60 = vsub.s32 %v1563_v27, %v6931_v1 }
 0x2af   :  { %v3058_v53 = vmul.f32 %v3057_v0, %v3055_v22  ;;  %v3065_v39 = vstv %s5866_s8  ;;  %v3059_v6 = vmul.f32 %v3057_v0, %v3056_v3  ;;  %v6932_v45 = vlaneseq }
 0x2b0   :  { %v3028_v57 = vadd.f32 %v3026_v54, %v3020_v42  ;;  %v3029_v28 = vadd.f32 %v3027_v30, %v3021_v14  ;;  %v3073_v56 = vstv %s5869_s16  ;;  %v3066_v12 = vmul.f32 %v3065_v39, %v3063_v37 }
 0x2b1   :  { %vm5880_vm10 = vcmp.lt.s32.totalorder %v6932_v45, 16  ;;  %v3067_v63 = vmul.f32 %v3065_v39, %v3064_v62  ;;  %v3081_v33 = vstv %s5873_s29  ;;  %v3074_v41 = vmul.f32 %v3073_v56, %v3071_v43 }
 0x2b2   :  { %v3036_v15 = vadd.f32 %v3034_v13, %v3028_v57  ;;  %v3037_v17 = vadd.f32 %v3035_v46, %v3029_v28  ;;  %v3075_v5 = vmul.f32 %v3073_v56, %v3072_v35  ;;  %v3082_v24 = vmul.f32 %v3081_v33, %v3079_v44 }
 0x2b3   :  { %v3540_v10 = vpop.eup %3539  ;;  %v3083_v21 = vmul.f32 %v3081_v33, %v3080_v55  ;;  %vm1586_vm11 = vcmp.ge.s32.totalorder %v6932_v45, 16  ;;  %vm1587_vm12 = vcmp.lt.s32.totalorder %v6932_v45, 32  ;;  %vm1594_vm14 = vcmp.ge.s32.totalorder %v6932_v45, 32 }
 0x2b4   :  { %v1550_v8 = vadd.f32 1.0, %v3540_v10  ;;  %v3044_v2 = vadd.f32 %v3042_v51, %v3036_v15  ;;  %v3045_v23 = vadd.f32 %v3043_v47, %v3037_v17  ;;  %vm5948_vm13 = vmand %vm1586_vm11, %vm1587_vm12  ;;  %vm1595_vm15 = vcmp.lt.s32.totalorder %v6932_v45, 48 }
 0x2b5   :  { %vm5956_vm0 = vmand %vm1594_vm14, %vm1595_vm15  ;;  %vm1602_vm1 = vcmp.ge.s32.totalorder %v6932_v45, 48  ;;  %vm1603_vm2 = vcmp.lt.s32.totalorder %v6932_v45, 64  ;;  %vm1624_vm3 = vcmp.ge.s32.totalorder %v6932_v45, 64  ;;  %vm1625_vm4 = vcmp.lt.s32.totalorder %v6932_v45, 80 }
 0x2b6   :  { %3543 = vrcp.f32 %v1550_v8  ;;  %v3052_v36 = vadd.f32 %v3050_v19, %v3044_v2  ;;  %v3053_v29 = vadd.f32 %v3051_v40, %v3045_v23  ;;  %vm5968_vm5 = vmand %vm1602_vm1, %vm1603_vm2  ;;  %vm1639_vm7 = vcmp.ge.s32.totalorder %v6932_v45, 80 }
 0x2b7   :  { %v3542_v34 = vpop.eup %3541  ;;  %vm5972_vm6 = vmand %vm1624_vm3, %vm1625_vm4  ;;  %vm1640_vm8 = vcmp.lt.s32.totalorder %v6932_v45, 96  ;;  %vm1648_vm11 = vcmp.lt.s32.totalorder %v6932_v45, 112  ;;  %vm1655_vm14 = vcmp.ge.s32.totalorder %v6932_v45, 112  ;;  %vm1656_vm15 = vcmp.lt.s32.totalorder %v6932_v45, 128 }
 0x2b8   :  { %v3060_v11 = vadd.f32 %v3058_v53, %v3052_v36  ;;  %v3061_v18 = vadd.f32 %v3059_v6, %v3053_v29  ;;  %v1567_v7 = vrot.slane %v3542_v34, %v5876_v60  ;;  %v1606_v31 = vcombine.high %v3542_v34, %v3542_v34  ;;  %1559 = vst.msk [vmem:[#allocation11] sm:$0x1] %vm5880_vm10, %v3542_v34  ;;  %vm5984_vm9 = vmand %vm1639_vm7, %vm1640_vm8 }
 0x2b9   :  { %vm6004_vm1 = vmand %vm1655_vm14, %vm1656_vm15 }
 0x2ba   :  { %v3068_v32 = vadd.f32 %v3066_v12, %v3060_v11  ;;  %v3069_v48 = vadd.f32 %v3067_v63, %v3061_v18  ;;  %v1568_v26 = vcombine.high %v1567_v7, %v1567_v7  ;;  %v1575_v49 = vrot.slane %v1567_v7, %v5876_v60 }
 0x2bb   :  { %v1613_v25 = vrot.slane %v1606_v31, %v5876_v60 }
 0x2bc   :  { %v3076_v52 = vadd.f32 %v3074_v41, %v3068_v32  ;;  %v3077_v38 = vadd.f32 %v3075_v5, %v3069_v48  ;;  %v1582_v54 = vrot.slane %v1568_v26, %v5876_v60  ;;  %v1590_v57 = vcombine.high %v1575_v49, %v1575_v49 }
 0x2bd   :  { %v1620_v50 = vrot.slane %v1613_v25, %v5876_v60  ;;  %v1628_v30 = vcombine.high %v1613_v25, %v1613_v25 }
 0x2be   :  { %v3084_v42 = vadd.f32 %v3082_v24, %v3076_v52  ;;  %v3085_v14 = vadd.f32 %v3083_v21, %v3077_v38  ;;  %1583 = vrot.lane.b32.xlu0 %v1582_v54, %s3634_s4  ;;  %v1598_v22 = vcombine.high %v1582_v54, %v1582_v54 }
 0x2bf   :  { %v1635_v4 = vrot.slane %v1628_v30, %v5876_v60  ;;  %v1643_v8 = vcombine.high %v1620_v50, %v1620_v50 }
 0x2c0   :  { %v3544_v13 = vpop.eup %3543  ;;  %v3503_v9 = vmul.f32 -1.442695, %v3084_v42  ;;  %v3504_v59 = vmul.f32 -1.442695, %v3085_v14 }
 0x2c1   :  { %v1667_v20 = vrot.slane %v3544_v13, %v5876_v60  ;;  %v1697_v58 = vcombine.high %v3544_v13, %v3544_v13  ;;  %1659 = vst.msk [vmem:[#allocation11 + $0x1] sm:$0x1] %vm5880_vm10, %v3544_v13  ;;  %v1651_v23 = vcombine.high %v1635_v4, %v1635_v4 }
 0x2c2   :  { %3545 = vpow2.f32 %v3503_v9  ;;  %1591 = vrot.lane.b32.xlu0 %v1590_v57, %s3635_s20 }
 0x2c3   :  { %v1668_v28 = vcombine.high %v1667_v20, %v1667_v20  ;;  %v1675_v46 = vrot.slane %v1667_v20, %v5876_v60  ;;  %v1704_v27 = vrot.slane %v1697_v58, %v5876_v60  ;;  %3547 = vpow2.f32 %v3504_v59 }
 0x2c5   :  { %v1682_v0 = vrot.slane %v1668_v28, %v5876_v60  ;;  %v1711_v16 = vrot.slane %v1704_v27, %v5876_v60  ;;  %v1716_v15 = vcombine.high %v1704_v27, %v1704_v27  ;;  %v1687_v17 = vcombine.high %v1675_v46, %v1675_v46 }
 0x2c6   :  { %1621 = vrot.lane.b32.xlu0 %v1620_v50, %s3636_s2 }
 0x2c7   :  { %1683 = vrot.lane.b32.xlu1 %v1682_v0, %s3634_s4  ;;  %v1723_v51 = vrot.slane %v1716_v15, %v5876_v60  ;;  %v1692_v2 = vcombine.high %v1682_v0, %v1682_v0  ;;  %v1728_v1 = vcombine.high %v1711_v16, %v1711_v16 }
 0x2c9   :  { %v1733_v62 = vcombine.high %v1723_v51, %v1723_v51 }
 0x2ca   :  { %1599 = vrot.lane.b32.xlu0 %v1598_v22, %s3637_s15 }
 0x2cb   :  { %1688 = vrot.lane.b32.xlu1 %v1687_v17, %s3635_s20 }
 0x2cc   :  { %v3546_v47 = vpop.eup %3545 }
 0x2cd   :  { %v3548_v3 = vpop.eup %3547  ;;  %v3092_v10 = vadd.f32 1.0, %v3546_v47 }
 0x2ce   :  { %v3093_v19 = vadd.f32 1.0, %v3548_v3  ;;  %1636 = vrot.lane.b32.xlu0 %v1635_v4, %s3638_s26 }
 0x2cf   :  { %1712 = vrot.lane.b32.xlu1 %v1711_v16, %s3636_s2  ;;  %3549 = vrcp.f32 %v3092_v10 }
 0x2d0   :  { %3551 = vrcp.f32 %v3093_v19 }
 0x2d2   :  { %1644 = vrot.lane.b32.xlu0 %v1643_v8, %s3639_s5 }
 0x2d3   :  { %1693 = vrot.lane.b32.xlu1 %v1692_v2, %s3637_s15 }
 0x2d6   :  { %1652 = vrot.lane.b32.xlu0 %v1651_v23, %s3640_s14 }
 0x2d7   :  { %1724 = vrot.lane.b32.xlu1 %v1723_v51, %s3638_s26 }
 0x2d9   :  { %v3550_v40 = vpop.eup %3549 }
 0x2da   :  { %v3552_v53 = vpop.eup %3551  ;;  %v3107_v37 = vrot.slane %v3550_v40, %v5876_v60  ;;  %3099 = vst.msk [vmem:[#allocation11 + $0x2] sm:$0x1] %vm5880_vm10, %v3550_v40  ;;  %v3137_v56 = vcombine.high %v3550_v40, %v3550_v40 }
 0x2db   :  { %1729 = vrot.lane.b32.xlu1 %v1728_v1, %s3639_s5  ;;  %v3186_v39 = vrot.slane %v3552_v53, %v5876_v60  ;;  %3178 = vst.msk [vmem:[#allocation11 + $0x3] sm:$0x1] %vm5880_vm10, %v3552_v53  ;;  %v3216_v11 = vcombine.high %v3552_v53, %v3552_v53  ;;  %vm1647_vm10 = vcmp.ge.s32.totalorder %v6932_v45, 96 }
 0x2dc   :  { %v3108_v6 = vcombine.high %v3107_v37, %v3107_v37  ;;  %v3115_v43 = vrot.slane %v3107_v37, %v5876_v60  ;;  %v3144_v61 = vrot.slane %v3137_v56, %v5876_v60  ;;  %vm5992_vm12 = vmand %vm1647_vm10, %vm1648_vm11 }
 0x2dd   :  { %v3187_v36 = vcombine.high %v3186_v39, %v3186_v39  ;;  %v3194_v34 = vrot.slane %v3186_v39, %v5876_v60  ;;  %v3223_v63 = vrot.slane %v3216_v11, %v5876_v60 }
 0x2de   :  { %v3122_v29 = vrot.slane %v3108_v6, %v5876_v60  ;;  %v3127_v12 = vcombine.high %v3115_v43, %v3115_v43  ;;  %v3151_v7 = vrot.slane %v3144_v61, %v5876_v60  ;;  %v3156_v33 = vcombine.high %v3144_v61, %v3144_v61 }
 0x2df   :  { %1734 = vrot.lane.b32.xlu1 %v1733_v62, %s3640_s14  ;;  %v3201_v35 = vrot.slane %v3187_v36, %v5876_v60  ;;  %v3206_v18 = vcombine.high %v3194_v34, %v3194_v34  ;;  %v3230_v31 = vrot.slane %v3223_v63, %v5876_v60  ;;  %v3235_v32 = vcombine.high %v3223_v63, %v3223_v63 }
 0x2e0   :  { %3123 = vrot.lane.b32.xlu0 %v3122_v29, %s3634_s4  ;;  %v3132_v44 = vcombine.high %v3122_v29, %v3122_v29  ;;  %v3163_v41 = vrot.slane %v3156_v33, %v5876_v60  ;;  %v3168_v5 = vcombine.high %v3151_v7, %v3151_v7 }
 0x2e1   :  { %v3211_v55 = vcombine.high %v3201_v35, %v3201_v35  ;;  %v3242_v48 = vrot.slane %v3235_v32, %v5876_v60  ;;  %v3247_v26 = vcombine.high %v3230_v31, %v3230_v31 }
 0x2e2   :  { %v3173_v49 = vcombine.high %v3163_v41, %v3163_v41 }
 0x2e3   :  { %3202 = vrot.lane.b32.xlu1 %v3201_v35, %s3634_s4  ;;  %v3252_v25 = vcombine.high %v3242_v48, %v3242_v48 }
 0x2e4   :  { %3128 = vrot.lane.b32.xlu0 %v3127_v12, %s3635_s20 }
 0x2e7   :  { %3207 = vrot.lane.b32.xlu1 %v3206_v18, %s3635_s20 }
 0x2e8   :  { %3152 = vrot.lane.b32.xlu0 %v3151_v7, %s3636_s2 }
 0x2eb   :  { %3231 = vrot.lane.b32.xlu1 %v3230_v31, %s3636_s2 }
 0x2ec   :  { %3133 = vrot.lane.b32.xlu0 %v3132_v44, %s3637_s15 }
 0x2ef   :  { %3212 = vrot.lane.b32.xlu1 %v3211_v55, %s3637_s15 }
 0x2f0   :  { %3164 = vrot.lane.b32.xlu0 %v3163_v41, %s3638_s26 }
 0x2f3   :  { %3243 = vrot.lane.b32.xlu1 %v3242_v48, %s3638_s26 }
 0x2f4   :  { %3169 = vrot.lane.b32.xlu0 %v3168_v5, %s3639_s5 }
 0x2f7   :  { %3248 = vrot.lane.b32.xlu1 %v3247_v26, %s3639_s5 }
 0x2f8   :  { %3174 = vrot.lane.b32.xlu0 %v3173_v49, %s3640_s14 }
 0x2fb   :  { %3253 = vrot.lane.b32.xlu1 %v3252_v25, %s3640_s14 }
 0x330   :  { %v1584_v52 = vpop.permute.xlu0 %1583 }
 0x331   :  { %1589 = vst.msk [vmem:[#allocation11] sm:$0x1] %vm5948_vm13, %v1584_v52 }
 0x334   :  { %v1592_v38 = vpop.permute.xlu0 %1591 }
 0x335   :  { %1597 = vst.msk [vmem:[#allocation11] sm:$0x1] %vm5956_vm0, %v1592_v38 }
 0x338   :  { %v1622_v54 = vpop.permute.xlu0 %1621 }
 0x339   :  { %v1684_v21 = vpop.permute.xlu1 %1683 }
 0x33a   :  { %1686 = vst.msk [vmem:[#allocation11 + $0x1] sm:$0x1] %vm5948_vm13, %v1684_v21 }
 0x33c   :  { %v1600_v14 = vpop.permute.xlu0 %1599 }
 0x33d   :  { %v1689_v42 = vpop.permute.xlu1 %1688  ;;  %1605 = vst.msk [vmem:[#allocation11] sm:$0x1] %vm5968_vm5, %v1600_v14 }
 0x33e   :  { %1691 = vst.msk [vmem:[#allocation11 + $0x1] sm:$0x1] %vm5956_vm0, %v1689_v42 }
 0x33f   :  { %1627 = vst.msk [vmem:[#allocation11] sm:$0x1] %vm5972_vm6, %v1622_v54 }
 0x340   :  { %v1637_v9 = vpop.permute.xlu0 %1636 }
 0x341   :  { %v1713_v13 = vpop.permute.xlu1 %1712  ;;  %1642 = vst.msk [vmem:[#allocation11] sm:$0x1] %vm5984_vm9, %v1637_v9 }
 0x344   :  { %v1645_v20 = vpop.permute.xlu0 %1644 }
 0x345   :  { %v1694_v57 = vpop.permute.xlu1 %1693  ;;  %1650 = vst.msk [vmem:[#allocation11] sm:$0x1] %vm5992_vm12, %v1645_v20 }
 0x346   :  { %1696 = vst.msk [vmem:[#allocation11 + $0x1] sm:$0x1] %vm5968_vm5, %v1694_v57 }
 0x347   :  { %1715 = vst.msk [vmem:[#allocation11 + $0x1] sm:$0x1] %vm5972_vm6, %v1713_v13 }
 0x348   :  { %v1653_v46 = vpop.permute.xlu0 %1652 }
 0x349   :  { %v1725_v28 = vpop.permute.xlu1 %1724  ;;  %1658 = vst.msk [vmem:[#allocation11] sm:$0x1] %vm6004_vm1, %v1653_v46 }
 0x34a   :  { %1727 = vst.msk [vmem:[#allocation11 + $0x1] sm:$0x1] %vm5984_vm9, %v1725_v28 }
 0x34d   :  { %v1730_v45 = vpop.permute.xlu1 %1729 }
 0x34e   :  { %1732 = vst.msk [vmem:[#allocation11 + $0x1] sm:$0x1] %vm5992_vm12, %v1730_v45 }
 0x351   :  { %v1735_v27 = vpop.permute.xlu1 %1734 }
 0x352   :  { %v3124_v0 = vpop.permute.xlu0 %3123  ;;  %1737 = vst.msk [vmem:[#allocation11 + $0x1] sm:$0x1] %vm6004_vm1, %v1735_v27 }
 0x353   :  { %3126 = vst.msk [vmem:[#allocation11 + $0x2] sm:$0x1] %vm5948_vm13, %v3124_v0 }
 0x355   :  { %v3203_v16 = vpop.permute.xlu1 %3202 }
 0x356   :  { %v3129_v15 = vpop.permute.xlu0 %3128  ;;  %3205 = vst.msk [vmem:[#allocation11 + $0x3] sm:$0x1] %vm5948_vm13, %v3203_v16 }
 0x357   :  { %3131 = vst.msk [vmem:[#allocation11 + $0x2] sm:$0x1] %vm5956_vm0, %v3129_v15 }
 0x359   :  { %v3208_v51 = vpop.permute.xlu1 %3207 }
 0x35a   :  { %v3153_v22 = vpop.permute.xlu0 %3152  ;;  %3210 = vst.msk [vmem:[#allocation11 + $0x3] sm:$0x1] %vm5956_vm0, %v3208_v51 }
 0x35d   :  { %v3232_v17 = vpop.permute.xlu1 %3231 }
 0x35e   :  { %v3134_v47 = vpop.permute.xlu0 %3133 }
 0x35f   :  { %3136 = vst.msk [vmem:[#allocation11 + $0x2] sm:$0x1] %vm5968_vm5, %v3134_v47 }
 0x360   :  { %3155 = vst.msk [vmem:[#allocation11 + $0x2] sm:$0x1] %vm5972_vm6, %v3153_v22 }
 0x361   :  { %v3213_v3 = vpop.permute.xlu1 %3212 }
 0x362   :  { %v3165_v10 = vpop.permute.xlu0 %3164  ;;  %3215 = vst.msk [vmem:[#allocation11 + $0x3] sm:$0x1] %vm5968_vm5, %v3213_v3 }
 0x363   :  { %3167 = vst.msk [vmem:[#allocation11 + $0x2] sm:$0x1] %vm5984_vm9, %v3165_v10 }
 0x364   :  { %3234 = vst.msk [vmem:[#allocation11 + $0x3] sm:$0x1] %vm5972_vm6, %v3232_v17 }
 0x365   :  { %v3244_v19 = vpop.permute.xlu1 %3243 }
 0x366   :  { %v3170_v8 = vpop.permute.xlu0 %3169  ;;  %3246 = vst.msk [vmem:[#allocation11 + $0x3] sm:$0x1] %vm5984_vm9, %v3244_v19 }
 0x367   :  { %3172 = vst.msk [vmem:[#allocation11 + $0x2] sm:$0x1] %vm5992_vm12, %v3170_v8 }
 0x369   :  { %v3249_v2 = vpop.permute.xlu1 %3248 }
 0x36a   :  { %v3175_v23 = vpop.permute.xlu0 %3174  ;;  %3251 = vst.msk [vmem:[#allocation11 + $0x3] sm:$0x1] %vm5992_vm12, %v3249_v2 }
 0x36b   :  { %3177 = vst.msk [vmem:[#allocation11 + $0x2] sm:$0x1] %vm6004_vm1, %v3175_v23 }
 0x36d   :  { %v3254_v40 = vpop.permute.xlu1 %3253 }
 0x36e   :  { %3256 = vst.msk [vmem:[#allocation11 + $0x3] sm:$0x1] %vm6004_vm1, %v3254_v40 }
 0x36f   :  { %3596 = shalt.err (!%p3593_p1)
}
 0x370   :  { %s6949_s13 = sld [smem:[#allocation229_spill]] }
 0x376   :  { %s3597_s23 = scalar_lea.hbm %s6949_s13, 64 }
 0x377   :  { %p3598_p2 = scmp.ne.s32.totalorder %s6949_s13, %s3597_s23  ;;  %p3601_p3 = scmp.lt.u32.totalorder %s3597_s23, %s6949_s13 }
 0x379   :  { %p3603_p4 = pnand %p3601_p3, %p3598_p2 }
 0x37b   :  { %3606 = shalt.err (!%p3603_p4)
}
 0x37c   :  { %s3642_s30 = smov 2  }
 0x37d   :  { %3268 = dma.vmem_to_hbm [thread:$0]  %s3263_s24, 64, %s6949_s13, [#allocation8], %s3635_s20, %s3635_s20, %s3642_s30  }
 0x37e   :  { %3611 = dma.done.wait [#allocation8], 64  }
 0x37f   :  { %3612 = vsyncadd [#allocation8], 4294967232 }
 0x380   :  { %3272 = vsyncpa [#allocation7], 1 }
 0x381   :  { %3273 = vsyncpa [#allocation8], 1 }
 0x382   :  { %3274 = vsyncpa [#allocation9], 1 }

</bundles_post_ra>
